<compile_context>
chip_gen: v5e
topology: v5e:2x2
jax: 0.10.0
libtpu: 0.0.40
codegen_flags: <defaults>
</compile_context>

<pallas_src>
import jax
import jax.numpy as jnp
from jax.experimental import pallas as pl
from jax.experimental.pallas import tpu as pltpu


# ----------------------------------------------------------------------------
# Fused kernel
# ----------------------------------------------------------------------------

def _enhanced_net_kernel(xcol_ref, w1_ref, s1_ref, b1_ref,
                         w2_ref, s2_ref, b2_ref,
                         fc1w_ref, fc1b_ref, fc2w_ref, fc2b_ref,
                         out_ref, pool1k, rowbuf1):
    tb = out_ref.shape[0]          # images per grid step (static)
    m32 = 32 * tb                  # merged (batch, conv1-col padded to 32) rows
    m16 = 16 * tb                  # merged (batch, pool1-col padded to 16) rows
    f32 = jnp.float32
    bf16 = jnp.bfloat16

    # ---- stage 1: conv1 (3->64 via wrapper im2col, K=32) + bn1 + relu + 2x2 pool.
    #      Pool rows are stored kw-packed (K=192) so stage 2 needs no shifted reads. ----
    w1 = w1_ref[...]               # (32, 64)  bf16
    s1 = s1_ref[...]               # (1, 64)   f32 (folded BN scale)
    b1 = b1_ref[...]               # (1, 64)   f32 (folded BN bias)

    # Zero once per step: the 8 slack rows past m32 are read by the kw-shifted
    # strided loads below (only feeding per-image padding rows, never the output).
    rowbuf1[...] = jnp.zeros_like(rowbuf1)

    @pl.loop(0, 15)
    def _(h2):
        hmax = None
        for dy in range(2):                      # the two conv rows feeding pool row h2
            oy = 2 * h2 + dy
            y = jnp.dot(xcol_ref[oy], w1, preferred_element_type=f32)   # (m32, 64)
            y = jnp.maximum(y * s1 + b1, 0.0)
            hmax = y if hmax is None else jnp.maximum(hmax, y)          # row-pair max
        rowbuf1[pl.ds(0, m32), :] = hmax
        # Column pool (stride-2 sublane reads) fused with kw-packing: piece kw holds
        # pooled column (ox + kw) for output column ox -> lanes [64*kw : 64*kw+64).
        pieces = []
        for kw in range(3):
            ev = rowbuf1[pl.ds(2 * kw, m16, stride=2), :]
            od = rowbuf1[pl.ds(2 * kw + 1, m16, stride=2), :]
            pieces.append(jnp.maximum(ev, od))
        pool1k[h2] = jnp.concatenate(pieces, axis=-1).astype(bf16)      # (m16, 192)

    # ---- stage 2: conv2 (64->128, kw-packed K=192) + bn2 + relu + 2x2 pool, fused with
    #      fc1 (36 accumulated (tb,128)x(128,256) matmuls; pool2 never materialized). ----
    s2 = s2_ref[...]               # (1, 128)
    b2 = b2_ref[...]
    fc1_acc = jnp.zeros((tb, 256), f32)
    for h2 in range(6):                          # fully unrolled (short trip count)
        hrow = None
        for dy in range(2):
            oy = 2 * h2 + dy
            acc = jnp.dot(pool1k[oy], w2_ref[0], preferred_element_type=f32)
            acc = acc + jnp.dot(pool1k[oy + 1], w2_ref[1], preferred_element_type=f32)
            acc = acc + jnp.dot(pool1k[oy + 2], w2_ref[2], preferred_element_type=f32)
            y = jnp.maximum(acc * s2 + b2, 0.0)                         # (m16, 128)
            hrow = y if hrow is None else jnp.maximum(hrow, y)
        hrow = hrow.reshape(tb, 16, 128)         # tile-aligned split of the merged dim
        for w in range(6):                       # column pool + fc1 accumulation
            pcol = jnp.maximum(hrow[:, 2 * w, :], hrow[:, 2 * w + 1, :])   # (tb, 128)
            fc1_acc = fc1_acc + jnp.dot(pcol.astype(bf16), fc1w_ref[6 * h2 + w],
                                        preferred_element_type=f32)

    # ---- fc1 bias + relu -> (dropout = identity in eval) -> fc2 (padded to 128 lanes) ----
    h1 = jnp.maximum(fc1_acc + fc1b_ref[...], 0.0)                      # (tb, 256)
    # TODO(synk): Dropout(0.3) is identity in eval mode; training-mode mask not reproduced.
    logits = jnp.dot(h1.astype(bf16), fc2w_ref[...],
                     preferred_element_type=f32) + fc2b_ref[...]        # (tb, 128)
    out_ref[...] = logits.reshape(tb, 1, 128)    # cols >= 10 are zero padding


# ----------------------------------------------------------------------------
# One-time parameter preparation (hoisted out of the forward path)
# ----------------------------------------------------------------------------

def fold_bn(conv_b, gamma, beta, mean, var, eps=1e-5):
    """BN(conv + conv_b) == conv * scale + bias  (eval mode, running stats)."""
    scale = gamma / jnp.sqrt(var + eps)
    bias = (conv_b - mean) * scale + beta
    return scale, bias


def prepare_params(p):
    bf16, f32 = jnp.bfloat16, jnp.float32

    s1, b1 = fold_bn(p["conv1_b"], p["bn1_gamma"], p["bn1_beta"], p["bn1_mean"], p["bn1_var"])
    s2, b2 = fold_bn(p["conv2_b"], p["bn2_gamma"], p["bn2_beta"], p["bn2_mean"], p["bn2_var"])

    # conv1: (Cout,Cin,KH,KW) -> (27,64) with row = kh*9 + kw*3 + cin, padded K 27->32.
    w1 = jnp.transpose(p["conv1_w"], (2, 3, 1, 0)).reshape(27, 64)
    w1 = jnp.pad(w1, ((0, 5), (0, 0))).astype(bf16)

    # conv2: kw-packed -> (3, 192, 128), row within kh block = kw*64 + cin.
    w2 = jnp.transpose(p["conv2_w"], (2, 3, 1, 0)).reshape(3, 192, 128).astype(bf16)

    # fc1: torch column order is c*36 + h*6 + w (NCHW flatten) -> (36, 128, 256) so the
    # kernel consumes pool2 per spatial tap (h*6+w) with channels in lanes.
    fc1 = p["fc1_w"].reshape(256, 128, 6, 6)                 # (o, c, h, w)
    fc1 = jnp.transpose(fc1, (2, 3, 1, 0)).reshape(36, 128, 256).astype(bf16)
    fc1_b = p["fc1_b"].reshape(1, 256).astype(f32)

    # fc2: (10,256) -> (256,10), zero-padded to 128 output lanes for a lane-dense store.
    fc2 = jnp.zeros((256, 128), f32).at[:, :10].set(p["fc2_w"].T).astype(bf16)
    fc2_b = jnp.zeros((1, 128), f32).at[0, :10].set(p["fc2_b"])

    return dict(
        w1=w1, s1=s1.reshape(1, 64).astype(f32), b1=b1.reshape(1, 64).astype(f32),
        w2=w2, s2=s2.reshape(1, 128).astype(f32), b2=b2.reshape(1, 128).astype(f32),
        fc1_w=fc1, fc1_b=fc1_b, fc2_w=fc2, fc2_b=fc2_b)


# ----------------------------------------------------------------------------
# Forward
# ----------------------------------------------------------------------------

def _im2col_conv1(x_nchw):
    """(N,3,32,32) -> (30, N*32, 32) bf16 im2col for the 3x3 conv1.

    K is padded 27->32 and the per-image output-column count 30->32 so the merged
    (batch, column) row dim is a multiple of 8 per image (tile-aligned pooling)."""
    n = x_nchw.shape[0]
    x = jnp.transpose(x_nchw, (0, 2, 3, 1)).astype(jnp.float32)          # (N,32,32,3)
    cols = [x[:, kh:kh + 30, kw:kw + 30, :] for kh in range(3) for kw in range(3)]
    xcol = jnp.concatenate(cols, axis=-1)                                # (N,30,30,27)
    xcol = jnp.pad(xcol, ((0, 0), (0, 0), (0, 2), (0, 5)))               # (N,30,32,32)
    xcol = jnp.transpose(xcol, (1, 0, 2, 3)).reshape(30, n * 32, 32)
    return xcol.astype(jnp.bfloat16)


def enhanced_net_forward(x_nchw, prep, tb=None):
    n = x_nchw.shape[0]
    if tb is None:
        tb = max(1, min(8, -(-n // 2)))        # keep >=2 grid steps (both v7x TCs), cap at 8
    g = -(-n // tb)
    n_pad = g * tb
    if n_pad != n:
        x_nchw = jnp.pad(x_nchw, ((0, n_pad - n), (0, 0), (0, 0), (0, 0)))
    xcol = _im2col_conv1(x_nchw)               # (30, n_pad*32, 32) bf16, lane-dense

    c2 = lambda i: (0, 0)
    c3 = lambda i: (0, 0, 0)

    out = pl.pallas_call(
        _enhanced_net_kernel,
        out_shape=jax.ShapeDtypeStruct((n_pad, 1, 128), jnp.float32),
        grid=(g,),
        in_specs=[
            pl.BlockSpec((30, tb * 32, 32), lambda i: (0, i, 0)),   # im2col'd input (TB imgs)
            pl.BlockSpec((32, 64), c2),                             # conv1 weight (K packed)
            pl.BlockSpec((1, 64), c2), pl.BlockSpec((1, 64), c2),   # bn1 scale / bias
            pl.BlockSpec((3, 192, 128), c3),                        # conv2 weight (kw-packed)
            pl.BlockSpec((1, 128), c2), pl.BlockSpec((1, 128), c2), # bn2 scale / bias
            pl.BlockSpec((36, 128, 256), c3),                       # fc1 weight (per tap)
            pl.BlockSpec((1, 256), c2),                             # fc1 bias
            pl.BlockSpec((256, 128), c2),                           # fc2 weight (padded)
            pl.BlockSpec((1, 128), c2),                             # fc2 bias (padded)
        ],
        out_specs=pl.BlockSpec((tb, 1, 128), lambda i: (i, 0, 0)),
        scratch_shapes=[
            pltpu.VMEM((15, tb * 16, 192), jnp.bfloat16),   # pool1 rows, kw-packed
            pltpu.VMEM((tb * 32 + 8, 64), jnp.float32),     # stage-1 pooling row buffer
        ],
        compiler_params=pltpu.CompilerParams(dimension_semantics=("parallel",)),
    )(xcol, prep["w1"], prep["s1"], prep["b1"],
      prep["w2"], prep["s2"], prep["b2"],
      prep["fc1_w"], prep["fc1_b"], prep["fc2_w"], prep["fc2_b"])

    return out[:n, 0, :10]


# ----------------------------------------------------------------------------
# Synthetic parameters (deterministic)
# ----------------------------------------------------------------------------

def init_params(key):
    ks = jax.random.split(key, 16)
    f32 = jnp.float32
    p = {}
    p["conv1_w"] = (0.05 * jax.random.normal(ks[0], (64, 3, 3, 3))).astype(f32)
    p["conv1_b"] = (0.05 * jax.random.normal(ks[1], (64,))).astype(f32)
    p["bn1_gamma"] = (1.0 + 0.05 * jax.random.normal(ks[2], (64,))).astype(f32)
    p["bn1_beta"] = (0.05 * jax.random.normal(ks[3], (64,))).astype(f32)
    p["bn1_mean"] = (0.05 * jax.random.normal(ks[4], (64,))).astype(f32)
    p["bn1_var"] = (1.0 + 0.05 * jnp.abs(jax.random.normal(ks[5], (64,)))).astype(f32)
    p["conv2_w"] = (0.02 * jax.random.normal(ks[6], (128, 64, 3, 3))).astype(f32)
    p["conv2_b"] = (0.02 * jax.random.normal(ks[7], (128,))).astype(f32)
    p["bn2_gamma"] = (1.0 + 0.05 * jax.random.normal(ks[8], (128,))).astype(f32)
    p["bn2_beta"] = (0.05 * jax.random.normal(ks[9], (128,))).astype(f32)
    p["bn2_mean"] = (0.05 * jax.random.normal(ks[10], (128,))).astype(f32)
    p["bn2_var"] = (1.0 + 0.05 * jnp.abs(jax.random.normal(ks[11], (128,)))).astype(f32)
    p["fc1_w"] = (0.01 * jax.random.normal(ks[12], (256, 128 * 6 * 6))).astype(f32)
    p["fc1_b"] = (0.01 * jax.random.normal(ks[13], (256,))).astype(f32)
    p["fc2_w"] = (0.05 * jax.random.normal(ks[14], (10, 256))).astype(f32)
    p["fc2_b"] = (0.05 * jax.random.normal(ks[15], (10,))).astype(f32)
    return p


if __name__ == "__main__":
    key = jax.random.PRNGKey(0)
    k_in, k_param = jax.random.split(key)
    # Batch 2, CIFAR-like 3x32x32 input (required so fc1 sees 128*6*6 features).
    x = jax.random.normal(k_in, (2, 3, 32, 32), dtype=jnp.float32)
    params = init_params(k_param)
    prep = prepare_params(params)          # one-time weight folding / re-layout

    fwd = jax.jit(enhanced_net_forward)
    out = jax.block_until_ready(fwd(x, prep))
    assert out.shape == (2, 10), out.shape
    assert bool(jnp.all(jnp.isfinite(out)))
    print("KERNEL_OK")
</pallas_src>

<mosaic_0001>
module attributes {stable_mosaic.version = 11 : i64} {
  func.func @_enhanced_net_kernel(%arg0: i32, %arg1: memref<30x32x32xbf16, #tpu.memory_space<vmem>>, %arg2: memref<32x64xbf16, #tpu.memory_space<vmem>>, %arg3: memref<1x64xf32, #tpu.memory_space<vmem>>, %arg4: memref<1x64xf32, #tpu.memory_space<vmem>>, %arg5: memref<3x192x128xbf16, #tpu.memory_space<vmem>>, %arg6: memref<1x128xf32, #tpu.memory_space<vmem>>, %arg7: memref<1x128xf32, #tpu.memory_space<vmem>>, %arg8: memref<36x128x256xbf16, #tpu.memory_space<vmem>>, %arg9: memref<1x256xf32, #tpu.memory_space<vmem>>, %arg10: memref<256x128xbf16, #tpu.memory_space<vmem>>, %arg11: memref<1x128xf32, #tpu.memory_space<vmem>>, %arg12: memref<1x1x128xf32, #tpu.memory_space<vmem>>, %arg13: memref<15x16x192xbf16, #tpu.memory_space<vmem>>, %arg14: memref<40x64xf32, #tpu.memory_space<vmem>>) attributes {dimension_semantics = [#tpu.dimension_semantics<parallel>], iteration_bounds = array<i64: 2>, scalar_prefetch = 0 : i64, scratch_operands = 2 : i64, tpu.core_type = #tpu.core_type<tc>, window_params = [{transform_indices = @transform_0, window_bounds = array<i64: 30, 32, 32>}, {pipeline_mode = #tpu.pipeline_mode<synchronous>, transform_indices = @transform_1, window_bounds = array<i64: 32, 64>}, {pipeline_mode = #tpu.pipeline_mode<synchronous>, transform_indices = @transform_2, window_bounds = array<i64: 1, 64>}, {pipeline_mode = #tpu.pipeline_mode<synchronous>, transform_indices = @transform_3, window_bounds = array<i64: 1, 64>}, {pipeline_mode = #tpu.pipeline_mode<synchronous>, transform_indices = @transform_4, window_bounds = array<i64: 3, 192, 128>}, {pipeline_mode = #tpu.pipeline_mode<synchronous>, transform_indices = @transform_5, window_bounds = array<i64: 1, 128>}, {pipeline_mode = #tpu.pipeline_mode<synchronous>, transform_indices = @transform_6, window_bounds = array<i64: 1, 128>}, {pipeline_mode = #tpu.pipeline_mode<synchronous>, transform_indices = @transform_7, window_bounds = array<i64: 36, 128, 256>}, {pipeline_mode = #tpu.pipeline_mode<synchronous>, transform_indices = @transform_8, window_bounds = array<i64: 1, 256>}, {pipeline_mode = #tpu.pipeline_mode<synchronous>, transform_indices = @transform_9, window_bounds = array<i64: 256, 128>}, {pipeline_mode = #tpu.pipeline_mode<synchronous>, transform_indices = @transform_10, window_bounds = array<i64: 1, 128>}, {transform_indices = @transform_11, window_bounds = array<i64: 1, 1, 128>}]} {
    %c0 = arith.constant 0 : index
    %c0_0 = arith.constant 0 : index
    %0 = vector.load %arg2[%c0, %c0_0] : memref<32x64xbf16, #tpu.memory_space<vmem>>, vector<32x64xbf16>
    %c0_1 = arith.constant 0 : index
    %c0_2 = arith.constant 0 : index
    %1 = vector.load %arg3[%c0_1, %c0_2] : memref<1x64xf32, #tpu.memory_space<vmem>>, vector<1x64xf32>
    %c0_3 = arith.constant 0 : index
    %c0_4 = arith.constant 0 : index
    %2 = vector.load %arg4[%c0_3, %c0_4] : memref<1x64xf32, #tpu.memory_space<vmem>>, vector<1x64xf32>
    %cst = arith.constant 0.000000e+00 : f32
    %3 = vector.broadcast %cst : f32 to vector<40x64xf32>
    %c0_5 = arith.constant 0 : index
    %c0_6 = arith.constant 0 : index
    %4 = vector.load %arg14[%c0_5, %c0_6] : memref<40x64xf32, #tpu.memory_space<vmem>>, vector<40x64xf32>
    tpu.vector_store %arg14[%c0_5, %c0_6], %3 {strides = array<i32>} : memref<40x64xf32, #tpu.memory_space<vmem>>, vector<40x64xf32>,
    %c0_i32 = arith.constant 0 : i32
    %c15_i32 = arith.constant 15 : i32
    %5 = arith.addi %c0_i32, %c15_i32 : i32
    %c1_i32 = arith.constant 1 : i32
    scf.for %arg15 = %c0_i32 to %5 step %c1_i32  : i32 {
      %c1_i32_397 = arith.constant 1 : i32
      %668 = arith.muli %arg15, %c1_i32_397 : i32
      %c0_i32_398 = arith.constant 0 : i32
      %669 = arith.addi %c0_i32_398, %668 : i32
      %c2_i32 = arith.constant 2 : i32
      %670 = arith.muli %c2_i32, %669 : i32
      %c0_i32_399 = arith.constant 0 : i32
      %671 = arith.addi %670, %c0_i32_399 : i32
      %672 = arith.index_cast %671 : i32 to index
      %c0_400 = arith.constant 0 : index
      %c0_401 = arith.constant 0 : index
      %673 = vector.load %arg1[%672, %c0_400, %c0_401] : memref<30x32x32xbf16, #tpu.memory_space<vmem>>, vector<1x32x32xbf16>
      %674 = vector.shape_cast %673 : vector<1x32x32xbf16> to vector<32x32xbf16>
      %cst_402 = arith.constant dense<0.000000e+00> : vector<32x64xf32>
      %675 = tpu.matmul %674, %0, %cst_402 {dimension_numbers = #tpu.dot_dimension_numbers<[1], [0], [0], [1], [0, 0, 1, 1], [], []>} : vector<32x32xbf16>, vector<32x64xbf16>, vector<32x64xf32> -> vector<32x64xf32>
      %676 = vector.broadcast %1 : vector<1x64xf32> to vector<32x64xf32>
      %677 = arith.mulf %675, %676 : vector<32x64xf32>
      %678 = vector.broadcast %2 : vector<1x64xf32> to vector<32x64xf32>
      %679 = arith.addf %677, %678 : vector<32x64xf32>
      %cst_403 = arith.constant 0.000000e+00 : f32
      %680 = vector.broadcast %cst_403 : f32 to vector<32x64xf32>
      %681 = arith.maximumf %679, %680 : vector<32x64xf32>
      %c2_i32_404 = arith.constant 2 : i32
      %682 = arith.muli %c2_i32_404, %669 : i32
      %c1_i32_405 = arith.constant 1 : i32
      %683 = arith.addi %682, %c1_i32_405 : i32
      %684 = arith.index_cast %683 : i32 to index
      %c0_406 = arith.constant 0 : index
      %c0_407 = arith.constant 0 : index
      %685 = vector.load %arg1[%684, %c0_406, %c0_407] : memref<30x32x32xbf16, #tpu.memory_space<vmem>>, vector<1x32x32xbf16>
      %686 = vector.shape_cast %685 : vector<1x32x32xbf16> to vector<32x32xbf16>
      %cst_408 = arith.constant dense<0.000000e+00> : vector<32x64xf32>
      %687 = tpu.matmul %686, %0, %cst_408 {dimension_numbers = #tpu.dot_dimension_numbers<[1], [0], [0], [1], [0, 0, 1, 1], [], []>} : vector<32x32xbf16>, vector<32x64xbf16>, vector<32x64xf32> -> vector<32x64xf32>
      %688 = vector.broadcast %1 : vector<1x64xf32> to vector<32x64xf32>
      %689 = arith.mulf %687, %688 : vector<32x64xf32>
      %690 = vector.broadcast %2 : vector<1x64xf32> to vector<32x64xf32>
      %691 = arith.addf %689, %690 : vector<32x64xf32>
      %cst_409 = arith.constant 0.000000e+00 : f32
      %692 = vector.broadcast %cst_409 : f32 to vector<32x64xf32>
      %693 = arith.maximumf %691, %692 : vector<32x64xf32>
      %694 = arith.maximumf %681, %693 : vector<32x64xf32>
      %c0_410 = arith.constant 0 : index
      %c0_411 = arith.constant 0 : index
      %695 = vector.load %arg14[%c0_410, %c0_411] : memref<40x64xf32, #tpu.memory_space<vmem>>, vector<32x64xf32>
      tpu.vector_store %arg14[%c0_410, %c0_411], %694 {strides = array<i32>} : memref<40x64xf32, #tpu.memory_space<vmem>>, vector<32x64xf32>,
      %c0_412 = arith.constant 0 : index
      %c0_413 = arith.constant 0 : index
      %696 = tpu.strided_load %arg14[%c0_412, %c0_413] {strides = array<i32: 2, 1>} : memref<40x64xf32, #tpu.memory_space<vmem>>, vector<16x64xf32>
      %c1_414 = arith.constant 1 : index
      %c0_415 = arith.constant 0 : index
      %697 = tpu.strided_load %arg14[%c1_414, %c0_415] {strides = array<i32: 2, 1>} : memref<40x64xf32, #tpu.memory_space<vmem>>, vector<16x64xf32>
      %698 = arith.maximumf %696, %697 : vector<16x64xf32>
      %c2_416 = arith.constant 2 : index
      %c0_417 = arith.constant 0 : index
      %699 = tpu.strided_load %arg14[%c2_416, %c0_417] {strides = array<i32: 2, 1>} : memref<40x64xf32, #tpu.memory_space<vmem>>, vector<16x64xf32>
      %c3_418 = arith.constant 3 : index
      %c0_419 = arith.constant 0 : index
      %700 = tpu.strided_load %arg14[%c3_418, %c0_419] {strides = array<i32: 2, 1>} : memref<40x64xf32, #tpu.memory_space<vmem>>, vector<16x64xf32>
      %701 = arith.maximumf %699, %700 : vector<16x64xf32>
      %c4_420 = arith.constant 4 : index
      %c0_421 = arith.constant 0 : index
      %702 = tpu.strided_load %arg14[%c4_420, %c0_421] {strides = array<i32: 2, 1>} : memref<40x64xf32, #tpu.memory_space<vmem>>, vector<16x64xf32>
      %c5_422 = arith.constant 5 : index
      %c0_423 = arith.constant 0 : index
      %703 = tpu.strided_load %arg14[%c5_422, %c0_423] {strides = array<i32: 2, 1>} : memref<40x64xf32, #tpu.memory_space<vmem>>, vector<16x64xf32>
      %704 = arith.maximumf %702, %703 : vector<16x64xf32>
      %705 = tpu.concatenate %698, %701, %704 in 1 : vector<16x64xf32>, vector<16x64xf32>, vector<16x64xf32> -> vector<16x192xf32>
      %706 = arith.truncf %705 : vector<16x192xf32> to vector<16x192xbf16>
      %707 = arith.index_cast %669 : i32 to index
      %c0_424 = arith.constant 0 : index
      %c0_425 = arith.constant 0 : index
      %708 = vector.load %arg13[%707, %c0_424, %c0_425] : memref<15x16x192xbf16, #tpu.memory_space<vmem>>, vector<1x16x192xbf16>
      %709 = vector.shape_cast %708 : vector<1x16x192xbf16> to vector<16x192xbf16>
      %710 = vector.shape_cast %706 : vector<16x192xbf16> to vector<1x16x192xbf16>
      tpu.vector_store %arg13[%707, %c0_424, %c0_425], %710 {strides = array<i32>} : memref<15x16x192xbf16, #tpu.memory_space<vmem>>, vector<1x16x192xbf16>,
    }
    %c15_i32_7 = arith.constant 15 : i32
    %c0_8 = arith.constant 0 : index
    %c0_9 = arith.constant 0 : index
    %6 = vector.load %arg6[%c0_8, %c0_9] : memref<1x128xf32, #tpu.memory_space<vmem>>, vector<1x128xf32>
    %c0_10 = arith.constant 0 : index
    %c0_11 = arith.constant 0 : index
    %7 = vector.load %arg7[%c0_10, %c0_11] : memref<1x128xf32, #tpu.memory_space<vmem>>, vector<1x128xf32>
    %cst_12 = arith.constant 0.000000e+00 : f32
    %8 = vector.broadcast %cst_12 : f32 to vector<1x256xf32>
    %c0_13 = arith.constant 0 : index
    %c0_14 = arith.constant 0 : index
    %c0_15 = arith.constant 0 : index
    %9 = vector.load %arg13[%c0_13, %c0_14, %c0_15] : memref<15x16x192xbf16, #tpu.memory_space<vmem>>, vector<1x16x192xbf16>
    %10 = vector.shape_cast %9 : vector<1x16x192xbf16> to vector<16x192xbf16>
    %c0_16 = arith.constant 0 : index
    %c0_17 = arith.constant 0 : index
    %c0_18 = arith.constant 0 : index
    %11 = vector.load %arg5[%c0_16, %c0_17, %c0_18] : memref<3x192x128xbf16, #tpu.memory_space<vmem>>, vector<1x192x128xbf16>
    %12 = vector.shape_cast %11 : vector<1x192x128xbf16> to vector<192x128xbf16>
    %cst_19 = arith.constant dense<0.000000e+00> : vector<16x128xf32>
    %13 = tpu.matmul %10, %12, %cst_19 {dimension_numbers = #tpu.dot_dimension_numbers<[1], [0], [0], [1], [0, 0, 1, 1], [], []>} : vector<16x192xbf16>, vector<192x128xbf16>, vector<16x128xf32> -> vector<16x128xf32>
    %c1 = arith.constant 1 : index
    %c0_20 = arith.constant 0 : index
    %c0_21 = arith.constant 0 : index
    %14 = vector.load %arg13[%c1, %c0_20, %c0_21] : memref<15x16x192xbf16, #tpu.memory_space<vmem>>, vector<1x16x192xbf16>
    %15 = vector.shape_cast %14 : vector<1x16x192xbf16> to vector<16x192xbf16>
    %c1_22 = arith.constant 1 : index
    %c0_23 = arith.constant 0 : index
    %c0_24 = arith.constant 0 : index
    %16 = vector.load %arg5[%c1_22, %c0_23, %c0_24] : memref<3x192x128xbf16, #tpu.memory_space<vmem>>, vector<1x192x128xbf16>
    %17 = vector.shape_cast %16 : vector<1x192x128xbf16> to vector<192x128xbf16>
    %cst_25 = arith.constant dense<0.000000e+00> : vector<16x128xf32>
    %18 = tpu.matmul %15, %17, %cst_25 {dimension_numbers = #tpu.dot_dimension_numbers<[1], [0], [0], [1], [0, 0, 1, 1], [], []>} : vector<16x192xbf16>, vector<192x128xbf16>, vector<16x128xf32> -> vector<16x128xf32>
    %19 = arith.addf %13, %18 : vector<16x128xf32>
    %c2 = arith.constant 2 : index
    %c0_26 = arith.constant 0 : index
    %c0_27 = arith.constant 0 : index
    %20 = vector.load %arg13[%c2, %c0_26, %c0_27] : memref<15x16x192xbf16, #tpu.memory_space<vmem>>, vector<1x16x192xbf16>
    %21 = vector.shape_cast %20 : vector<1x16x192xbf16> to vector<16x192xbf16>
    %c2_28 = arith.constant 2 : index
    %c0_29 = arith.constant 0 : index
    %c0_30 = arith.constant 0 : index
    %22 = vector.load %arg5[%c2_28, %c0_29, %c0_30] : memref<3x192x128xbf16, #tpu.memory_space<vmem>>, vector<1x192x128xbf16>
    %23 = vector.shape_cast %22 : vector<1x192x128xbf16> to vector<192x128xbf16>
    %cst_31 = arith.constant dense<0.000000e+00> : vector<16x128xf32>
    %24 = tpu.matmul %21, %23, %cst_31 {dimension_numbers = #tpu.dot_dimension_numbers<[1], [0], [0], [1], [0, 0, 1, 1], [], []>} : vector<16x192xbf16>, vector<192x128xbf16>, vector<16x128xf32> -> vector<16x128xf32>
    %25 = arith.addf %19, %24 : vector<16x128xf32>
    %26 = vector.broadcast %6 : vector<1x128xf32> to vector<16x128xf32>
    %27 = arith.mulf %25, %26 : vector<16x128xf32>
    %28 = vector.broadcast %7 : vector<1x128xf32> to vector<16x128xf32>
    %29 = arith.addf %27, %28 : vector<16x128xf32>
    %cst_32 = arith.constant 0.000000e+00 : f32
    %30 = vector.broadcast %cst_32 : f32 to vector<16x128xf32>
    %31 = arith.maximumf %29, %30 : vector<16x128xf32>
    %c1_33 = arith.constant 1 : index
    %c0_34 = arith.constant 0 : index
    %c0_35 = arith.constant 0 : index
    %32 = vector.load %arg13[%c1_33, %c0_34, %c0_35] : memref<15x16x192xbf16, #tpu.memory_space<vmem>>, vector<1x16x192xbf16>
    %33 = vector.shape_cast %32 : vector<1x16x192xbf16> to vector<16x192xbf16>
    %c0_36 = arith.constant 0 : index
    %c0_37 = arith.constant 0 : index
    %c0_38 = arith.constant 0 : index
    %34 = vector.load %arg5[%c0_36, %c0_37, %c0_38] : memref<3x192x128xbf16, #tpu.memory_space<vmem>>, vector<1x192x128xbf16>
    %35 = vector.shape_cast %34 : vector<1x192x128xbf16> to vector<192x128xbf16>
    %cst_39 = arith.constant dense<0.000000e+00> : vector<16x128xf32>
    %36 = tpu.matmul %33, %35, %cst_39 {dimension_numbers = #tpu.dot_dimension_numbers<[1], [0], [0], [1], [0, 0, 1, 1], [], []>} : vector<16x192xbf16>, vector<192x128xbf16>, vector<16x128xf32> -> vector<16x128xf32>
    %c2_40 = arith.constant 2 : index
    %c0_41 = arith.constant 0 : index
    %c0_42 = arith.constant 0 : index
    %37 = vector.load %arg13[%c2_40, %c0_41, %c0_42] : memref<15x16x192xbf16, #tpu.memory_space<vmem>>, vector<1x16x192xbf16>
    %38 = vector.shape_cast %37 : vector<1x16x192xbf16> to vector<16x192xbf16>
    %c1_43 = arith.constant 1 : index
    %c0_44 = arith.constant 0 : index
    %c0_45 = arith.constant 0 : index
    %39 = vector.load %arg5[%c1_43, %c0_44, %c0_45] : memref<3x192x128xbf16, #tpu.memory_space<vmem>>, vector<1x192x128xbf16>
    %40 = vector.shape_cast %39 : vector<1x192x128xbf16> to vector<192x128xbf16>
    %cst_46 = arith.constant dense<0.000000e+00> : vector<16x128xf32>
    %41 = tpu.matmul %38, %40, %cst_46 {dimension_numbers = #tpu.dot_dimension_numbers<[1], [0], [0], [1], [0, 0, 1, 1], [], []>} : vector<16x192xbf16>, vector<192x128xbf16>, vector<16x128xf32> -> vector<16x128xf32>
    %42 = arith.addf %36, %41 : vector<16x128xf32>
    %c3 = arith.constant 3 : index
    %c0_47 = arith.constant 0 : index
    %c0_48 = arith.constant 0 : index
    %43 = vector.load %arg13[%c3, %c0_47, %c0_48] : memref<15x16x192xbf16, #tpu.memory_space<vmem>>, vector<1x16x192xbf16>
    %44 = vector.shape_cast %43 : vector<1x16x192xbf16> to vector<16x192xbf16>
    %c2_49 = arith.constant 2 : index
    %c0_50 = arith.constant 0 : index
    %c0_51 = arith.constant 0 : index
    %45 = vector.load %arg5[%c2_49, %c0_50, %c0_51] : memref<3x192x128xbf16, #tpu.memory_space<vmem>>, vector<1x192x128xbf16>
    %46 = vector.shape_cast %45 : vector<1x192x128xbf16> to vector<192x128xbf16>
    %cst_52 = arith.constant dense<0.000000e+00> : vector<16x128xf32>
    %47 = tpu.matmul %44, %46, %cst_52 {dimension_numbers = #tpu.dot_dimension_numbers<[1], [0], [0], [1], [0, 0, 1, 1], [], []>} : vector<16x192xbf16>, vector<192x128xbf16>, vector<16x128xf32> -> vector<16x128xf32>
    %48 = arith.addf %42, %47 : vector<16x128xf32>
    %49 = vector.broadcast %6 : vector<1x128xf32> to vector<16x128xf32>
    %50 = arith.mulf %48, %49 : vector<16x128xf32>
    %51 = vector.broadcast %7 : vector<1x128xf32> to vector<16x128xf32>
    %52 = arith.addf %50, %51 : vector<16x128xf32>
    %cst_53 = arith.constant 0.000000e+00 : f32
    %53 = vector.broadcast %cst_53 : f32 to vector<16x128xf32>
    %54 = arith.maximumf %52, %53 : vector<16x128xf32>
    %55 = arith.maximumf %31, %54 : vector<16x128xf32>
    %56 = vector.shape_cast %55 : vector<16x128xf32> to vector<1x16x128xf32>
    %57 = vector.extract_strided_slice %56 {offsets = [0, 0, 0], sizes = [1, 1, 128], strides = [1, 1, 1]} : vector<1x16x128xf32> to vector<1x1x128xf32>
    %58 = vector.shape_cast %57 : vector<1x1x128xf32> to vector<1x128xf32>
    %59 = vector.extract_strided_slice %56 {offsets = [0, 1, 0], sizes = [1, 1, 128], strides = [1, 1, 1]} : vector<1x16x128xf32> to vector<1x1x128xf32>
    %60 = vector.shape_cast %59 : vector<1x1x128xf32> to vector<1x128xf32>
    %61 = arith.maximumf %58, %60 : vector<1x128xf32>
    %62 = arith.truncf %61 : vector<1x128xf32> to vector<1x128xbf16>
    %c0_54 = arith.constant 0 : index
    %c0_55 = arith.constant 0 : index
    %c0_56 = arith.constant 0 : index
    %63 = vector.load %arg8[%c0_54, %c0_55, %c0_56] : memref<36x128x256xbf16, #tpu.memory_space<vmem>>, vector<1x128x256xbf16>
    %64 = vector.shape_cast %63 : vector<1x128x256xbf16> to vector<128x256xbf16>
    %cst_57 = arith.constant dense<0.000000e+00> : vector<1x256xf32>
    %65 = tpu.matmul %62, %64, %cst_57 {dimension_numbers = #tpu.dot_dimension_numbers<[1], [0], [0], [1], [0, 0, 1, 1], [], []>} : vector<1x128xbf16>, vector<128x256xbf16>, vector<1x256xf32> -> vector<1x256xf32>
    %66 = arith.addf %8, %65 : vector<1x256xf32>
    %67 = vector.extract_strided_slice %56 {offsets = [0, 2, 0], sizes = [1, 1, 128], strides = [1, 1, 1]} : vector<1x16x128xf32> to vector<1x1x128xf32>
    %68 = vector.shape_cast %67 : vector<1x1x128xf32> to vector<1x128xf32>
    %69 = vector.extract_strided_slice %56 {offsets = [0, 3, 0], sizes = [1, 1, 128], strides = [1, 1, 1]} : vector<1x16x128xf32> to vector<1x1x128xf32>
    %70 = vector.shape_cast %69 : vector<1x1x128xf32> to vector<1x128xf32>
    %71 = arith.maximumf %68, %70 : vector<1x128xf32>
    %72 = arith.truncf %71 : vector<1x128xf32> to vector<1x128xbf16>
    %c1_58 = arith.constant 1 : index
    %c0_59 = arith.constant 0 : index
    %c0_60 = arith.constant 0 : index
    %73 = vector.load %arg8[%c1_58, %c0_59, %c0_60] : memref<36x128x256xbf16, #tpu.memory_space<vmem>>, vector<1x128x256xbf16>
    %74 = vector.shape_cast %73 : vector<1x128x256xbf16> to vector<128x256xbf16>
    %cst_61 = arith.constant dense<0.000000e+00> : vector<1x256xf32>
    %75 = tpu.matmul %72, %74, %cst_61 {dimension_numbers = #tpu.dot_dimension_numbers<[1], [0], [0], [1], [0, 0, 1, 1], [], []>} : vector<1x128xbf16>, vector<128x256xbf16>, vector<1x256xf32> -> vector<1x256xf32>
    %76 = arith.addf %66, %75 : vector<1x256xf32>
    %77 = vector.extract_strided_slice %56 {offsets = [0, 4, 0], sizes = [1, 1, 128], strides = [1, 1, 1]} : vector<1x16x128xf32> to vector<1x1x128xf32>
    %78 = vector.shape_cast %77 : vector<1x1x128xf32> to vector<1x128xf32>
    %79 = vector.extract_strided_slice %56 {offsets = [0, 5, 0], sizes = [1, 1, 128], strides = [1, 1, 1]} : vector<1x16x128xf32> to vector<1x1x128xf32>
    %80 = vector.shape_cast %79 : vector<1x1x128xf32> to vector<1x128xf32>
    %81 = arith.maximumf %78, %80 : vector<1x128xf32>
    %82 = arith.truncf %81 : vector<1x128xf32> to vector<1x128xbf16>
    %c2_62 = arith.constant 2 : index
    %c0_63 = arith.constant 0 : index
    %c0_64 = arith.constant 0 : index
    %83 = vector.load %arg8[%c2_62, %c0_63, %c0_64] : memref<36x128x256xbf16, #tpu.memory_space<vmem>>, vector<1x128x256xbf16>
    %84 = vector.shape_cast %83 : vector<1x128x256xbf16> to vector<128x256xbf16>
    %cst_65 = arith.constant dense<0.000000e+00> : vector<1x256xf32>
    %85 = tpu.matmul %82, %84, %cst_65 {dimension_numbers = #tpu.dot_dimension_numbers<[1], [0], [0], [1], [0, 0, 1, 1], [], []>} : vector<1x128xbf16>, vector<128x256xbf16>, vector<1x256xf32> -> vector<1x256xf32>
    %86 = arith.addf %76, %85 : vector<1x256xf32>
    %87 = vector.extract_strided_slice %56 {offsets = [0, 6, 0], sizes = [1, 1, 128], strides = [1, 1, 1]} : vector<1x16x128xf32> to vector<1x1x128xf32>
    %88 = vector.shape_cast %87 : vector<1x1x128xf32> to vector<1x128xf32>
    %89 = vector.extract_strided_slice %56 {offsets = [0, 7, 0], sizes = [1, 1, 128], strides = [1, 1, 1]} : vector<1x16x128xf32> to vector<1x1x128xf32>
    %90 = vector.shape_cast %89 : vector<1x1x128xf32> to vector<1x128xf32>
    %91 = arith.maximumf %88, %90 : vector<1x128xf32>
    %92 = arith.truncf %91 : vector<1x128xf32> to vector<1x128xbf16>
    %c3_66 = arith.constant 3 : index
    %c0_67 = arith.constant 0 : index
    %c0_68 = arith.constant 0 : index
    %93 = vector.load %arg8[%c3_66, %c0_67, %c0_68] : memref<36x128x256xbf16, #tpu.memory_space<vmem>>, vector<1x128x256xbf16>
    %94 = vector.shape_cast %93 : vector<1x128x256xbf16> to vector<128x256xbf16>
    %cst_69 = arith.constant dense<0.000000e+00> : vector<1x256xf32>
    %95 = tpu.matmul %92, %94, %cst_69 {dimension_numbers = #tpu.dot_dimension_numbers<[1], [0], [0], [1], [0, 0, 1, 1], [], []>} : vector<1x128xbf16>, vector<128x256xbf16>, vector<1x256xf32> -> vector<1x256xf32>
    %96 = arith.addf %86, %95 : vector<1x256xf32>
    %97 = vector.extract_strided_slice %56 {offsets = [0, 8, 0], sizes = [1, 1, 128], strides = [1, 1, 1]} : vector<1x16x128xf32> to vector<1x1x128xf32>
    %98 = vector.shape_cast %97 : vector<1x1x128xf32> to vector<1x128xf32>
    %99 = vector.extract_strided_slice %56 {offsets = [0, 9, 0], sizes = [1, 1, 128], strides = [1, 1, 1]} : vector<1x16x128xf32> to vector<1x1x128xf32>
    %100 = vector.shape_cast %99 : vector<1x1x128xf32> to vector<1x128xf32>
    %101 = arith.maximumf %98, %100 : vector<1x128xf32>
    %102 = arith.truncf %101 : vector<1x128xf32> to vector<1x128xbf16>
    %c4 = arith.constant 4 : index
    %c0_70 = arith.constant 0 : index
    %c0_71 = arith.constant 0 : index
    %103 = vector.load %arg8[%c4, %c0_70, %c0_71] : memref<36x128x256xbf16, #tpu.memory_space<vmem>>, vector<1x128x256xbf16>
    %104 = vector.shape_cast %103 : vector<1x128x256xbf16> to vector<128x256xbf16>
    %cst_72 = arith.constant dense<0.000000e+00> : vector<1x256xf32>
    %105 = tpu.matmul %102, %104, %cst_72 {dimension_numbers = #tpu.dot_dimension_numbers<[1], [0], [0], [1], [0, 0, 1, 1], [], []>} : vector<1x128xbf16>, vector<128x256xbf16>, vector<1x256xf32> -> vector<1x256xf32>
    %106 = arith.addf %96, %105 : vector<1x256xf32>
    %107 = vector.extract_strided_slice %56 {offsets = [0, 10, 0], sizes = [1, 1, 128], strides = [1, 1, 1]} : vector<1x16x128xf32> to vector<1x1x128xf32>
    %108 = vector.shape_cast %107 : vector<1x1x128xf32> to vector<1x128xf32>
    %109 = vector.extract_strided_slice %56 {offsets = [0, 11, 0], sizes = [1, 1, 128], strides = [1, 1, 1]} : vector<1x16x128xf32> to vector<1x1x128xf32>
    %110 = vector.shape_cast %109 : vector<1x1x128xf32> to vector<1x128xf32>
    %111 = arith.maximumf %108, %110 : vector<1x128xf32>
    %112 = arith.truncf %111 : vector<1x128xf32> to vector<1x128xbf16>
    %c5 = arith.constant 5 : index
    %c0_73 = arith.constant 0 : index
    %c0_74 = arith.constant 0 : index
    %113 = vector.load %arg8[%c5, %c0_73, %c0_74] : memref<36x128x256xbf16, #tpu.memory_space<vmem>>, vector<1x128x256xbf16>
    %114 = vector.shape_cast %113 : vector<1x128x256xbf16> to vector<128x256xbf16>
    %cst_75 = arith.constant dense<0.000000e+00> : vector<1x256xf32>
    %115 = tpu.matmul %112, %114, %cst_75 {dimension_numbers = #tpu.dot_dimension_numbers<[1], [0], [0], [1], [0, 0, 1, 1], [], []>} : vector<1x128xbf16>, vector<128x256xbf16>, vector<1x256xf32> -> vector<1x256xf32>
    %116 = arith.addf %106, %115 : vector<1x256xf32>
    %c2_76 = arith.constant 2 : index
    %c0_77 = arith.constant 0 : index
    %c0_78 = arith.constant 0 : index
    %117 = vector.load %arg13[%c2_76, %c0_77, %c0_78] : memref<15x16x192xbf16, #tpu.memory_space<vmem>>, vector<1x16x192xbf16>
    %118 = vector.shape_cast %117 : vector<1x16x192xbf16> to vector<16x192xbf16>
    %c0_79 = arith.constant 0 : index
    %c0_80 = arith.constant 0 : index
    %c0_81 = arith.constant 0 : index
    %119 = vector.load %arg5[%c0_79, %c0_80, %c0_81] : memref<3x192x128xbf16, #tpu.memory_space<vmem>>, vector<1x192x128xbf16>
    %120 = vector.shape_cast %119 : vector<1x192x128xbf16> to vector<192x128xbf16>
    %cst_82 = arith.constant dense<0.000000e+00> : vector<16x128xf32>
    %121 = tpu.matmul %118, %120, %cst_82 {dimension_numbers = #tpu.dot_dimension_numbers<[1], [0], [0], [1], [0, 0, 1, 1], [], []>} : vector<16x192xbf16>, vector<192x128xbf16>, vector<16x128xf32> -> vector<16x128xf32>
    %c3_83 = arith.constant 3 : index
    %c0_84 = arith.constant 0 : index
    %c0_85 = arith.constant 0 : index
    %122 = vector.load %arg13[%c3_83, %c0_84, %c0_85] : memref<15x16x192xbf16, #tpu.memory_space<vmem>>, vector<1x16x192xbf16>
    %123 = vector.shape_cast %122 : vector<1x16x192xbf16> to vector<16x192xbf16>
    %c1_86 = arith.constant 1 : index
    %c0_87 = arith.constant 0 : index
    %c0_88 = arith.constant 0 : index
    %124 = vector.load %arg5[%c1_86, %c0_87, %c0_88] : memref<3x192x128xbf16, #tpu.memory_space<vmem>>, vector<1x192x128xbf16>
    %125 = vector.shape_cast %124 : vector<1x192x128xbf16> to vector<192x128xbf16>
    %cst_89 = arith.constant dense<0.000000e+00> : vector<16x128xf32>
    %126 = tpu.matmul %123, %125, %cst_89 {dimension_numbers = #tpu.dot_dimension_numbers<[1], [0], [0], [1], [0, 0, 1, 1], [], []>} : vector<16x192xbf16>, vector<192x128xbf16>, vector<16x128xf32> -> vector<16x128xf32>
    %127 = arith.addf %121, %126 : vector<16x128xf32>
    %c4_90 = arith.constant 4 : index
    %c0_91 = arith.constant 0 : index
    %c0_92 = arith.constant 0 : index
    %128 = vector.load %arg13[%c4_90, %c0_91, %c0_92] : memref<15x16x192xbf16, #tpu.memory_space<vmem>>, vector<1x16x192xbf16>
    %129 = vector.shape_cast %128 : vector<1x16x192xbf16> to vector<16x192xbf16>
    %c2_93 = arith.constant 2 : index
    %c0_94 = arith.constant 0 : index
    %c0_95 = arith.constant 0 : index
    %130 = vector.load %arg5[%c2_93, %c0_94, %c0_95] : memref<3x192x128xbf16, #tpu.memory_space<vmem>>, vector<1x192x128xbf16>
    %131 = vector.shape_cast %130 : vector<1x192x128xbf16> to vector<192x128xbf16>
    %cst_96 = arith.constant dense<0.000000e+00> : vector<16x128xf32>
    %132 = tpu.matmul %129, %131, %cst_96 {dimension_numbers = #tpu.dot_dimension_numbers<[1], [0], [0], [1], [0, 0, 1, 1], [], []>} : vector<16x192xbf16>, vector<192x128xbf16>, vector<16x128xf32> -> vector<16x128xf32>
    %133 = arith.addf %127, %132 : vector<16x128xf32>
    %134 = vector.broadcast %6 : vector<1x128xf32> to vector<16x128xf32>
    %135 = arith.mulf %133, %134 : vector<16x128xf32>
    %136 = vector.broadcast %7 : vector<1x128xf32> to vector<16x128xf32>
    %137 = arith.addf %135, %136 : vector<16x128xf32>
    %cst_97 = arith.constant 0.000000e+00 : f32
    %138 = vector.broadcast %cst_97 : f32 to vector<16x128xf32>
    %139 = arith.maximumf %137, %138 : vector<16x128xf32>
    %c3_98 = arith.constant 3 : index
    %c0_99 = arith.constant 0 : index
    %c0_100 = arith.constant 0 : index
    %140 = vector.load %arg13[%c3_98, %c0_99, %c0_100] : memref<15x16x192xbf16, #tpu.memory_space<vmem>>, vector<1x16x192xbf16>
    %141 = vector.shape_cast %140 : vector<1x16x192xbf16> to vector<16x192xbf16>
    %c0_101 = arith.constant 0 : index
    %c0_102 = arith.constant 0 : index
    %c0_103 = arith.constant 0 : index
    %142 = vector.load %arg5[%c0_101, %c0_102, %c0_103] : memref<3x192x128xbf16, #tpu.memory_space<vmem>>, vector<1x192x128xbf16>
    %143 = vector.shape_cast %142 : vector<1x192x128xbf16> to vector<192x128xbf16>
    %cst_104 = arith.constant dense<0.000000e+00> : vector<16x128xf32>
    %144 = tpu.matmul %141, %143, %cst_104 {dimension_numbers = #tpu.dot_dimension_numbers<[1], [0], [0], [1], [0, 0, 1, 1], [], []>} : vector<16x192xbf16>, vector<192x128xbf16>, vector<16x128xf32> -> vector<16x128xf32>
    %c4_105 = arith.constant 4 : index
    %c0_106 = arith.constant 0 : index
    %c0_107 = arith.constant 0 : index
    %145 = vector.load %arg13[%c4_105, %c0_106, %c0_107] : memref<15x16x192xbf16, #tpu.memory_space<vmem>>, vector<1x16x192xbf16>
    %146 = vector.shape_cast %145 : vector<1x16x192xbf16> to vector<16x192xbf16>
    %c1_108 = arith.constant 1 : index
    %c0_109 = arith.constant 0 : index
    %c0_110 = arith.constant 0 : index
    %147 = vector.load %arg5[%c1_108, %c0_109, %c0_110] : memref<3x192x128xbf16, #tpu.memory_space<vmem>>, vector<1x192x128xbf16>
    %148 = vector.shape_cast %147 : vector<1x192x128xbf16> to vector<192x128xbf16>
    %cst_111 = arith.constant dense<0.000000e+00> : vector<16x128xf32>
    %149 = tpu.matmul %146, %148, %cst_111 {dimension_numbers = #tpu.dot_dimension_numbers<[1], [0], [0], [1], [0, 0, 1, 1], [], []>} : vector<16x192xbf16>, vector<192x128xbf16>, vector<16x128xf32> -> vector<16x128xf32>
    %150 = arith.addf %144, %149 : vector<16x128xf32>
    %c5_112 = arith.constant 5 : index
    %c0_113 = arith.constant 0 : index
    %c0_114 = arith.constant 0 : index
    %151 = vector.load %arg13[%c5_112, %c0_113, %c0_114] : memref<15x16x192xbf16, #tpu.memory_space<vmem>>, vector<1x16x192xbf16>
    %152 = vector.shape_cast %151 : vector<1x16x192xbf16> to vector<16x192xbf16>
    %c2_115 = arith.constant 2 : index
    %c0_116 = arith.constant 0 : index
    %c0_117 = arith.constant 0 : index
    %153 = vector.load %arg5[%c2_115, %c0_116, %c0_117] : memref<3x192x128xbf16, #tpu.memory_space<vmem>>, vector<1x192x128xbf16>
    %154 = vector.shape_cast %153 : vector<1x192x128xbf16> to vector<192x128xbf16>
    %cst_118 = arith.constant dense<0.000000e+00> : vector<16x128xf32>
    %155 = tpu.matmul %152, %154, %cst_118 {dimension_numbers = #tpu.dot_dimension_numbers<[1], [0], [0], [1], [0, 0, 1, 1], [], []>} : vector<16x192xbf16>, vector<192x128xbf16>, vector<16x128xf32> -> vector<16x128xf32>
    %156 = arith.addf %150, %155 : vector<16x128xf32>
    %157 = vector.broadcast %6 : vector<1x128xf32> to vector<16x128xf32>
    %158 = arith.mulf %156, %157 : vector<16x128xf32>
    %159 = vector.broadcast %7 : vector<1x128xf32> to vector<16x128xf32>
    %160 = arith.addf %158, %159 : vector<16x128xf32>
    %cst_119 = arith.constant 0.000000e+00 : f32
    %161 = vector.broadcast %cst_119 : f32 to vector<16x128xf32>
    %162 = arith.maximumf %160, %161 : vector<16x128xf32>
    %163 = arith.maximumf %139, %162 : vector<16x128xf32>
    %164 = vector.shape_cast %163 : vector<16x128xf32> to vector<1x16x128xf32>
    %165 = vector.extract_strided_slice %164 {offsets = [0, 0, 0], sizes = [1, 1, 128], strides = [1, 1, 1]} : vector<1x16x128xf32> to vector<1x1x128xf32>
    %166 = vector.shape_cast %165 : vector<1x1x128xf32> to vector<1x128xf32>
    %167 = vector.extract_strided_slice %164 {offsets = [0, 1, 0], sizes = [1, 1, 128], strides = [1, 1, 1]} : vector<1x16x128xf32> to vector<1x1x128xf32>
    %168 = vector.shape_cast %167 : vector<1x1x128xf32> to vector<1x128xf32>
    %169 = arith.maximumf %166, %168 : vector<1x128xf32>
    %170 = arith.truncf %169 : vector<1x128xf32> to vector<1x128xbf16>
    %c6 = arith.constant 6 : index
    %c0_120 = arith.constant 0 : index
    %c0_121 = arith.constant 0 : index
    %171 = vector.load %arg8[%c6, %c0_120, %c0_121] : memref<36x128x256xbf16, #tpu.memory_space<vmem>>, vector<1x128x256xbf16>
    %172 = vector.shape_cast %171 : vector<1x128x256xbf16> to vector<128x256xbf16>
    %cst_122 = arith.constant dense<0.000000e+00> : vector<1x256xf32>
    %173 = tpu.matmul %170, %172, %cst_122 {dimension_numbers = #tpu.dot_dimension_numbers<[1], [0], [0], [1], [0, 0, 1, 1], [], []>} : vector<1x128xbf16>, vector<128x256xbf16>, vector<1x256xf32> -> vector<1x256xf32>
    %174 = arith.addf %116, %173 : vector<1x256xf32>
    %175 = vector.extract_strided_slice %164 {offsets = [0, 2, 0], sizes = [1, 1, 128], strides = [1, 1, 1]} : vector<1x16x128xf32> to vector<1x1x128xf32>
    %176 = vector.shape_cast %175 : vector<1x1x128xf32> to vector<1x128xf32>
    %177 = vector.extract_strided_slice %164 {offsets = [0, 3, 0], sizes = [1, 1, 128], strides = [1, 1, 1]} : vector<1x16x128xf32> to vector<1x1x128xf32>
    %178 = vector.shape_cast %177 : vector<1x1x128xf32> to vector<1x128xf32>
    %179 = arith.maximumf %176, %178 : vector<1x128xf32>
    %180 = arith.truncf %179 : vector<1x128xf32> to vector<1x128xbf16>
    %c7 = arith.constant 7 : index
    %c0_123 = arith.constant 0 : index
    %c0_124 = arith.constant 0 : index
    %181 = vector.load %arg8[%c7, %c0_123, %c0_124] : memref<36x128x256xbf16, #tpu.memory_space<vmem>>, vector<1x128x256xbf16>
    %182 = vector.shape_cast %181 : vector<1x128x256xbf16> to vector<128x256xbf16>
    %cst_125 = arith.constant dense<0.000000e+00> : vector<1x256xf32>
    %183 = tpu.matmul %180, %182, %cst_125 {dimension_numbers = #tpu.dot_dimension_numbers<[1], [0], [0], [1], [0, 0, 1, 1], [], []>} : vector<1x128xbf16>, vector<128x256xbf16>, vector<1x256xf32> -> vector<1x256xf32>
    %184 = arith.addf %174, %183 : vector<1x256xf32>
    %185 = vector.extract_strided_slice %164 {offsets = [0, 4, 0], sizes = [1, 1, 128], strides = [1, 1, 1]} : vector<1x16x128xf32> to vector<1x1x128xf32>
    %186 = vector.shape_cast %185 : vector<1x1x128xf32> to vector<1x128xf32>
    %187 = vector.extract_strided_slice %164 {offsets = [0, 5, 0], sizes = [1, 1, 128], strides = [1, 1, 1]} : vector<1x16x128xf32> to vector<1x1x128xf32>
    %188 = vector.shape_cast %187 : vector<1x1x128xf32> to vector<1x128xf32>
    %189 = arith.maximumf %186, %188 : vector<1x128xf32>
    %190 = arith.truncf %189 : vector<1x128xf32> to vector<1x128xbf16>
    %c8 = arith.constant 8 : index
    %c0_126 = arith.constant 0 : index
    %c0_127 = arith.constant 0 : index
    %191 = vector.load %arg8[%c8, %c0_126, %c0_127] : memref<36x128x256xbf16, #tpu.memory_space<vmem>>, vector<1x128x256xbf16>
    %192 = vector.shape_cast %191 : vector<1x128x256xbf16> to vector<128x256xbf16>
    %cst_128 = arith.constant dense<0.000000e+00> : vector<1x256xf32>
    %193 = tpu.matmul %190, %192, %cst_128 {dimension_numbers = #tpu.dot_dimension_numbers<[1], [0], [0], [1], [0, 0, 1, 1], [], []>} : vector<1x128xbf16>, vector<128x256xbf16>, vector<1x256xf32> -> vector<1x256xf32>
    %194 = arith.addf %184, %193 : vector<1x256xf32>
    %195 = vector.extract_strided_slice %164 {offsets = [0, 6, 0], sizes = [1, 1, 128], strides = [1, 1, 1]} : vector<1x16x128xf32> to vector<1x1x128xf32>
    %196 = vector.shape_cast %195 : vector<1x1x128xf32> to vector<1x128xf32>
    %197 = vector.extract_strided_slice %164 {offsets = [0, 7, 0], sizes = [1, 1, 128], strides = [1, 1, 1]} : vector<1x16x128xf32> to vector<1x1x128xf32>
    %198 = vector.shape_cast %197 : vector<1x1x128xf32> to vector<1x128xf32>
    %199 = arith.maximumf %196, %198 : vector<1x128xf32>
    %200 = arith.truncf %199 : vector<1x128xf32> to vector<1x128xbf16>
    %c9 = arith.constant 9 : index
    %c0_129 = arith.constant 0 : index
    %c0_130 = arith.constant 0 : index
    %201 = vector.load %arg8[%c9, %c0_129, %c0_130] : memref<36x128x256xbf16, #tpu.memory_space<vmem>>, vector<1x128x256xbf16>
    %202 = vector.shape_cast %201 : vector<1x128x256xbf16> to vector<128x256xbf16>
    %cst_131 = arith.constant dense<0.000000e+00> : vector<1x256xf32>
    %203 = tpu.matmul %200, %202, %cst_131 {dimension_numbers = #tpu.dot_dimension_numbers<[1], [0], [0], [1], [0, 0, 1, 1], [], []>} : vector<1x128xbf16>, vector<128x256xbf16>, vector<1x256xf32> -> vector<1x256xf32>
    %204 = arith.addf %194, %203 : vector<1x256xf32>
    %205 = vector.extract_strided_slice %164 {offsets = [0, 8, 0], sizes = [1, 1, 128], strides = [1, 1, 1]} : vector<1x16x128xf32> to vector<1x1x128xf32>
    %206 = vector.shape_cast %205 : vector<1x1x128xf32> to vector<1x128xf32>
    %207 = vector.extract_strided_slice %164 {offsets = [0, 9, 0], sizes = [1, 1, 128], strides = [1, 1, 1]} : vector<1x16x128xf32> to vector<1x1x128xf32>
    %208 = vector.shape_cast %207 : vector<1x1x128xf32> to vector<1x128xf32>
    %209 = arith.maximumf %206, %208 : vector<1x128xf32>
    %210 = arith.truncf %209 : vector<1x128xf32> to vector<1x128xbf16>
    %c10 = arith.constant 10 : index
    %c0_132 = arith.constant 0 : index
    %c0_133 = arith.constant 0 : index
    %211 = vector.load %arg8[%c10, %c0_132, %c0_133] : memref<36x128x256xbf16, #tpu.memory_space<vmem>>, vector<1x128x256xbf16>
    %212 = vector.shape_cast %211 : vector<1x128x256xbf16> to vector<128x256xbf16>
    %cst_134 = arith.constant dense<0.000000e+00> : vector<1x256xf32>
    %213 = tpu.matmul %210, %212, %cst_134 {dimension_numbers = #tpu.dot_dimension_numbers<[1], [0], [0], [1], [0, 0, 1, 1], [], []>} : vector<1x128xbf16>, vector<128x256xbf16>, vector<1x256xf32> -> vector<1x256xf32>
    %214 = arith.addf %204, %213 : vector<1x256xf32>
    %215 = vector.extract_strided_slice %164 {offsets = [0, 10, 0], sizes = [1, 1, 128], strides = [1, 1, 1]} : vector<1x16x128xf32> to vector<1x1x128xf32>
    %216 = vector.shape_cast %215 : vector<1x1x128xf32> to vector<1x128xf32>
    %217 = vector.extract_strided_slice %164 {offsets = [0, 11, 0], sizes = [1, 1, 128], strides = [1, 1, 1]} : vector<1x16x128xf32> to vector<1x1x128xf32>
    %218 = vector.shape_cast %217 : vector<1x1x128xf32> to vector<1x128xf32>
    %219 = arith.maximumf %216, %218 : vector<1x128xf32>
    %220 = arith.truncf %219 : vector<1x128xf32> to vector<1x128xbf16>
    %c11 = arith.constant 11 : index
    %c0_135 = arith.constant 0 : index
    %c0_136 = arith.constant 0 : index
    %221 = vector.load %arg8[%c11, %c0_135, %c0_136] : memref<36x128x256xbf16, #tpu.memory_space<vmem>>, vector<1x128x256xbf16>
    %222 = vector.shape_cast %221 : vector<1x128x256xbf16> to vector<128x256xbf16>
    %cst_137 = arith.constant dense<0.000000e+00> : vector<1x256xf32>
    %223 = tpu.matmul %220, %222, %cst_137 {dimension_numbers = #tpu.dot_dimension_numbers<[1], [0], [0], [1], [0, 0, 1, 1], [], []>} : vector<1x128xbf16>, vector<128x256xbf16>, vector<1x256xf32> -> vector<1x256xf32>
    %224 = arith.addf %214, %223 : vector<1x256xf32>
    %c4_138 = arith.constant 4 : index
    %c0_139 = arith.constant 0 : index
    %c0_140 = arith.constant 0 : index
    %225 = vector.load %arg13[%c4_138, %c0_139, %c0_140] : memref<15x16x192xbf16, #tpu.memory_space<vmem>>, vector<1x16x192xbf16>
    %226 = vector.shape_cast %225 : vector<1x16x192xbf16> to vector<16x192xbf16>
    %c0_141 = arith.constant 0 : index
    %c0_142 = arith.constant 0 : index
    %c0_143 = arith.constant 0 : index
    %227 = vector.load %arg5[%c0_141, %c0_142, %c0_143] : memref<3x192x128xbf16, #tpu.memory_space<vmem>>, vector<1x192x128xbf16>
    %228 = vector.shape_cast %227 : vector<1x192x128xbf16> to vector<192x128xbf16>
    %cst_144 = arith.constant dense<0.000000e+00> : vector<16x128xf32>
    %229 = tpu.matmul %226, %228, %cst_144 {dimension_numbers = #tpu.dot_dimension_numbers<[1], [0], [0], [1], [0, 0, 1, 1], [], []>} : vector<16x192xbf16>, vector<192x128xbf16>, vector<16x128xf32> -> vector<16x128xf32>
    %c5_145 = arith.constant 5 : index
    %c0_146 = arith.constant 0 : index
    %c0_147 = arith.constant 0 : index
    %230 = vector.load %arg13[%c5_145, %c0_146, %c0_147] : memref<15x16x192xbf16, #tpu.memory_space<vmem>>, vector<1x16x192xbf16>
    %231 = vector.shape_cast %230 : vector<1x16x192xbf16> to vector<16x192xbf16>
    %c1_148 = arith.constant 1 : index
    %c0_149 = arith.constant 0 : index
    %c0_150 = arith.constant 0 : index
    %232 = vector.load %arg5[%c1_148, %c0_149, %c0_150] : memref<3x192x128xbf16, #tpu.memory_space<vmem>>, vector<1x192x128xbf16>
    %233 = vector.shape_cast %232 : vector<1x192x128xbf16> to vector<192x128xbf16>
    %cst_151 = arith.constant dense<0.000000e+00> : vector<16x128xf32>
    %234 = tpu.matmul %231, %233, %cst_151 {dimension_numbers = #tpu.dot_dimension_numbers<[1], [0], [0], [1], [0, 0, 1, 1], [], []>} : vector<16x192xbf16>, vector<192x128xbf16>, vector<16x128xf32> -> vector<16x128xf32>
    %235 = arith.addf %229, %234 : vector<16x128xf32>
    %c6_152 = arith.constant 6 : index
    %c0_153 = arith.constant 0 : index
    %c0_154 = arith.constant 0 : index
    %236 = vector.load %arg13[%c6_152, %c0_153, %c0_154] : memref<15x16x192xbf16, #tpu.memory_space<vmem>>, vector<1x16x192xbf16>
    %237 = vector.shape_cast %236 : vector<1x16x192xbf16> to vector<16x192xbf16>
    %c2_155 = arith.constant 2 : index
    %c0_156 = arith.constant 0 : index
    %c0_157 = arith.constant 0 : index
    %238 = vector.load %arg5[%c2_155, %c0_156, %c0_157] : memref<3x192x128xbf16, #tpu.memory_space<vmem>>, vector<1x192x128xbf16>
    %239 = vector.shape_cast %238 : vector<1x192x128xbf16> to vector<192x128xbf16>
    %cst_158 = arith.constant dense<0.000000e+00> : vector<16x128xf32>
    %240 = tpu.matmul %237, %239, %cst_158 {dimension_numbers = #tpu.dot_dimension_numbers<[1], [0], [0], [1], [0, 0, 1, 1], [], []>} : vector<16x192xbf16>, vector<192x128xbf16>, vector<16x128xf32> -> vector<16x128xf32>
    %241 = arith.addf %235, %240 : vector<16x128xf32>
    %242 = vector.broadcast %6 : vector<1x128xf32> to vector<16x128xf32>
    %243 = arith.mulf %241, %242 : vector<16x128xf32>
    %244 = vector.broadcast %7 : vector<1x128xf32> to vector<16x128xf32>
    %245 = arith.addf %243, %244 : vector<16x128xf32>
    %cst_159 = arith.constant 0.000000e+00 : f32
    %246 = vector.broadcast %cst_159 : f32 to vector<16x128xf32>
    %247 = arith.maximumf %245, %246 : vector<16x128xf32>
    %c5_160 = arith.constant 5 : index
    %c0_161 = arith.constant 0 : index
    %c0_162 = arith.constant 0 : index
    %248 = vector.load %arg13[%c5_160, %c0_161, %c0_162] : memref<15x16x192xbf16, #tpu.memory_space<vmem>>, vector<1x16x192xbf16>
    %249 = vector.shape_cast %248 : vector<1x16x192xbf16> to vector<16x192xbf16>
    %c0_163 = arith.constant 0 : index
    %c0_164 = arith.constant 0 : index
    %c0_165 = arith.constant 0 : index
    %250 = vector.load %arg5[%c0_163, %c0_164, %c0_165] : memref<3x192x128xbf16, #tpu.memory_space<vmem>>, vector<1x192x128xbf16>
    %251 = vector.shape_cast %250 : vector<1x192x128xbf16> to vector<192x128xbf16>
    %cst_166 = arith.constant dense<0.000000e+00> : vector<16x128xf32>
    %252 = tpu.matmul %249, %251, %cst_166 {dimension_numbers = #tpu.dot_dimension_numbers<[1], [0], [0], [1], [0, 0, 1, 1], [], []>} : vector<16x192xbf16>, vector<192x128xbf16>, vector<16x128xf32> -> vector<16x128xf32>
    %c6_167 = arith.constant 6 : index
    %c0_168 = arith.constant 0 : index
    %c0_169 = arith.constant 0 : index
    %253 = vector.load %arg13[%c6_167, %c0_168, %c0_169] : memref<15x16x192xbf16, #tpu.memory_space<vmem>>, vector<1x16x192xbf16>
    %254 = vector.shape_cast %253 : vector<1x16x192xbf16> to vector<16x192xbf16>
    %c1_170 = arith.constant 1 : index
    %c0_171 = arith.constant 0 : index
    %c0_172 = arith.constant 0 : index
    %255 = vector.load %arg5[%c1_170, %c0_171, %c0_172] : memref<3x192x128xbf16, #tpu.memory_space<vmem>>, vector<1x192x128xbf16>
    %256 = vector.shape_cast %255 : vector<1x192x128xbf16> to vector<192x128xbf16>
    %cst_173 = arith.constant dense<0.000000e+00> : vector<16x128xf32>
    %257 = tpu.matmul %254, %256, %cst_173 {dimension_numbers = #tpu.dot_dimension_numbers<[1], [0], [0], [1], [0, 0, 1, 1], [], []>} : vector<16x192xbf16>, vector<192x128xbf16>, vector<16x128xf32> -> vector<16x128xf32>
    %258 = arith.addf %252, %257 : vector<16x128xf32>
    %c7_174 = arith.constant 7 : index
    %c0_175 = arith.constant 0 : index
    %c0_176 = arith.constant 0 : index
    %259 = vector.load %arg13[%c7_174, %c0_175, %c0_176] : memref<15x16x192xbf16, #tpu.memory_space<vmem>>, vector<1x16x192xbf16>
    %260 = vector.shape_cast %259 : vector<1x16x192xbf16> to vector<16x192xbf16>
    %c2_177 = arith.constant 2 : index
    %c0_178 = arith.constant 0 : index
    %c0_179 = arith.constant 0 : index
    %261 = vector.load %arg5[%c2_177, %c0_178, %c0_179] : memref<3x192x128xbf16, #tpu.memory_space<vmem>>, vector<1x192x128xbf16>
    %262 = vector.shape_cast %261 : vector<1x192x128xbf16> to vector<192x128xbf16>
    %cst_180 = arith.constant dense<0.000000e+00> : vector<16x128xf32>
    %263 = tpu.matmul %260, %262, %cst_180 {dimension_numbers = #tpu.dot_dimension_numbers<[1], [0], [0], [1], [0, 0, 1, 1], [], []>} : vector<16x192xbf16>, vector<192x128xbf16>, vector<16x128xf32> -> vector<16x128xf32>
    %264 = arith.addf %258, %263 : vector<16x128xf32>
    %265 = vector.broadcast %6 : vector<1x128xf32> to vector<16x128xf32>
    %266 = arith.mulf %264, %265 : vector<16x128xf32>
    %267 = vector.broadcast %7 : vector<1x128xf32> to vector<16x128xf32>
    %268 = arith.addf %266, %267 : vector<16x128xf32>
    %cst_181 = arith.constant 0.000000e+00 : f32
    %269 = vector.broadcast %cst_181 : f32 to vector<16x128xf32>
    %270 = arith.maximumf %268, %269 : vector<16x128xf32>
    %271 = arith.maximumf %247, %270 : vector<16x128xf32>
    %272 = vector.shape_cast %271 : vector<16x128xf32> to vector<1x16x128xf32>
    %273 = vector.extract_strided_slice %272 {offsets = [0, 0, 0], sizes = [1, 1, 128], strides = [1, 1, 1]} : vector<1x16x128xf32> to vector<1x1x128xf32>
    %274 = vector.shape_cast %273 : vector<1x1x128xf32> to vector<1x128xf32>
    %275 = vector.extract_strided_slice %272 {offsets = [0, 1, 0], sizes = [1, 1, 128], strides = [1, 1, 1]} : vector<1x16x128xf32> to vector<1x1x128xf32>
    %276 = vector.shape_cast %275 : vector<1x1x128xf32> to vector<1x128xf32>
    %277 = arith.maximumf %274, %276 : vector<1x128xf32>
    %278 = arith.truncf %277 : vector<1x128xf32> to vector<1x128xbf16>
    %c12 = arith.constant 12 : index
    %c0_182 = arith.constant 0 : index
    %c0_183 = arith.constant 0 : index
    %279 = vector.load %arg8[%c12, %c0_182, %c0_183] : memref<36x128x256xbf16, #tpu.memory_space<vmem>>, vector<1x128x256xbf16>
    %280 = vector.shape_cast %279 : vector<1x128x256xbf16> to vector<128x256xbf16>
    %cst_184 = arith.constant dense<0.000000e+00> : vector<1x256xf32>
    %281 = tpu.matmul %278, %280, %cst_184 {dimension_numbers = #tpu.dot_dimension_numbers<[1], [0], [0], [1], [0, 0, 1, 1], [], []>} : vector<1x128xbf16>, vector<128x256xbf16>, vector<1x256xf32> -> vector<1x256xf32>
    %282 = arith.addf %224, %281 : vector<1x256xf32>
    %283 = vector.extract_strided_slice %272 {offsets = [0, 2, 0], sizes = [1, 1, 128], strides = [1, 1, 1]} : vector<1x16x128xf32> to vector<1x1x128xf32>
    %284 = vector.shape_cast %283 : vector<1x1x128xf32> to vector<1x128xf32>
    %285 = vector.extract_strided_slice %272 {offsets = [0, 3, 0], sizes = [1, 1, 128], strides = [1, 1, 1]} : vector<1x16x128xf32> to vector<1x1x128xf32>
    %286 = vector.shape_cast %285 : vector<1x1x128xf32> to vector<1x128xf32>
    %287 = arith.maximumf %284, %286 : vector<1x128xf32>
    %288 = arith.truncf %287 : vector<1x128xf32> to vector<1x128xbf16>
    %c13 = arith.constant 13 : index
    %c0_185 = arith.constant 0 : index
    %c0_186 = arith.constant 0 : index
    %289 = vector.load %arg8[%c13, %c0_185, %c0_186] : memref<36x128x256xbf16, #tpu.memory_space<vmem>>, vector<1x128x256xbf16>
    %290 = vector.shape_cast %289 : vector<1x128x256xbf16> to vector<128x256xbf16>
    %cst_187 = arith.constant dense<0.000000e+00> : vector<1x256xf32>
    %291 = tpu.matmul %288, %290, %cst_187 {dimension_numbers = #tpu.dot_dimension_numbers<[1], [0], [0], [1], [0, 0, 1, 1], [], []>} : vector<1x128xbf16>, vector<128x256xbf16>, vector<1x256xf32> -> vector<1x256xf32>
    %292 = arith.addf %282, %291 : vector<1x256xf32>
    %293 = vector.extract_strided_slice %272 {offsets = [0, 4, 0], sizes = [1, 1, 128], strides = [1, 1, 1]} : vector<1x16x128xf32> to vector<1x1x128xf32>
    %294 = vector.shape_cast %293 : vector<1x1x128xf32> to vector<1x128xf32>
    %295 = vector.extract_strided_slice %272 {offsets = [0, 5, 0], sizes = [1, 1, 128], strides = [1, 1, 1]} : vector<1x16x128xf32> to vector<1x1x128xf32>
    %296 = vector.shape_cast %295 : vector<1x1x128xf32> to vector<1x128xf32>
    %297 = arith.maximumf %294, %296 : vector<1x128xf32>
    %298 = arith.truncf %297 : vector<1x128xf32> to vector<1x128xbf16>
    %c14 = arith.constant 14 : index
    %c0_188 = arith.constant 0 : index
    %c0_189 = arith.constant 0 : index
    %299 = vector.load %arg8[%c14, %c0_188, %c0_189] : memref<36x128x256xbf16, #tpu.memory_space<vmem>>, vector<1x128x256xbf16>
    %300 = vector.shape_cast %299 : vector<1x128x256xbf16> to vector<128x256xbf16>
    %cst_190 = arith.constant dense<0.000000e+00> : vector<1x256xf32>
    %301 = tpu.matmul %298, %300, %cst_190 {dimension_numbers = #tpu.dot_dimension_numbers<[1], [0], [0], [1], [0, 0, 1, 1], [], []>} : vector<1x128xbf16>, vector<128x256xbf16>, vector<1x256xf32> -> vector<1x256xf32>
    %302 = arith.addf %292, %301 : vector<1x256xf32>
    %303 = vector.extract_strided_slice %272 {offsets = [0, 6, 0], sizes = [1, 1, 128], strides = [1, 1, 1]} : vector<1x16x128xf32> to vector<1x1x128xf32>
    %304 = vector.shape_cast %303 : vector<1x1x128xf32> to vector<1x128xf32>
    %305 = vector.extract_strided_slice %272 {offsets = [0, 7, 0], sizes = [1, 1, 128], strides = [1, 1, 1]} : vector<1x16x128xf32> to vector<1x1x128xf32>
    %306 = vector.shape_cast %305 : vector<1x1x128xf32> to vector<1x128xf32>
    %307 = arith.maximumf %304, %306 : vector<1x128xf32>
    %308 = arith.truncf %307 : vector<1x128xf32> to vector<1x128xbf16>
    %c15 = arith.constant 15 : index
    %c0_191 = arith.constant 0 : index
    %c0_192 = arith.constant 0 : index
    %309 = vector.load %arg8[%c15, %c0_191, %c0_192] : memref<36x128x256xbf16, #tpu.memory_space<vmem>>, vector<1x128x256xbf16>
    %310 = vector.shape_cast %309 : vector<1x128x256xbf16> to vector<128x256xbf16>
    %cst_193 = arith.constant dense<0.000000e+00> : vector<1x256xf32>
    %311 = tpu.matmul %308, %310, %cst_193 {dimension_numbers = #tpu.dot_dimension_numbers<[1], [0], [0], [1], [0, 0, 1, 1], [], []>} : vector<1x128xbf16>, vector<128x256xbf16>, vector<1x256xf32> -> vector<1x256xf32>
    %312 = arith.addf %302, %311 : vector<1x256xf32>
    %313 = vector.extract_strided_slice %272 {offsets = [0, 8, 0], sizes = [1, 1, 128], strides = [1, 1, 1]} : vector<1x16x128xf32> to vector<1x1x128xf32>
    %314 = vector.shape_cast %313 : vector<1x1x128xf32> to vector<1x128xf32>
    %315 = vector.extract_strided_slice %272 {offsets = [0, 9, 0], sizes = [1, 1, 128], strides = [1, 1, 1]} : vector<1x16x128xf32> to vector<1x1x128xf32>
    %316 = vector.shape_cast %315 : vector<1x1x128xf32> to vector<1x128xf32>
    %317 = arith.maximumf %314, %316 : vector<1x128xf32>
    %318 = arith.truncf %317 : vector<1x128xf32> to vector<1x128xbf16>
    %c16 = arith.constant 16 : index
    %c0_194 = arith.constant 0 : index
    %c0_195 = arith.constant 0 : index
    %319 = vector.load %arg8[%c16, %c0_194, %c0_195] : memref<36x128x256xbf16, #tpu.memory_space<vmem>>, vector<1x128x256xbf16>
    %320 = vector.shape_cast %319 : vector<1x128x256xbf16> to vector<128x256xbf16>
    %cst_196 = arith.constant dense<0.000000e+00> : vector<1x256xf32>
    %321 = tpu.matmul %318, %320, %cst_196 {dimension_numbers = #tpu.dot_dimension_numbers<[1], [0], [0], [1], [0, 0, 1, 1], [], []>} : vector<1x128xbf16>, vector<128x256xbf16>, vector<1x256xf32> -> vector<1x256xf32>
    %322 = arith.addf %312, %321 : vector<1x256xf32>
    %323 = vector.extract_strided_slice %272 {offsets = [0, 10, 0], sizes = [1, 1, 128], strides = [1, 1, 1]} : vector<1x16x128xf32> to vector<1x1x128xf32>
    %324 = vector.shape_cast %323 : vector<1x1x128xf32> to vector<1x128xf32>
    %325 = vector.extract_strided_slice %272 {offsets = [0, 11, 0], sizes = [1, 1, 128], strides = [1, 1, 1]} : vector<1x16x128xf32> to vector<1x1x128xf32>
    %326 = vector.shape_cast %325 : vector<1x1x128xf32> to vector<1x128xf32>
    %327 = arith.maximumf %324, %326 : vector<1x128xf32>
    %328 = arith.truncf %327 : vector<1x128xf32> to vector<1x128xbf16>
    %c17 = arith.constant 17 : index
    %c0_197 = arith.constant 0 : index
    %c0_198 = arith.constant 0 : index
    %329 = vector.load %arg8[%c17, %c0_197, %c0_198] : memref<36x128x256xbf16, #tpu.memory_space<vmem>>, vector<1x128x256xbf16>
    %330 = vector.shape_cast %329 : vector<1x128x256xbf16> to vector<128x256xbf16>
    %cst_199 = arith.constant dense<0.000000e+00> : vector<1x256xf32>
    %331 = tpu.matmul %328, %330, %cst_199 {dimension_numbers = #tpu.dot_dimension_numbers<[1], [0], [0], [1], [0, 0, 1, 1], [], []>} : vector<1x128xbf16>, vector<128x256xbf16>, vector<1x256xf32> -> vector<1x256xf32>
    %332 = arith.addf %322, %331 : vector<1x256xf32>
    %c6_200 = arith.constant 6 : index
    %c0_201 = arith.constant 0 : index
    %c0_202 = arith.constant 0 : index
    %333 = vector.load %arg13[%c6_200, %c0_201, %c0_202] : memref<15x16x192xbf16, #tpu.memory_space<vmem>>, vector<1x16x192xbf16>
    %334 = vector.shape_cast %333 : vector<1x16x192xbf16> to vector<16x192xbf16>
    %c0_203 = arith.constant 0 : index
    %c0_204 = arith.constant 0 : index
    %c0_205 = arith.constant 0 : index
    %335 = vector.load %arg5[%c0_203, %c0_204, %c0_205] : memref<3x192x128xbf16, #tpu.memory_space<vmem>>, vector<1x192x128xbf16>
    %336 = vector.shape_cast %335 : vector<1x192x128xbf16> to vector<192x128xbf16>
    %cst_206 = arith.constant dense<0.000000e+00> : vector<16x128xf32>
    %337 = tpu.matmul %334, %336, %cst_206 {dimension_numbers = #tpu.dot_dimension_numbers<[1], [0], [0], [1], [0, 0, 1, 1], [], []>} : vector<16x192xbf16>, vector<192x128xbf16>, vector<16x128xf32> -> vector<16x128xf32>
    %c7_207 = arith.constant 7 : index
    %c0_208 = arith.constant 0 : index
    %c0_209 = arith.constant 0 : index
    %338 = vector.load %arg13[%c7_207, %c0_208, %c0_209] : memref<15x16x192xbf16, #tpu.memory_space<vmem>>, vector<1x16x192xbf16>
    %339 = vector.shape_cast %338 : vector<1x16x192xbf16> to vector<16x192xbf16>
    %c1_210 = arith.constant 1 : index
    %c0_211 = arith.constant 0 : index
    %c0_212 = arith.constant 0 : index
    %340 = vector.load %arg5[%c1_210, %c0_211, %c0_212] : memref<3x192x128xbf16, #tpu.memory_space<vmem>>, vector<1x192x128xbf16>
    %341 = vector.shape_cast %340 : vector<1x192x128xbf16> to vector<192x128xbf16>
    %cst_213 = arith.constant dense<0.000000e+00> : vector<16x128xf32>
    %342 = tpu.matmul %339, %341, %cst_213 {dimension_numbers = #tpu.dot_dimension_numbers<[1], [0], [0], [1], [0, 0, 1, 1], [], []>} : vector<16x192xbf16>, vector<192x128xbf16>, vector<16x128xf32> -> vector<16x128xf32>
    %343 = arith.addf %337, %342 : vector<16x128xf32>
    %c8_214 = arith.constant 8 : index
    %c0_215 = arith.constant 0 : index
    %c0_216 = arith.constant 0 : index
    %344 = vector.load %arg13[%c8_214, %c0_215, %c0_216] : memref<15x16x192xbf16, #tpu.memory_space<vmem>>, vector<1x16x192xbf16>
    %345 = vector.shape_cast %344 : vector<1x16x192xbf16> to vector<16x192xbf16>
    %c2_217 = arith.constant 2 : index
    %c0_218 = arith.constant 0 : index
    %c0_219 = arith.constant 0 : index
    %346 = vector.load %arg5[%c2_217, %c0_218, %c0_219] : memref<3x192x128xbf16, #tpu.memory_space<vmem>>, vector<1x192x128xbf16>
    %347 = vector.shape_cast %346 : vector<1x192x128xbf16> to vector<192x128xbf16>
    %cst_220 = arith.constant dense<0.000000e+00> : vector<16x128xf32>
    %348 = tpu.matmul %345, %347, %cst_220 {dimension_numbers = #tpu.dot_dimension_numbers<[1], [0], [0], [1], [0, 0, 1, 1], [], []>} : vector<16x192xbf16>, vector<192x128xbf16>, vector<16x128xf32> -> vector<16x128xf32>
    %349 = arith.addf %343, %348 : vector<16x128xf32>
    %350 = vector.broadcast %6 : vector<1x128xf32> to vector<16x128xf32>
    %351 = arith.mulf %349, %350 : vector<16x128xf32>
    %352 = vector.broadcast %7 : vector<1x128xf32> to vector<16x128xf32>
    %353 = arith.addf %351, %352 : vector<16x128xf32>
    %cst_221 = arith.constant 0.000000e+00 : f32
    %354 = vector.broadcast %cst_221 : f32 to vector<16x128xf32>
    %355 = arith.maximumf %353, %354 : vector<16x128xf32>
    %c7_222 = arith.constant 7 : index
    %c0_223 = arith.constant 0 : index
    %c0_224 = arith.constant 0 : index
    %356 = vector.load %arg13[%c7_222, %c0_223, %c0_224] : memref<15x16x192xbf16, #tpu.memory_space<vmem>>, vector<1x16x192xbf16>
    %357 = vector.shape_cast %356 : vector<1x16x192xbf16> to vector<16x192xbf16>
    %c0_225 = arith.constant 0 : index
    %c0_226 = arith.constant 0 : index
    %c0_227 = arith.constant 0 : index
    %358 = vector.load %arg5[%c0_225, %c0_226, %c0_227] : memref<3x192x128xbf16, #tpu.memory_space<vmem>>, vector<1x192x128xbf16>
    %359 = vector.shape_cast %358 : vector<1x192x128xbf16> to vector<192x128xbf16>
    %cst_228 = arith.constant dense<0.000000e+00> : vector<16x128xf32>
    %360 = tpu.matmul %357, %359, %cst_228 {dimension_numbers = #tpu.dot_dimension_numbers<[1], [0], [0], [1], [0, 0, 1, 1], [], []>} : vector<16x192xbf16>, vector<192x128xbf16>, vector<16x128xf32> -> vector<16x128xf32>
    %c8_229 = arith.constant 8 : index
    %c0_230 = arith.constant 0 : index
    %c0_231 = arith.constant 0 : index
    %361 = vector.load %arg13[%c8_229, %c0_230, %c0_231] : memref<15x16x192xbf16, #tpu.memory_space<vmem>>, vector<1x16x192xbf16>
    %362 = vector.shape_cast %361 : vector<1x16x192xbf16> to vector<16x192xbf16>
    %c1_232 = arith.constant 1 : index
    %c0_233 = arith.constant 0 : index
    %c0_234 = arith.constant 0 : index
    %363 = vector.load %arg5[%c1_232, %c0_233, %c0_234] : memref<3x192x128xbf16, #tpu.memory_space<vmem>>, vector<1x192x128xbf16>
    %364 = vector.shape_cast %363 : vector<1x192x128xbf16> to vector<192x128xbf16>
    %cst_235 = arith.constant dense<0.000000e+00> : vector<16x128xf32>
    %365 = tpu.matmul %362, %364, %cst_235 {dimension_numbers = #tpu.dot_dimension_numbers<[1], [0], [0], [1], [0, 0, 1, 1], [], []>} : vector<16x192xbf16>, vector<192x128xbf16>, vector<16x128xf32> -> vector<16x128xf32>
    %366 = arith.addf %360, %365 : vector<16x128xf32>
    %c9_236 = arith.constant 9 : index
    %c0_237 = arith.constant 0 : index
    %c0_238 = arith.constant 0 : index
    %367 = vector.load %arg13[%c9_236, %c0_237, %c0_238] : memref<15x16x192xbf16, #tpu.memory_space<vmem>>, vector<1x16x192xbf16>
    %368 = vector.shape_cast %367 : vector<1x16x192xbf16> to vector<16x192xbf16>
    %c2_239 = arith.constant 2 : index
    %c0_240 = arith.constant 0 : index
    %c0_241 = arith.constant 0 : index
    %369 = vector.load %arg5[%c2_239, %c0_240, %c0_241] : memref<3x192x128xbf16, #tpu.memory_space<vmem>>, vector<1x192x128xbf16>
    %370 = vector.shape_cast %369 : vector<1x192x128xbf16> to vector<192x128xbf16>
    %cst_242 = arith.constant dense<0.000000e+00> : vector<16x128xf32>
    %371 = tpu.matmul %368, %370, %cst_242 {dimension_numbers = #tpu.dot_dimension_numbers<[1], [0], [0], [1], [0, 0, 1, 1], [], []>} : vector<16x192xbf16>, vector<192x128xbf16>, vector<16x128xf32> -> vector<16x128xf32>
    %372 = arith.addf %366, %371 : vector<16x128xf32>
    %373 = vector.broadcast %6 : vector<1x128xf32> to vector<16x128xf32>
    %374 = arith.mulf %372, %373 : vector<16x128xf32>
    %375 = vector.broadcast %7 : vector<1x128xf32> to vector<16x128xf32>
    %376 = arith.addf %374, %375 : vector<16x128xf32>
    %cst_243 = arith.constant 0.000000e+00 : f32
    %377 = vector.broadcast %cst_243 : f32 to vector<16x128xf32>
    %378 = arith.maximumf %376, %377 : vector<16x128xf32>
    %379 = arith.maximumf %355, %378 : vector<16x128xf32>
    %380 = vector.shape_cast %379 : vector<16x128xf32> to vector<1x16x128xf32>
    %381 = vector.extract_strided_slice %380 {offsets = [0, 0, 0], sizes = [1, 1, 128], strides = [1, 1, 1]} : vector<1x16x128xf32> to vector<1x1x128xf32>
    %382 = vector.shape_cast %381 : vector<1x1x128xf32> to vector<1x128xf32>
    %383 = vector.extract_strided_slice %380 {offsets = [0, 1, 0], sizes = [1, 1, 128], strides = [1, 1, 1]} : vector<1x16x128xf32> to vector<1x1x128xf32>
    %384 = vector.shape_cast %383 : vector<1x1x128xf32> to vector<1x128xf32>
    %385 = arith.maximumf %382, %384 : vector<1x128xf32>
    %386 = arith.truncf %385 : vector<1x128xf32> to vector<1x128xbf16>
    %c18 = arith.constant 18 : index
    %c0_244 = arith.constant 0 : index
    %c0_245 = arith.constant 0 : index
    %387 = vector.load %arg8[%c18, %c0_244, %c0_245] : memref<36x128x256xbf16, #tpu.memory_space<vmem>>, vector<1x128x256xbf16>
    %388 = vector.shape_cast %387 : vector<1x128x256xbf16> to vector<128x256xbf16>
    %cst_246 = arith.constant dense<0.000000e+00> : vector<1x256xf32>
    %389 = tpu.matmul %386, %388, %cst_246 {dimension_numbers = #tpu.dot_dimension_numbers<[1], [0], [0], [1], [0, 0, 1, 1], [], []>} : vector<1x128xbf16>, vector<128x256xbf16>, vector<1x256xf32> -> vector<1x256xf32>
    %390 = arith.addf %332, %389 : vector<1x256xf32>
    %391 = vector.extract_strided_slice %380 {offsets = [0, 2, 0], sizes = [1, 1, 128], strides = [1, 1, 1]} : vector<1x16x128xf32> to vector<1x1x128xf32>
    %392 = vector.shape_cast %391 : vector<1x1x128xf32> to vector<1x128xf32>
    %393 = vector.extract_strided_slice %380 {offsets = [0, 3, 0], sizes = [1, 1, 128], strides = [1, 1, 1]} : vector<1x16x128xf32> to vector<1x1x128xf32>
    %394 = vector.shape_cast %393 : vector<1x1x128xf32> to vector<1x128xf32>
    %395 = arith.maximumf %392, %394 : vector<1x128xf32>
    %396 = arith.truncf %395 : vector<1x128xf32> to vector<1x128xbf16>
    %c19 = arith.constant 19 : index
    %c0_247 = arith.constant 0 : index
    %c0_248 = arith.constant 0 : index
    %397 = vector.load %arg8[%c19, %c0_247, %c0_248] : memref<36x128x256xbf16, #tpu.memory_space<vmem>>, vector<1x128x256xbf16>
    %398 = vector.shape_cast %397 : vector<1x128x256xbf16> to vector<128x256xbf16>
    %cst_249 = arith.constant dense<0.000000e+00> : vector<1x256xf32>
    %399 = tpu.matmul %396, %398, %cst_249 {dimension_numbers = #tpu.dot_dimension_numbers<[1], [0], [0], [1], [0, 0, 1, 1], [], []>} : vector<1x128xbf16>, vector<128x256xbf16>, vector<1x256xf32> -> vector<1x256xf32>
    %400 = arith.addf %390, %399 : vector<1x256xf32>
    %401 = vector.extract_strided_slice %380 {offsets = [0, 4, 0], sizes = [1, 1, 128], strides = [1, 1, 1]} : vector<1x16x128xf32> to vector<1x1x128xf32>
    %402 = vector.shape_cast %401 : vector<1x1x128xf32> to vector<1x128xf32>
    %403 = vector.extract_strided_slice %380 {offsets = [0, 5, 0], sizes = [1, 1, 128], strides = [1, 1, 1]} : vector<1x16x128xf32> to vector<1x1x128xf32>
    %404 = vector.shape_cast %403 : vector<1x1x128xf32> to vector<1x128xf32>
    %405 = arith.maximumf %402, %404 : vector<1x128xf32>
    %406 = arith.truncf %405 : vector<1x128xf32> to vector<1x128xbf16>
    %c20 = arith.constant 20 : index
    %c0_250 = arith.constant 0 : index
    %c0_251 = arith.constant 0 : index
    %407 = vector.load %arg8[%c20, %c0_250, %c0_251] : memref<36x128x256xbf16, #tpu.memory_space<vmem>>, vector<1x128x256xbf16>
    %408 = vector.shape_cast %407 : vector<1x128x256xbf16> to vector<128x256xbf16>
    %cst_252 = arith.constant dense<0.000000e+00> : vector<1x256xf32>
    %409 = tpu.matmul %406, %408, %cst_252 {dimension_numbers = #tpu.dot_dimension_numbers<[1], [0], [0], [1], [0, 0, 1, 1], [], []>} : vector<1x128xbf16>, vector<128x256xbf16>, vector<1x256xf32> -> vector<1x256xf32>
    %410 = arith.addf %400, %409 : vector<1x256xf32>
    %411 = vector.extract_strided_slice %380 {offsets = [0, 6, 0], sizes = [1, 1, 128], strides = [1, 1, 1]} : vector<1x16x128xf32> to vector<1x1x128xf32>
    %412 = vector.shape_cast %411 : vector<1x1x128xf32> to vector<1x128xf32>
    %413 = vector.extract_strided_slice %380 {offsets = [0, 7, 0], sizes = [1, 1, 128], strides = [1, 1, 1]} : vector<1x16x128xf32> to vector<1x1x128xf32>
    %414 = vector.shape_cast %413 : vector<1x1x128xf32> to vector<1x128xf32>
    %415 = arith.maximumf %412, %414 : vector<1x128xf32>
    %416 = arith.truncf %415 : vector<1x128xf32> to vector<1x128xbf16>
    %c21 = arith.constant 21 : index
    %c0_253 = arith.constant 0 : index
    %c0_254 = arith.constant 0 : index
    %417 = vector.load %arg8[%c21, %c0_253, %c0_254] : memref<36x128x256xbf16, #tpu.memory_space<vmem>>, vector<1x128x256xbf16>
    %418 = vector.shape_cast %417 : vector<1x128x256xbf16> to vector<128x256xbf16>
    %cst_255 = arith.constant dense<0.000000e+00> : vector<1x256xf32>
    %419 = tpu.matmul %416, %418, %cst_255 {dimension_numbers = #tpu.dot_dimension_numbers<[1], [0], [0], [1], [0, 0, 1, 1], [], []>} : vector<1x128xbf16>, vector<128x256xbf16>, vector<1x256xf32> -> vector<1x256xf32>
    %420 = arith.addf %410, %419 : vector<1x256xf32>
    %421 = vector.extract_strided_slice %380 {offsets = [0, 8, 0], sizes = [1, 1, 128], strides = [1, 1, 1]} : vector<1x16x128xf32> to vector<1x1x128xf32>
    %422 = vector.shape_cast %421 : vector<1x1x128xf32> to vector<1x128xf32>
    %423 = vector.extract_strided_slice %380 {offsets = [0, 9, 0], sizes = [1, 1, 128], strides = [1, 1, 1]} : vector<1x16x128xf32> to vector<1x1x128xf32>
    %424 = vector.shape_cast %423 : vector<1x1x128xf32> to vector<1x128xf32>
    %425 = arith.maximumf %422, %424 : vector<1x128xf32>
    %426 = arith.truncf %425 : vector<1x128xf32> to vector<1x128xbf16>
    %c22 = arith.constant 22 : index
    %c0_256 = arith.constant 0 : index
    %c0_257 = arith.constant 0 : index
    %427 = vector.load %arg8[%c22, %c0_256, %c0_257] : memref<36x128x256xbf16, #tpu.memory_space<vmem>>, vector<1x128x256xbf16>
    %428 = vector.shape_cast %427 : vector<1x128x256xbf16> to vector<128x256xbf16>
    %cst_258 = arith.constant dense<0.000000e+00> : vector<1x256xf32>
    %429 = tpu.matmul %426, %428, %cst_258 {dimension_numbers = #tpu.dot_dimension_numbers<[1], [0], [0], [1], [0, 0, 1, 1], [], []>} : vector<1x128xbf16>, vector<128x256xbf16>, vector<1x256xf32> -> vector<1x256xf32>
    %430 = arith.addf %420, %429 : vector<1x256xf32>
    %431 = vector.extract_strided_slice %380 {offsets = [0, 10, 0], sizes = [1, 1, 128], strides = [1, 1, 1]} : vector<1x16x128xf32> to vector<1x1x128xf32>
    %432 = vector.shape_cast %431 : vector<1x1x128xf32> to vector<1x128xf32>
    %433 = vector.extract_strided_slice %380 {offsets = [0, 11, 0], sizes = [1, 1, 128], strides = [1, 1, 1]} : vector<1x16x128xf32> to vector<1x1x128xf32>
    %434 = vector.shape_cast %433 : vector<1x1x128xf32> to vector<1x128xf32>
    %435 = arith.maximumf %432, %434 : vector<1x128xf32>
    %436 = arith.truncf %435 : vector<1x128xf32> to vector<1x128xbf16>
    %c23 = arith.constant 23 : index
    %c0_259 = arith.constant 0 : index
    %c0_260 = arith.constant 0 : index
    %437 = vector.load %arg8[%c23, %c0_259, %c0_260] : memref<36x128x256xbf16, #tpu.memory_space<vmem>>, vector<1x128x256xbf16>
    %438 = vector.shape_cast %437 : vector<1x128x256xbf16> to vector<128x256xbf16>
    %cst_261 = arith.constant dense<0.000000e+00> : vector<1x256xf32>
    %439 = tpu.matmul %436, %438, %cst_261 {dimension_numbers = #tpu.dot_dimension_numbers<[1], [0], [0], [1], [0, 0, 1, 1], [], []>} : vector<1x128xbf16>, vector<128x256xbf16>, vector<1x256xf32> -> vector<1x256xf32>
    %440 = arith.addf %430, %439 : vector<1x256xf32>
    %c8_262 = arith.constant 8 : index
    %c0_263 = arith.constant 0 : index
    %c0_264 = arith.constant 0 : index
    %441 = vector.load %arg13[%c8_262, %c0_263, %c0_264] : memref<15x16x192xbf16, #tpu.memory_space<vmem>>, vector<1x16x192xbf16>
    %442 = vector.shape_cast %441 : vector<1x16x192xbf16> to vector<16x192xbf16>
    %c0_265 = arith.constant 0 : index
    %c0_266 = arith.constant 0 : index
    %c0_267 = arith.constant 0 : index
    %443 = vector.load %arg5[%c0_265, %c0_266, %c0_267] : memref<3x192x128xbf16, #tpu.memory_space<vmem>>, vector<1x192x128xbf16>
    %444 = vector.shape_cast %443 : vector<1x192x128xbf16> to vector<192x128xbf16>
    %cst_268 = arith.constant dense<0.000000e+00> : vector<16x128xf32>
    %445 = tpu.matmul %442, %444, %cst_268 {dimension_numbers = #tpu.dot_dimension_numbers<[1], [0], [0], [1], [0, 0, 1, 1], [], []>} : vector<16x192xbf16>, vector<192x128xbf16>, vector<16x128xf32> -> vector<16x128xf32>
    %c9_269 = arith.constant 9 : index
    %c0_270 = arith.constant 0 : index
    %c0_271 = arith.constant 0 : index
    %446 = vector.load %arg13[%c9_269, %c0_270, %c0_271] : memref<15x16x192xbf16, #tpu.memory_space<vmem>>, vector<1x16x192xbf16>
    %447 = vector.shape_cast %446 : vector<1x16x192xbf16> to vector<16x192xbf16>
    %c1_272 = arith.constant 1 : index
    %c0_273 = arith.constant 0 : index
    %c0_274 = arith.constant 0 : index
    %448 = vector.load %arg5[%c1_272, %c0_273, %c0_274] : memref<3x192x128xbf16, #tpu.memory_space<vmem>>, vector<1x192x128xbf16>
    %449 = vector.shape_cast %448 : vector<1x192x128xbf16> to vector<192x128xbf16>
    %cst_275 = arith.constant dense<0.000000e+00> : vector<16x128xf32>
    %450 = tpu.matmul %447, %449, %cst_275 {dimension_numbers = #tpu.dot_dimension_numbers<[1], [0], [0], [1], [0, 0, 1, 1], [], []>} : vector<16x192xbf16>, vector<192x128xbf16>, vector<16x128xf32> -> vector<16x128xf32>
    %451 = arith.addf %445, %450 : vector<16x128xf32>
    %c10_276 = arith.constant 10 : index
    %c0_277 = arith.constant 0 : index
    %c0_278 = arith.constant 0 : index
    %452 = vector.load %arg13[%c10_276, %c0_277, %c0_278] : memref<15x16x192xbf16, #tpu.memory_space<vmem>>, vector<1x16x192xbf16>
    %453 = vector.shape_cast %452 : vector<1x16x192xbf16> to vector<16x192xbf16>
    %c2_279 = arith.constant 2 : index
    %c0_280 = arith.constant 0 : index
    %c0_281 = arith.constant 0 : index
    %454 = vector.load %arg5[%c2_279, %c0_280, %c0_281] : memref<3x192x128xbf16, #tpu.memory_space<vmem>>, vector<1x192x128xbf16>
    %455 = vector.shape_cast %454 : vector<1x192x128xbf16> to vector<192x128xbf16>
    %cst_282 = arith.constant dense<0.000000e+00> : vector<16x128xf32>
    %456 = tpu.matmul %453, %455, %cst_282 {dimension_numbers = #tpu.dot_dimension_numbers<[1], [0], [0], [1], [0, 0, 1, 1], [], []>} : vector<16x192xbf16>, vector<192x128xbf16>, vector<16x128xf32> -> vector<16x128xf32>
    %457 = arith.addf %451, %456 : vector<16x128xf32>
    %458 = vector.broadcast %6 : vector<1x128xf32> to vector<16x128xf32>
    %459 = arith.mulf %457, %458 : vector<16x128xf32>
    %460 = vector.broadcast %7 : vector<1x128xf32> to vector<16x128xf32>
    %461 = arith.addf %459, %460 : vector<16x128xf32>
    %cst_283 = arith.constant 0.000000e+00 : f32
    %462 = vector.broadcast %cst_283 : f32 to vector<16x128xf32>
    %463 = arith.maximumf %461, %462 : vector<16x128xf32>
    %c9_284 = arith.constant 9 : index
    %c0_285 = arith.constant 0 : index
    %c0_286 = arith.constant 0 : index
    %464 = vector.load %arg13[%c9_284, %c0_285, %c0_286] : memref<15x16x192xbf16, #tpu.memory_space<vmem>>, vector<1x16x192xbf16>
    %465 = vector.shape_cast %464 : vector<1x16x192xbf16> to vector<16x192xbf16>
    %c0_287 = arith.constant 0 : index
    %c0_288 = arith.constant 0 : index
    %c0_289 = arith.constant 0 : index
    %466 = vector.load %arg5[%c0_287, %c0_288, %c0_289] : memref<3x192x128xbf16, #tpu.memory_space<vmem>>, vector<1x192x128xbf16>
    %467 = vector.shape_cast %466 : vector<1x192x128xbf16> to vector<192x128xbf16>
    %cst_290 = arith.constant dense<0.000000e+00> : vector<16x128xf32>
    %468 = tpu.matmul %465, %467, %cst_290 {dimension_numbers = #tpu.dot_dimension_numbers<[1], [0], [0], [1], [0, 0, 1, 1], [], []>} : vector<16x192xbf16>, vector<192x128xbf16>, vector<16x128xf32> -> vector<16x128xf32>
    %c10_291 = arith.constant 10 : index
    %c0_292 = arith.constant 0 : index
    %c0_293 = arith.constant 0 : index
    %469 = vector.load %arg13[%c10_291, %c0_292, %c0_293] : memref<15x16x192xbf16, #tpu.memory_space<vmem>>, vector<1x16x192xbf16>
    %470 = vector.shape_cast %469 : vector<1x16x192xbf16> to vector<16x192xbf16>
    %c1_294 = arith.constant 1 : index
    %c0_295 = arith.constant 0 : index
    %c0_296 = arith.constant 0 : index
    %471 = vector.load %arg5[%c1_294, %c0_295, %c0_296] : memref<3x192x128xbf16, #tpu.memory_space<vmem>>, vector<1x192x128xbf16>
    %472 = vector.shape_cast %471 : vector<1x192x128xbf16> to vector<192x128xbf16>
    %cst_297 = arith.constant dense<0.000000e+00> : vector<16x128xf32>
    %473 = tpu.matmul %470, %472, %cst_297 {dimension_numbers = #tpu.dot_dimension_numbers<[1], [0], [0], [1], [0, 0, 1, 1], [], []>} : vector<16x192xbf16>, vector<192x128xbf16>, vector<16x128xf32> -> vector<16x128xf32>
    %474 = arith.addf %468, %473 : vector<16x128xf32>
    %c11_298 = arith.constant 11 : index
    %c0_299 = arith.constant 0 : index
    %c0_300 = arith.constant 0 : index
    %475 = vector.load %arg13[%c11_298, %c0_299, %c0_300] : memref<15x16x192xbf16, #tpu.memory_space<vmem>>, vector<1x16x192xbf16>
    %476 = vector.shape_cast %475 : vector<1x16x192xbf16> to vector<16x192xbf16>
    %c2_301 = arith.constant 2 : index
    %c0_302 = arith.constant 0 : index
    %c0_303 = arith.constant 0 : index
    %477 = vector.load %arg5[%c2_301, %c0_302, %c0_303] : memref<3x192x128xbf16, #tpu.memory_space<vmem>>, vector<1x192x128xbf16>
    %478 = vector.shape_cast %477 : vector<1x192x128xbf16> to vector<192x128xbf16>
    %cst_304 = arith.constant dense<0.000000e+00> : vector<16x128xf32>
    %479 = tpu.matmul %476, %478, %cst_304 {dimension_numbers = #tpu.dot_dimension_numbers<[1], [0], [0], [1], [0, 0, 1, 1], [], []>} : vector<16x192xbf16>, vector<192x128xbf16>, vector<16x128xf32> -> vector<16x128xf32>
    %480 = arith.addf %474, %479 : vector<16x128xf32>
    %481 = vector.broadcast %6 : vector<1x128xf32> to vector<16x128xf32>
    %482 = arith.mulf %480, %481 : vector<16x128xf32>
    %483 = vector.broadcast %7 : vector<1x128xf32> to vector<16x128xf32>
    %484 = arith.addf %482, %483 : vector<16x128xf32>
    %cst_305 = arith.constant 0.000000e+00 : f32
    %485 = vector.broadcast %cst_305 : f32 to vector<16x128xf32>
    %486 = arith.maximumf %484, %485 : vector<16x128xf32>
    %487 = arith.maximumf %463, %486 : vector<16x128xf32>
    %488 = vector.shape_cast %487 : vector<16x128xf32> to vector<1x16x128xf32>
    %489 = vector.extract_strided_slice %488 {offsets = [0, 0, 0], sizes = [1, 1, 128], strides = [1, 1, 1]} : vector<1x16x128xf32> to vector<1x1x128xf32>
    %490 = vector.shape_cast %489 : vector<1x1x128xf32> to vector<1x128xf32>
    %491 = vector.extract_strided_slice %488 {offsets = [0, 1, 0], sizes = [1, 1, 128], strides = [1, 1, 1]} : vector<1x16x128xf32> to vector<1x1x128xf32>
    %492 = vector.shape_cast %491 : vector<1x1x128xf32> to vector<1x128xf32>
    %493 = arith.maximumf %490, %492 : vector<1x128xf32>
    %494 = arith.truncf %493 : vector<1x128xf32> to vector<1x128xbf16>
    %c24 = arith.constant 24 : index
    %c0_306 = arith.constant 0 : index
    %c0_307 = arith.constant 0 : index
    %495 = vector.load %arg8[%c24, %c0_306, %c0_307] : memref<36x128x256xbf16, #tpu.memory_space<vmem>>, vector<1x128x256xbf16>
    %496 = vector.shape_cast %495 : vector<1x128x256xbf16> to vector<128x256xbf16>
    %cst_308 = arith.constant dense<0.000000e+00> : vector<1x256xf32>
    %497 = tpu.matmul %494, %496, %cst_308 {dimension_numbers = #tpu.dot_dimension_numbers<[1], [0], [0], [1], [0, 0, 1, 1], [], []>} : vector<1x128xbf16>, vector<128x256xbf16>, vector<1x256xf32> -> vector<1x256xf32>
    %498 = arith.addf %440, %497 : vector<1x256xf32>
    %499 = vector.extract_strided_slice %488 {offsets = [0, 2, 0], sizes = [1, 1, 128], strides = [1, 1, 1]} : vector<1x16x128xf32> to vector<1x1x128xf32>
    %500 = vector.shape_cast %499 : vector<1x1x128xf32> to vector<1x128xf32>
    %501 = vector.extract_strided_slice %488 {offsets = [0, 3, 0], sizes = [1, 1, 128], strides = [1, 1, 1]} : vector<1x16x128xf32> to vector<1x1x128xf32>
    %502 = vector.shape_cast %501 : vector<1x1x128xf32> to vector<1x128xf32>
    %503 = arith.maximumf %500, %502 : vector<1x128xf32>
    %504 = arith.truncf %503 : vector<1x128xf32> to vector<1x128xbf16>
    %c25 = arith.constant 25 : index
    %c0_309 = arith.constant 0 : index
    %c0_310 = arith.constant 0 : index
    %505 = vector.load %arg8[%c25, %c0_309, %c0_310] : memref<36x128x256xbf16, #tpu.memory_space<vmem>>, vector<1x128x256xbf16>
    %506 = vector.shape_cast %505 : vector<1x128x256xbf16> to vector<128x256xbf16>
    %cst_311 = arith.constant dense<0.000000e+00> : vector<1x256xf32>
    %507 = tpu.matmul %504, %506, %cst_311 {dimension_numbers = #tpu.dot_dimension_numbers<[1], [0], [0], [1], [0, 0, 1, 1], [], []>} : vector<1x128xbf16>, vector<128x256xbf16>, vector<1x256xf32> -> vector<1x256xf32>
    %508 = arith.addf %498, %507 : vector<1x256xf32>
    %509 = vector.extract_strided_slice %488 {offsets = [0, 4, 0], sizes = [1, 1, 128], strides = [1, 1, 1]} : vector<1x16x128xf32> to vector<1x1x128xf32>
    %510 = vector.shape_cast %509 : vector<1x1x128xf32> to vector<1x128xf32>
    %511 = vector.extract_strided_slice %488 {offsets = [0, 5, 0], sizes = [1, 1, 128], strides = [1, 1, 1]} : vector<1x16x128xf32> to vector<1x1x128xf32>
    %512 = vector.shape_cast %511 : vector<1x1x128xf32> to vector<1x128xf32>
    %513 = arith.maximumf %510, %512 : vector<1x128xf32>
    %514 = arith.truncf %513 : vector<1x128xf32> to vector<1x128xbf16>
    %c26 = arith.constant 26 : index
    %c0_312 = arith.constant 0 : index
    %c0_313 = arith.constant 0 : index
    %515 = vector.load %arg8[%c26, %c0_312, %c0_313] : memref<36x128x256xbf16, #tpu.memory_space<vmem>>, vector<1x128x256xbf16>
    %516 = vector.shape_cast %515 : vector<1x128x256xbf16> to vector<128x256xbf16>
    %cst_314 = arith.constant dense<0.000000e+00> : vector<1x256xf32>
    %517 = tpu.matmul %514, %516, %cst_314 {dimension_numbers = #tpu.dot_dimension_numbers<[1], [0], [0], [1], [0, 0, 1, 1], [], []>} : vector<1x128xbf16>, vector<128x256xbf16>, vector<1x256xf32> -> vector<1x256xf32>
    %518 = arith.addf %508, %517 : vector<1x256xf32>
    %519 = vector.extract_strided_slice %488 {offsets = [0, 6, 0], sizes = [1, 1, 128], strides = [1, 1, 1]} : vector<1x16x128xf32> to vector<1x1x128xf32>
    %520 = vector.shape_cast %519 : vector<1x1x128xf32> to vector<1x128xf32>
    %521 = vector.extract_strided_slice %488 {offsets = [0, 7, 0], sizes = [1, 1, 128], strides = [1, 1, 1]} : vector<1x16x128xf32> to vector<1x1x128xf32>
    %522 = vector.shape_cast %521 : vector<1x1x128xf32> to vector<1x128xf32>
    %523 = arith.maximumf %520, %522 : vector<1x128xf32>
    %524 = arith.truncf %523 : vector<1x128xf32> to vector<1x128xbf16>
    %c27 = arith.constant 27 : index
    %c0_315 = arith.constant 0 : index
    %c0_316 = arith.constant 0 : index
    %525 = vector.load %arg8[%c27, %c0_315, %c0_316] : memref<36x128x256xbf16, #tpu.memory_space<vmem>>, vector<1x128x256xbf16>
    %526 = vector.shape_cast %525 : vector<1x128x256xbf16> to vector<128x256xbf16>
    %cst_317 = arith.constant dense<0.000000e+00> : vector<1x256xf32>
    %527 = tpu.matmul %524, %526, %cst_317 {dimension_numbers = #tpu.dot_dimension_numbers<[1], [0], [0], [1], [0, 0, 1, 1], [], []>} : vector<1x128xbf16>, vector<128x256xbf16>, vector<1x256xf32> -> vector<1x256xf32>
    %528 = arith.addf %518, %527 : vector<1x256xf32>
    %529 = vector.extract_strided_slice %488 {offsets = [0, 8, 0], sizes = [1, 1, 128], strides = [1, 1, 1]} : vector<1x16x128xf32> to vector<1x1x128xf32>
    %530 = vector.shape_cast %529 : vector<1x1x128xf32> to vector<1x128xf32>
    %531 = vector.extract_strided_slice %488 {offsets = [0, 9, 0], sizes = [1, 1, 128], strides = [1, 1, 1]} : vector<1x16x128xf32> to vector<1x1x128xf32>
    %532 = vector.shape_cast %531 : vector<1x1x128xf32> to vector<1x128xf32>
    %533 = arith.maximumf %530, %532 : vector<1x128xf32>
    %534 = arith.truncf %533 : vector<1x128xf32> to vector<1x128xbf16>
    %c28 = arith.constant 28 : index
    %c0_318 = arith.constant 0 : index
    %c0_319 = arith.constant 0 : index
    %535 = vector.load %arg8[%c28, %c0_318, %c0_319] : memref<36x128x256xbf16, #tpu.memory_space<vmem>>, vector<1x128x256xbf16>
    %536 = vector.shape_cast %535 : vector<1x128x256xbf16> to vector<128x256xbf16>
    %cst_320 = arith.constant dense<0.000000e+00> : vector<1x256xf32>
    %537 = tpu.matmul %534, %536, %cst_320 {dimension_numbers = #tpu.dot_dimension_numbers<[1], [0], [0], [1], [0, 0, 1, 1], [], []>} : vector<1x128xbf16>, vector<128x256xbf16>, vector<1x256xf32> -> vector<1x256xf32>
    %538 = arith.addf %528, %537 : vector<1x256xf32>
    %539 = vector.extract_strided_slice %488 {offsets = [0, 10, 0], sizes = [1, 1, 128], strides = [1, 1, 1]} : vector<1x16x128xf32> to vector<1x1x128xf32>
    %540 = vector.shape_cast %539 : vector<1x1x128xf32> to vector<1x128xf32>
    %541 = vector.extract_strided_slice %488 {offsets = [0, 11, 0], sizes = [1, 1, 128], strides = [1, 1, 1]} : vector<1x16x128xf32> to vector<1x1x128xf32>
    %542 = vector.shape_cast %541 : vector<1x1x128xf32> to vector<1x128xf32>
    %543 = arith.maximumf %540, %542 : vector<1x128xf32>
    %544 = arith.truncf %543 : vector<1x128xf32> to vector<1x128xbf16>
    %c29 = arith.constant 29 : index
    %c0_321 = arith.constant 0 : index
    %c0_322 = arith.constant 0 : index
    %545 = vector.load %arg8[%c29, %c0_321, %c0_322] : memref<36x128x256xbf16, #tpu.memory_space<vmem>>, vector<1x128x256xbf16>
    %546 = vector.shape_cast %545 : vector<1x128x256xbf16> to vector<128x256xbf16>
    %cst_323 = arith.constant dense<0.000000e+00> : vector<1x256xf32>
    %547 = tpu.matmul %544, %546, %cst_323 {dimension_numbers = #tpu.dot_dimension_numbers<[1], [0], [0], [1], [0, 0, 1, 1], [], []>} : vector<1x128xbf16>, vector<128x256xbf16>, vector<1x256xf32> -> vector<1x256xf32>
    %548 = arith.addf %538, %547 : vector<1x256xf32>
    %c10_324 = arith.constant 10 : index
    %c0_325 = arith.constant 0 : index
    %c0_326 = arith.constant 0 : index
    %549 = vector.load %arg13[%c10_324, %c0_325, %c0_326] : memref<15x16x192xbf16, #tpu.memory_space<vmem>>, vector<1x16x192xbf16>
    %550 = vector.shape_cast %549 : vector<1x16x192xbf16> to vector<16x192xbf16>
    %c0_327 = arith.constant 0 : index
    %c0_328 = arith.constant 0 : index
    %c0_329 = arith.constant 0 : index
    %551 = vector.load %arg5[%c0_327, %c0_328, %c0_329] : memref<3x192x128xbf16, #tpu.memory_space<vmem>>, vector<1x192x128xbf16>
    %552 = vector.shape_cast %551 : vector<1x192x128xbf16> to vector<192x128xbf16>
    %cst_330 = arith.constant dense<0.000000e+00> : vector<16x128xf32>
    %553 = tpu.matmul %550, %552, %cst_330 {dimension_numbers = #tpu.dot_dimension_numbers<[1], [0], [0], [1], [0, 0, 1, 1], [], []>} : vector<16x192xbf16>, vector<192x128xbf16>, vector<16x128xf32> -> vector<16x128xf32>
    %c11_331 = arith.constant 11 : index
    %c0_332 = arith.constant 0 : index
    %c0_333 = arith.constant 0 : index
    %554 = vector.load %arg13[%c11_331, %c0_332, %c0_333] : memref<15x16x192xbf16, #tpu.memory_space<vmem>>, vector<1x16x192xbf16>
    %555 = vector.shape_cast %554 : vector<1x16x192xbf16> to vector<16x192xbf16>
    %c1_334 = arith.constant 1 : index
    %c0_335 = arith.constant 0 : index
    %c0_336 = arith.constant 0 : index
    %556 = vector.load %arg5[%c1_334, %c0_335, %c0_336] : memref<3x192x128xbf16, #tpu.memory_space<vmem>>, vector<1x192x128xbf16>
    %557 = vector.shape_cast %556 : vector<1x192x128xbf16> to vector<192x128xbf16>
    %cst_337 = arith.constant dense<0.000000e+00> : vector<16x128xf32>
    %558 = tpu.matmul %555, %557, %cst_337 {dimension_numbers = #tpu.dot_dimension_numbers<[1], [0], [0], [1], [0, 0, 1, 1], [], []>} : vector<16x192xbf16>, vector<192x128xbf16>, vector<16x128xf32> -> vector<16x128xf32>
    %559 = arith.addf %553, %558 : vector<16x128xf32>
    %c12_338 = arith.constant 12 : index
    %c0_339 = arith.constant 0 : index
    %c0_340 = arith.constant 0 : index
    %560 = vector.load %arg13[%c12_338, %c0_339, %c0_340] : memref<15x16x192xbf16, #tpu.memory_space<vmem>>, vector<1x16x192xbf16>
    %561 = vector.shape_cast %560 : vector<1x16x192xbf16> to vector<16x192xbf16>
    %c2_341 = arith.constant 2 : index
    %c0_342 = arith.constant 0 : index
    %c0_343 = arith.constant 0 : index
    %562 = vector.load %arg5[%c2_341, %c0_342, %c0_343] : memref<3x192x128xbf16, #tpu.memory_space<vmem>>, vector<1x192x128xbf16>
    %563 = vector.shape_cast %562 : vector<1x192x128xbf16> to vector<192x128xbf16>
    %cst_344 = arith.constant dense<0.000000e+00> : vector<16x128xf32>
    %564 = tpu.matmul %561, %563, %cst_344 {dimension_numbers = #tpu.dot_dimension_numbers<[1], [0], [0], [1], [0, 0, 1, 1], [], []>} : vector<16x192xbf16>, vector<192x128xbf16>, vector<16x128xf32> -> vector<16x128xf32>
    %565 = arith.addf %559, %564 : vector<16x128xf32>
    %566 = vector.broadcast %6 : vector<1x128xf32> to vector<16x128xf32>
    %567 = arith.mulf %565, %566 : vector<16x128xf32>
    %568 = vector.broadcast %7 : vector<1x128xf32> to vector<16x128xf32>
    %569 = arith.addf %567, %568 : vector<16x128xf32>
    %cst_345 = arith.constant 0.000000e+00 : f32
    %570 = vector.broadcast %cst_345 : f32 to vector<16x128xf32>
    %571 = arith.maximumf %569, %570 : vector<16x128xf32>
    %c11_346 = arith.constant 11 : index
    %c0_347 = arith.constant 0 : index
    %c0_348 = arith.constant 0 : index
    %572 = vector.load %arg13[%c11_346, %c0_347, %c0_348] : memref<15x16x192xbf16, #tpu.memory_space<vmem>>, vector<1x16x192xbf16>
    %573 = vector.shape_cast %572 : vector<1x16x192xbf16> to vector<16x192xbf16>
    %c0_349 = arith.constant 0 : index
    %c0_350 = arith.constant 0 : index
    %c0_351 = arith.constant 0 : index
    %574 = vector.load %arg5[%c0_349, %c0_350, %c0_351] : memref<3x192x128xbf16, #tpu.memory_space<vmem>>, vector<1x192x128xbf16>
    %575 = vector.shape_cast %574 : vector<1x192x128xbf16> to vector<192x128xbf16>
    %cst_352 = arith.constant dense<0.000000e+00> : vector<16x128xf32>
    %576 = tpu.matmul %573, %575, %cst_352 {dimension_numbers = #tpu.dot_dimension_numbers<[1], [0], [0], [1], [0, 0, 1, 1], [], []>} : vector<16x192xbf16>, vector<192x128xbf16>, vector<16x128xf32> -> vector<16x128xf32>
    %c12_353 = arith.constant 12 : index
    %c0_354 = arith.constant 0 : index
    %c0_355 = arith.constant 0 : index
    %577 = vector.load %arg13[%c12_353, %c0_354, %c0_355] : memref<15x16x192xbf16, #tpu.memory_space<vmem>>, vector<1x16x192xbf16>
    %578 = vector.shape_cast %577 : vector<1x16x192xbf16> to vector<16x192xbf16>
    %c1_356 = arith.constant 1 : index
    %c0_357 = arith.constant 0 : index
    %c0_358 = arith.constant 0 : index
    %579 = vector.load %arg5[%c1_356, %c0_357, %c0_358] : memref<3x192x128xbf16, #tpu.memory_space<vmem>>, vector<1x192x128xbf16>
    %580 = vector.shape_cast %579 : vector<1x192x128xbf16> to vector<192x128xbf16>
    %cst_359 = arith.constant dense<0.000000e+00> : vector<16x128xf32>
    %581 = tpu.matmul %578, %580, %cst_359 {dimension_numbers = #tpu.dot_dimension_numbers<[1], [0], [0], [1], [0, 0, 1, 1], [], []>} : vector<16x192xbf16>, vector<192x128xbf16>, vector<16x128xf32> -> vector<16x128xf32>
    %582 = arith.addf %576, %581 : vector<16x128xf32>
    %c13_360 = arith.constant 13 : index
    %c0_361 = arith.constant 0 : index
    %c0_362 = arith.constant 0 : index
    %583 = vector.load %arg13[%c13_360, %c0_361, %c0_362] : memref<15x16x192xbf16, #tpu.memory_space<vmem>>, vector<1x16x192xbf16>
    %584 = vector.shape_cast %583 : vector<1x16x192xbf16> to vector<16x192xbf16>
    %c2_363 = arith.constant 2 : index
    %c0_364 = arith.constant 0 : index
    %c0_365 = arith.constant 0 : index
    %585 = vector.load %arg5[%c2_363, %c0_364, %c0_365] : memref<3x192x128xbf16, #tpu.memory_space<vmem>>, vector<1x192x128xbf16>
    %586 = vector.shape_cast %585 : vector<1x192x128xbf16> to vector<192x128xbf16>
    %cst_366 = arith.constant dense<0.000000e+00> : vector<16x128xf32>
    %587 = tpu.matmul %584, %586, %cst_366 {dimension_numbers = #tpu.dot_dimension_numbers<[1], [0], [0], [1], [0, 0, 1, 1], [], []>} : vector<16x192xbf16>, vector<192x128xbf16>, vector<16x128xf32> -> vector<16x128xf32>
    %588 = arith.addf %582, %587 : vector<16x128xf32>
    %589 = vector.broadcast %6 : vector<1x128xf32> to vector<16x128xf32>
    %590 = arith.mulf %588, %589 : vector<16x128xf32>
    %591 = vector.broadcast %7 : vector<1x128xf32> to vector<16x128xf32>
    %592 = arith.addf %590, %591 : vector<16x128xf32>
    %cst_367 = arith.constant 0.000000e+00 : f32
    %593 = vector.broadcast %cst_367 : f32 to vector<16x128xf32>
    %594 = arith.maximumf %592, %593 : vector<16x128xf32>
    %595 = arith.maximumf %571, %594 : vector<16x128xf32>
    %596 = vector.shape_cast %595 : vector<16x128xf32> to vector<1x16x128xf32>
    %597 = vector.extract_strided_slice %596 {offsets = [0, 0, 0], sizes = [1, 1, 128], strides = [1, 1, 1]} : vector<1x16x128xf32> to vector<1x1x128xf32>
    %598 = vector.shape_cast %597 : vector<1x1x128xf32> to vector<1x128xf32>
    %599 = vector.extract_strided_slice %596 {offsets = [0, 1, 0], sizes = [1, 1, 128], strides = [1, 1, 1]} : vector<1x16x128xf32> to vector<1x1x128xf32>
    %600 = vector.shape_cast %599 : vector<1x1x128xf32> to vector<1x128xf32>
    %601 = arith.maximumf %598, %600 : vector<1x128xf32>
    %602 = arith.truncf %601 : vector<1x128xf32> to vector<1x128xbf16>
    %c30 = arith.constant 30 : index
    %c0_368 = arith.constant 0 : index
    %c0_369 = arith.constant 0 : index
    %603 = vector.load %arg8[%c30, %c0_368, %c0_369] : memref<36x128x256xbf16, #tpu.memory_space<vmem>>, vector<1x128x256xbf16>
    %604 = vector.shape_cast %603 : vector<1x128x256xbf16> to vector<128x256xbf16>
    %cst_370 = arith.constant dense<0.000000e+00> : vector<1x256xf32>
    %605 = tpu.matmul %602, %604, %cst_370 {dimension_numbers = #tpu.dot_dimension_numbers<[1], [0], [0], [1], [0, 0, 1, 1], [], []>} : vector<1x128xbf16>, vector<128x256xbf16>, vector<1x256xf32> -> vector<1x256xf32>
    %606 = arith.addf %548, %605 : vector<1x256xf32>
    %607 = vector.extract_strided_slice %596 {offsets = [0, 2, 0], sizes = [1, 1, 128], strides = [1, 1, 1]} : vector<1x16x128xf32> to vector<1x1x128xf32>
    %608 = vector.shape_cast %607 : vector<1x1x128xf32> to vector<1x128xf32>
    %609 = vector.extract_strided_slice %596 {offsets = [0, 3, 0], sizes = [1, 1, 128], strides = [1, 1, 1]} : vector<1x16x128xf32> to vector<1x1x128xf32>
    %610 = vector.shape_cast %609 : vector<1x1x128xf32> to vector<1x128xf32>
    %611 = arith.maximumf %608, %610 : vector<1x128xf32>
    %612 = arith.truncf %611 : vector<1x128xf32> to vector<1x128xbf16>
    %c31 = arith.constant 31 : index
    %c0_371 = arith.constant 0 : index
    %c0_372 = arith.constant 0 : index
    %613 = vector.load %arg8[%c31, %c0_371, %c0_372] : memref<36x128x256xbf16, #tpu.memory_space<vmem>>, vector<1x128x256xbf16>
    %614 = vector.shape_cast %613 : vector<1x128x256xbf16> to vector<128x256xbf16>
    %cst_373 = arith.constant dense<0.000000e+00> : vector<1x256xf32>
    %615 = tpu.matmul %612, %614, %cst_373 {dimension_numbers = #tpu.dot_dimension_numbers<[1], [0], [0], [1], [0, 0, 1, 1], [], []>} : vector<1x128xbf16>, vector<128x256xbf16>, vector<1x256xf32> -> vector<1x256xf32>
    %616 = arith.addf %606, %615 : vector<1x256xf32>
    %617 = vector.extract_strided_slice %596 {offsets = [0, 4, 0], sizes = [1, 1, 128], strides = [1, 1, 1]} : vector<1x16x128xf32> to vector<1x1x128xf32>
    %618 = vector.shape_cast %617 : vector<1x1x128xf32> to vector<1x128xf32>
    %619 = vector.extract_strided_slice %596 {offsets = [0, 5, 0], sizes = [1, 1, 128], strides = [1, 1, 1]} : vector<1x16x128xf32> to vector<1x1x128xf32>
    %620 = vector.shape_cast %619 : vector<1x1x128xf32> to vector<1x128xf32>
    %621 = arith.maximumf %618, %620 : vector<1x128xf32>
    %622 = arith.truncf %621 : vector<1x128xf32> to vector<1x128xbf16>
    %c32 = arith.constant 32 : index
    %c0_374 = arith.constant 0 : index
    %c0_375 = arith.constant 0 : index
    %623 = vector.load %arg8[%c32, %c0_374, %c0_375] : memref<36x128x256xbf16, #tpu.memory_space<vmem>>, vector<1x128x256xbf16>
    %624 = vector.shape_cast %623 : vector<1x128x256xbf16> to vector<128x256xbf16>
    %cst_376 = arith.constant dense<0.000000e+00> : vector<1x256xf32>
    %625 = tpu.matmul %622, %624, %cst_376 {dimension_numbers = #tpu.dot_dimension_numbers<[1], [0], [0], [1], [0, 0, 1, 1], [], []>} : vector<1x128xbf16>, vector<128x256xbf16>, vector<1x256xf32> -> vector<1x256xf32>
    %626 = arith.addf %616, %625 : vector<1x256xf32>
    %627 = vector.extract_strided_slice %596 {offsets = [0, 6, 0], sizes = [1, 1, 128], strides = [1, 1, 1]} : vector<1x16x128xf32> to vector<1x1x128xf32>
    %628 = vector.shape_cast %627 : vector<1x1x128xf32> to vector<1x128xf32>
    %629 = vector.extract_strided_slice %596 {offsets = [0, 7, 0], sizes = [1, 1, 128], strides = [1, 1, 1]} : vector<1x16x128xf32> to vector<1x1x128xf32>
    %630 = vector.shape_cast %629 : vector<1x1x128xf32> to vector<1x128xf32>
    %631 = arith.maximumf %628, %630 : vector<1x128xf32>
    %632 = arith.truncf %631 : vector<1x128xf32> to vector<1x128xbf16>
    %c33 = arith.constant 33 : index
    %c0_377 = arith.constant 0 : index
    %c0_378 = arith.constant 0 : index
    %633 = vector.load %arg8[%c33, %c0_377, %c0_378] : memref<36x128x256xbf16, #tpu.memory_space<vmem>>, vector<1x128x256xbf16>
    %634 = vector.shape_cast %633 : vector<1x128x256xbf16> to vector<128x256xbf16>
    %cst_379 = arith.constant dense<0.000000e+00> : vector<1x256xf32>
    %635 = tpu.matmul %632, %634, %cst_379 {dimension_numbers = #tpu.dot_dimension_numbers<[1], [0], [0], [1], [0, 0, 1, 1], [], []>} : vector<1x128xbf16>, vector<128x256xbf16>, vector<1x256xf32> -> vector<1x256xf32>
    %636 = arith.addf %626, %635 : vector<1x256xf32>
    %637 = vector.extract_strided_slice %596 {offsets = [0, 8, 0], sizes = [1, 1, 128], strides = [1, 1, 1]} : vector<1x16x128xf32> to vector<1x1x128xf32>
    %638 = vector.shape_cast %637 : vector<1x1x128xf32> to vector<1x128xf32>
    %639 = vector.extract_strided_slice %596 {offsets = [0, 9, 0], sizes = [1, 1, 128], strides = [1, 1, 1]} : vector<1x16x128xf32> to vector<1x1x128xf32>
    %640 = vector.shape_cast %639 : vector<1x1x128xf32> to vector<1x128xf32>
    %641 = arith.maximumf %638, %640 : vector<1x128xf32>
    %642 = arith.truncf %641 : vector<1x128xf32> to vector<1x128xbf16>
    %c34 = arith.constant 34 : index
    %c0_380 = arith.constant 0 : index
    %c0_381 = arith.constant 0 : index
    %643 = vector.load %arg8[%c34, %c0_380, %c0_381] : memref<36x128x256xbf16, #tpu.memory_space<vmem>>, vector<1x128x256xbf16>
    %644 = vector.shape_cast %643 : vector<1x128x256xbf16> to vector<128x256xbf16>
    %cst_382 = arith.constant dense<0.000000e+00> : vector<1x256xf32>
    %645 = tpu.matmul %642, %644, %cst_382 {dimension_numbers = #tpu.dot_dimension_numbers<[1], [0], [0], [1], [0, 0, 1, 1], [], []>} : vector<1x128xbf16>, vector<128x256xbf16>, vector<1x256xf32> -> vector<1x256xf32>
    %646 = arith.addf %636, %645 : vector<1x256xf32>
    %647 = vector.extract_strided_slice %596 {offsets = [0, 10, 0], sizes = [1, 1, 128], strides = [1, 1, 1]} : vector<1x16x128xf32> to vector<1x1x128xf32>
    %648 = vector.shape_cast %647 : vector<1x1x128xf32> to vector<1x128xf32>
    %649 = vector.extract_strided_slice %596 {offsets = [0, 11, 0], sizes = [1, 1, 128], strides = [1, 1, 1]} : vector<1x16x128xf32> to vector<1x1x128xf32>
    %650 = vector.shape_cast %649 : vector<1x1x128xf32> to vector<1x128xf32>
    %651 = arith.maximumf %648, %650 : vector<1x128xf32>
    %652 = arith.truncf %651 : vector<1x128xf32> to vector<1x128xbf16>
    %c35 = arith.constant 35 : index
    %c0_383 = arith.constant 0 : index
    %c0_384 = arith.constant 0 : index
    %653 = vector.load %arg8[%c35, %c0_383, %c0_384] : memref<36x128x256xbf16, #tpu.memory_space<vmem>>, vector<1x128x256xbf16>
    %654 = vector.shape_cast %653 : vector<1x128x256xbf16> to vector<128x256xbf16>
    %cst_385 = arith.constant dense<0.000000e+00> : vector<1x256xf32>
    %655 = tpu.matmul %652, %654, %cst_385 {dimension_numbers = #tpu.dot_dimension_numbers<[1], [0], [0], [1], [0, 0, 1, 1], [], []>} : vector<1x128xbf16>, vector<128x256xbf16>, vector<1x256xf32> -> vector<1x256xf32>
    %656 = arith.addf %646, %655 : vector<1x256xf32>
    %c0_386 = arith.constant 0 : index
    %c0_387 = arith.constant 0 : index
    %657 = vector.load %arg9[%c0_386, %c0_387] : memref<1x256xf32, #tpu.memory_space<vmem>>, vector<1x256xf32>
    %658 = arith.addf %656, %657 : vector<1x256xf32>
    %cst_388 = arith.constant 0.000000e+00 : f32
    %659 = vector.broadcast %cst_388 : f32 to vector<1x256xf32>
    %660 = arith.maximumf %658, %659 : vector<1x256xf32>
    %661 = arith.truncf %660 : vector<1x256xf32> to vector<1x256xbf16>
    %c0_389 = arith.constant 0 : index
    %c0_390 = arith.constant 0 : index
    %662 = vector.load %arg10[%c0_389, %c0_390] : memref<256x128xbf16, #tpu.memory_space<vmem>>, vector<256x128xbf16>
    %cst_391 = arith.constant dense<0.000000e+00> : vector<1x128xf32>
    %663 = tpu.matmul %661, %662, %cst_391 {dimension_numbers = #tpu.dot_dimension_numbers<[1], [0], [0], [1], [0, 0, 1, 1], [], []>} : vector<1x256xbf16>, vector<256x128xbf16>, vector<1x128xf32> -> vector<1x128xf32>
    %c0_392 = arith.constant 0 : index
    %c0_393 = arith.constant 0 : index
    %664 = vector.load %arg11[%c0_392, %c0_393] : memref<1x128xf32, #tpu.memory_space<vmem>>, vector<1x128xf32>
    %665 = arith.addf %663, %664 : vector<1x128xf32>
    %666 = vector.shape_cast %665 : vector<1x128xf32> to vector<1x1x128xf32>
    %c0_394 = arith.constant 0 : index
    %c0_395 = arith.constant 0 : index
    %c0_396 = arith.constant 0 : index
    %667 = vector.load %arg12[%c0_394, %c0_395, %c0_396] : memref<1x1x128xf32, #tpu.memory_space<vmem>>, vector<1x1x128xf32>
    tpu.vector_store %arg12[%c0_394, %c0_395, %c0_396], %666 {strides = array<i32>} : memref<1x1x128xf32, #tpu.memory_space<vmem>>, vector<1x1x128xf32>,
    return
  }
  func.func @transform_0(%arg0: i32) -> (i32, i32, i32) {
    %c0_i32 = arith.constant 0 : i32
    %c0_i32_0 = arith.constant 0 : i32
    %c0_i32_1 = arith.constant 0 : i32
    return %c0_i32, %arg0, %c0_i32_0 : i32, i32, i32
  }
  func.func @transform_1(%arg0: i32) -> (i32, i32) {
    %c0_i32 = arith.constant 0 : i32
    %c0_i32_0 = arith.constant 0 : i32
    %c0_i32_1 = arith.constant 0 : i32
    return %c0_i32, %c0_i32_0 : i32, i32
  }
  func.func @transform_2(%arg0: i32) -> (i32, i32) {
    %c0_i32 = arith.constant 0 : i32
    %c0_i32_0 = arith.constant 0 : i32
    %c0_i32_1 = arith.constant 0 : i32
    return %c0_i32, %c0_i32_0 : i32, i32
  }
  func.func @transform_3(%arg0: i32) -> (i32, i32) {
    %c0_i32 = arith.constant 0 : i32
    %c0_i32_0 = arith.constant 0 : i32
    %c0_i32_1 = arith.constant 0 : i32
    return %c0_i32, %c0_i32_0 : i32, i32
  }
  func.func @transform_4(%arg0: i32) -> (i32, i32, i32) {
    %c0_i32 = arith.constant 0 : i32
    %c0_i32_0 = arith.constant 0 : i32
    %c0_i32_1 = arith.constant 0 : i32
    %c0_i32_2 = arith.constant 0 : i32
    return %c0_i32, %c0_i32_0, %c0_i32_1 : i32, i32, i32
  }
  func.func @transform_5(%arg0: i32) -> (i32, i32) {
    %c0_i32 = arith.constant 0 : i32
    %c0_i32_0 = arith.constant 0 : i32
    %c0_i32_1 = arith.constant 0 : i32
    return %c0_i32, %c0_i32_0 : i32, i32
  }
  func.func @transform_6(%arg0: i32) -> (i32, i32) {
    %c0_i32 = arith.constant 0 : i32
    %c0_i32_0 = arith.constant 0 : i32
    %c0_i32_1 = arith.constant 0 : i32
    return %c0_i32, %c0_i32_0 : i32, i32
  }
  func.func @transform_7(%arg0: i32) -> (i32, i32, i32) {
    %c0_i32 = arith.constant 0 : i32
    %c0_i32_0 = arith.constant 0 : i32
    %c0_i32_1 = arith.constant 0 : i32
    %c0_i32_2 = arith.constant 0 : i32
    return %c0_i32, %c0_i32_0, %c0_i32_1 : i32, i32, i32
  }
  func.func @transform_8(%arg0: i32) -> (i32, i32) {
    %c0_i32 = arith.constant 0 : i32
    %c0_i32_0 = arith.constant 0 : i32
    %c0_i32_1 = arith.constant 0 : i32
    return %c0_i32, %c0_i32_0 : i32, i32
  }
  func.func @transform_9(%arg0: i32) -> (i32, i32) {
    %c0_i32 = arith.constant 0 : i32
    %c0_i32_0 = arith.constant 0 : i32
    %c0_i32_1 = arith.constant 0 : i32
    return %c0_i32, %c0_i32_0 : i32, i32
  }
  func.func @transform_10(%arg0: i32) -> (i32, i32) {
    %c0_i32 = arith.constant 0 : i32
    %c0_i32_0 = arith.constant 0 : i32
    %c0_i32_1 = arith.constant 0 : i32
    return %c0_i32, %c0_i32_0 : i32, i32
  }
  func.func @transform_11(%arg0: i32) -> (i32, i32, i32) {
    %c0_i32 = arith.constant 0 : i32
    %c0_i32_0 = arith.constant 0 : i32
    %c0_i32_1 = arith.constant 0 : i32
    return %arg0, %c0_i32, %c0_i32_0 : i32, i32, i32
  }
}

</mosaic_0001>

<bundles_post_ra>
// kernel: enhanced_net_forward.1
= control target key start
LH: loop header
LB: loop body
LE: loop exit
PB: predicated region body
PF: predicated region fallthrough
CT: control target
= control target key end

     0   :  { %s17296_s0 = inlined_call_operand.vmem [shape: bf16[30,64,32], index: 0, kind: input, shape index: {}]   ;;  %s17297_s1 = inlined_call_operand.vmem [shape: bf16[32,64], index: 1, kind: input, shape index: {}]   ;;  %s17298_s2 = inlined_call_operand.vmem [shape: f32[1,64], index: 2, kind: input, shape index: {}]   ;;  %s17299_s3 = inlined_call_operand.vmem [shape: f32[1,64], index: 3, kind: input, shape index: {}]   ;;  %s17300_s4 = inlined_call_operand.vmem [shape: bf16[3,192,128], index: 4, kind: input, shape index: {}]   ;;  %s17301_s5 = inlined_call_operand.vmem [shape: f32[1,128], index: 5, kind: input, shape index: {}]   ;;  %s17302_s6 = inlined_call_operand.vmem [shape: f32[1,128], index: 6, kind: input, shape index: {}]   ;;  %s17303_s7 = inlined_call_operand.vmem [shape: bf16[36,128,256], index: 7, kind: input, shape index: {}]   ;;  %s17304_s8 = inlined_call_operand.vmem [shape: f32[1,256], index: 8, kind: input, shape index: {}]   ;;  %s17305_s9 = inlined_call_operand.vmem [shape: bf16[256,128], index: 9, kind: input, shape index: {}]   ;;  %s17306_s10 = inlined_call_operand.vmem [shape: f32[1,128], index: 10, kind: input, shape index: {}]   ;;  %s17307_s11 = inlined_call_operand.hbm [shape: f32[2,1,128], index: 11, kind: output, shape index: {}]  }
   0x1   :  { %17309 = sst [smem:[#allocation8_spill]] %s17296_s0 }
   0x2   :  { %17310 = sst [smem:[#allocation9_spill]] %s17297_s1 }
   0x3   :  { %16 = vsyncpa [#allocation6], 0 }
   0x4   :  { %18 = vsyncpa [#allocation6 + $0x1], 0  ;;  %s11971_s17 = smov 0   ;;  %s11973_s18 = smov 0  }
   0x5   :  { %s11975_s19 = smov 0   ;;  %s11977_s20 = smov 0  }
   0x6 LB: > { %s17308_s21 = sadd.s32 4294967295, %s11903_s20   ;;  %s7603_s22 = sadd.s32 4294967294, %s11903_s20   ;;  %s11903_s20 = sphi %s11977_s20, %s17321_s20   ;;  %s11899_s19 = sphi %s11975_s19, %s17320_s19   ;;  %s11895_s18 = sphi %s11973_s18, %s17319_s18   ;;  %s11891_s17 = sphi %s11971_s17, %s17318_s17  }
   0x7   : > { %s11994_s23 = sadd.s32 1, %s11903_s20   ;;  %s31_s24 = sadd.s32 1, %s11899_s19 }
   0x8   : > { %s28_s25 = ssub.s32 %s11903_s20, %s11994_s23  ;;  %p38_p0 = scmp.ne.s32.totalorder %s11899_s19, %s11895_s18 }
   0x9   : > { %p29_p1 = scmp.eq.s32.totalorder %s28_s25, 0  ;;  %p39_p2 = scmp.eq.s32.totalorder %s11903_s20, 0 }
   0xa   : > { %p278_p3 = scmp.eq.s32.totalorder %s17308_s21, 1  ;;  %p283_p4 = scmp.ne.s32.totalorder %s11895_s18, %s11891_s17 }
   0xb   : > { %s12007_s26 = scalar_select %p29_p1, %s11899_s19, %s31_s24  }
   0xc   : > { %p40_p5 = por %p39_p2, %p38_p0  ;;  %p12009_p6 = por %p278_p3, %p38_p0 }
   0xd   : > { %p284_p7 = scmp.eq.s32.totalorder %s7603_s22, 1  ;;  %p7605_p9 = scmp.ge.s32.totalorder %s11903_s20, 2 }
   0xf   : > { %p12013_p8 = por %p284_p7, %p283_p4  ;;  %330 = sbr.rel (%p7605_p9) target bundleno = 90 (0x5a), region = 56 }
  0x14   : > { %333 = sbr.rel (!%p40_p5) target bundleno = 90 (0x5a), region = 60  ;;  %s335_s29 = sand.u32 (%p40_p5), 1, %s11899_s19  }
  0x15   : > { %s10918_s30 = sshll.u32 (%p40_p5), %s11903_s20, 4  ;;  %s11589_s12 = smul.u32 (%p40_p5), 480, %s335_s29 }
  0x16   : > { %s17313_s0 = sld [smem:[#allocation8_spill]] (%p40_p5) }
  0x17   : > { %s12030_s16 = scalar_lea.vmem (%p40_p5), [#allocation4], %s11589_s12 }
  0x1c   : > { %s12025_s15 = scalar_lea.vmem %s17313_s0, %s10918_s30 }
  0x1d   : > { %v357_v0 = vld [vmem:[%s12025_s15] sm:$0xff]   ;;  %v361_v1 = vld [vmem:[%s12025_s15 + $0x8] sm:$0xff]  }
  0x1e   : > { %v365_v2 = vld [vmem:[%s12025_s15 + $0x20] sm:$0xff]   ;;  %358 = vst [vmem:[%s12030_s16] sm:$0xff] %v357_v0   ;;  %v369_v3 = vld [vmem:[%s12025_s15 + $0x28] sm:$0xff]  }
  0x1f   : > { %362 = vst [vmem:[%s12030_s16 + $0x8] sm:$0xff] %v361_v1   ;;  %v373_v4 = vld [vmem:[%s12025_s15 + $0x40] sm:$0xff]   ;;  %v377_v5 = vld [vmem:[%s12025_s15 + $0x48] sm:$0xff]  }
  0x20   : > { %366 = vst [vmem:[%s12030_s16 + $0x10] sm:$0xff] %v365_v2   ;;  %v381_v6 = vld [vmem:[%s12025_s15 + $0x60] sm:$0xff]   ;;  %v385_v7 = vld [vmem:[%s12025_s15 + $0x68] sm:$0xff]  }
  0x21   : > { %370 = vst [vmem:[%s12030_s16 + $0x18] sm:$0xff] %v369_v3   ;;  %v389_v8 = vld [vmem:[%s12025_s15 + $0x80] sm:$0xff]   ;;  %v393_v9 = vld [vmem:[%s12025_s15 + $0x88] sm:$0xff]  }
  0x22   : > { %374 = vst [vmem:[%s12030_s16 + $0x20] sm:$0xff] %v373_v4   ;;  %v397_v10 = vld [vmem:[%s12025_s15 + $0xa0] sm:$0xff]   ;;  %v401_v11 = vld [vmem:[%s12025_s15 + $0xa8] sm:$0xff]  }
  0x23   : > { %378 = vst [vmem:[%s12030_s16 + $0x28] sm:$0xff] %v377_v5   ;;  %v405_v12 = vld [vmem:[%s12025_s15 + $0xc0] sm:$0xff]   ;;  %v409_v13 = vld [vmem:[%s12025_s15 + $0xc8] sm:$0xff]  }
  0x24   : > { %382 = vst [vmem:[%s12030_s16 + $0x30] sm:$0xff] %v381_v6   ;;  %v413_v14 = vld [vmem:[%s12025_s15 + $0xe0] sm:$0xff]   ;;  %v417_v15 = vld [vmem:[%s12025_s15 + $0xe8] sm:$0xff]  }
  0x25   : > { %386 = vst [vmem:[%s12030_s16 + $0x38] sm:$0xff] %v385_v7   ;;  %v421_v16 = vld [vmem:[%s12025_s15 + $0x100] sm:$0xff]   ;;  %v425_v17 = vld [vmem:[%s12025_s15 + $0x108] sm:$0xff]  }
  0x26   : > { %390 = vst [vmem:[%s12030_s16 + $0x40] sm:$0xff] %v389_v8   ;;  %v429_v18 = vld [vmem:[%s12025_s15 + $0x120] sm:$0xff]   ;;  %v433_v19 = vld [vmem:[%s12025_s15 + $0x128] sm:$0xff]  }
  0x27   : > { %394 = vst [vmem:[%s12030_s16 + $0x48] sm:$0xff] %v393_v9   ;;  %v437_v20 = vld [vmem:[%s12025_s15 + $0x140] sm:$0xff]   ;;  %v441_v21 = vld [vmem:[%s12025_s15 + $0x148] sm:$0xff]  }
  0x28   : > { %398 = vst [vmem:[%s12030_s16 + $0x50] sm:$0xff] %v397_v10   ;;  %v445_v22 = vld [vmem:[%s12025_s15 + $0x160] sm:$0xff]   ;;  %v449_v23 = vld [vmem:[%s12025_s15 + $0x168] sm:$0xff]  }
  0x29   : > { %402 = vst [vmem:[%s12030_s16 + $0x58] sm:$0xff] %v401_v11   ;;  %v453_v24 = vld [vmem:[%s12025_s15 + $0x180] sm:$0xff]   ;;  %v457_v25 = vld [vmem:[%s12025_s15 + $0x188] sm:$0xff]  }
  0x2a   : > { %406 = vst [vmem:[%s12030_s16 + $0x60] sm:$0xff] %v405_v12   ;;  %v461_v26 = vld [vmem:[%s12025_s15 + $0x1a0] sm:$0xff]   ;;  %v465_v27 = vld [vmem:[%s12025_s15 + $0x1a8] sm:$0xff]  }
  0x2b   : > { %410 = vst [vmem:[%s12030_s16 + $0x68] sm:$0xff] %v409_v13   ;;  %v469_v28 = vld [vmem:[%s12025_s15 + $0x1c0] sm:$0xff]   ;;  %v473_v29 = vld [vmem:[%s12025_s15 + $0x1c8] sm:$0xff]  }
  0x2c   : > { %414 = vst [vmem:[%s12030_s16 + $0x70] sm:$0xff] %v413_v14   ;;  %v477_v30 = vld [vmem:[%s12025_s15 + $0x1e0] sm:$0xff]   ;;  %v481_v31 = vld [vmem:[%s12025_s15 + $0x1e8] sm:$0xff]  }
  0x2d   : > { %418 = vst [vmem:[%s12030_s16 + $0x78] sm:$0xff] %v417_v15   ;;  %v485_v32 = vld [vmem:[%s12025_s15 + $0x200] sm:$0xff]   ;;  %v489_v33 = vld [vmem:[%s12025_s15 + $0x208] sm:$0xff]  }
  0x2e   : > { %422 = vst [vmem:[%s12030_s16 + $0x80] sm:$0xff] %v421_v16   ;;  %v493_v34 = vld [vmem:[%s12025_s15 + $0x220] sm:$0xff]   ;;  %v497_v35 = vld [vmem:[%s12025_s15 + $0x228] sm:$0xff]  }
  0x2f   : > { %426 = vst [vmem:[%s12030_s16 + $0x88] sm:$0xff] %v425_v17   ;;  %v501_v36 = vld [vmem:[%s12025_s15 + $0x240] sm:$0xff]   ;;  %v505_v37 = vld [vmem:[%s12025_s15 + $0x248] sm:$0xff]  }
  0x30   : > { %430 = vst [vmem:[%s12030_s16 + $0x90] sm:$0xff] %v429_v18   ;;  %v509_v38 = vld [vmem:[%s12025_s15 + $0x260] sm:$0xff]   ;;  %v513_v39 = vld [vmem:[%s12025_s15 + $0x268] sm:$0xff]  }
  0x31   : > { %434 = vst [vmem:[%s12030_s16 + $0x98] sm:$0xff] %v433_v19   ;;  %v517_v40 = vld [vmem:[%s12025_s15 + $0x280] sm:$0xff]   ;;  %v521_v41 = vld [vmem:[%s12025_s15 + $0x288] sm:$0xff]  }
  0x32   : > { %438 = vst [vmem:[%s12030_s16 + $0xa0] sm:$0xff] %v437_v20   ;;  %v525_v42 = vld [vmem:[%s12025_s15 + $0x2a0] sm:$0xff]   ;;  %v529_v43 = vld [vmem:[%s12025_s15 + $0x2a8] sm:$0xff]  }
  0x33   : > { %442 = vst [vmem:[%s12030_s16 + $0xa8] sm:$0xff] %v441_v21   ;;  %v533_v44 = vld [vmem:[%s12025_s15 + $0x2c0] sm:$0xff]   ;;  %v537_v45 = vld [vmem:[%s12025_s15 + $0x2c8] sm:$0xff]  }
  0x34   : > { %446 = vst [vmem:[%s12030_s16 + $0xb0] sm:$0xff] %v445_v22   ;;  %v541_v46 = vld [vmem:[%s12025_s15 + $0x2e0] sm:$0xff]   ;;  %v545_v47 = vld [vmem:[%s12025_s15 + $0x2e8] sm:$0xff]  }
  0x35   : > { %450 = vst [vmem:[%s12030_s16 + $0xb8] sm:$0xff] %v449_v23   ;;  %v549_v48 = vld [vmem:[%s12025_s15 + $0x300] sm:$0xff]   ;;  %v553_v49 = vld [vmem:[%s12025_s15 + $0x308] sm:$0xff]  }
  0x36   : > { %454 = vst [vmem:[%s12030_s16 + $0xc0] sm:$0xff] %v453_v24   ;;  %v557_v50 = vld [vmem:[%s12025_s15 + $0x320] sm:$0xff]   ;;  %v561_v51 = vld [vmem:[%s12025_s15 + $0x328] sm:$0xff]  }
  0x37   : > { %458 = vst [vmem:[%s12030_s16 + $0xc8] sm:$0xff] %v457_v25   ;;  %v565_v52 = vld [vmem:[%s12025_s15 + $0x340] sm:$0xff]   ;;  %v569_v53 = vld [vmem:[%s12025_s15 + $0x348] sm:$0xff]  }
  0x38   : > { %462 = vst [vmem:[%s12030_s16 + $0xd0] sm:$0xff] %v461_v26   ;;  %v573_v54 = vld [vmem:[%s12025_s15 + $0x360] sm:$0xff]   ;;  %v577_v55 = vld [vmem:[%s12025_s15 + $0x368] sm:$0xff]  }
  0x39   : > { %466 = vst [vmem:[%s12030_s16 + $0xd8] sm:$0xff] %v465_v27   ;;  %v581_v56 = vld [vmem:[%s12025_s15 + $0x380] sm:$0xff]   ;;  %v585_v57 = vld [vmem:[%s12025_s15 + $0x388] sm:$0xff]  }
  0x3a   : > { %470 = vst [vmem:[%s12030_s16 + $0xe0] sm:$0xff] %v469_v28   ;;  %v589_v58 = vld [vmem:[%s12025_s15 + $0x3a0] sm:$0xff]   ;;  %v593_v59 = vld [vmem:[%s12025_s15 + $0x3a8] sm:$0xff]  }
  0x3b   : > { %474 = vst [vmem:[%s12030_s16 + $0xe8] sm:$0xff] %v473_v29  }
  0x3c   : > { %478 = vst [vmem:[%s12030_s16 + $0xf0] sm:$0xff] %v477_v30  }
  0x3d   : > { %482 = vst [vmem:[%s12030_s16 + $0xf8] sm:$0xff] %v481_v31  }
  0x3e   : > { %486 = vst [vmem:[%s12030_s16 + $0x100] sm:$0xff] %v485_v32  }
  0x3f   : > { %490 = vst [vmem:[%s12030_s16 + $0x108] sm:$0xff] %v489_v33  }
  0x40   : > { %494 = vst [vmem:[%s12030_s16 + $0x110] sm:$0xff] %v493_v34  }
  0x41   : > { %498 = vst [vmem:[%s12030_s16 + $0x118] sm:$0xff] %v497_v35  }
  0x42   : > { %502 = vst [vmem:[%s12030_s16 + $0x120] sm:$0xff] %v501_v36  }
  0x43   : > { %506 = vst [vmem:[%s12030_s16 + $0x128] sm:$0xff] %v505_v37  }
  0x44   : > { %510 = vst [vmem:[%s12030_s16 + $0x130] sm:$0xff] %v509_v38  }
  0x45   : > { %514 = vst [vmem:[%s12030_s16 + $0x138] sm:$0xff] %v513_v39  }
  0x46   : > { %518 = vst [vmem:[%s12030_s16 + $0x140] sm:$0xff] %v517_v40  }
  0x47   : > { %522 = vst [vmem:[%s12030_s16 + $0x148] sm:$0xff] %v521_v41  }
  0x48   : > { %526 = vst [vmem:[%s12030_s16 + $0x150] sm:$0xff] %v525_v42  }
  0x49   : > { %530 = vst [vmem:[%s12030_s16 + $0x158] sm:$0xff] %v529_v43  }
  0x4a   : > { %534 = vst [vmem:[%s12030_s16 + $0x160] sm:$0xff] %v533_v44  }
  0x4b   : > { %538 = vst [vmem:[%s12030_s16 + $0x168] sm:$0xff] %v537_v45  }
  0x4c   : > { %542 = vst [vmem:[%s12030_s16 + $0x170] sm:$0xff] %v541_v46  }
  0x4d   : > { %546 = vst [vmem:[%s12030_s16 + $0x178] sm:$0xff] %v545_v47  }
  0x4e   : > { %550 = vst [vmem:[%s12030_s16 + $0x180] sm:$0xff] %v549_v48  }
  0x4f   : > { %554 = vst [vmem:[%s12030_s16 + $0x188] sm:$0xff] %v553_v49  }
  0x50   : > { %558 = vst [vmem:[%s12030_s16 + $0x190] sm:$0xff] %v557_v50  }
  0x51   : > { %562 = vst [vmem:[%s12030_s16 + $0x198] sm:$0xff] %v561_v51  }
  0x52   : > { %566 = vst [vmem:[%s12030_s16 + $0x1a0] sm:$0xff] %v565_v52  }
  0x53   : > { %570 = vst [vmem:[%s12030_s16 + $0x1a8] sm:$0xff] %v569_v53  }
  0x54   : > { %574 = vst [vmem:[%s12030_s16 + $0x1b0] sm:$0xff] %v573_v54  }
  0x55   : > { %578 = vst [vmem:[%s12030_s16 + $0x1b8] sm:$0xff] %v577_v55  }
  0x56   : > { %582 = vst [vmem:[%s12030_s16 + $0x1c0] sm:$0xff] %v581_v56  }
  0x57   : > { %586 = vst [vmem:[%s12030_s16 + $0x1c8] sm:$0xff] %v585_v57  }
  0x58   : > { %590 = vst [vmem:[%s12030_s16 + $0x1d0] sm:$0xff] %v589_v58  }
  0x59   : > { %594 = vst [vmem:[%s12030_s16 + $0x1d8] sm:$0xff] %v593_v59  }
  0x5a PF: > { %p7608_p10 = scmp.ge.s32.totalorder %s11903_s20, 1  ;;  %p859_p11 = scmp.lt.s32.totalorder %s11903_s20, 3 }
  0x5c   : > { %p860_p12 = pnand %p7608_p10, %p859_p11 }
  0x5d   : > { %s12152_s22 = sand.u32 (!%p860_p12), 1, %s11895_s18   ;;  %s17314_s1 = sld [smem:[#allocation9_spill]] (!%p860_p12) }
  0x5e   : > { %863 = sbr.rel (%p860_p12) target bundleno = 2224 (0x8b0), region = 101  ;;  %s12193_s15 = smov (!%p860_p12), 0  }
  0x5f   : > { %s11590_s12 = smul.u32 (!%p860_p12), 480, %s12152_s22 }
  0x61   : > { %s12190_s13 = scalar_lea.vmem (!%p860_p12), [#allocation4], %s11590_s12 }
  0x63   : > { %v12157_v60 = vld [vmem:[%s17314_s1] sm:$0xf]  ;;  %v12162_v61 = vld [vmem:[%s17314_s1] sm:$0xf0]  ;;  %vm912_vm0 = vcmask 523264   ;;  %v11909_v2 = vmov 0.0  }
  0x64   : > { %v12168_v62 = vld [vmem:[%s17314_s1 + $0x8] sm:$0xf]  ;;  %v12173_v63 = vld [vmem:[%s17314_s1 + $0x8] sm:$0xf0]  ;;  %v12178_v0 = vld [vmem:[%s17298_s2] sm:$0x1] }
  0x65   : > { %v12183_v1 = vld [vmem:[%s17299_s3] sm:$0x1]  ;;  %913 = vst.msk [vmem:[#allocation3] sm:$0xff] %vm912_vm0, %v11909_v2 }
  0x66   : > { %914 = vst.msk [vmem:[#allocation3 + $0x8] sm:$0xff] %vm912_vm0, %v11909_v2 }
  0x67   : > { %915 = vst.msk [vmem:[#allocation3 + $0x10] sm:$0xff] %vm912_vm0, %v11909_v2 }
  0x68   : > { %916 = vst.msk [vmem:[#allocation3 + $0x18] sm:$0xff] %vm912_vm0, %v11909_v2 }
  0x69   : > { %917 = vst.msk [vmem:[#allocation3 + $0x20] sm:$0xff] %vm912_vm0, %v11909_v2 }
  0x6a LB: >> { %v7627_v3 = vor.u32 %v12173_v63, %v12168_v62  ;;  %v7623_v4 = vor.u32 %v12162_v61, %v12157_v60  ;;  %s10922_s12 = sshll.u32 %s11907_s15, 5  ;;  %vm954_vm1 = vcmask 261120   ;;  %v981_v9 = vperm.slane %v12178_v0, 0  ;;  %s11910_s24 = smov 64   ;;  %s11907_s15 = sphi %s12193_s15, %s923_s15  }
  0x6b   : >> { %s927_s16 = scalar_lea.vmem %s12190_s13, %s10922_s12 [#allocation4]  ;;  %v988_v10 = vperm.slane %v12183_v1, 0  ;;  %s10928_s25 = sshll.u32 %s11907_s15, 4  ;;  %vm1105_vm2 = vcmask 1043456   ;;  %vm1106_vm3 = vcmask 523268  }
  0x6c   : >> { %967 = vmatpush.bf16.msra.mxu0 %v7627_v3  ;;  %11585 = vmatpush.bf16.msra.mxu2 %v7627_v3  ;;  %v10923_v5 = vld [vmem:[%s927_s16] sm:$0xff]  ;;  %v10924_v6 = vld [vmem:[%s927_s16 + $0x8] sm:$0xff]  ;;  %v10926_v7 = vld [vmem:[%s927_s16 + $0x10] sm:$0xff]  ;;  %s1104_s29 = scalar_lea.vmem [#allocation2], %s10928_s25  ;;  %s923_s15 = sadd.s32 1, %s11907_s15  }
  0x6d   : >> { %1028 = vmatpush.bf16.msra.mxu1 %v7627_v3  ;;  %11587 = vmatpush.bf16.msra.mxu3 %v7627_v3  ;;  %v10927_v8 = vld [vmem:[%s927_s16 + $0x18] sm:$0xff]  ;;  %vm1107_vm4 = vmor %vm1106_vm3, %vm1105_vm2  ;;  %p920_p13 = scmp.ge.s32.totalorder %s923_s15, 15  }
  0x6e   : > { %v12235_v60 = vld [vmem:[%s17300_s4 + $0xb0] sm:$0xff] (%p920_p13)  ;;  %v12252_v63 = vld [vmem:[%s17300_s4 + $0xf8] sm:$0xff] (%p920_p13)  ;;  %v12258_v0 = vld [vmem:[%s17300_s4 + $0xa8] sm:$0xff] (%p920_p13)  ;;  %s17315_s14 = sadd.s32 (%p920_p13), 4294967295, %s11903_s20   ;;  %s17316_s21 = scalar_lea.vmem (%p920_p13), [#allocation5], %s12152_s22 }
  0x6f   : > { %v12241_v61 = vld [vmem:[%s17300_s4 + $0x90] sm:$0xff] (%p920_p13)  ;;  %v12264_v1 = vld [vmem:[%s17300_s4 + $0x88] sm:$0xff] (%p920_p13)  ;;  %s7525_s25 = scalar_lea.hbm (%p920_p13), %s17307_s11, %s17315_s14  ;;  %s7527_s13 = sshll.u32 (%p920_p13), %s17316_s21, 4  ;;  %s7528_s13 = int_to_ptr.vmem [resolvable:$true] %s7527_s13 }
  0x70   : >> { %968 = vmatpush.bf16.msra.mxu0 %v7623_v4  ;;  %11586 = vmatpush.bf16.msra.mxu2 %v7623_v4  ;;  %v12247_v62 = vld [vmem:[%s17300_s4 + $0x50] sm:$0xff] (%p920_p13)  ;;  %s7529_s30 = sshll.u32 (%p920_p13), %s7525_s25, 4  ;;  %s17317_s12 = smov (%p920_p13), %s17316_s21  ;;  %s7530_s30 = int_to_ptr.hbm [resolvable:$true] %s7529_s30 }
  0x71   : >> { %1029 = vmatpush.bf16.msra.mxu1 %v7623_v4  ;;  %11588 = vmatpush.bf16.msra.mxu3 %v7623_v4  ;;  %s7517_s0 = scalar_lea.sflag (%p920_p13), [#allocation6], %s12152_s22  ;;  %s11851_s1 = sshra.s32 (%p920_p13), %s7530_s30, 4  ;;  %s11852_s1 = int_to_ptr.hbm [resolvable:$true] %s11851_s1 }
  0x72   : > { %s11853_s16 = scalar_lea.hbm (%p920_p13), %s11852_s1, 1  ;;  %p11858_p3 = scmp.lt.s32.totalorder (%p920_p13), %s11852_s1, %s17307_s11 }
  0x73   : >> { %7628 = vmatmul.msk.bf16.vlgmr.msra.gmra.mxu0 %vm954_vm1, %v10923_v5  ;;  %7629 = vmatmul.msk.bf16.vlgmr.msra.gmra.mxu2 %vm954_vm1, %v10924_v6  ;;  %p11854_p0 = scmp.ne.s32.totalorder (%p920_p13), %s11852_s1, %s11853_s16 }
  0x74   : >> { %7644 = vmatmul.msk.bf16.vlgmr.msra.gmra.mxu1 %vm954_vm1, %v10926_v7  ;;  %7645 = vmatmul.msk.bf16.vlgmr.msra.gmra.mxu3 %vm954_vm1, %v10927_v8 }
  0x75   : > { %1502 = vmatpush.bf16.msra.mxu1 (%p920_p13), %v12252_v63  ;;  %p11855_p1 = pnand (%p920_p13), %p11854_p0, %p12009_p6 }
  0x77   : > { %p11856_p2 = pneg (%p920_p13), %p11855_p1 }
  0xf0   : >> { %v970_v11 = vpop.f32.mrf.mxu0 }
  0xf1   : >> { %v983_v12 = vmul.f32 %v981_v9, %v970_v11  ;;  %v1031_v13 = vpop.f32.mrf.mxu1 }
  0xf2   : >> { %v1041_v14 = vmul.f32 %v1031_v13, %v981_v9 }
  0xf3   : >> { %v990_v15 = vadd.f32 %v988_v10, %v983_v12 }
  0xf4   : >> { %v1045_v16 = vadd.f32 %v1041_v14, %v988_v10 }
  0xf5   : >> { %v994_v17 = vmax.f32 %v990_v15, 0.0  ;;  %v12219_v15 = vld [vmem:[%s17300_s4 + $0xb8] sm:$0xff] (%p920_p13) }
  0xf6   : >> { %v1049_v18 = vmax.f32 %v1045_v16, 0.0  ;;  %v975_v19 = vpop.f32.mrf.mxu2  ;;  %v12224_v16 = vld [vmem:[%s17300_s4 + $0x98] sm:$0xff] (%p920_p13)  ;;  %1268 = vmatpush.bf16.msra.mxu2 (%p920_p13), %v12219_v15 }
  0xf7   : >> { %v985_v20 = vmul.f32 %v981_v9, %v975_v19  ;;  %v1036_v21 = vpop.f32.mrf.mxu3  ;;  %1250 = vmatpush.bf16.msra.mxu0 (%p920_p13), %v12224_v16  ;;  %v12276_v19 = vld [vmem:[%s17300_s4 + $0xf0] sm:$0xff] (%p920_p13) }
  0xf8   : >> { %v1053_v22 = vmax.f32 %v994_v17, %v1049_v18  ;;  %v1043_v23 = vmul.f32 %v1036_v21, %v981_v9  ;;  %v972_v24 = vpop.f32.mrf.mxu0  ;;  %v12229_v17 = vld [vmem:[%s17300_s4 + $0x58] sm:$0xff] (%p920_p13)  ;;  %v12270_v18 = vld [vmem:[%s17300_s4 + $0x48] sm:$0xff] (%p920_p13)  ;;  %1503 = vmatpush.bf16.msra.mxu1 (%p920_p13), %v12276_v19 }
  0xf9   : >> { %v992_v25 = vadd.f32 %v988_v10, %v985_v20  ;;  %v984_v26 = vmul.f32 %v981_v9, %v972_v24  ;;  %v1033_v27 = vpop.f32.mrf.mxu1  ;;  %1380 = vmatpush.bf16.msra.mxu3 (%p920_p13), %v12229_v17  ;;  %v12281_v20 = vld [vmem:[%s17300_s4 + $0xa0] sm:$0xff] (%p920_p13)  ;;  %v10938_v21 = vld [vmem:[%s17300_s4 + $0x38] sm:$0xff] (%p920_p13) }
  0xfa   : >> { %1057 = vst.msk [vmem:[#allocation3] sm:$0xff] %vm912_vm0, %v1053_v22  ;;  %v1047_v28 = vadd.f32 %v1043_v23, %v988_v10  ;;  %v1042_v29 = vmul.f32 %v1033_v27, %v981_v9  ;;  %1269 = vmatpush.bf16.msra.mxu2 (%p920_p13), %v12235_v60  ;;  %v12291_v22 = vld [vmem:[%s17300_s4 + $0x80] sm:$0xff] (%p920_p13) }
  0xfb   : >> { %v996_v30 = vmax.f32 %v992_v25, 0.0  ;;  %v991_v31 = vadd.f32 %v988_v10, %v984_v26  ;;  %1251 = vmatpush.bf16.msra.mxu0 (%p920_p13), %v12241_v61  ;;  %v12297_v25 = vld [vmem:[%s17300_s4 + $0x40] sm:$0xff] (%p920_p13) }
  0xfc   : >> { %v1051_v32 = vmax.f32 %v1047_v28, 0.0  ;;  %v1046_v33 = vadd.f32 %v1042_v29, %v988_v10  ;;  %v12303_v28 = vld [vmem:[%s17300_s4 + $0x118] sm:$0xff] (%p920_p13)  ;;  %v12308_v29 = vld [vmem:[%s17300_s4 + $0xe8] sm:$0xff] (%p920_p13) }
  0xfd   : >> { %v995_v34 = vmax.f32 %v991_v31, 0.0  ;;  %1381 = vmatpush.bf16.msra.mxu3 (%p920_p13), %v12247_v62  ;;  %v12317_v31 = vld [vmem:[%s17300_s4 + $0x78] sm:$0xff] (%p920_p13)  ;;  %1504 = vmatpush.bf16.msra.mxu1 (%p920_p13), %v12308_v29 }
  0xfe   : >> { %v1055_v35 = vmax.f32 %v996_v30, %v1051_v32  ;;  %v1050_v36 = vmax.f32 %v1046_v33, 0.0  ;;  %v977_v37 = vpop.f32.mrf.mxu2  ;;  %1270 = vmatpush.bf16.msra.mxu2 (%p920_p13), %v12258_v0  ;;  %v10937_v33 = vld [vmem:[%s17300_s4 + $0x30] sm:$0xff] (%p920_p13) }
  0xff   : >> { %v986_v38 = vmul.f32 %v981_v9, %v977_v37  ;;  %v1038_v39 = vpop.f32.mrf.mxu3  ;;  %1252 = vmatpush.bf16.msra.mxu0 (%p920_p13), %v12264_v1  ;;  %v10936_v37 = vld [vmem:[%s17300_s4 + $0x28] sm:$0xff] (%p920_p13) }
 0x100   : >> { %1059 = vst.msk [vmem:[#allocation3 + $0x10] sm:$0xff] %vm912_vm0, %v1055_v35  ;;  %v1054_v40 = vmax.f32 %v995_v34, %v1050_v36  ;;  %v1044_v41 = vmul.f32 %v1038_v39, %v981_v9  ;;  %v12327_v34 = vld [vmem:[%s17300_s4 + $0x110] sm:$0xff] (%p920_p13)  ;;  %v12333_v35 = vld [vmem:[%s17300_s4 + $0xe0] sm:$0xff] (%p920_p13)  ;;  %v12357_v39 = vld [vmem:[%s17300_s4 + $0xd8] sm:$0xff] (%p920_p13) }
 0x101   : >> { %v993_v42 = vadd.f32 %v988_v10, %v986_v38  ;;  %1382 = vmatpush.bf16.msra.mxu3 (%p920_p13), %v12270_v18  ;;  %v12341_v36 = vld [vmem:[%s17300_s4 + $0x70] sm:$0xff] (%p920_p13)  ;;  %v12351_v38 = vld [vmem:[%s17300_s4 + $0x108] sm:$0xff] (%p920_p13)  ;;  %1505 = vmatpush.bf16.msra.mxu1 (%p920_p13), %v12333_v35 }
 0x102   : >> { %1058 = vst.msk [vmem:[#allocation3 + $0x8] sm:$0xff] %vm912_vm0, %v1054_v40  ;;  %v1048_v43 = vadd.f32 %v1044_v41, %v988_v10  ;;  %1271 = vmatpush.bf16.msra.mxu2 (%p920_p13), %v12281_v20  ;;  %v10946_v40 = vld [vmem:[%s17300_s4 + $0x68] sm:$0xff] (%p920_p13)  ;;  %v10935_v41 = vld [vmem:[%s17300_s4 + $0x20] sm:$0xff] (%p920_p13) }
 0x103   : >> { %v997_v44 = vmax.f32 %v993_v42, 0.0  ;;  %1253 = vmatpush.bf16.msra.mxu0 (%p920_p13), %v12291_v22  ;;  %v12370_v42 = vld [vmem:[%s17300_s4 + $0x100] sm:$0xff] (%p920_p13) }
 0x104   : >> { %v1052_v45 = vmax.f32 %v1048_v43, 0.0  ;;  %v12376_v43 = vld [vmem:[%s17300_s4 + $0xd0] sm:$0xff] (%p920_p13) }
 0x105   : > { %1383 = vmatpush.bf16.msra.mxu3 (%p920_p13), %v12297_v25  ;;  %1506 = vmatpush.bf16.msra.mxu1 (%p920_p13), %v12357_v39 }
 0x106   : >> { %v1056_v46 = vmax.f32 %v997_v44, %v1052_v45  ;;  %1362 = vmatpush.bf16.msrb.mxu2 (%p920_p13), %v10938_v21  ;;  %v10945_v44 = vld [vmem:[%s17300_s4 + $0x60] sm:$0xff] (%p920_p13) }
 0x107   : > { %1254 = vmatpush.bf16.msra.mxu0 (%p920_p13), %v12317_v31 }
 0x108   : >> { %1060 = vst.msk [vmem:[#allocation3 + $0x18] sm:$0xff] %vm912_vm0, %v1056_v46 }
 0x109   : >> { %v1071_v47 = vld [vmem:[#allocation3 + $0x2] ss:$2 sm:$0xff]  ;;  %v1075_v48 = vld [vmem:[#allocation3 + $0x3] ss:$2 sm:$0xff]  ;;  %1520 = vmatpush.bf16.msrb.mxu3 (%p920_p13), %v12303_v28  ;;  %1507 = vmatpush.bf16.msra.mxu1 (%p920_p13), %v12376_v43 }
 0x10a   : >> { %v1078_v51 = vmax.f32 %v1071_v47, %v1075_v48  ;;  %v1081_v54 = vld [vmem:[#allocation3 + $0x4] ss:$2 sm:$0xff]  ;;  %v1065_v58 = vld [vmem:[#allocation3 + $0x1] ss:$2 sm:$0xff]  ;;  %1363 = vmatpush.bf16.msrb.mxu2 (%p920_p13), %v10937_v33 }
 0x10b   : >> { %v1061_v55 = vld [vmem:[#allocation3] ss:$2 sm:$0xff]  ;;  %v1085_v2 = vld [vmem:[#allocation3 + $0x5] ss:$2 sm:$0xff]  ;;  %1255 = vmatpush.bf16.msra.mxu0 (%p920_p13), %v12341_v36 }
 0x10c   : >> { %v1068_v8 = vmax.f32 %v1061_v55, %v1065_v58  ;;  %v1088_v9 = vmax.f32 %v1081_v54, %v1085_v2  ;;  %v10934_v47 = vld [vmem:[%s17300_s4 + $0x18] sm:$0xff] (%p920_p13)  ;;  %v10959_v54 = vld [vmem:[%s17300_s4 + $0xc0] sm:$0xff] (%p920_p13) }
 0x10d   : > { %1521 = vmatpush.bf16.msrb.mxu3 (%p920_p13), %v12327_v34 }
 0x10e   : > { %1364 = vmatpush.bf16.msrb.mxu2 (%p920_p13), %v10936_v37 }
 0x10f   : >> { %v1073_v49 = vld [vmem:[#allocation3 + $0x12] ss:$2 sm:$0xff]  ;;  %v1077_v50 = vld [vmem:[#allocation3 + $0x13] ss:$2 sm:$0xff]  ;;  %1256 = vmatpush.bf16.msra.mxu0 (%p920_p13), %v10946_v40 }
 0x110   : >> { %v1079_v52 = vmax.f32 %v1073_v49, %v1077_v50  ;;  %v1063_v56 = vld [vmem:[#allocation3 + $0x10] ss:$2 sm:$0xff]  ;;  %v1067_v57 = vld [vmem:[#allocation3 + $0x11] ss:$2 sm:$0xff] }
 0x111   : >> { %v1083_v59 = vld [vmem:[#allocation3 + $0x14] ss:$2 sm:$0xff]  ;;  %v1087_v3 = vld [vmem:[#allocation3 + $0x15] ss:$2 sm:$0xff]  ;;  %v1069_v5 = vmax.f32 %v1063_v56, %v1067_v57  ;;  %1522 = vmatpush.bf16.msrb.mxu3 (%p920_p13), %v12351_v38 }
 0x112   : >> { %v11640_v53 = vpack.i.bf16 %v1079_v52, %v1078_v51  ;;  %v1089_v10 = vmax.f32 %v1083_v59, %v1087_v3  ;;  %1365 = vmatpush.bf16.msrb.mxu2 (%p920_p13), %v10935_v41  ;;  %v12389_v50 = vld [vmem:[%s17300_s4 + $0xc8] sm:$0xff] (%p920_p13)  ;;  %v10931_v59 = vld [vmem:[%s17300_s4] sm:$0xff] (%p920_p13) }
 0x113   : > { %1257 = vmatpush.bf16.msra.mxu0 (%p920_p13), %v10945_v44  ;;  %1508 = vmatpush.bf16.msra.mxu1 (%p920_p13), %v12389_v50  ;;  %v10932_v57 = vld [vmem:[%s17300_s4 + $0x8] sm:$0xff] (%p920_p13) }
 0x114   : >> { %11641 = vrot.lane.b32.xlu0 %v11640_v53, %s11910_s24  ;;  %v10933_v53 = vld [vmem:[%s17300_s4 + $0x10] sm:$0xff] (%p920_p13) }
 0x115   : > { %1523 = vmatpush.bf16.msrb.mxu3 (%p920_p13), %v12370_v42 }
 0x116   : > { %1366 = vmatpush.bf16.msrb.mxu2 (%p920_p13), %v10934_v47 }
 0x117   : > { %1544 = vmatpush.bf16.msrb.mxu0 (%p920_p13), %v12224_v16  ;;  %1509 = vmatpush.bf16.msra.mxu1 (%p920_p13), %v10959_v54 }
 0x11a   : > { %1367 = vmatpush.bf16.msrb.mxu2 (%p920_p13), %v10933_v53 }
 0x11b   : > { %1545 = vmatpush.bf16.msrb.mxu0 (%p920_p13), %v12241_v61  ;;  %1590 = vmatpush.bf16.msrb.mxu1 (%p920_p13), %v12229_v17  ;;  %v7952_v17 = vld [vmem:[%s17303_s7 + $0xf0] sm:$0xf] (%p920_p13)  ;;  %v11003_v61 = vld [vmem:[%s17303_s7 + $0xf4] sm:$0xf] (%p920_p13) }
 0x11e   : > { %1368 = vmatpush.bf16.msrb.mxu2 (%p920_p13), %v10932_v57 }
 0x11f   : > { %1546 = vmatpush.bf16.msrb.mxu0 (%p920_p13), %v12264_v1  ;;  %1591 = vmatpush.bf16.msrb.mxu1 (%p920_p13), %v12247_v62  ;;  %v8008_v1 = vld [vmem:[%s17303_s7 + $0x60] sm:$0xf] (%p920_p13) }
 0x122   : > { %1369 = vmatpush.bf16.msrb.mxu2 (%p920_p13), %v10931_v59 }
 0x123   : > { %1547 = vmatpush.bf16.msrb.mxu0 (%p920_p13), %v12291_v22  ;;  %1592 = vmatpush.bf16.msrb.mxu1 (%p920_p13), %v12270_v18  ;;  %v10986_v18 = vld [vmem:[%s17303_s7 + $0x64] sm:$0xf0] (%p920_p13) }
 0x127   : > { %1548 = vmatpush.bf16.msrb.mxu0 (%p920_p13), %v12317_v31  ;;  %1593 = vmatpush.bf16.msrb.mxu1 (%p920_p13), %v12297_v25  ;;  %v11001_v25 = vld [vmem:[%s17303_s7 + $0xe4] sm:$0xf] (%p920_p13) }
 0x12b   : > { %1549 = vmatpush.bf16.msrb.mxu0 (%p920_p13), %v12341_v36  ;;  %v11000_v36 = vld [vmem:[%s17303_s7 + $0xd4] sm:$0xf0] (%p920_p13) }
 0x12f   : > { %1550 = vmatpush.bf16.msrb.mxu0 (%p920_p13), %v10946_v40 }
 0x133   : > { %1551 = vmatpush.bf16.msrb.mxu0 (%p920_p13), %v10945_v44  ;;  %v10981_v44 = vld [vmem:[%s17303_s7 + $0x44] sm:$0xf] (%p920_p13) }
 0x186   : >> { %v11642_v4 = vpop.permute.xlu0 %11641 }
 0x187   : >> { %v11644_v6 = vunpack.i.h.bf16 %v11642_v4  ;;  %v11643_v7 = vunpack.i.l.bf16 %v11642_v4 }
 0x189   : >> { %v1099_v11 = vsel %vm912_vm0, %v1069_v5, %v11644_v6  ;;  %v1098_v12 = vsel %vm912_vm0, %v1068_v8, %v11643_v7  ;;  %922 = sbr.rel (!%p920_p13) target bundleno = 106 (0x6a), region = 216 }
 0x18a   : >> { %v1101_v13 = vpack.c.bf16 %v1089_v10, %v1099_v11  ;;  %v1100_v14 = vpack.c.bf16 %v1088_v9, %v1098_v12  ;;  %v8016_v11 = vld [vmem:[%s17303_s7 + $0x70] sm:$0xf] (%p920_p13)  ;;  %v10988_v12 = vld [vmem:[%s17303_s7 + $0x74] sm:$0xf0] (%p920_p13) }
 0x18c   : >> { %1109 = vst.msk [vmem:[%s1104_s29 + $0x8] sm:$0xff] %vm1107_vm4, %v1101_v13  ;;  %v8017_v13 = vor.u32 (%p920_p13), %v10988_v12, %v8016_v11  ;;  %v7976_v12 = vld [vmem:[%s17303_s7 + $0x20] sm:$0xf] (%p920_p13) }
 0x18d   : >> { %1108 = vst.msk [vmem:[%s1104_s29] sm:$0xff] %vm1107_vm4, %v1100_v14  ;;  %v10987_v14 = vld [vmem:[%s17303_s7 + $0x74] sm:$0xf] (%p920_p13)  ;;  %s11857_s29 = scalar_lea.hbm (%p920_p13), %s17307_s11, 2 }
 0x18e   : > { %p11859_p4 = scmp.lt.s32.totalorder %s11857_s29, %s11853_s16 }
 0x190   : > { %p11860_p5 = por %p11859_p4, %p11858_p3 }
 0x192   : > { %p11861_p7 = pnand %p11860_p5, %p11856_p2 }
 0x194   : > { %v10943_v23 = vld [vmem:[#allocation2 + $0x14] sm:$0xf]  ;;  %v7676_v24 = vld [vmem:[#allocation2 + $0x18] sm:$0xf0]  ;;  %v10929_v26 = vld [vmem:[#allocation2 + $0x4] sm:$0xf] }
 0x195   : > { %v7733_v27 = vld [vmem:[#allocation2 + $0x8] sm:$0xf0]  ;;  %v12310_v30 = vor.u32 %v10943_v23, %v7676_v24  ;;  %v7674_v45 = vld [vmem:[#allocation2 + $0x10] sm:$0xf]  ;;  %v10944_v46 = vld [vmem:[#allocation2 + $0x14] sm:$0xf0] }
 0x196   : > { %v7736_v32 = vor.u32 %v10929_v26, %v7733_v27  ;;  %v10957_v48 = vld [vmem:[#allocation2 + $0x24] sm:$0xf]  ;;  %v7814_v49 = vld [vmem:[#allocation2 + $0x28] sm:$0xf0]  ;;  %v7675_v51 = vor.u32 %v10944_v46, %v7674_v45  ;;  %v7812_v55 = vld [vmem:[#allocation2 + $0x20] sm:$0xf] }
 0x197   : > { %7728 = vmatmul.msk.bf16.vlgmr.msra.gmra.mxu2 %vm912_vm0, %v12310_v30  ;;  %v12391_v52 = vor.u32 %v10957_v48, %v7814_v49  ;;  %v10958_v56 = vld [vmem:[#allocation2 + $0x24] sm:$0xf0]  ;;  %v7731_v2 = vld [vmem:[#allocation2] sm:$0xf]  ;;  %v10971_v5 = vld [vmem:[#allocation2 + $0x34] sm:$0xf] }
 0x198   : > { %7785 = vmatmul.msk.bf16.vlgmr.msra.gmra.mxu3 %vm912_vm0, %v7736_v32  ;;  %1258 = vmatmul.bf16.vlgmr.msra.gmra.mxu0 %v7675_v51  ;;  %v12407_v58 = vor.u32 %v10958_v56, %v7812_v55  ;;  %v10930_v3 = vld [vmem:[#allocation2 + $0x4] sm:$0xf0]  ;;  %v7873_v6 = vld [vmem:[#allocation2 + $0x38] sm:$0xf0]  ;;  %v7871_v8 = vld [vmem:[#allocation2 + $0x30] sm:$0xf] }
 0x199   : > { %1572 = vmatpush.bf16.msra.mxu3 %v10938_v21  ;;  %v7732_v4 = vor.u32 %v10930_v3, %v7731_v2  ;;  %1562 = vmatpush.bf16.msra.mxu2 %v12219_v15  ;;  %v12439_v7 = vor.u32 %v10971_v5, %v7873_v6  ;;  %v10972_v9 = vld [vmem:[#allocation2 + $0x34] sm:$0xf0]  ;;  %v8018_v15 = vld [vmem:[%s17303_s7 + $0x78] sm:$0xf0]  ;;  %v8010_v21 = vld [vmem:[%s17303_s7 + $0x68] sm:$0xf0] }
 0x19a   : > { %1510 = vmatmul.bf16.vlgmr.msra.gmra.mxu1 %v12407_v58  ;;  %1633 = vmatpush.bf16.msra.mxu0 %v12303_v28  ;;  %v12445_v10 = vor.u32 %v10972_v9, %v7871_v8  ;;  %v8021_v16 = vor.u32 %v10987_v14, %v8018_v15  ;;  %v7944_v23 = vld [vmem:[%s17303_s7 + $0xe0] sm:$0xf]  ;;  %v11002_v24 = vld [vmem:[%s17303_s7 + $0xe4] sm:$0xf0]  ;;  %v7946_v27 = vld [vmem:[%s17303_s7 + $0xe8] sm:$0xf0] }
 0x19b   : > { %v7945_v26 = vor.u32 %v11002_v24, %v7944_v23  ;;  %v7949_v28 = vor.u32 %v11001_v25, %v7946_v27  ;;  %v10983_v32 = vld [vmem:[%s17303_s7 + $0x54] sm:$0xf]  ;;  %v7994_v45 = vld [vmem:[%s17303_s7 + $0x48] sm:$0xf0]  ;;  %v10998_v48 = vld [vmem:[%s17303_s7 + $0xc4] sm:$0xf0] }
 0x19c   : > { %v7997_v46 = vor.u32 %v10981_v44, %v7994_v45  ;;  %v10997_v49 = vld [vmem:[%s17303_s7 + $0xc4] sm:$0xf]  ;;  %v10980_v55 = vld [vmem:[%s17303_s7 + $0x34] sm:$0xf0]  ;;  %v10995_v6 = vld [vmem:[%s17303_s7 + $0xb4] sm:$0xf] }
 0x19d   : > { %1573 = vmatpush.bf16.msra.mxu3 %v10937_v33  ;;  %1563 = vmatpush.bf16.msra.mxu2 %v12235_v60  ;;  %v11004_v60 = vld [vmem:[%s17303_s7 + $0xf4] sm:$0xf0]  ;;  %v8002_v33 = vld [vmem:[%s17303_s7 + $0x58] sm:$0xf0]  ;;  %v10977_v15 = vld [vmem:[%s17303_s7 + $0x24] sm:$0xf] }
 0x19e   : > { %1634 = vmatpush.bf16.msra.mxu0 %v12327_v34  ;;  %v7953_v62 = vor.u32 %v11004_v60, %v7952_v17  ;;  %v8005_v34 = vor.u32 %v10983_v32, %v8002_v33  ;;  %v10996_v5 = vld [vmem:[%s17303_s7 + $0xb4] sm:$0xf0]  ;;  %v7922_v9 = vld [vmem:[%s17303_s7 + $0xb8] sm:$0xf0]  ;;  %v7912_v17 = vld [vmem:[%s17303_s7 + $0xa0] sm:$0xf] }
 0x19f   : > { %v7925_v11 = vor.u32 %v10995_v6, %v7922_v9  ;;  %v7904_v24 = vld [vmem:[%s17303_s7 + $0x90] sm:$0xf]  ;;  %v10992_v25 = vld [vmem:[%s17303_s7 + $0x94] sm:$0xf0]  ;;  %v10974_v32 = vld [vmem:[%s17303_s7 + $0x4] sm:$0xf0] }
 0x1a0   : > { %1774 = vmatpush.bf16.msra.mxu1 %v7953_v62  ;;  %v10993_v62 = vld [vmem:[%s17303_s7 + $0xa4] sm:$0xf]  ;;  %v7905_v27 = vor.u32 %v10992_v25, %v7904_v24  ;;  %v7898_v44 = vld [vmem:[%s17303_s7 + $0x88] sm:$0xf0]  ;;  %v11035_v45 = vld [vmem:[%s17303_s7 + $0x1f4] sm:$0xf] }
 0x1a1   : > { %1574 = vmatpush.bf16.msra.mxu3 %v10936_v37  ;;  %1564 = vmatpush.bf16.msra.mxu2 %v12258_v0  ;;  %v10999_v37 = vld [vmem:[%s17303_s7 + $0xd4] sm:$0xf]  ;;  %v11018_v9 = vld [vmem:[%s17303_s7 + $0x164] sm:$0xf0] }
 0x1a2   : > { %1635 = vmatpush.bf16.msra.mxu0 %v12351_v38  ;;  %v11030_v24 = vld [vmem:[%s17303_s7 + $0x1c4] sm:$0xf0] }
 0x1a4   : > { %1775 = vmatpush.bf16.msra.mxu1 %v7945_v26  ;;  %v10991_v26 = vld [vmem:[%s17303_s7 + $0x94] sm:$0xf] }
 0x1a5   : > { %1575 = vmatpush.bf16.msra.mxu3 %v10935_v41  ;;  %1565 = vmatpush.bf16.msra.mxu2 %v12281_v20  ;;  %v10985_v20 = vld [vmem:[%s17303_s7 + $0x64] sm:$0xf]  ;;  %v7992_v41 = vld [vmem:[%s17303_s7 + $0x40] sm:$0xf] }
 0x1a6   : > { %1636 = vmatpush.bf16.msra.mxu0 %v12370_v42  ;;  %v8013_v22 = vor.u32 %v10985_v20, %v8010_v21  ;;  %v10982_v42 = vld [vmem:[%s17303_s7 + $0x44] sm:$0xf0]  ;;  %v10975_v21 = vld [vmem:[%s17303_s7 + $0x14] sm:$0xf] }
 0x1a7   : > { %1370 = vmatmul.bf16.vlgmr.msrb.gmra.mxu2 %v7732_v4  ;;  %v7920_v4 = vld [vmem:[%s17303_s7 + $0xb0] sm:$0xf] }
 0x1a8   : > { %7866 = vmatmul.msk.bf16.vlgmr.msrb.gmra.mxu3 %vm912_vm0, %v12391_v52  ;;  %1552 = vmatmul.bf16.vlgmr.msrb.gmra.mxu0 %v12407_v58  ;;  %v7921_v8 = vor.u32 %v10996_v5, %v7920_v4  ;;  %v8170_v4 = vld [vmem:[%s17303_s7 + $0x1e8] sm:$0xf0] }
 0x1a9   : > { %1576 = vmatpush.bf16.msra.mxu3 %v10934_v47  ;;  %1615 = vmatpush.bf16.msrb.mxu2 %v12252_v63  ;;  %v7954_v63 = vld [vmem:[%s17303_s7 + $0xf8] sm:$0xf0]  ;;  %v7928_v47 = vld [vmem:[%s17303_s7 + $0xc0] sm:$0xf] }
 0x1aa   : > { %7868 = vmatmul.msk.bf16.vlgmr.msrb.gmra.mxu1 %vm912_vm0, %v12310_v30  ;;  %1880 = vmatpush.bf16.msrb.mxu0 %v8017_v13  ;;  %v7957_v0 = vor.u32 %v11003_v61, %v7954_v63  ;;  %v10984_v30 = vld [vmem:[%s17303_s7 + $0x54] sm:$0xf0]  ;;  %v10978_v13 = vld [vmem:[%s17303_s7 + $0x24] sm:$0xf0]  ;;  %v7914_v63 = vld [vmem:[%s17303_s7 + $0xa8] sm:$0xf0] }
 0x1ab   : > { %v7977_v14 = vor.u32 %v10978_v13, %v7976_v12  ;;  %v10994_v61 = vld [vmem:[%s17303_s7 + $0xa4] sm:$0xf0] }
 0x1ad   : > { %1577 = vmatpush.bf16.msra.mxu3 %v10933_v53  ;;  %1616 = vmatpush.bf16.msrb.mxu2 %v12276_v19  ;;  %v8009_v19 = vor.u32 %v10986_v18, %v8008_v1  ;;  %v7917_v1 = vor.u32 %v10993_v62, %v7914_v63  ;;  %v7968_v18 = vld [vmem:[%s17303_s7 + $0x10] sm:$0xf]  ;;  %v8162_v62 = vld [vmem:[%s17303_s7 + $0x1d8] sm:$0xf0] }
 0x1af   : > { %1881 = vmatpush.bf16.msrb.mxu0 %v8009_v19  ;;  %v10976_v19 = vld [vmem:[%s17303_s7 + $0x14] sm:$0xf0] }
 0x1b0   : > { %v7969_v20 = vor.u32 %v10976_v19, %v7968_v18  ;;  %v11016_v18 = vld [vmem:[%s17303_s7 + $0x154] sm:$0xf0]  ;;  %v11015_v19 = vld [vmem:[%s17303_s7 + $0x154] sm:$0xf] }
 0x1b1   : > { %1578 = vmatpush.bf16.msra.mxu3 %v10932_v57  ;;  %1617 = vmatpush.bf16.msrb.mxu2 %v12308_v29  ;;  %v8000_v29 = vld [vmem:[%s17303_s7 + $0x50] sm:$0xf]  ;;  %v10979_v57 = vld [vmem:[%s17303_s7 + $0x34] sm:$0xf] }
 0x1b2   : > { %v8001_v31 = vor.u32 %v10984_v30, %v8000_v29 }
 0x1b4   : > { %1882 = vmatpush.bf16.msrb.mxu0 %v8001_v31  ;;  %v7960_v31 = vld [vmem:[%s17303_s7] sm:$0xf] }
 0x1b5   : > { %1579 = vmatpush.bf16.msra.mxu3 %v10931_v59  ;;  %1618 = vmatpush.bf16.msrb.mxu2 %v12333_v35  ;;  %v7936_v35 = vld [vmem:[%s17303_s7 + $0xd0] sm:$0xf]  ;;  %v7986_v59 = vld [vmem:[%s17303_s7 + $0x38] sm:$0xf0]  ;;  %v7961_v33 = vor.u32 %v10974_v32, %v7960_v31  ;;  %v8072_v31 = vld [vmem:[%s17303_s7 + $0x140] sm:$0xf] }
 0x1b6   : > { %v7937_v38 = vor.u32 %v11000_v36, %v7936_v35  ;;  %v7989_v3 = vor.u32 %v10979_v57, %v7986_v59  ;;  %v7962_v35 = vld [vmem:[%s17303_s7 + $0x8] sm:$0xf0]  ;;  %v8176_v36 = vld [vmem:[%s17303_s7 + $0x1f0] sm:$0xf]  ;;  %v11034_v59 = vld [vmem:[%s17303_s7 + $0x1e4] sm:$0xf0] }
 0x1b7   : > { %7867 = vmatmul.msk.bf16.vlgmr.msra.gmra.mxu2 %vm912_vm0, %v12391_v52  ;;  %v11014_v32 = vld [vmem:[%s17303_s7 + $0x144] sm:$0xf0] }
 0x1b8   : > { %1580 = vmatmul.bf16.vlgmr.msra.gmra.mxu3 %v7675_v51  ;;  %7877 = vmatmul.msk.bf16.vlgmr.msra.gmra.mxu0 %vm912_vm0, %v12439_v7  ;;  %v7930_v51 = vld [vmem:[%s17303_s7 + $0xc8] sm:$0xf0] }
 0x1b9   : > { %1619 = vmatpush.bf16.msrb.mxu2 %v12357_v39  ;;  %1787 = vmatpush.bf16.msrb.mxu3 %v7957_v0  ;;  %v7938_v39 = vld [vmem:[%s17303_s7 + $0xd8] sm:$0xf0]  ;;  %v7933_v53 = vor.u32 %v10997_v49, %v7930_v51  ;;  %v7913_v0 = vor.u32 %v10994_v61, %v7912_v17  ;;  %v8096_v49 = vld [vmem:[%s17303_s7 + $0x170] sm:$0xf]  ;;  %v11031_v61 = vld [vmem:[%s17303_s7 + $0x1d4] sm:$0xf] }
 0x1ba   : > { %v7941_v40 = vor.u32 %v10999_v37, %v7938_v39  ;;  %1776 = vmatpush.bf16.msra.mxu1 %v7937_v38  ;;  %v11036_v38 = vld [vmem:[%s17303_s7 + $0x1f4] sm:$0xf0]  ;;  %v7896_v39 = vld [vmem:[%s17303_s7 + $0x80] sm:$0xf] }
 0x1bd   : > { %1620 = vmatpush.bf16.msrb.mxu2 %v12376_v43  ;;  %1788 = vmatpush.bf16.msrb.mxu3 %v7949_v28  ;;  %v7993_v43 = vor.u32 %v10982_v42, %v7992_v41  ;;  %v7906_v28 = vld [vmem:[%s17303_s7 + $0x98] sm:$0xf0]  ;;  %v8177_v41 = vor.u32 %v11036_v38, %v8176_v36  ;;  %v11028_v38 = vld [vmem:[%s17303_s7 + $0x1b4] sm:$0xf0] }
 0x1be   : > { %v7909_v30 = vor.u32 %v10991_v26, %v7906_v28  ;;  %v8154_v28 = vld [vmem:[%s17303_s7 + $0x1c8] sm:$0xf0] }
 0x1bf   : > { %1883 = vmatpush.bf16.msrb.mxu0 %v7993_v43  ;;  %v10989_v43 = vld [vmem:[%s17303_s7 + $0x84] sm:$0xf] }
 0x1c1   : > { %1621 = vmatpush.bf16.msrb.mxu2 %v12389_v50  ;;  %1789 = vmatpush.bf16.msrb.mxu3 %v7941_v40  ;;  %v7929_v50 = vor.u32 %v10998_v48, %v7928_v47  ;;  %v10990_v40 = vld [vmem:[%s17303_s7 + $0x84] sm:$0xf0]  ;;  %v7901_v47 = vor.u32 %v10989_v43, %v7898_v44  ;;  %v8178_v48 = vld [vmem:[%s17303_s7 + $0x1f8] sm:$0xf0]  ;;  %v8064_v44 = vld [vmem:[%s17303_s7 + $0x130] sm:$0xf] }
 0x1c2   : > { %v7897_v42 = vor.u32 %v10990_v40, %v7896_v39  ;;  %v8181_v51 = vor.u32 %v11035_v45, %v8178_v48  ;;  %v11012_v45 = vld [vmem:[%s17303_s7 + $0x134] sm:$0xf0] }
 0x1c3   : > { %1777 = vmatpush.bf16.msra.mxu1 %v7929_v50  ;;  %v11020_v50 = vld [vmem:[%s17303_s7 + $0x174] sm:$0xf0] }
 0x1c5   : > { %1622 = vmatpush.bf16.msrb.mxu2 %v10959_v54  ;;  %v7984_v54 = vld [vmem:[%s17303_s7 + $0x30] sm:$0xf]  ;;  %1790 = vmatpush.bf16.msrb.mxu3 %v7933_v53  ;;  %v8097_v53 = vor.u32 %v11020_v50, %v8096_v49  ;;  %v8065_v49 = vor.u32 %v11012_v45, %v8064_v44  ;;  %v8066_v50 = vld [vmem:[%s17303_s7 + $0x138] sm:$0xf0] }
 0x1c6   : > { %v7985_v56 = vor.u32 %v10980_v55, %v7984_v54  ;;  %v11019_v54 = vld [vmem:[%s17303_s7 + $0x174] sm:$0xf]  ;;  %v8098_v55 = vld [vmem:[%s17303_s7 + $0x178] sm:$0xf0] }
 0x1c7   : > { %1778 = vmatpush.bf16.msra.mxu1 %v7921_v8  ;;  %v8101_v57 = vor.u32 %v11019_v54, %v8098_v55  ;;  %v8088_v8 = vld [vmem:[%s17303_s7 + $0x160] sm:$0xf]  ;;  %v11026_v54 = vld [vmem:[%s17303_s7 + $0x1a4] sm:$0xf0] }
 0x1c8   : > { %1623 = vmatmul.bf16.vlgmr.msrb.gmra.mxu2 %v12445_v10  ;;  %1884 = vmatpush.bf16.msrb.mxu0 %v7985_v56  ;;  %v8168_v56 = vld [vmem:[%s17303_s7 + $0x1e0] sm:$0xf]  ;;  %v8089_v13 = vor.u32 %v11018_v9, %v8088_v8  ;;  %v11009_v8 = vld [vmem:[%s17303_s7 + $0x124] sm:$0xf]  ;;  %v8058_v9 = vld [vmem:[%s17303_s7 + $0x128] sm:$0xf0] }
 0x1c9   : > { %1893 = vmatpush.bf16.msra.mxu2 %v8021_v16  ;;  %v7978_v16 = vld [vmem:[%s17303_s7 + $0x28] sm:$0xf0]  ;;  %1791 = vmatpush.bf16.msrb.mxu3 %v7925_v11  ;;  %v8169_v5 = vor.u32 %v11034_v59, %v8168_v56  ;;  %v11017_v11 = vld [vmem:[%s17303_s7 + $0x164] sm:$0xf] }
 0x1ca   : > { %v7981_v60 = vor.u32 %v10977_v15, %v7978_v16  ;;  %v8160_v15 = vld [vmem:[%s17303_s7 + $0x1d0] sm:$0xf]  ;;  %v11032_v16 = vld [vmem:[%s17303_s7 + $0x1d4] sm:$0xf0]  ;;  %v11025_v56 = vld [vmem:[%s17303_s7 + $0x1a4] sm:$0xf] }
 0x1cb   : > { %1779 = vmatpush.bf16.msra.mxu1 %v7913_v0  ;;  %v8165_v0 = vor.u32 %v11031_v61, %v8162_v62 }
 0x1cc   : > { %1885 = vmatpush.bf16.msrb.mxu0 %v7977_v14  ;;  %v8090_v14 = vld [vmem:[%s17303_s7 + $0x168] sm:$0xf0] }
 0x1cd   : > { %1894 = vmatpush.bf16.msra.mxu2 %v8013_v22  ;;  %v7970_v22 = vld [vmem:[%s17303_s7 + $0x18] sm:$0xf0]  ;;  %1792 = vmatpush.bf16.msrb.mxu3 %v7917_v1  ;;  %v8093_v17 = vor.u32 %v11017_v11, %v8090_v14  ;;  %v8080_v1 = vld [vmem:[%s17303_s7 + $0x150] sm:$0xf]  ;;  %v8061_v11 = vor.u32 %v11009_v8, %v8058_v9  ;;  %v11024_v14 = vld [vmem:[%s17303_s7 + $0x194] sm:$0xf0] }
 0x1ce   : > { %v7973_v23 = vor.u32 %v10975_v21, %v7970_v22  ;;  %v8082_v21 = vld [vmem:[%s17303_s7 + $0x158] sm:$0xf0] }
 0x1cf   : > { %1780 = vmatpush.bf16.msra.mxu1 %v7905_v27  ;;  %v8085_v22 = vor.u32 %v11015_v19, %v8082_v21  ;;  %v11029_v27 = vld [vmem:[%s17303_s7 + $0x1c4] sm:$0xf]  ;;  %v8050_v21 = vld [vmem:[%s17303_s7 + $0x118] sm:$0xf0] }
 0x1d0   : > { %1886 = vmatpush.bf16.msrb.mxu0 %v7969_v20  ;;  %v8081_v20 = vor.u32 %v11016_v18, %v8080_v1  ;;  %v11008_v1 = vld [vmem:[%s17303_s7 + $0x114] sm:$0xf0]  ;;  %v11007_v18 = vld [vmem:[%s17303_s7 + $0x114] sm:$0xf] }
 0x1d1   : > { %1895 = vmatpush.bf16.msra.mxu2 %v8005_v34  ;;  %v10973_v34 = vld [vmem:[%s17303_s7 + $0x4] sm:$0xf]  ;;  %1793 = vmatpush.bf16.msrb.mxu3 %v7909_v30  ;;  %v8157_v30 = vor.u32 %v11029_v27, %v8154_v28  ;;  %v8122_v28 = vld [vmem:[%s17303_s7 + $0x188] sm:$0xf0] }
 0x1d2   : > { %v7965_v37 = vor.u32 %v10973_v34, %v7962_v35  ;;  %v11013_v34 = vld [vmem:[%s17303_s7 + $0x144] sm:$0xf]  ;;  %v8074_v35 = vld [vmem:[%s17303_s7 + $0x148] sm:$0xf0] }
 0x1d3   : > { %1781 = vmatpush.bf16.msra.mxu1 %v7897_v42  ;;  %v8077_v36 = vor.u32 %v11013_v34, %v8074_v35  ;;  %v8146_v42 = vld [vmem:[%s17303_s7 + $0x1b8] sm:$0xf0]  ;;  %v11021_v27 = vld [vmem:[%s17303_s7 + $0x184] sm:$0xf] }
 0x1d4   : > { %1887 = vmatpush.bf16.msrb.mxu0 %v7961_v33  ;;  %v8073_v33 = vor.u32 %v11014_v32, %v8072_v31  ;;  %v8040_v31 = vld [vmem:[%s17303_s7 + $0x100] sm:$0xf]  ;;  %v11006_v32 = vld [vmem:[%s17303_s7 + $0x104] sm:$0xf0] }
 0x1d5   : > { %1896 = vmatpush.bf16.msra.mxu2 %v7997_v46  ;;  %1794 = vmatpush.bf16.msrb.mxu3 %v7901_v47  ;;  %v11011_v47 = vld [vmem:[%s17303_s7 + $0x134] sm:$0xf]  ;;  %v8041_v35 = vor.u32 %v11006_v32, %v8040_v31  ;;  %v11066_v31 = vld [vmem:[%s17303_s7 + $0x2e4] sm:$0xf0]  ;;  %v11065_v32 = vld [vmem:[%s17303_s7 + $0x2e4] sm:$0xf] }
 0x1d7   : > { %2005 = vmatpush.bf16.msrb.mxu1 %v8097_v53  ;;  %v8136_v53 = vld [vmem:[%s17303_s7 + $0x1a0] sm:$0xf] }
 0x1d8   : > { %2132 = vmatpush.bf16.msra.mxu0 %v8177_v41  ;;  %v11027_v41 = vld [vmem:[%s17303_s7 + $0x1b4] sm:$0xf]  ;;  %v8137_v55 = vor.u32 %v11026_v54, %v8136_v53 }
 0x1d9   : > { %1897 = vmatpush.bf16.msra.mxu2 %v7989_v3  ;;  %v11033_v3 = vld [vmem:[%s17303_s7 + $0x1e4] sm:$0xf]  ;;  %2018 = vmatpush.bf16.msra.mxu3 %v8101_v57  ;;  %v8149_v43 = vor.u32 %v11027_v41, %v8146_v42  ;;  %v8138_v57 = vld [vmem:[%s17303_s7 + $0x1a8] sm:$0xf0] }
 0x1da   : > { %v8173_v6 = vor.u32 %v11033_v3, %v8170_v4  ;;  %v8141_v59 = vor.u32 %v11025_v56, %v8138_v57  ;;  %v8056_v3 = vld [vmem:[%s17303_s7 + $0x120] sm:$0xf]  ;;  %v11010_v4 = vld [vmem:[%s17303_s7 + $0x124] sm:$0xf0] }
 0x1db   : > { %2006 = vmatpush.bf16.msrb.mxu1 %v8089_v13  ;;  %v8128_v13 = vld [vmem:[%s17303_s7 + $0x190] sm:$0xf] }
 0x1dc   : > { %2133 = vmatpush.bf16.msra.mxu0 %v8169_v5 }
 0x1dd   : > { %1898 = vmatpush.bf16.msra.mxu2 %v7981_v60  ;;  %v8161_v60 = vor.u32 %v11032_v16, %v8160_v15  ;;  %2019 = vmatpush.bf16.msra.mxu3 %v8093_v17  ;;  %v8129_v16 = vor.u32 %v11024_v14, %v8128_v13  ;;  %v11023_v17 = vld [vmem:[%s17303_s7 + $0x194] sm:$0xf] }
 0x1df   : > { %2007 = vmatpush.bf16.msrb.mxu1 %v8081_v20 }
 0x1e0   : > { %2134 = vmatpush.bf16.msra.mxu0 %v8161_v60  ;;  %v8130_v60 = vld [vmem:[%s17303_s7 + $0x198] sm:$0xf0] }
 0x1e1   : > { %1899 = vmatpush.bf16.msra.mxu2 %v7973_v23  ;;  %v8152_v23 = vld [vmem:[%s17303_s7 + $0x1c0] sm:$0xf]  ;;  %2020 = vmatpush.bf16.msra.mxu3 %v8085_v22  ;;  %v8133_v62 = vor.u32 %v11023_v17, %v8130_v60  ;;  %v8053_v22 = vor.u32 %v11007_v18, %v8050_v21  ;;  %v8336_v17 = vld [vmem:[%s17303_s7 + $0x2f0] sm:$0xf]  ;;  %v11068_v60 = vld [vmem:[%s17303_s7 + $0x2f4] sm:$0xf0] }
 0x1e2   : > { %v8153_v26 = vor.u32 %v11030_v24, %v8152_v23  ;;  %v8120_v23 = vld [vmem:[%s17303_s7 + $0x180] sm:$0xf]  ;;  %v11022_v24 = vld [vmem:[%s17303_s7 + $0x184] sm:$0xf0]  ;;  %v11051_v21 = vld [vmem:[%s17303_s7 + $0x274] sm:$0xf] }
 0x1e3   : > { %2008 = vmatpush.bf16.msrb.mxu1 %v8073_v33  ;;  %v11005_v33 = vld [vmem:[%s17303_s7 + $0x104] sm:$0xf] }
 0x1e4   : > { %2135 = vmatpush.bf16.msra.mxu0 %v8153_v26  ;;  %v8121_v26 = vor.u32 %v11022_v24, %v8120_v23 }
 0x1e5   : > { %1900 = vmatpush.bf16.msra.mxu2 %v7965_v37  ;;  %v8144_v37 = vld [vmem:[%s17303_s7 + $0x1b0] sm:$0xf]  ;;  %2021 = vmatpush.bf16.msra.mxu3 %v8077_v36  ;;  %v8042_v36 = vld [vmem:[%s17303_s7 + $0x108] sm:$0xf0] }
 0x1e6   : > { %v8145_v40 = vor.u32 %v11028_v38, %v8144_v37  ;;  %v8045_v38 = vor.u32 %v11005_v33, %v8042_v36  ;;  %v8248_v36 = vld [vmem:[%s17303_s7 + $0x260] sm:$0xf] }
 0x1e7   : > { %2009 = vmatpush.bf16.msrb.mxu1 %v8065_v49  ;;  %v12855_v49 = vld [vmem:[%s17301_s5] ss:$0 sm:$0xff] }
 0x1e8   : > { %2136 = vmatpush.bf16.msra.mxu0 %v8145_v40 }
 0x1e9   : > { %2145 = vmatpush.bf16.msrb.mxu2 %v8181_v51  ;;  %v8069_v51 = vor.u32 %v11011_v47, %v8066_v50 }
 0x1eb   : > { %2022 = vmatpush.bf16.msra.mxu3 %v8069_v51 }
 0x1ec   : > { %2137 = vmatpush.bf16.msra.mxu0 %v8137_v55  ;;  %v12861_v55 = vld [vmem:[%s17302_s6] ss:$0 sm:$0xff] }
 0x1ed   : > { %2146 = vmatpush.bf16.msrb.mxu2 %v8173_v6  ;;  %v8057_v6 = vor.u32 %v11010_v4, %v8056_v3 }
 0x1ef   : > { %2010 = vmatpush.bf16.msrb.mxu1 %v8057_v6  ;;  %2023 = vmatpush.bf16.msra.mxu3 %v8061_v11 }
 0x1f0   : > { %2138 = vmatpush.bf16.msra.mxu0 %v8129_v16 }
 0x1f1   : > { %2147 = vmatpush.bf16.msrb.mxu2 %v8165_v0  ;;  %v8048_v0 = vld [vmem:[%s17303_s7 + $0x110] sm:$0xf] }
 0x1f2   : > { %v8049_v20 = vor.u32 %v11008_v1, %v8048_v0  ;;  %v8256_v1 = vld [vmem:[%s17303_s7 + $0x270] sm:$0xf] }
 0x1f3   : > { %2024 = vmatpush.bf16.msra.mxu3 %v8053_v22  ;;  %v8258_v22 = vld [vmem:[%s17303_s7 + $0x278] sm:$0xf0] }
 0x1f4   : > { %2011 = vmatpush.bf16.msrb.mxu1 %v8049_v20  ;;  %2139 = vmatpush.bf16.msra.mxu0 %v8121_v26  ;;  %v11052_v20 = vld [vmem:[%s17303_s7 + $0x274] sm:$0xf0]  ;;  %v8337_v26 = vor.u32 %v11068_v60, %v8336_v17 }
 0x1f5   : > { %2148 = vmatpush.bf16.msrb.mxu2 %v8157_v30  ;;  %v8125_v30 = vor.u32 %v11021_v27, %v8122_v28  ;;  %v8328_v28 = vld [vmem:[%s17303_s7 + $0x2e0] sm:$0xf] }
 0x1f7   : > { %2025 = vmatpush.bf16.msra.mxu3 %v8045_v38 }
 0x1f8   : > { %2012 = vmatpush.bf16.msrb.mxu1 %v8041_v35  ;;  %v8261_v35 = vor.u32 %v11051_v21, %v8258_v22  ;;  %v8226_v21 = vld [vmem:[%s17303_s7 + $0x238] sm:$0xf0] }
 0x1f9   : > { %2149 = vmatpush.bf16.msrb.mxu2 %v8149_v43 }
 0x1fd   : > { %2150 = vmatpush.bf16.msrb.mxu2 %v8141_v59 }
 0x201   : > { %2151 = vmatpush.bf16.msrb.mxu2 %v8133_v62 }
 0x205   : > { %2152 = vmatpush.bf16.msrb.mxu2 %v8125_v30 }
 0x215   : > { %v12691_v12 = vpop.f32.mrf.mxu0 }
 0x217   : > { %v1511_v61 = vpop.f32.mrf.mxu1 }
 0x21a   : > { %v12556_v2 = vpop.f32.mrf.mxu2 }
 0x21b   : > { %v12653_v46 = vpop.f32.mrf.mxu3  ;;  %v1274_v34 = vadd.f32 %v12556_v2, %v12691_v12 }
 0x21d   : > { %v12754_v39 = vpop.f32.mrf.mxu0 }
 0x21f   : > { %v1513_v42 = vpop.f32.mrf.mxu1 }
 0x222   : > { %v12618_v29 = vpop.f32.mrf.mxu2 }
 0x223   : > { %v12728_v25 = vpop.f32.mrf.mxu3  ;;  %v1276_v11 = vadd.f32 %v12618_v29, %v12754_v39  ;;  %v11067_v29 = vld [vmem:[%s17303_s7 + $0x2f4] sm:$0xf]  ;;  %v8338_v39 = vld [vmem:[%s17303_s7 + $0x2f8] sm:$0xf0] }
 0x224   : > { %v8341_v27 = vor.u32 %v11067_v29, %v8338_v39  ;;  %v11059_v29 = vld [vmem:[%s17303_s7 + $0x2b4] sm:$0xf] }
 0x225   : > { %v1553_v15 = vpop.f32.mrf.mxu0 }
 0x227   : > { %v1595_v51 = vpop.f32.mrf.mxu1 }
 0x22a   : > { %v12708_v63 = vpop.f32.mrf.mxu2 }
 0x22b   : > { %v1525_v5 = vpop.f32.mrf.mxu3  ;;  %v1372_v40 = vadd.f32 %v12708_v63, %v1274_v34  ;;  %v8257_v34 = vor.u32 %v11052_v20, %v8256_v1  ;;  %v11043_v20 = vld [vmem:[%s17303_s7 + $0x234] sm:$0xf] }
 0x22c   : > { %v1526_v45 = vadd.f32 %v1525_v5, %v1511_v61 }
 0x22d   : > { %v1555_v41 = vpop.f32.mrf.mxu0  ;;  %v1386_v44 = vadd.f32 %v12653_v46, %v1372_v40  ;;  %v11049_v40 = vld [vmem:[%s17303_s7 + $0x264] sm:$0xf] }
 0x22f   : > { %v1530_v47 = vadd.f32 %v1526_v45, %v1386_v44  ;;  %v1597_v61 = vpop.f32.mrf.mxu1  ;;  %v8320_v45 = vld [vmem:[%s17303_s7 + $0x2d0] sm:$0xf] }
 0x231   : > { %v1535_v54 = vmul.f32 %v12855_v49, %v1530_v47  ;;  %v8322_v47 = vld [vmem:[%s17303_s7 + $0x2d8] sm:$0xf0] }
 0x232   : > { %v12771_v48 = vpop.f32.mrf.mxu2 }
 0x233   : > { %v1527_v37 = vpop.f32.mrf.mxu3  ;;  %v1540_v59 = vadd.f32 %v12861_v55, %v1535_v54  ;;  %v11048_v54 = vld [vmem:[%s17303_s7 + $0x254] sm:$0xf0] }
 0x234   : > { %v1528_v18 = vadd.f32 %v1527_v37, %v1513_v42  ;;  %v11050_v37 = vld [vmem:[%s17303_s7 + $0x264] sm:$0xf0] }
 0x235   : > { %v1638_v63 = vpop.f32.mrf.mxu0  ;;  %v1542_v6 = vmax.f32 %v1540_v59, 0.0 }
 0x23a   : > { %v1567_v19 = vpop.f32.mrf.mxu2 }
 0x23b   : > { %v1568_v2 = vadd.f32 %v1567_v19, %v1553_v15  ;;  %v1581_v12 = vpop.f32.mrf.mxu3  ;;  %v1374_v15 = vadd.f32 %v12771_v48, %v1276_v11 }
 0x23d   : > { %v1582_v50 = vadd.f32 %v1581_v12, %v1568_v2  ;;  %v1640_v0 = vpop.f32.mrf.mxu0  ;;  %v1388_v23 = vadd.f32 %v12728_v25, %v1374_v15  ;;  %v8330_v25 = vld [vmem:[%s17303_s7 + $0x2e8] sm:$0xf0]  ;;  %v11064_v2 = vld [vmem:[%s17303_s7 + $0x2d4] sm:$0xf0]  ;;  %v11063_v12 = vld [vmem:[%s17303_s7 + $0x2d4] sm:$0xf] }
 0x23e   : > { %v8333_v44 = vor.u32 %v11065_v32, %v8330_v25  ;;  %v8321_v59 = vor.u32 %v11064_v2, %v8320_v45  ;;  %v11045_v15 = vld [vmem:[%s17303_s7 + $0x244] sm:$0xf]  ;;  %v8298_v32 = vld [vmem:[%s17303_s7 + $0x2a8] sm:$0xf0]  ;;  %v8290_v45 = vld [vmem:[%s17303_s7 + $0x298] sm:$0xf0] }
 0x23f   : > { %v1596_v46 = vadd.f32 %v1595_v51, %v1582_v50  ;;  %v1531_v42 = vadd.f32 %v1528_v18, %v1388_v23  ;;  %v8249_v51 = vor.u32 %v11050_v37, %v8248_v36  ;;  %v8224_v18 = vld [vmem:[%s17303_s7 + $0x230] sm:$0xf]  ;;  %v11042_v36 = vld [vmem:[%s17303_s7 + $0x224] sm:$0xf0] }
 0x242   : > { %v1569_v43 = vpop.f32.mrf.mxu2 }
 0x243   : > { %v1570_v5 = vadd.f32 %v1569_v43, %v1555_v41  ;;  %v1583_v8 = vpop.f32.mrf.mxu3  ;;  %v8250_v41 = vld [vmem:[%s17303_s7 + $0x268] sm:$0xf0]  ;;  %v8329_v43 = vor.u32 %v11066_v31, %v8328_v28  ;;  %v11057_v31 = vld [vmem:[%s17303_s7 + $0x2a4] sm:$0xf] }
 0x245   : > { %v1584_v16 = vadd.f32 %v1583_v8, %v1570_v5  ;;  %v11062_v5 = vld [vmem:[%s17303_s7 + $0x2c4] sm:$0xf0] }
 0x247   : > { %v1598_v24 = vadd.f32 %v1597_v61, %v1584_v16  ;;  %v8234_v16 = vld [vmem:[%s17303_s7 + $0x248] sm:$0xf0] }
 0x248   : > { %v8237_v1 = vor.u32 %v11045_v15, %v8234_v16 }
 0x24b   : > { %v1624_v53 = vpop.f32.mrf.mxu2 }
 0x24c   : > { %v1639_v56 = vadd.f32 %v1638_v63, %v1624_v53  ;;  %v8253_v63 = vor.u32 %v11049_v40, %v8250_v41  ;;  %v8240_v53 = vld [vmem:[%s17303_s7 + $0x250] sm:$0xf]  ;;  %v8218_v40 = vld [vmem:[%s17303_s7 + $0x228] sm:$0xf0] }
 0x24e   : > { %v1643_v57 = vadd.f32 %v1639_v56, %v1596_v46  ;;  %v11047_v46 = vld [vmem:[%s17303_s7 + $0x254] sm:$0xf]  ;;  %v8242_v56 = vld [vmem:[%s17303_s7 + $0x258] sm:$0xf0] }
 0x24f   : > { %v8245_v11 = vor.u32 %v11047_v46, %v8242_v56  ;;  %v8280_v56 = vld [vmem:[%s17303_s7 + $0x280] sm:$0xf] }
 0x250   : > { %v1645_v3 = vmul.f32 %v12855_v49, %v1643_v57  ;;  %v1536_v57 = vmul.f32 %v12855_v49, %v1531_v42  ;;  %v8301_v42 = vor.u32 %v11057_v31, %v8298_v32  ;;  %v11665_v31 = vld [vmem:[%s17300_s4 + $0x78] sm:$0xff]  ;;  %v11666_v32 = vld [vmem:[%s17300_s4 + $0xf0] sm:$0xff] }
 0x252   : > { %v1647_v4 = vadd.f32 %v12861_v55, %v1645_v3  ;;  %v8325_v3 = vor.u32 %v11063_v12, %v8322_v47  ;;  %v1541_v17 = vadd.f32 %v12861_v55, %v1536_v57  ;;  %v11054_v57 = vld [vmem:[%s17303_s7 + $0x284] sm:$0xf0] }
 0x253   : > { %v1626_v14 = vpop.f32.mrf.mxu2 }
 0x254   : > { %v1649_v9 = vmax.f32 %v1647_v4, 0.0  ;;  %v1641_v48 = vadd.f32 %v1640_v0, %v1626_v14  ;;  %v8312_v4 = vld [vmem:[%s17303_s7 + $0x2c0] sm:$0xf]  ;;  %v11046_v14 = vld [vmem:[%s17303_s7 + $0x244] sm:$0xf0]  ;;  %v1543_v22 = vmax.f32 %v1541_v17, 0.0 }
 0x255   : > { %v8313_v60 = vor.u32 %v11062_v5, %v8312_v4  ;;  %v11060_v0 = vld [vmem:[%s17303_s7 + $0x2b4] sm:$0xf0] }
 0x256   : > { %v1651_v13 = vmax.f32 %v1542_v6, %v1649_v9  ;;  %v1644_v33 = vadd.f32 %v1641_v48, %v1598_v24  ;;  %v11061_v6 = vld [vmem:[%s17303_s7 + $0x2c4] sm:$0xf]  ;;  %v8241_v9 = vor.u32 %v11048_v54, %v8240_v53  ;;  %v8210_v53 = vld [vmem:[%s17303_s7 + $0x218] sm:$0xf0] }
 0x258   : > { %v1654_v62 = vrot.slane %v1651_v13, 1  ;;  %v1646_v50 = vmul.f32 %v12855_v49, %v1644_v33  ;;  %v8314_v49 = vld [vmem:[%s17303_s7 + $0x2c8] sm:$0xf0] }
 0x259   : > { %v8317_v61 = vor.u32 %v11061_v6, %v8314_v49  ;;  %v8200_v49 = vld [vmem:[%s17303_s7 + $0x200] sm:$0xf] }
 0x25a   : > { %v1656_v19 = vmax.f32 %v1651_v13, %v1654_v62  ;;  %v1648_v8 = vadd.f32 %v12861_v55, %v1646_v50  ;;  %v8232_v13 = vld [vmem:[%s17303_s7 + $0x240] sm:$0xf]  ;;  %v8304_v62 = vld [vmem:[%s17303_s7 + $0x2b0] sm:$0xf]  ;;  %v8306_v55 = vld [vmem:[%s17303_s7 + $0x2b8] sm:$0xf0] }
 0x25b   : > { %v8233_v48 = vor.u32 %v11046_v14, %v8232_v13  ;;  %v8305_v23 = vor.u32 %v11060_v0, %v8304_v62  ;;  %v8309_v24 = vor.u32 %v11059_v29, %v8306_v55  ;;  %v8208_v50 = vld [vmem:[%s17303_s7 + $0x210] sm:$0xf]  ;;  %v8281_v13 = vor.u32 %v11054_v57, %v8280_v56  ;;  %v11649_v0 = vld [vmem:[%s17300_s4 + $0x98] sm:$0xff] }
 0x25c   : > { %v12897_v30 = vpack.c.bf16 %v1656_v19, %v1656_v19  ;;  %v1650_v39 = vmax.f32 %v1648_v8, 0.0  ;;  %v11044_v19 = vld [vmem:[%s17303_s7 + $0x234] sm:$0xf0]  ;;  %v11038_v8 = vld [vmem:[%s17303_s7 + $0x204] sm:$0xf0]  ;;  %v13094_v55 = vld [vmem:[%s17300_s4 + $0x30] sm:$0xff] }
 0x25d   : > { %v8225_v33 = vor.u32 %v11044_v19, %v8224_v18  ;;  %v8201_v15 = vor.u32 %v11038_v8, %v8200_v49  ;;  %v11650_v29 = vld [vmem:[%s17300_s4 + $0xb8] sm:$0xff]  ;;  %v13112_v18 = vld [vmem:[%s17300_s4 + $0x28] sm:$0xff]  ;;  %v8357_v56 = vld [vmem:[#allocation2 + $0x50] sm:$0xf] }
 0x25e   : > { %1888 = vmatmul.bf16.vlgmr.msrb.gmra.mxu0 %v12897_v30  ;;  %1901 = vmatmul.bf16.vlgmr.msra.gmra.mxu2 %v12897_v30  ;;  %v1692_v38 = vrot.slane %v12897_v30, 1  ;;  %v2050_v28 = vrot.slane %v12897_v30, 3  ;;  %v1652_v25 = vmax.f32 %v1543_v22, %v1650_v39  ;;  %v1923_v37 = vrot.slane %v12897_v30, 2  ;;  %v11056_v30 = vld [vmem:[%s17303_s7 + $0x294] sm:$0xf0]  ;;  %v13100_v39 = vld [vmem:[%s17300_s4 + $0x50] sm:$0xff] }
 0x25f   : > { %2390 = vmatpush.bf16.msrb.mxu0 %v8337_v26  ;;  %2403 = vmatpush.bf16.msra.mxu2 %v8341_v27  ;;  %v8296_v26 = vld [vmem:[%s17303_s7 + $0x2a0] sm:$0xf]  ;;  %v11058_v27 = vld [vmem:[%s17303_s7 + $0x2a4] sm:$0xf0]  ;;  %v11072_v57 = vld [vmem:[#allocation2 + $0x54] sm:$0xf0] }
 0x260   : > { %1782 = vmatmul.bf16.vlgmr.msra.gmra.mxu1 %v1692_v38  ;;  %1795 = vmatmul.bf16.vlgmr.msrb.gmra.mxu3 %v1692_v38  ;;  %v11041_v38 = vld [vmem:[%s17303_s7 + $0x224] sm:$0xf]  ;;  %v8297_v41 = vor.u32 %v11058_v27, %v8296_v26  ;;  %v2161_v2 = vrot.slane %v1652_v25, 1  ;;  %v13118_v19 = vld [vmem:[%s17300_s4 + $0x48] sm:$0xff]  ;;  %v11663_v27 = vld [vmem:[%s17300_s4 + $0xf8] sm:$0xff] }
 0x261   : > { %2262 = vmatpush.bf16.msra.mxu1 %v8257_v34  ;;  %2275 = vmatpush.bf16.msrb.mxu3 %v8261_v35  ;;  %v8229_v34 = vor.u32 %v11043_v20, %v8226_v21  ;;  %v8216_v35 = vld [vmem:[%s17303_s7 + $0x220] sm:$0xf]  ;;  %v8221_v47 = vor.u32 %v11041_v38, %v8218_v40  ;;  %v11657_v20 = vld [vmem:[%s17300_s4 + $0x88] sm:$0xff]  ;;  %v11675_v40 = vld [vmem:[%s17300_s4 + $0xd8] sm:$0xff] }
 0x262   : > { %v8217_v12 = vor.u32 %v11042_v36, %v8216_v35  ;;  %v2163_v4 = vmax.f32 %v1652_v25, %v2161_v2  ;;  %v11658_v21 = vld [vmem:[%s17300_s4 + $0xa8] sm:$0xff]  ;;  %v13130_v22 = vld [vmem:[%s17300_s4 + $0x20] sm:$0xff]  ;;  %v13163_v25 = vld [vmem:[%s17300_s4 + $0x10] sm:$0xff] }
 0x263   : > { %2391 = vmatpush.bf16.msrb.mxu0 %v8329_v43  ;;  %2404 = vmatpush.bf16.msra.mxu2 %v8333_v44  ;;  %v8288_v43 = vld [vmem:[%s17303_s7 + $0x290] sm:$0xf]  ;;  %v11055_v44 = vld [vmem:[%s17303_s7 + $0x294] sm:$0xf]  ;;  %v11662_v26 = vld [vmem:[%s17300_s4 + $0xa0] sm:$0xff] }
 0x264   : > { %v8289_v54 = vor.u32 %v11056_v30, %v8288_v43  ;;  %v8293_v46 = vor.u32 %v11055_v44, %v8290_v45  ;;  %v2164_v17 = vpack.c.bf16 %v2163_v4, %v2163_v4  ;;  %v13179_v35 = vld [vmem:[%s17300_s4 + $0x8] sm:$0xff]  ;;  %v11672_v36 = vld [vmem:[%s17300_s4 + $0xe0] sm:$0xff]  ;;  %v11678_v43 = vld [vmem:[%s17300_s4 + $0x110] sm:$0xff] }
 0x265   : > { %2263 = vmatpush.bf16.msra.mxu1 %v8249_v51  ;;  %2276 = vmatpush.bf16.msrb.mxu3 %v8253_v63  ;;  %v11040_v51 = vld [vmem:[%s17303_s7 + $0x214] sm:$0xf0]  ;;  %v11039_v63 = vld [vmem:[%s17303_s7 + $0x214] sm:$0xf]  ;;  %v11674_v38 = vld [vmem:[%s17300_s4 + $0x60] sm:$0xff] }
 0x266   : > { %v8209_v5 = vor.u32 %v11040_v51, %v8208_v50  ;;  %v8213_v6 = vor.u32 %v11039_v63, %v8210_v53  ;;  %v2308_v62 = vrot.slane %v2164_v17, 1  ;;  %v11679_v30 = vld [vmem:[%s17300_s4 + $0xc8] sm:$0xff]  ;;  %v8346_v44 = vld [vmem:[#allocation2 + $0x40] sm:$0xf]  ;;  %v11071_v53 = vld [vmem:[#allocation2 + $0x54] sm:$0xf] }
 0x267   : > { %2392 = vmatpush.bf16.msrb.mxu0 %v8321_v59  ;;  %2405 = vmatpush.bf16.msra.mxu2 %v8325_v3  ;;  %v11053_v59 = vld [vmem:[%s17303_s7 + $0x284] sm:$0xf]  ;;  %v8282_v3 = vld [vmem:[%s17303_s7 + $0x288] sm:$0xf0]  ;;  %v11070_v45 = vld [vmem:[#allocation2 + $0x44] sm:$0xf0] }
 0x268   : > { %v8285_v14 = vor.u32 %v11053_v59, %v8282_v3  ;;  %v13217_v2 = vor.u32 %v11070_v45, %v8346_v44  ;;  %v11681_v50 = vld [vmem:[%s17300_s4 + $0xc0] sm:$0xff]  ;;  %v13250_v59 = vor.u32 %v11072_v57, %v8357_v56  ;;  %v11083_v56 = vld [vmem:[%s17303_s7 + $0x354] sm:$0xf]  ;;  %v8424_v57 = vld [vmem:[%s17303_s7 + $0x358] sm:$0xf0] }
 0x269   : > { %2264 = vmatpush.bf16.msra.mxu1 %v8241_v9  ;;  %2277 = vmatpush.bf16.msrb.mxu3 %v8245_v11  ;;  %v11037_v9 = vld [vmem:[%s17303_s7 + $0x204] sm:$0xf]  ;;  %v8202_v11 = vld [vmem:[%s17303_s7 + $0x208] sm:$0xf0] }
 0x26a   : > { %v8205_v16 = vor.u32 %v11037_v9, %v8202_v11  ;;  %v11682_v51 = vld [vmem:[%s17300_s4 + $0x100] sm:$0xff] }
 0x26b   : > { %2393 = vmatpush.bf16.msrb.mxu0 %v8313_v60  ;;  %2406 = vmatpush.bf16.msra.mxu2 %v8317_v61  ;;  %v13076_v60 = vld [vmem:[%s17300_s4 + $0x38] sm:$0xff] }
 0x26c   : > { %v13082_v61 = vld [vmem:[%s17300_s4 + $0x58] sm:$0xff] }
 0x26d   : > { %2265 = vmatpush.bf16.msra.mxu1 %v8233_v48  ;;  %2278 = vmatpush.bf16.msrb.mxu3 %v8237_v1  ;;  %v11653_v48 = vld [vmem:[%s17300_s4 + $0x90] sm:$0xff] }
 0x26e   : > { %2140 = vmatmul.bf16.vlgmr.msra.gmra.mxu0 %v2050_v28  ;;  %2153 = vmatmul.bf16.vlgmr.msrb.gmra.mxu2 %v2050_v28  ;;  %v11654_v1 = vld [vmem:[%s17300_s4 + $0xb0] sm:$0xff]  ;;  %v13151_v28 = vld [vmem:[%s17300_s4 + $0x18] sm:$0xff] }
 0x26f   : > { %2394 = vmatpush.bf16.msrb.mxu0 %v8305_v23  ;;  %2407 = vmatpush.bf16.msra.mxu2 %v8309_v24  ;;  %v13136_v23 = vld [vmem:[%s17300_s4 + $0x40] sm:$0xff] }
 0x270   : > { %2013 = vmatmul.bf16.vlgmr.msrb.gmra.mxu1 %v1923_v37  ;;  %2026 = vmatmul.bf16.vlgmr.msra.gmra.mxu3 %v1923_v37  ;;  %v11661_v24 = vld [vmem:[%s17300_s4 + $0x80] sm:$0xff] }
 0x271   : > { %2266 = vmatpush.bf16.msra.mxu1 %v8225_v33  ;;  %2279 = vmatpush.bf16.msrb.mxu3 %v8229_v34  ;;  %v11668_v33 = vld [vmem:[%s17300_s4 + $0x70] sm:$0xff]  ;;  %v11669_v34 = vld [vmem:[%s17300_s4 + $0xe8] sm:$0xff]  ;;  %v13191_v37 = vld [vmem:[%s17300_s4] sm:$0xff] }
 0x273   : > { %2395 = vmatpush.bf16.msrb.mxu0 %v8297_v41  ;;  %2408 = vmatpush.bf16.msra.mxu2 %v8301_v42  ;;  %v11676_v41 = vld [vmem:[%s17300_s4 + $0x118] sm:$0xff]  ;;  %v11677_v42 = vld [vmem:[%s17300_s4 + $0xd0] sm:$0xff] }
 0x275   : > { %2267 = vmatpush.bf16.msra.mxu1 %v8217_v12  ;;  %2280 = vmatpush.bf16.msrb.mxu3 %v8221_v47  ;;  %v11069_v12 = vld [vmem:[#allocation2 + $0x44] sm:$0xf]  ;;  %v8348_v47 = vld [vmem:[#allocation2 + $0x48] sm:$0xf0] }
 0x276   : > { %v13227_v63 = vor.u32 %v11069_v12, %v8348_v47  ;;  %v8422_v47 = vld [vmem:[%s17303_s7 + $0x350] sm:$0xf] }
 0x277   : > { %2396 = vmatpush.bf16.msrb.mxu0 %v8289_v54  ;;  %2409 = vmatpush.bf16.msra.mxu2 %v8293_v46  ;;  %v8359_v54 = vld [vmem:[#allocation2 + $0x58] sm:$0xf0] }
 0x278   : > { %v13241_v46 = vor.u32 %v11071_v53, %v8359_v54 }
 0x279   : > { %2268 = vmatpush.bf16.msra.mxu1 %v8209_v5  ;;  %2281 = vmatpush.bf16.msrb.mxu3 %v8213_v6 }
 0x27b   : > { %2397 = vmatpush.bf16.msrb.mxu0 %v8281_v13  ;;  %2410 = vmatpush.bf16.msra.mxu2 %v8285_v14 }
 0x27d   : > { %2269 = vmatpush.bf16.msra.mxu1 %v8201_v15  ;;  %2282 = vmatpush.bf16.msrb.mxu3 %v8205_v16 }
 0x27e   : > { %2398 = vmatmul.bf16.vlgmr.msrb.gmra.mxu0 %v2308_v62  ;;  %2411 = vmatmul.bf16.vlgmr.msra.gmra.mxu2 %v2308_v62 }
 0x27f   : > { %2446 = vmatpush.bf16.msra.mxu0 %v13076_v60  ;;  %2464 = vmatpush.bf16.msrb.mxu2 %v13082_v61 }
 0x280   : > { %2270 = vmatmul.bf16.vlgmr.msra.gmra.mxu1 %v2164_v17  ;;  %2283 = vmatmul.bf16.vlgmr.msrb.gmra.mxu3 %v2164_v17 }
 0x281   : > { %2418 = vmatpush.bf16.msrb.mxu1 %v11649_v0  ;;  %2436 = vmatpush.bf16.msra.mxu3 %v11650_v29 }
 0x283   : > { %2447 = vmatpush.bf16.msra.mxu0 %v13094_v55  ;;  %2465 = vmatpush.bf16.msrb.mxu2 %v13100_v39 }
 0x285   : > { %2419 = vmatpush.bf16.msrb.mxu1 %v11653_v48  ;;  %2437 = vmatpush.bf16.msra.mxu3 %v11654_v1 }
 0x287   : > { %2448 = vmatpush.bf16.msra.mxu0 %v13112_v18  ;;  %2466 = vmatpush.bf16.msrb.mxu2 %v13118_v19 }
 0x289   : > { %2420 = vmatpush.bf16.msrb.mxu1 %v11657_v20  ;;  %2438 = vmatpush.bf16.msra.mxu3 %v11658_v21 }
 0x28b   : > { %2449 = vmatpush.bf16.msra.mxu0 %v13130_v22  ;;  %2467 = vmatpush.bf16.msrb.mxu2 %v13136_v23 }
 0x28d   : > { %2421 = vmatpush.bf16.msrb.mxu1 %v11661_v24  ;;  %2439 = vmatpush.bf16.msra.mxu3 %v11662_v26 }
 0x28e   : > { %8343 = vmatmul.msk.bf16.vlgmr.msrb.gmra.mxu2 %vm912_vm0, %v12391_v52  ;;  %v11671_v52 = vld [vmem:[%s17300_s4 + $0x68] sm:$0xff] }
 0x28f   : > { %2525 = vmatpush.bf16.msra.mxu2 %v11649_v0  ;;  %2450 = vmatpush.bf16.msra.mxu0 %v13151_v28 }
 0x290   : > { %8342 = vmatmul.msk.bf16.vlgmr.msra.gmra.mxu3 %vm912_vm0, %v12439_v7 }
 0x291   : > { %2489 = vmatpush.bf16.msrb.mxu3 %v11663_v27  ;;  %2422 = vmatpush.bf16.msrb.mxu1 %v11665_v31 }
 0x293   : > { %2526 = vmatpush.bf16.msra.mxu2 %v11653_v48  ;;  %2451 = vmatpush.bf16.msra.mxu0 %v13163_v25 }
 0x295   : > { %2490 = vmatpush.bf16.msrb.mxu3 %v11666_v32  ;;  %2423 = vmatpush.bf16.msrb.mxu1 %v11668_v33 }
 0x297   : > { %2527 = vmatpush.bf16.msra.mxu2 %v11657_v20  ;;  %2452 = vmatpush.bf16.msra.mxu0 %v13179_v35 }
 0x299   : > { %2491 = vmatpush.bf16.msrb.mxu3 %v11669_v34  ;;  %2424 = vmatpush.bf16.msrb.mxu1 %v11671_v52 }
 0x29b   : > { %2528 = vmatpush.bf16.msra.mxu2 %v11661_v24  ;;  %2453 = vmatpush.bf16.msra.mxu0 %v13191_v37 }
 0x29d   : > { %2492 = vmatpush.bf16.msrb.mxu3 %v11672_v36  ;;  %2425 = vmatpush.bf16.msrb.mxu1 %v11674_v38 }
 0x29e   : > { %2454 = vmatmul.bf16.vlgmr.msra.gmra.mxu0 %v12407_v58  ;;  %v11680_v58 = vld [vmem:[%s17300_s4 + $0x108] sm:$0xff] }
 0x29f   : > { %2543 = vmatpush.bf16.msrb.mxu0 %v11650_v29  ;;  %2529 = vmatpush.bf16.msra.mxu2 %v11665_v31  ;;  %v11103_v31 = vld [vmem:[%s17303_s7 + $0x3f4] sm:$0xf] }
 0x2a0   : > { %2426 = vmatmul.bf16.vlgmr.msrb.gmra.mxu1 %v12445_v10 }
 0x2a1   : > { %2493 = vmatpush.bf16.msrb.mxu3 %v11675_v40  ;;  %2507 = vmatpush.bf16.msra.mxu1 %v11676_v41 }
 0x2a3   : > { %2544 = vmatpush.bf16.msrb.mxu0 %v11654_v1  ;;  %2530 = vmatpush.bf16.msra.mxu2 %v11668_v33  ;;  %v8438_v1 = vld [vmem:[%s17303_s7 + $0x370] sm:$0xf] }
 0x2a5   : > { %2494 = vmatpush.bf16.msrb.mxu3 %v11677_v42  ;;  %2508 = vmatpush.bf16.msra.mxu1 %v11678_v43 }
 0x2a7   : > { %2545 = vmatpush.bf16.msrb.mxu0 %v11658_v21  ;;  %2531 = vmatpush.bf16.msra.mxu2 %v11671_v52  ;;  %v11087_v21 = vld [vmem:[%s17303_s7 + $0x374] sm:$0xf] }
 0x2a9   : > { %2495 = vmatpush.bf16.msrb.mxu3 %v11679_v30  ;;  %2509 = vmatpush.bf16.msra.mxu1 %v11680_v58 }
 0x2ab   : > { %2546 = vmatpush.bf16.msrb.mxu0 %v11662_v26  ;;  %2532 = vmatpush.bf16.msra.mxu2 %v11674_v38  ;;  %v8518_v26 = vld [vmem:[%s17303_s7 + $0x3f0] sm:$0xf] }
 0x2ad   : > { %2496 = vmatpush.bf16.msrb.mxu3 %v11681_v50  ;;  %2510 = vmatpush.bf16.msra.mxu1 %v11682_v51 }
 0x2ae   : > { %2533 = vmatmul.bf16.vlgmr.msra.gmra.mxu2 %v13217_v2  ;;  %8353 = vmatmul.msk.bf16.vlgmr.msrb.gmra.mxu0 %vm912_vm0, %v13227_v63 }
 0x2af   : > { %2596 = vmatpush.bf16.msra.mxu0 %v11663_v27  ;;  %2614 = vmatpush.bf16.msrb.mxu2 %v11676_v41  ;;  %v11104_v27 = vld [vmem:[%s17303_s7 + $0x3f4] sm:$0xf0]  ;;  %v8510_v41 = vld [vmem:[%s17303_s7 + $0x3e0] sm:$0xf] }
 0x2b0   : > { %2497 = vmatmul.bf16.vlgmr.msrb.gmra.mxu3 %v13217_v2  ;;  %8352 = vmatmul.msk.bf16.vlgmr.msra.gmra.mxu1 %vm912_vm0, %v13227_v63 }
 0x2b1   : > { %2553 = vmatpush.bf16.msrb.mxu1 %v13076_v60  ;;  %2571 = vmatpush.bf16.msra.mxu3 %v13082_v61 }
 0x2b3   : > { %2597 = vmatpush.bf16.msra.mxu0 %v11666_v32  ;;  %2615 = vmatpush.bf16.msrb.mxu2 %v11678_v43  ;;  %v8520_v32 = vld [vmem:[%s17303_s7 + $0x3f8] sm:$0xf0] }
 0x2b4   : > { %v8523_v33 = vor.u32 %v11103_v31, %v8520_v32  ;;  %v8398_v31 = vld [vmem:[%s17303_s7 + $0x320] sm:$0xf]  ;;  %v11078_v32 = vld [vmem:[%s17303_s7 + $0x324] sm:$0xf0] }
 0x2b5   : > { %2554 = vmatpush.bf16.msrb.mxu1 %v13094_v55  ;;  %2572 = vmatpush.bf16.msra.mxu3 %v13100_v39 }
 0x2b7   : > { %2598 = vmatpush.bf16.msra.mxu0 %v11669_v34  ;;  %2616 = vmatpush.bf16.msrb.mxu2 %v11680_v58  ;;  %v8430_v34 = vld [vmem:[%s17303_s7 + $0x360] sm:$0xf]  ;;  %v8512_v58 = vld [vmem:[%s17303_s7 + $0x3e8] sm:$0xf0] }
 0x2b9   : > { %2555 = vmatpush.bf16.msrb.mxu1 %v13112_v18  ;;  %2573 = vmatpush.bf16.msra.mxu3 %v13118_v19  ;;  %v11088_v18 = vld [vmem:[%s17303_s7 + $0x374] sm:$0xf0] }
 0x2ba   : > { %v8439_v20 = vor.u32 %v11088_v18, %v8438_v1  ;;  %v11080_v1 = vld [vmem:[%s17303_s7 + $0x334] sm:$0xf0] }
 0x2bb   : > { %2599 = vmatpush.bf16.msra.mxu0 %v11672_v36  ;;  %2617 = vmatpush.bf16.msrb.mxu2 %v11682_v51  ;;  %v11085_v36 = vld [vmem:[%s17303_s7 + $0x364] sm:$0xf] }
 0x2bd   : > { %2556 = vmatpush.bf16.msrb.mxu1 %v13130_v22  ;;  %2574 = vmatpush.bf16.msra.mxu3 %v13136_v23  ;;  %v8440_v22 = vld [vmem:[%s17303_s7 + $0x378] sm:$0xf0] }
 0x2be   : > { %8363 = vmatmul.msk.bf16.vlgmr.msrb.gmra.mxu2 %vm912_vm0, %v13241_v46  ;;  %v8443_v24 = vor.u32 %v11087_v21, %v8440_v22  ;;  %v8486_v22 = vld [vmem:[%s17303_s7 + $0x3b0] sm:$0xf] }
 0x2bf   : > { %2600 = vmatpush.bf16.msra.mxu0 %v11675_v40 }
 0x2c0   : > { %8354 = vmatmul.msk.bf16.vlgmr.msra.gmra.mxu3 %vm912_vm0, %v12439_v7 }
 0x2c1   : > { %2557 = vmatpush.bf16.msrb.mxu1 %v13151_v28  ;;  %2736 = vmatpush.bf16.msrb.mxu3 %v8439_v20  ;;  %v8519_v28 = vor.u32 %v11104_v27, %v8518_v26  ;;  %v8408_v20 = vld [vmem:[%s17303_s7 + $0x338] sm:$0xf0]  ;;  %v11095_v26 = vld [vmem:[%s17303_s7 + $0x3b4] sm:$0xf] }
 0x2c2   : > { %v8488_v27 = vld [vmem:[%s17303_s7 + $0x3b8] sm:$0xf0] }
 0x2c3   : > { %2601 = vmatpush.bf16.msra.mxu0 %v11677_v42  ;;  %2864 = vmatpush.bf16.msra.mxu2 %v8519_v28  ;;  %v11102_v42 = vld [vmem:[%s17303_s7 + $0x3e4] sm:$0xf0]  ;;  %v8491_v28 = vor.u32 %v11095_v26, %v8488_v27  ;;  %v8670_v27 = vld [vmem:[%s17303_s7 + $0x4e0] sm:$0xf] }
 0x2c4   : > { %v8511_v43 = vor.u32 %v11102_v42, %v8510_v41  ;;  %v8480_v41 = vld [vmem:[%s17303_s7 + $0x3a8] sm:$0xf0] }
 0x2c5   : > { %2558 = vmatpush.bf16.msrb.mxu1 %v13163_v25 }
 0x2c7   : > { %2602 = vmatpush.bf16.msra.mxu0 %v11679_v30  ;;  %v11101_v30 = vld [vmem:[%s17303_s7 + $0x3e4] sm:$0xf]  ;;  %2865 = vmatpush.bf16.msra.mxu2 %v8511_v43  ;;  %v8390_v43 = vld [vmem:[%s17303_s7 + $0x310] sm:$0xf] }
 0x2c8   : > { %v8515_v12 = vor.u32 %v11101_v30, %v8512_v58  ;;  %v11076_v30 = vld [vmem:[%s17303_s7 + $0x314] sm:$0xf0] }
 0x2c9   : > { %2559 = vmatpush.bf16.msrb.mxu1 %v13179_v35  ;;  %v11086_v35 = vld [vmem:[%s17303_s7 + $0x364] sm:$0xf0]  ;;  %v8391_v58 = vor.u32 %v11076_v30, %v8390_v43  ;;  %v8662_v43 = vld [vmem:[%s17303_s7 + $0x4d0] sm:$0xf]  ;;  %v11132_v30 = vld [vmem:[%s17303_s7 + $0x4d4] sm:$0xf0] }
 0x2ca   : > { %v8431_v52 = vor.u32 %v11086_v35, %v8430_v34  ;;  %v11077_v34 = vld [vmem:[%s17303_s7 + $0x324] sm:$0xf]  ;;  %v8400_v35 = vld [vmem:[%s17303_s7 + $0x328] sm:$0xf0] }
 0x2cb   : > { %2603 = vmatpush.bf16.msra.mxu0 %v11681_v50  ;;  %v11084_v50 = vld [vmem:[%s17303_s7 + $0x354] sm:$0xf0] }
 0x2cc   : > { %2737 = vmatpush.bf16.msrb.mxu3 %v8431_v52  ;;  %v8423_v54 = vor.u32 %v11084_v50, %v8422_v47  ;;  %v8403_v52 = vor.u32 %v11077_v34, %v8400_v35  ;;  %v8470_v47 = vld [vmem:[%s17303_s7 + $0x390] sm:$0xf]  ;;  %v11092_v50 = vld [vmem:[%s17303_s7 + $0x394] sm:$0xf0]  ;;  %v11133_v34 = vld [vmem:[%s17303_s7 + $0x4e4] sm:$0xf] }
 0x2cd   : > { %2560 = vmatpush.bf16.msrb.mxu1 %v13191_v37  ;;  %v8432_v37 = vld [vmem:[%s17303_s7 + $0x368] sm:$0xf0] }
 0x2ce   : > { %2604 = vmatmul.bf16.vlgmr.msra.gmra.mxu0 %v13250_v59  ;;  %v8435_v40 = vor.u32 %v11085_v36, %v8432_v37  ;;  %v8478_v36 = vld [vmem:[%s17303_s7 + $0x3a0] sm:$0xf]  ;;  %v11094_v37 = vld [vmem:[%s17303_s7 + $0x3a4] sm:$0xf0]  ;;  %v8672_v35 = vld [vmem:[%s17303_s7 + $0x4e8] sm:$0xf0] }
 0x2cf   : > { %2877 = vmatpush.bf16.msrb.mxu0 %v8523_v33  ;;  %v8399_v33 = vor.u32 %v11078_v32, %v8398_v31 }
 0x2d0   : > { %2561 = vmatmul.bf16.vlgmr.msrb.gmra.mxu1 %v12445_v10  ;;  %2738 = vmatpush.bf16.msrb.mxu3 %v8423_v54  ;;  %v8472_v54 = vld [vmem:[%s17303_s7 + $0x398] sm:$0xf0] }
 0x2d1   : > { %2749 = vmatpush.bf16.msra.mxu1 %v8443_v24 }
 0x2d3   : > { %2878 = vmatpush.bf16.msrb.mxu0 %v8515_v12 }
 0x2d5   : > { %2750 = vmatpush.bf16.msra.mxu1 %v8435_v40  ;;  %v11093_v40 = vld [vmem:[%s17303_s7 + $0x3a4] sm:$0xf] }
 0x2d6   : > { %v8483_v42 = vor.u32 %v11093_v40, %v8480_v41  ;;  %v11115_v40 = vld [vmem:[%s17303_s7 + $0x454] sm:$0xf]  ;;  %v8584_v41 = vld [vmem:[%s17303_s7 + $0x458] sm:$0xf0] }
 0x2db   : > { %v1889_v7 = vpop.f32.mrf.mxu0 }
 0x2dd   : > { %v1783_v3 = vpop.f32.mrf.mxu1 }
 0x2de   : > { %v1890_v4 = vadd.f32 %v1889_v7, %v1783_v3  ;;  %v8427_v7 = vor.u32 %v11083_v56, %v8424_v57  ;;  %v8502_v3 = vld [vmem:[%s17303_s7 + $0x3d0] sm:$0xf]  ;;  %v8382_v57 = vld [vmem:[%s17303_s7 + $0x300] sm:$0xf] }
 0x2e0   : > { %2751 = vmatpush.bf16.msra.mxu1 %v8427_v7  ;;  %v11074_v7 = vld [vmem:[%s17303_s7 + $0x304] sm:$0xf0] }
 0x2e1   : > { %v1902_v5 = vpop.f32.mrf.mxu2 }
 0x2e3   : > { %v1796_v6 = vpop.f32.mrf.mxu3  ;;  %v1891_v49 = vpop.f32.mrf.mxu0 }
 0x2e4   : > { %v1903_v8 = vadd.f32 %v1902_v5, %v1796_v6  ;;  %v11099_v49 = vld [vmem:[%s17303_s7 + $0x3d4] sm:$0xf] }
 0x2e5   : > { %v1785_v9 = vpop.f32.mrf.mxu1 }
 0x2e6   : > { %v8414_v9 = vld [vmem:[%s17303_s7 + $0x340] sm:$0xf] }
 0x2e9   : > { %v1904_v11 = vpop.f32.mrf.mxu2 }
 0x2eb   : > { %v1798_v13 = vpop.f32.mrf.mxu3  ;;  %v2141_v14 = vpop.f32.mrf.mxu0 }
 0x2ec   : > { %v11082_v13 = vld [vmem:[%s17303_s7 + $0x344] sm:$0xf0] }
 0x2ed   : > { %v2014_v15 = vpop.f32.mrf.mxu1 }
 0x2ee   : > { %v2031_v16 = vadd.f32 %v2014_v15, %v1890_v4  ;;  %v11100_v4 = vld [vmem:[%s17303_s7 + $0x3d4] sm:$0xf0]  ;;  %v11081_v15 = vld [vmem:[%s17303_s7 + $0x344] sm:$0xf] }
 0x2ef   : > { %v8503_v6 = vor.u32 %v11100_v4, %v8502_v3  ;;  %v8383_v3 = vor.u32 %v11074_v7, %v8382_v57  ;;  %v11073_v4 = vld [vmem:[%s17303_s7 + $0x304] sm:$0xf]  ;;  %v8654_v7 = vld [vmem:[%s17303_s7 + $0x4c0] sm:$0xf] }
 0x2f0   : > { %v2158_v17 = vadd.f32 %v2141_v14, %v2031_v16  ;;  %v8415_v14 = vor.u32 %v11082_v13, %v8414_v9  ;;  %v8416_v16 = vld [vmem:[%s17303_s7 + $0x348] sm:$0xf0]  ;;  %v11120_v9 = vld [vmem:[%s17303_s7 + $0x474] sm:$0xf0]  ;;  %v11090_v13 = vld [vmem:[%s17303_s7 + $0x384] sm:$0xf0] }
 0x2f1   : > { %v2154_v60 = vpop.f32.mrf.mxu2  ;;  %2866 = vmatpush.bf16.msra.mxu2 %v8503_v6  ;;  %v8384_v6 = vld [vmem:[%s17303_s7 + $0x308] sm:$0xf0] }
 0x2f2   : > { %2739 = vmatpush.bf16.msrb.mxu3 %v8415_v14 }
 0x2f3   : > { %v2027_v61 = vpop.f32.mrf.mxu3  ;;  %v2143_v62 = vpop.f32.mrf.mxu0 }
 0x2f4   : > { %v2032_v0 = vadd.f32 %v2027_v61, %v1903_v8  ;;  %v8504_v8 = vld [vmem:[%s17303_s7 + $0x3d8] sm:$0xf0]  ;;  %v8494_v61 = vld [vmem:[%s17303_s7 + $0x3c0] sm:$0xf]  ;;  %v11098_v62 = vld [vmem:[%s17303_s7 + $0x3c4] sm:$0xf0] }
 0x2f5   : > { %v2016_v29 = vpop.f32.mrf.mxu1  ;;  %v8507_v11 = vor.u32 %v11099_v49, %v8504_v8  ;;  %v8598_v49 = vld [vmem:[%s17303_s7 + $0x470] sm:$0xf]  ;;  %v8387_v8 = vor.u32 %v11073_v4, %v8384_v6  ;;  %v11129_v6 = vld [vmem:[%s17303_s7 + $0x4c4] sm:$0xf] }
 0x2f6   : > { %v2159_v10 = vadd.f32 %v2154_v60, %v2032_v0  ;;  %v8419_v60 = vor.u32 %v11081_v15, %v8416_v16  ;;  %v8495_v0 = vor.u32 %v11098_v62, %v8494_v61  ;;  %v11097_v29 = vld [vmem:[%s17303_s7 + $0x3c4] sm:$0xf]  ;;  %v8599_v15 = vor.u32 %v11120_v9, %v8598_v49  ;;  %v8656_v49 = vld [vmem:[%s17303_s7 + $0x4c8] sm:$0xf0] }
 0x2f7   : > { %2879 = vmatpush.bf16.msrb.mxu0 %v8507_v11  ;;  %v8462_v11 = vld [vmem:[%s17303_s7 + $0x380] sm:$0xf]  ;;  %v11089_v61 = vld [vmem:[%s17303_s7 + $0x384] sm:$0xf]  ;;  %v8659_v9 = vor.u32 %v11129_v6, %v8656_v49  ;;  %v11122_v6 = vld [vmem:[%s17303_s7 + $0x484] sm:$0xf0] }
 0x2f8   : > { %2752 = vmatpush.bf16.msra.mxu1 %v8419_v60  ;;  %2867 = vmatpush.bf16.msra.mxu2 %v8495_v0  ;;  %v8463_v16 = vor.u32 %v11090_v13, %v8462_v11  ;;  %v8600_v60 = vld [vmem:[%s17303_s7 + $0x478] sm:$0xf0]  ;;  %v8464_v0 = vld [vmem:[%s17303_s7 + $0x388] sm:$0xf0]  ;;  %v8566_v11 = vld [vmem:[%s17303_s7 + $0x430] sm:$0xf] }
 0x2f9   : > { %v2156_v55 = vpop.f32.mrf.mxu2  ;;  %v11112_v13 = vld [vmem:[%s17303_s7 + $0x434] sm:$0xf0] }
 0x2fb   : > { %v2029_v39 = vpop.f32.mrf.mxu3  ;;  %v2399_v48 = vpop.f32.mrf.mxu0 }
 0x2fd   : > { %v2271_v19 = vpop.f32.mrf.mxu1 }
 0x2fe   : > { %v2288_v23 = vadd.f32 %v2271_v19, %v2158_v17  ;;  %v11079_v19 = vld [vmem:[%s17303_s7 + $0x334] sm:$0xf] }
 0x2ff   : > { %v8411_v21 = vor.u32 %v11079_v19, %v8408_v20  ;;  %v11118_v20 = vld [vmem:[%s17303_s7 + $0x464] sm:$0xf0] }
 0x300   : > { %v13279_v25 = vadd.f32 %v2399_v48, %v2288_v23  ;;  %v8406_v48 = vld [vmem:[%s17303_s7 + $0x330] sm:$0xf]  ;;  %v11096_v23 = vld [vmem:[%s17303_s7 + $0x3b4] sm:$0xf0] }
 0x301   : > { %v2412_v38 = vpop.f32.mrf.mxu2  ;;  %v8407_v18 = vor.u32 %v11080_v1, %v8406_v48  ;;  %v8487_v24 = vor.u32 %v11096_v23, %v8486_v22  ;;  %2753 = vmatpush.bf16.msra.mxu1 %v8411_v21  ;;  %v11135_v48 = vld [vmem:[%s17303_s7 + $0x4f4] sm:$0xf]  ;;  %v8680_v1 = vld [vmem:[%s17303_s7 + $0x4f8] sm:$0xf0]  ;;  %v11117_v21 = vld [vmem:[%s17303_s7 + $0x464] sm:$0xf] }
 0x302   : > { %v8683_v19 = vor.u32 %v11135_v48, %v8680_v1  ;;  %v8592_v22 = vld [vmem:[%s17303_s7 + $0x468] sm:$0xf0]  ;;  %v8558_v1 = vld [vmem:[%s17303_s7 + $0x420] sm:$0xf] }
 0x303   : > { %v2284_v44 = vpop.f32.mrf.mxu3  ;;  %v2401_v45 = vpop.f32.mrf.mxu0  ;;  %2740 = vmatpush.bf16.msrb.mxu3 %v8407_v18  ;;  %2868 = vmatpush.bf16.msra.mxu2 %v8487_v24  ;;  %v8590_v18 = vld [vmem:[%s17303_s7 + $0x460] sm:$0xf]  ;;  %v8595_v26 = vor.u32 %v11117_v21, %v8592_v22  ;;  %v8560_v21 = vld [vmem:[%s17303_s7 + $0x428] sm:$0xf0] }
 0x304   : > { %v2289_v51 = vadd.f32 %v2284_v44, %v2159_v10  ;;  %v8496_v10 = vld [vmem:[%s17303_s7 + $0x3c8] sm:$0xf0]  ;;  %v11075_v44 = vld [vmem:[%s17303_s7 + $0x314] sm:$0xf]  ;;  %v8392_v45 = vld [vmem:[%s17303_s7 + $0x318] sm:$0xf0]  ;;  %v8591_v24 = vor.u32 %v11118_v20, %v8590_v18 }
 0x305   : > { %v2273_v53 = vpop.f32.mrf.mxu1  ;;  %v8499_v39 = vor.u32 %v11097_v29, %v8496_v10  ;;  %2754 = vmatpush.bf16.msra.mxu1 %v8403_v52  ;;  %v8395_v12 = vor.u32 %v11075_v44, %v8392_v45  ;;  %v8678_v29 = vld [vmem:[%s17303_s7 + $0x4f0] sm:$0xf]  ;;  %v11136_v10 = vld [vmem:[%s17303_s7 + $0x4f4] sm:$0xf0]  ;;  %v8675_v52 = vor.u32 %v11133_v34, %v8672_v35  ;;  %v11131_v44 = vld [vmem:[%s17303_s7 + $0x4d4] sm:$0xf] }
 0x306   : > { %v13323_v5 = vadd.f32 %v2412_v38, %v2289_v51  ;;  %v8479_v38 = vor.u32 %v11094_v37, %v8478_v36  ;;  %v8471_v51 = vor.u32 %v11092_v50, %v8470_v47  ;;  %v11091_v53 = vld [vmem:[%s17303_s7 + $0x394] sm:$0xf]  ;;  %v8582_v36 = vld [vmem:[%s17303_s7 + $0x450] sm:$0xf]  ;;  %v11116_v37 = vld [vmem:[%s17303_s7 + $0x454] sm:$0xf0] }
 0x307   : > { %2880 = vmatpush.bf16.msrb.mxu0 %v8499_v39  ;;  %2741 = vmatpush.bf16.msrb.mxu3 %v8399_v33  ;;  %v8475_v56 = vor.u32 %v11091_v53, %v8472_v54  ;;  %v8679_v39 = vor.u32 %v11136_v10, %v8678_v29  ;;  %v8664_v45 = vld [vmem:[%s17303_s7 + $0x4d8] sm:$0xf0]  ;;  %v8574_v50 = vld [vmem:[%s17303_s7 + $0x440] sm:$0xf]  ;;  %v11113_v54 = vld [vmem:[%s17303_s7 + $0x444] sm:$0xf] }
 0x308   : > { %2869 = vmatpush.bf16.msra.mxu2 %v8479_v38  ;;  %v8583_v38 = vor.u32 %v11116_v37, %v8582_v36  ;;  %v8667_v47 = vor.u32 %v11131_v44, %v8664_v45  ;;  %v11128_v29 = vld [vmem:[%s17303_s7 + $0x4b4] sm:$0xf0]  ;;  %v11110_v18 = vld [vmem:[%s17303_s7 + $0x424] sm:$0xf0]  ;;  %v11109_v20 = vld [vmem:[%s17303_s7 + $0x424] sm:$0xf] }
 0x309   : > { %v2414_v17 = vpop.f32.mrf.mxu2  ;;  %2755 = vmatpush.bf16.msra.mxu1 %v8395_v12  ;;  %v8640_v34 = vld [vmem:[%s17303_s7 + $0x4a8] sm:$0xf0]  ;;  %v8550_v36 = vld [vmem:[%s17303_s7 + $0x410] sm:$0xf]  ;;  %v11108_v37 = vld [vmem:[%s17303_s7 + $0x414] sm:$0xf0] }
 0x30a   : > { %v11119_v17 = vld [vmem:[%s17303_s7 + $0x474] sm:$0xf]  ;;  %v11124_v44 = vld [vmem:[%s17303_s7 + $0x494] sm:$0xf0] }
 0x30b   : > { %v2286_v55 = vpop.f32.mrf.mxu3  ;;  %2881 = vmatpush.bf16.msrb.mxu0 %v8491_v28  ;;  %2742 = vmatpush.bf16.msrb.mxu3 %v8391_v58  ;;  %v8603_v62 = vor.u32 %v11119_v17, %v8600_v60  ;;  %v11134_v28 = vld [vmem:[%s17303_s7 + $0x4e4] sm:$0xf0]  ;;  %v8663_v58 = vor.u32 %v11132_v30, %v8662_v43  ;;  %v8567_v17 = vor.u32 %v11112_v13, %v8566_v11  ;;  %v11111_v60 = vld [vmem:[%s17303_s7 + $0x434] sm:$0xf]  ;;  %v8552_v43 = vld [vmem:[%s17303_s7 + $0x418] sm:$0xf0] }
 0x30c   : > { %2870 = vmatpush.bf16.msra.mxu2 %v8471_v51  ;;  %v8467_v55 = vor.u32 %v11089_v61, %v8464_v0  ;;  %v8671_v33 = vor.u32 %v11134_v28, %v8670_v27  ;;  %v11114_v51 = vld [vmem:[%s17303_s7 + $0x444] sm:$0xf0]  ;;  %v8568_v61 = vld [vmem:[%s17303_s7 + $0x438] sm:$0xf0]  ;;  %v8646_v0 = vld [vmem:[%s17303_s7 + $0x4b0] sm:$0xf] }
 0x30d   : > { %2756 = vmatpush.bf16.msra.mxu1 %v8387_v8  ;;  %v8575_v53 = vor.u32 %v11114_v51, %v8574_v50  ;;  %v8647_v10 = vor.u32 %v11128_v29, %v8646_v0  ;;  %v11126_v27 = vld [vmem:[%s17303_s7 + $0x4a4] sm:$0xf0]  ;;  %v8632_v50 = vld [vmem:[%s17303_s7 + $0x498] sm:$0xf0]  ;;  %v11121_v13 = vld [vmem:[%s17303_s7 + $0x484] sm:$0xf] }
 0x30f   : > { %2882 = vmatpush.bf16.msrb.mxu0 %v8483_v42  ;;  %2743 = vmatpush.bf16.msrb.mxu3 %v8383_v3  ;;  %v8587_v42 = vor.u32 %v11115_v40, %v8584_v41  ;;  %v11130_v3 = vld [vmem:[%s17303_s7 + $0x4c4] sm:$0xf0]  ;;  %v8551_v41 = vor.u32 %v11108_v37, %v8550_v36 }
 0x310   : > { %2871 = vmatpush.bf16.msra.mxu2 %v8463_v16  ;;  %v8655_v4 = vor.u32 %v11130_v3, %v8654_v7  ;;  %v8544_v7 = vld [vmem:[%s17303_s7 + $0x408] sm:$0xf0] }
 0x311   : > { %v13451_v14 = vpop.f32.mrf.mxu2  ;;  %3004 = vmatpush.bf16.msrb.mxu1 %v8603_v62  ;;  %v8571_v62 = vor.u32 %v11111_v60, %v8568_v61 }
 0x313   : > { %2883 = vmatpush.bf16.msrb.mxu0 %v8475_v56  ;;  %2991 = vmatpush.bf16.msra.mxu3 %v8599_v15  ;;  %v13499_v32 = vpop.f32.mrf.mxu3  ;;  %v8576_v56 = vld [vmem:[%s17303_s7 + $0x448] sm:$0xf0] }
 0x314   : > { %3118 = vmatpush.bf16.msrb.mxu2 %v8679_v39  ;;  %v8579_v57 = vor.u32 %v11113_v54, %v8576_v56  ;;  %v8648_v39 = vld [vmem:[%s17303_s7 + $0x4b8] sm:$0xf0]  ;;  %v11106_v54 = vld [vmem:[%s17303_s7 + $0x404] sm:$0xf0] }
 0x315   : > { %3005 = vmatpush.bf16.msrb.mxu1 %v8595_v26  ;;  %v8638_v26 = vld [vmem:[%s17303_s7 + $0x4a0] sm:$0xf] }
 0x316   : > { %v8639_v28 = vor.u32 %v11126_v27, %v8638_v26 }
 0x317   : > { %2884 = vmatpush.bf16.msrb.mxu0 %v8467_v55  ;;  %2992 = vmatpush.bf16.msra.mxu3 %v8591_v24  ;;  %v11127_v55 = vld [vmem:[%s17303_s7 + $0x4b4] sm:$0xf]  ;;  %v8563_v24 = vor.u32 %v11109_v20, %v8560_v21  ;;  %v13666_v21 = vld [vmem:[%s17301_s5] ss:$0 sm:$0xff] }
 0x318   : > { %3119 = vmatpush.bf16.msrb.mxu2 %v8671_v33  ;;  %v8651_v48 = vor.u32 %v11127_v55, %v8648_v39  ;;  %v11125_v33 = vld [vmem:[%s17303_s7 + $0x4a4] sm:$0xf] }
 0x319   : > { %v13531_v12 = vpop.f32.mrf.mxu2  ;;  %3006 = vmatpush.bf16.msrb.mxu1 %v8587_v42  ;;  %v11107_v42 = vld [vmem:[%s17303_s7 + $0x414] sm:$0xf] }
 0x31a   : > { %v8555_v30 = vor.u32 %v11107_v42, %v8552_v43  ;;  %v11151_v43 = vld [vmem:[%s17303_s7 + $0x574] sm:$0xf] }
 0x31b   : > { %v13489_v23 = vpop.f32.mrf.mxu0  ;;  %3131 = vmatpush.bf16.msra.mxu0 %v8683_v19  ;;  %2993 = vmatpush.bf16.msra.mxu3 %v8583_v38  ;;  %v13567_v16 = vpop.f32.mrf.mxu3  ;;  %v8559_v19 = vor.u32 %v11110_v18, %v8558_v1 }
 0x31c   : > { %3120 = vmatpush.bf16.msrb.mxu2 %v8663_v58  ;;  %v8630_v58 = vld [vmem:[%s17303_s7 + $0x490] sm:$0xf] }
 0x31d   : > { %v13497_v31 = vpop.f32.mrf.mxu1  ;;  %3007 = vmatpush.bf16.msrb.mxu1 %v8579_v57  ;;  %v8631_v45 = vor.u32 %v11124_v44, %v8630_v58  ;;  %v11105_v57 = vld [vmem:[%s17303_s7 + $0x404] sm:$0xf]  ;;  %v8838_v58 = vld [vmem:[%s17303_s7 + $0x5f0] sm:$0xf] }
 0x31e   : > { %v8547_v3 = vor.u32 %v11105_v57, %v8544_v7  ;;  %v2442_v49 = vadd.f32 %v13499_v32, %v13497_v31 }
 0x31f   : > { %3132 = vmatpush.bf16.msra.mxu0 %v8675_v52  ;;  %2994 = vmatpush.bf16.msra.mxu3 %v8575_v53  ;;  %v8643_v52 = vor.u32 %v11125_v33, %v8640_v34  ;;  %v8542_v53 = vld [vmem:[%s17303_s7 + $0x400] sm:$0xf] }
 0x320   : > { %3121 = vmatpush.bf16.msrb.mxu2 %v8655_v4  ;;  %v8543_v56 = vor.u32 %v11106_v54, %v8542_v53  ;;  %v8622_v4 = vld [vmem:[%s17303_s7 + $0x480] sm:$0xf]  ;;  %v2456_v31 = vadd.f32 %v13489_v23, %v2442_v49  ;;  %v8840_v53 = vld [vmem:[%s17303_s7 + $0x5f8] sm:$0xf0]  ;;  %v11149_v49 = vld [vmem:[%s17303_s7 + $0x564] sm:$0xf] }
 0x321   : > { %3008 = vmatpush.bf16.msrb.mxu1 %v8571_v62  ;;  %v8623_v11 = vor.u32 %v11122_v6, %v8622_v4  ;;  %v11150_v6 = vld [vmem:[%s17303_s7 + $0x564] sm:$0xf0] }
 0x322   : > { %v2470_v29 = vadd.f32 %v13451_v14, %v2456_v31  ;;  %v13672_v14 = vld [vmem:[%s17302_s6] ss:$0 sm:$0xff]  ;;  %v11165_v31 = vld [vmem:[%s17303_s7 + $0x5e4] sm:$0xf] }
 0x323   : > { %3133 = vmatpush.bf16.msra.mxu0 %v8667_v47  ;;  %v13557_v8 = vpop.f32.mrf.mxu0  ;;  %2995 = vmatpush.bf16.msra.mxu3 %v8567_v17  ;;  %v11123_v47 = vld [vmem:[%s17303_s7 + $0x494] sm:$0xf]  ;;  %v8624_v17 = vld [vmem:[%s17303_s7 + $0x488] sm:$0xf0] }
 0x324   : > { %3122 = vmatpush.bf16.msrb.mxu2 %v8647_v10  ;;  %v8635_v51 = vor.u32 %v11123_v47, %v8632_v50  ;;  %v8627_v60 = vor.u32 %v11121_v13, %v8624_v17  ;;  %v11168_v50 = vld [vmem:[%s17303_s7 + $0x5f4] sm:$0xf0]  ;;  %v8830_v17 = vld [vmem:[%s17303_s7 + $0x5e0] sm:$0xf] }
 0x325   : > { %v13565_v15 = vpop.f32.mrf.mxu1  ;;  %3009 = vmatpush.bf16.msrb.mxu1 %v8563_v24 }
 0x326   : > { %v2444_v36 = vadd.f32 %v13567_v16, %v13565_v15 }
 0x327   : > { %3134 = vmatpush.bf16.msra.mxu0 %v8659_v9  ;;  %2996 = vmatpush.bf16.msra.mxu3 %v8559_v19 }
 0x328   : > { %3123 = vmatpush.bf16.msrb.mxu2 %v8639_v28  ;;  %v2458_v44 = vadd.f32 %v13557_v8, %v2444_v36  ;;  %v8750_v8 = vld [vmem:[%s17303_s7 + $0x560] sm:$0xf]  ;;  %v8736_v36 = vld [vmem:[%s17303_s7 + $0x548] sm:$0xf0] }
 0x329   : > { %3010 = vmatpush.bf16.msrb.mxu1 %v8555_v30  ;;  %v8760_v30 = vld [vmem:[%s17303_s7 + $0x578] sm:$0xf0] }
 0x32a   : > { %v8763_v57 = vor.u32 %v11151_v43, %v8760_v30  ;;  %v8816_v43 = vld [vmem:[%s17303_s7 + $0x5c8] sm:$0xf0] }
 0x32b   : > { %3135 = vmatpush.bf16.msra.mxu0 %v8651_v48  ;;  %v2548_v35 = vpop.f32.mrf.mxu0  ;;  %2997 = vmatpush.bf16.msra.mxu3 %v8551_v41  ;;  %v11152_v41 = vld [vmem:[%s17303_s7 + $0x574] sm:$0xf0] }
 0x32c   : > { %3124 = vmatpush.bf16.msrb.mxu2 %v8631_v45 }
 0x32d   : > { %v2512_v38 = vpop.f32.mrf.mxu1  ;;  %3011 = vmatpush.bf16.msrb.mxu1 %v8547_v3 }
 0x32f   : > { %3136 = vmatpush.bf16.msra.mxu0 %v8643_v52  ;;  %2998 = vmatpush.bf16.msra.mxu3 %v8543_v56 }
 0x330   : > { %3125 = vmatpush.bf16.msrb.mxu2 %v8623_v11  ;;  %v8839_v11 = vor.u32 %v11168_v50, %v8838_v58 }
 0x331   : > { %v2534_v22 = vpop.f32.mrf.mxu2 }
 0x332   : > { %v2549_v55 = vadd.f32 %v2548_v35, %v2534_v22 }
 0x333   : > { %v2498_v40 = vpop.f32.mrf.mxu3  ;;  %3137 = vmatpush.bf16.msra.mxu0 %v8635_v51  ;;  %v2550_v61 = vpop.f32.mrf.mxu0  ;;  %v11167_v51 = vld [vmem:[%s17303_s7 + $0x5f4] sm:$0xf] }
 0x334   : > { %v2513_v32 = vadd.f32 %v2512_v38, %v2498_v40  ;;  %v8758_v40 = vld [vmem:[%s17303_s7 + $0x570] sm:$0xf]  ;;  %v8843_v13 = vor.u32 %v11167_v51, %v8840_v53  ;;  %v11160_v53 = vld [vmem:[%s17303_s7 + $0x5b4] sm:$0xf0] }
 0x335   : > { %v2514_v62 = vpop.f32.mrf.mxu1  ;;  %v8759_v56 = vor.u32 %v11152_v41, %v8758_v40  ;;  %v11162_v41 = vld [vmem:[%s17303_s7 + $0x5c4] sm:$0xf0] }
 0x336   : > { %v2517_v10 = vadd.f32 %v2513_v32, %v2470_v29  ;;  %v8832_v32 = vld [vmem:[%s17303_s7 + $0x5e8] sm:$0xf0]  ;;  %v8751_v29 = vor.u32 %v11150_v6, %v8750_v8  ;;  %v11142_v6 = vld [vmem:[%s17303_s7 + $0x524] sm:$0xf0] }
 0x337   : > { %3138 = vmatpush.bf16.msra.mxu0 %v8627_v60  ;;  %v11166_v60 = vld [vmem:[%s17303_s7 + $0x5e4] sm:$0xf0] }
 0x338   : > { %v2519_v24 = vmul.f32 %v13666_v21, %v2517_v10 }
 0x339   : > { %v2536_v9 = vpop.f32.mrf.mxu2 }
 0x33a   : > { %v2521_v22 = vadd.f32 %v13672_v14, %v2519_v24  ;;  %v2551_v35 = vadd.f32 %v2550_v61, %v2536_v9  ;;  %v8752_v9 = vld [vmem:[%s17303_s7 + $0x568] sm:$0xf0]  ;;  %v2472_v61 = vadd.f32 %v13531_v12, %v2458_v44  ;;  %v8742_v12 = vld [vmem:[%s17303_s7 + $0x550] sm:$0xf]  ;;  %v11144_v44 = vld [vmem:[%s17303_s7 + $0x534] sm:$0xf0] }
 0x33b   : > { %v2500_v0 = vpop.f32.mrf.mxu3  ;;  %v8755_v10 = vor.u32 %v11149_v49, %v8752_v9 }
 0x33c   : > { %v2523_v34 = vmax.f32 %v2521_v22, 0.0  ;;  %v2515_v7 = vadd.f32 %v2514_v62, %v2500_v0  ;;  %v8824_v22 = vld [vmem:[%s17303_s7 + $0x5d8] sm:$0xf0] }
 0x341   : > { %v2619_v39 = vpop.f32.mrf.mxu2 }
 0x343   : > { %v2576_v20 = vpop.f32.mrf.mxu3 }
 0x349   : > { %v2621_v54 = vpop.f32.mrf.mxu2 }
 0x34b   : > { %v2605_v48 = vpop.f32.mrf.mxu0  ;;  %v2578_v15 = vpop.f32.mrf.mxu3 }
 0x34c   : > { %v2620_v18 = vadd.f32 %v2619_v39, %v2605_v48  ;;  %v11148_v39 = vld [vmem:[%s17303_s7 + $0x554] sm:$0xf0]  ;;  %v11147_v48 = vld [vmem:[%s17303_s7 + $0x554] sm:$0xf] }
 0x34d   : > { %v2562_v1 = vpop.f32.mrf.mxu1 }
 0x34e   : > { %v2563_v19 = vadd.f32 %v2562_v1, %v2549_v55  ;;  %v2518_v55 = vadd.f32 %v2515_v7, %v2472_v61  ;;  %v8744_v1 = vld [vmem:[%s17303_s7 + $0x558] sm:$0xf0]  ;;  %v8798_v61 = vld [vmem:[%s17303_s7 + $0x5a0] sm:$0xf] }
 0x350   : > { %v2577_v26 = vadd.f32 %v2576_v20, %v2563_v19  ;;  %v8835_v19 = vor.u32 %v11165_v31, %v8832_v32  ;;  %v8822_v20 = vld [vmem:[%s17303_s7 + $0x5d0] sm:$0xf]  ;;  %v11157_v31 = vld [vmem:[%s17303_s7 + $0x5a4] sm:$0xf]  ;;  %v8800_v32 = vld [vmem:[%s17303_s7 + $0x5a8] sm:$0xf0] }
 0x352   : > { %v2624_v23 = vadd.f32 %v2620_v18, %v2577_v26  ;;  %v8831_v18 = vor.u32 %v11166_v60, %v8830_v17  ;;  %v11164_v26 = vld [vmem:[%s17303_s7 + $0x5d4] sm:$0xf0] }
 0x353   : > { %v2607_v16 = vpop.f32.mrf.mxu0 }
 0x354   : > { %v2626_v27 = vmul.f32 %v13666_v21, %v2624_v23  ;;  %v2622_v3 = vadd.f32 %v2621_v54, %v2607_v16  ;;  %v11163_v23 = vld [vmem:[%s17303_s7 + $0x5d4] sm:$0xf]  ;;  %v8726_v16 = vld [vmem:[%s17303_s7 + $0x530] sm:$0xf] }
 0x355   : > { %v2564_v33 = vpop.f32.mrf.mxu1  ;;  %v8727_v8 = vor.u32 %v11144_v44, %v8726_v16  ;;  %v13890_v44 = vld [vmem:[%s17300_s4 + $0xb8] sm:$0xff] }
 0x356   : > { %v2628_v28 = vadd.f32 %v13672_v14, %v2626_v27  ;;  %v2565_v38 = vadd.f32 %v2564_v33, %v2551_v35  ;;  %v8743_v27 = vor.u32 %v11148_v39, %v8742_v12  ;;  %v8734_v33 = vld [vmem:[%s17303_s7 + $0x540] sm:$0xf]  ;;  %v11146_v35 = vld [vmem:[%s17303_s7 + $0x544] sm:$0xf0]  ;;  %v11139_v39 = vld [vmem:[%s17303_s7 + $0x514] sm:$0xf] }
 0x357   : > { %v8735_v30 = vor.u32 %v11146_v35, %v8734_v33  ;;  %v11138_v33 = vld [vmem:[%s17303_s7 + $0x504] sm:$0xf0]  ;;  %v8704_v35 = vld [vmem:[%s17303_s7 + $0x508] sm:$0xf0] }
 0x358   : > { %v2630_v52 = vmax.f32 %v2628_v28, 0.0  ;;  %v2579_v45 = vadd.f32 %v2578_v15, %v2565_v38  ;;  %v8747_v28 = vor.u32 %v11147_v48, %v8744_v1  ;;  %v8827_v38 = vor.u32 %v11163_v23, %v8824_v22  ;;  %v8712_v48 = vld [vmem:[%s17303_s7 + $0x518] sm:$0xf0] }
 0x35a   : > { %v2632_v37 = vmax.f32 %v2523_v34, %v2630_v52  ;;  %v2625_v62 = vadd.f32 %v2622_v3, %v2579_v45  ;;  %v2520_v34 = vmul.f32 %v13666_v21, %v2518_v55  ;;  %v11145_v52 = vld [vmem:[%s17303_s7 + $0x544] sm:$0xf]  ;;  %v11143_v45 = vld [vmem:[%s17303_s7 + $0x534] sm:$0xf]  ;;  %v8718_v3 = vld [vmem:[%s17303_s7 + $0x520] sm:$0xf] }
 0x35b   : > { %v8739_v15 = vor.u32 %v11145_v52, %v8736_v36  ;;  %v8710_v55 = vld [vmem:[%s17303_s7 + $0x510] sm:$0xf] }
 0x35c   : > { %v2635_v42 = vrot.slane %v2632_v37, 1  ;;  %v2627_v24 = vmul.f32 %v13666_v21, %v2625_v62  ;;  %v8814_v21 = vld [vmem:[%s17303_s7 + $0x5c0] sm:$0xf]  ;;  %v2522_v58 = vadd.f32 %v13672_v14, %v2520_v34  ;;  %v11158_v62 = vld [vmem:[%s17303_s7 + $0x5a4] sm:$0xf0] }
 0x35d   : > { %v8815_v50 = vor.u32 %v11162_v41, %v8814_v21  ;;  %v8799_v1 = vor.u32 %v11158_v62, %v8798_v61  ;;  %v11137_v34 = vld [vmem:[%s17303_s7 + $0x504] sm:$0xf]  ;;  %v11705_v61 = vld [vmem:[%s17300_s4 + $0x70] sm:$0xff] }
 0x35e   : > { %v2637_v47 = vmax.f32 %v2632_v37, %v2635_v42  ;;  %v8823_v37 = vor.u32 %v11164_v26, %v8822_v20  ;;  %v2629_v40 = vadd.f32 %v13672_v14, %v2627_v24  ;;  %v11161_v42 = vld [vmem:[%s17303_s7 + $0x5c4] sm:$0xf]  ;;  %v8806_v14 = vld [vmem:[%s17303_s7 + $0x5b0] sm:$0xf]  ;;  %v2524_v49 = vmax.f32 %v2522_v58, 0.0  ;;  %v11685_v58 = vld [vmem:[%s17300_s4 + $0x98] sm:$0xff] }
 0x35f   : > { %v8819_v51 = vor.u32 %v11161_v42, %v8816_v43  ;;  %v8807_v17 = vor.u32 %v11160_v53, %v8806_v14  ;;  %v11156_v20 = vld [vmem:[%s17303_s7 + $0x594] sm:$0xf0]  ;;  %v11155_v24 = vld [vmem:[%s17303_s7 + $0x594] sm:$0xf]  ;;  %v8792_v26 = vld [vmem:[%s17303_s7 + $0x598] sm:$0xf0]  ;;  %v8707_v43 = vor.u32 %v11137_v34, %v8704_v35 }
 0x360   : > { %v13707_v4 = vpack.c.bf16 %v2637_v47, %v2637_v47  ;;  %v8728_v47 = vld [vmem:[%s17303_s7 + $0x538] sm:$0xf0]  ;;  %v2631_v54 = vmax.f32 %v2629_v40, 0.0  ;;  %v8795_v36 = vor.u32 %v11155_v24, %v8792_v26  ;;  %v11153_v21 = vld [vmem:[%s17303_s7 + $0x584] sm:$0xf]  ;;  %v13911_v14 = vld [vmem:[%s17300_s4 + $0xb0] sm:$0xff] }
 0x361   : > { %v8731_v7 = vor.u32 %v11143_v45, %v8728_v47  ;;  %v8784_v40 = vld [vmem:[%s17303_s7 + $0x588] sm:$0xf0]  ;;  %v13896_v45 = vld [vmem:[%s17300_s4 + $0x38] sm:$0xff]  ;;  %v13917_v53 = vld [vmem:[%s17300_s4 + $0x30] sm:$0xff] }
 0x362   : > { %2744 = vmatmul.bf16.vlgmr.msrb.gmra.mxu3 %v13707_v4  ;;  %2757 = vmatmul.bf16.vlgmr.msra.gmra.mxu1 %v13707_v4  ;;  %v2782_v0 = vrot.slane %v13707_v4, 1  ;;  %v2909_v9 = vrot.slane %v13707_v4, 2  ;;  %v13996_v62 = vld [vmem:[%s17300_s4 + $0x10] sm:$0xff]  ;;  %v11719_v24 = vld [vmem:[%s17300_s4 + $0x100] sm:$0xff]  ;;  %v11172_v35 = vld [vmem:[#allocation2 + $0x74] sm:$0xf0] }
 0x363   : > { %3248 = vmatpush.bf16.msrb.mxu3 %v8759_v56  ;;  %3261 = vmatpush.bf16.msra.mxu1 %v8763_v57  ;;  %v11159_v56 = vld [vmem:[%s17303_s7 + $0x5b4] sm:$0xf]  ;;  %v8808_v57 = vld [vmem:[%s17303_s7 + $0x5b8] sm:$0xf0]  ;;  %v8859_v34 = vld [vmem:[#allocation2 + $0x70] sm:$0xf] }
 0x364   : > { %2872 = vmatmul.bf16.vlgmr.msra.gmra.mxu2 %v2782_v0  ;;  %2885 = vmatmul.bf16.vlgmr.msrb.gmra.mxu0 %v2782_v0  ;;  %v8811_v60 = vor.u32 %v11159_v56, %v8808_v57  ;;  %v3036_v0 = vrot.slane %v13707_v4, 3  ;;  %v11140_v4 = vld [vmem:[%s17303_s7 + $0x514] sm:$0xf0]  ;;  %v11693_v56 = vld [vmem:[%s17300_s4 + $0x88] sm:$0xff] }
 0x365   : > { %3376 = vmatpush.bf16.msra.mxu2 %v8839_v11  ;;  %3389 = vmatpush.bf16.msrb.mxu0 %v8843_v13  ;;  %v11141_v11 = vld [vmem:[%s17303_s7 + $0x524] sm:$0xf]  ;;  %v8720_v13 = vld [vmem:[%s17303_s7 + $0x528] sm:$0xf0]  ;;  %v8711_v22 = vor.u32 %v11140_v4, %v8710_v55  ;;  %v11714_v55 = vld [vmem:[%s17300_s4 + $0xd8] sm:$0xff] }
 0x366   : > { %v8723_v12 = vor.u32 %v11141_v11, %v8720_v13  ;;  %v13932_v57 = vld [vmem:[%s17300_s4 + $0xa8] sm:$0xff]  ;;  %v13971_v11 = vld [vmem:[%s17300_s4 + $0x40] sm:$0xff]  ;;  %v11702_v13 = vld [vmem:[%s17300_s4 + $0x78] sm:$0xff] }
 0x367   : > { %3249 = vmatpush.bf16.msrb.mxu3 %v8751_v29  ;;  %3262 = vmatpush.bf16.msra.mxu1 %v8755_v10  ;;  %v2633_v29 = vmax.f32 %v2524_v49, %v2631_v54  ;;  %v8719_v10 = vor.u32 %v11142_v6, %v8718_v3  ;;  %v13923_v54 = vld [vmem:[%s17300_s4 + $0x50] sm:$0xff]  ;;  %v11697_v3 = vld [vmem:[%s17300_s4 + $0x80] sm:$0xff] }
 0x368   : > { %v13953_v6 = vld [vmem:[%s17300_s4 + $0xa0] sm:$0xff]  ;;  %v11715_v4 = vld [vmem:[%s17300_s4 + $0x110] sm:$0xff] }
 0x369   : > { %3377 = vmatpush.bf16.msra.mxu2 %v8831_v18  ;;  %3390 = vmatpush.bf16.msrb.mxu0 %v8835_v19  ;;  %v8803_v18 = vor.u32 %v11157_v31, %v8800_v32  ;;  %v8790_v19 = vld [vmem:[%s17303_s7 + $0x590] sm:$0xf]  ;;  %v3147_v23 = vrot.slane %v2633_v29, 1  ;;  %v13959_v49 = vld [vmem:[%s17300_s4 + $0x20] sm:$0xff]  ;;  %v11708_v31 = vld [vmem:[%s17300_s4 + $0x68] sm:$0xff] }
 0x36a   : > { %v8791_v52 = vor.u32 %v11156_v20, %v8790_v19  ;;  %v11710_v32 = vld [vmem:[%s17300_s4 + $0xe0] sm:$0xff]  ;;  %v8850_v20 = vld [vmem:[#allocation2 + $0x68] sm:$0xf0] }
 0x36b   : > { %3250 = vmatpush.bf16.msrb.mxu3 %v8743_v27  ;;  %3263 = vmatpush.bf16.msra.mxu1 %v8747_v28  ;;  %v8715_v27 = vor.u32 %v11139_v39, %v8712_v48  ;;  %v8702_v28 = vld [vmem:[%s17303_s7 + $0x500] sm:$0xf]  ;;  %v3149_v41 = vmax.f32 %v2633_v29, %v3147_v23  ;;  %v11716_v39 = vld [vmem:[%s17300_s4 + $0xd0] sm:$0xff]  ;;  %v11717_v48 = vld [vmem:[%s17300_s4 + $0x108] sm:$0xff] }
 0x36c   : > { %v8703_v42 = vor.u32 %v11138_v33, %v8702_v28  ;;  %v11711_v29 = vld [vmem:[%s17300_s4 + $0x60] sm:$0xff]  ;;  %v8861_v28 = vld [vmem:[#allocation2 + $0x78] sm:$0xf0] }
 0x36d   : > { %3378 = vmatpush.bf16.msra.mxu2 %v8823_v37  ;;  %3391 = vmatpush.bf16.msrb.mxu0 %v8827_v38  ;;  %v8782_v37 = vld [vmem:[%s17303_s7 + $0x580] sm:$0xf]  ;;  %v11154_v38 = vld [vmem:[%s17303_s7 + $0x584] sm:$0xf0]  ;;  %v3150_v16 = vpack.c.bf16 %v3149_v41, %v3149_v41  ;;  %v11169_v19 = vld [vmem:[#allocation2 + $0x64] sm:$0xf] }
 0x36e   : > { %v11720_v23 = vld [vmem:[%s17300_s4 + $0xc0] sm:$0xff] }
 0x36f   : > { %3251 = vmatpush.bf16.msrb.mxu3 %v8735_v30  ;;  %3264 = vmatpush.bf16.msra.mxu1 %v8739_v15  ;;  %v8783_v30 = vor.u32 %v11154_v38, %v8782_v37  ;;  %v8787_v15 = vor.u32 %v11153_v21, %v8784_v40  ;;  %v3294_v47 = vrot.slane %v3150_v16, 1 }
 0x371   : > { %3379 = vmatpush.bf16.msra.mxu2 %v8815_v50  ;;  %3392 = vmatpush.bf16.msrb.mxu0 %v8819_v51  ;;  %v13902_v50 = vld [vmem:[%s17300_s4 + $0x58] sm:$0xff]  ;;  %v11689_v51 = vld [vmem:[%s17300_s4 + $0x90] sm:$0xff] }
 0x372   : > { %2999 = vmatmul.bf16.vlgmr.msra.gmra.mxu3 %v2909_v9  ;;  %3012 = vmatmul.bf16.vlgmr.msrb.gmra.mxu1 %v2909_v9  ;;  %v13965_v9 = vld [vmem:[%s17300_s4 + $0xf8] sm:$0xff] }
 0x373   : > { %3252 = vmatpush.bf16.msrb.mxu3 %v8727_v8  ;;  %3265 = vmatpush.bf16.msra.mxu1 %v8731_v7  ;;  %v13938_v8 = vld [vmem:[%s17300_s4 + $0x28] sm:$0xff] }
 0x374   : > { %3126 = vmatmul.bf16.vlgmr.msrb.gmra.mxu2 %v3036_v0  ;;  %3139 = vmatmul.bf16.vlgmr.msra.gmra.mxu0 %v3036_v0  ;;  %v13944_v7 = vld [vmem:[%s17300_s4 + $0x48] sm:$0xff] }
 0x375   : > { %3380 = vmatpush.bf16.msra.mxu2 %v8807_v17  ;;  %3393 = vmatpush.bf16.msrb.mxu0 %v8811_v60  ;;  %v13980_v17 = vld [vmem:[%s17300_s4 + $0x18] sm:$0xff]  ;;  %v11704_v60 = vld [vmem:[%s17300_s4 + $0xf0] sm:$0xff]  ;;  %v11707_v0 = vld [vmem:[%s17300_s4 + $0xe8] sm:$0xff] }
 0x377   : > { %3253 = vmatpush.bf16.msrb.mxu3 %v8719_v10  ;;  %3266 = vmatpush.bf16.msra.mxu1 %v8723_v12  ;;  %v11712_v10 = vld [vmem:[%s17300_s4 + $0x118] sm:$0xff]  ;;  %v14023_v12 = vld [vmem:[%s17300_s4] sm:$0xff] }
 0x379   : > { %3381 = vmatpush.bf16.msra.mxu2 %v8799_v1  ;;  %3394 = vmatpush.bf16.msrb.mxu0 %v8803_v18  ;;  %v8848_v1 = vld [vmem:[#allocation2 + $0x60] sm:$0xf]  ;;  %v11170_v18 = vld [vmem:[#allocation2 + $0x64] sm:$0xf0] }
 0x37a   : > { %v14049_v26 = vor.u32 %v11170_v18, %v8848_v1 }
 0x37b   : > { %3254 = vmatpush.bf16.msrb.mxu3 %v8711_v22  ;;  %3267 = vmatpush.bf16.msra.mxu1 %v8715_v27  ;;  %v14056_v22 = vor.u32 %v11169_v19, %v8850_v20  ;;  %v11171_v27 = vld [vmem:[#allocation2 + $0x74] sm:$0xf]  ;;  %v9012_v19 = vld [vmem:[%s17303_s7 + $0x6e0] sm:$0xf]  ;;  %v11202_v20 = vld [vmem:[%s17303_s7 + $0x6e4] sm:$0xf0] }
 0x37c   : > { %v14073_v33 = vor.u32 %v11171_v27, %v8861_v28  ;;  %v9014_v27 = vld [vmem:[%s17303_s7 + $0x6e8] sm:$0xf0] }
 0x37d   : > { %3382 = vmatpush.bf16.msra.mxu2 %v8791_v52  ;;  %3395 = vmatpush.bf16.msrb.mxu0 %v8795_v36  ;;  %v14082_v52 = vor.u32 %v11172_v35, %v8859_v34  ;;  %v8924_v34 = vld [vmem:[%s17303_s7 + $0x650] sm:$0xf]  ;;  %v11184_v35 = vld [vmem:[%s17303_s7 + $0x654] sm:$0xf0] }
 0x37f   : > { %3255 = vmatpush.bf16.msrb.mxu3 %v8703_v42  ;;  %3268 = vmatpush.bf16.msra.mxu1 %v8707_v43 }
 0x381   : > { %3383 = vmatpush.bf16.msra.mxu2 %v8783_v30  ;;  %3396 = vmatpush.bf16.msrb.mxu0 %v8787_v15 }
 0x382   : > { %3256 = vmatmul.bf16.vlgmr.msrb.gmra.mxu3 %v3150_v16  ;;  %3269 = vmatmul.bf16.vlgmr.msra.gmra.mxu1 %v3150_v16 }
 0x383   : > { %3404 = vmatpush.bf16.msra.mxu3 %v11685_v58  ;;  %3422 = vmatpush.bf16.msrb.mxu1 %v13890_v44 }
 0x384   : > { %3384 = vmatmul.bf16.vlgmr.msra.gmra.mxu2 %v3294_v47  ;;  %3397 = vmatmul.bf16.vlgmr.msrb.gmra.mxu0 %v3294_v47 }
 0x385   : > { %3432 = vmatpush.bf16.msrb.mxu2 %v13896_v45  ;;  %3450 = vmatpush.bf16.msra.mxu0 %v13902_v50 }
 0x387   : > { %3405 = vmatpush.bf16.msra.mxu3 %v11689_v51  ;;  %3423 = vmatpush.bf16.msrb.mxu1 %v13911_v14 }
 0x389   : > { %3433 = vmatpush.bf16.msrb.mxu2 %v13917_v53  ;;  %3451 = vmatpush.bf16.msra.mxu0 %v13923_v54 }
 0x38b   : > { %3406 = vmatpush.bf16.msra.mxu3 %v11693_v56  ;;  %3424 = vmatpush.bf16.msrb.mxu1 %v13932_v57 }
 0x38d   : > { %3434 = vmatpush.bf16.msrb.mxu2 %v13938_v8  ;;  %3452 = vmatpush.bf16.msra.mxu0 %v13944_v7 }
 0x38f   : > { %3407 = vmatpush.bf16.msra.mxu3 %v11697_v3  ;;  %3425 = vmatpush.bf16.msrb.mxu1 %v13953_v6 }
 0x391   : > { %3435 = vmatpush.bf16.msrb.mxu2 %v13959_v49  ;;  %3453 = vmatpush.bf16.msra.mxu0 %v13971_v11 }
 0x392   : > { %8844 = vmatmul.msk.bf16.vlgmr.msrb.gmra.mxu1 %vm912_vm0, %v13241_v46 }
 0x393   : > { %3475 = vmatpush.bf16.msra.mxu1 %v13965_v9  ;;  %3408 = vmatpush.bf16.msra.mxu3 %v11702_v13 }
 0x394   : > { %8845 = vmatmul.msk.bf16.vlgmr.msra.gmra.mxu0 %vm912_vm0, %v13227_v63  ;;  %v14008_v63 = vld [vmem:[%s17300_s4 + $0x8] sm:$0xff] }
 0x395   : > { %3511 = vmatpush.bf16.msrb.mxu0 %v11685_v58  ;;  %3436 = vmatpush.bf16.msrb.mxu2 %v13980_v17 }
 0x397   : > { %3476 = vmatpush.bf16.msra.mxu1 %v11704_v60  ;;  %3409 = vmatpush.bf16.msra.mxu3 %v11705_v61 }
 0x399   : > { %3512 = vmatpush.bf16.msrb.mxu0 %v11689_v51  ;;  %3437 = vmatpush.bf16.msrb.mxu2 %v13996_v62 }
 0x39b   : > { %3477 = vmatpush.bf16.msra.mxu1 %v11707_v0  ;;  %3410 = vmatpush.bf16.msra.mxu3 %v11708_v31 }
 0x39d   : > { %3513 = vmatpush.bf16.msrb.mxu0 %v11693_v56  ;;  %3438 = vmatpush.bf16.msrb.mxu2 %v14008_v63 }
 0x39f   : > { %3478 = vmatpush.bf16.msra.mxu1 %v11710_v32  ;;  %3411 = vmatpush.bf16.msra.mxu3 %v11711_v29 }
 0x3a1   : > { %3514 = vmatpush.bf16.msrb.mxu0 %v11697_v3  ;;  %3439 = vmatpush.bf16.msrb.mxu2 %v14023_v12  ;;  %v8940_v3 = vld [vmem:[%s17303_s7 + $0x670] sm:$0xf] }
 0x3a2   : > { %3412 = vmatmul.bf16.vlgmr.msra.gmra.mxu3 %v13250_v59 }
 0x3a3   : > { %3493 = vmatpush.bf16.msrb.mxu3 %v11712_v10  ;;  %3479 = vmatpush.bf16.msra.mxu1 %v11714_v55 }
 0x3a4   : > { %3440 = vmatmul.bf16.vlgmr.msrb.gmra.mxu2 %v13217_v2  ;;  %v11718_v2 = vld [vmem:[%s17300_s4 + $0xc8] sm:$0xff] }
 0x3a5   : > { %3529 = vmatpush.bf16.msra.mxu2 %v13890_v44  ;;  %3515 = vmatpush.bf16.msrb.mxu0 %v11702_v13  ;;  %v8942_v13 = vld [vmem:[%s17303_s7 + $0x678] sm:$0xf0] }
 0x3a7   : > { %3494 = vmatpush.bf16.msrb.mxu3 %v11715_v4  ;;  %3480 = vmatpush.bf16.msra.mxu1 %v11716_v39 }
 0x3a9   : > { %3530 = vmatpush.bf16.msra.mxu2 %v13911_v14  ;;  %3516 = vmatpush.bf16.msrb.mxu0 %v11705_v61  ;;  %v9020_v61 = vld [vmem:[%s17303_s7 + $0x6f0] sm:$0xf] }
 0x3ab   : > { %3495 = vmatpush.bf16.msrb.mxu3 %v11717_v48  ;;  %3481 = vmatpush.bf16.msra.mxu1 %v11718_v2 }
 0x3ad   : > { %3531 = vmatpush.bf16.msra.mxu2 %v13932_v57  ;;  %3517 = vmatpush.bf16.msrb.mxu0 %v11708_v31 }
 0x3af   : > { %3496 = vmatpush.bf16.msrb.mxu3 %v11719_v24  ;;  %3482 = vmatpush.bf16.msra.mxu1 %v11720_v23 }
 0x3b1   : > { %3532 = vmatpush.bf16.msra.mxu2 %v13953_v6  ;;  %3518 = vmatpush.bf16.msrb.mxu0 %v11711_v29  ;;  %v11188_v6 = vld [vmem:[%s17303_s7 + $0x674] sm:$0xf0] }
 0x3b2   : > { %3483 = vmatmul.bf16.vlgmr.msra.gmra.mxu1 %v14049_v26  ;;  %8854 = vmatmul.msk.bf16.vlgmr.msrb.gmra.mxu3 %vm912_vm0, %v14056_v22 }
 0x3b3   : > { %3539 = vmatpush.bf16.msra.mxu3 %v13896_v45  ;;  %3557 = vmatpush.bf16.msrb.mxu1 %v13902_v50 }
 0x3b4   : > { %3519 = vmatmul.bf16.vlgmr.msrb.gmra.mxu0 %v14049_v26  ;;  %8855 = vmatmul.msk.bf16.vlgmr.msra.gmra.mxu2 %vm912_vm0, %v14056_v22 }
 0x3b5   : > { %3582 = vmatpush.bf16.msrb.mxu2 %v13965_v9  ;;  %3600 = vmatpush.bf16.msra.mxu0 %v11712_v10 }
 0x3b7   : > { %3540 = vmatpush.bf16.msra.mxu3 %v13917_v53  ;;  %3558 = vmatpush.bf16.msrb.mxu1 %v13923_v54 }
 0x3b9   : > { %3583 = vmatpush.bf16.msrb.mxu2 %v11704_v60  ;;  %3601 = vmatpush.bf16.msra.mxu0 %v11715_v4  ;;  %v11186_v4 = vld [vmem:[%s17303_s7 + $0x664] sm:$0xf0] }
 0x3bb   : > { %3541 = vmatpush.bf16.msra.mxu3 %v13938_v8  ;;  %3559 = vmatpush.bf16.msrb.mxu1 %v13944_v7 }
 0x3bd   : > { %3584 = vmatpush.bf16.msrb.mxu2 %v11707_v0  ;;  %3602 = vmatpush.bf16.msra.mxu0 %v11717_v48  ;;  %v11203_v0 = vld [vmem:[%s17303_s7 + $0x6f4] sm:$0xf] }
 0x3bf   : > { %3542 = vmatpush.bf16.msra.mxu3 %v13959_v49  ;;  %3560 = vmatpush.bf16.msrb.mxu1 %v13971_v11  ;;  %v11187_v49 = vld [vmem:[%s17303_s7 + $0x674] sm:$0xf]  ;;  %v8941_v11 = vor.u32 %v11188_v6, %v8940_v3  ;;  %v8910_v6 = vld [vmem:[%s17303_s7 + $0x638] sm:$0xf0] }
 0x3c0   : > { %v8945_v60 = vor.u32 %v11187_v49, %v8942_v13  ;;  %v11195_v13 = vld [vmem:[%s17303_s7 + $0x6b4] sm:$0xf] }
 0x3c1   : > { %3585 = vmatpush.bf16.msrb.mxu2 %v11710_v32  ;;  %3603 = vmatpush.bf16.msra.mxu0 %v11719_v24  ;;  %v9022_v32 = vld [vmem:[%s17303_s7 + $0x6f8] sm:$0xf0]  ;;  %v11201_v24 = vld [vmem:[%s17303_s7 + $0x6e4] sm:$0xf] }
 0x3c2   : > { %8856 = vmatmul.msk.bf16.vlgmr.msrb.gmra.mxu1 %vm912_vm0, %v13241_v46  ;;  %v9017_v28 = vor.u32 %v11201_v24, %v9014_v27  ;;  %v8894_v24 = vld [vmem:[%s17303_s7 + $0x618] sm:$0xf0]  ;;  %v8972_v27 = vld [vmem:[%s17303_s7 + $0x690] sm:$0xf] }
 0x3c3   : > { %3543 = vmatpush.bf16.msra.mxu3 %v13980_v17  ;;  %3722 = vmatpush.bf16.msra.mxu1 %v8941_v11  ;;  %v11196_v11 = vld [vmem:[%s17303_s7 + $0x6b4] sm:$0xf0] }
 0x3c4   : > { %8865 = vmatmul.msk.bf16.vlgmr.msra.gmra.mxu0 %vm912_vm0, %v14073_v33 }
 0x3c5   : > { %3586 = vmatpush.bf16.msrb.mxu2 %v11714_v55  ;;  %v8932_v55 = vld [vmem:[%s17303_s7 + $0x660] sm:$0xf] }
 0x3c6   : > { %v8933_v48 = vor.u32 %v11186_v4, %v8932_v55  ;;  %v11194_v55 = vld [vmem:[%s17303_s7 + $0x6a4] sm:$0xf0]  ;;  %v11193_v4 = vld [vmem:[%s17303_s7 + $0x6a4] sm:$0xf] }
 0x3c7   : > { %3544 = vmatpush.bf16.msra.mxu3 %v13996_v62  ;;  %v11204_v62 = vld [vmem:[%s17303_s7 + $0x6f4] sm:$0xf0] }
 0x3c8   : > { %3723 = vmatpush.bf16.msra.mxu1 %v8933_v48  ;;  %v8982_v48 = vld [vmem:[%s17303_s7 + $0x6a8] sm:$0xf0] }
 0x3c9   : > { %3587 = vmatpush.bf16.msrb.mxu2 %v11716_v39  ;;  %v11185_v39 = vld [vmem:[%s17303_s7 + $0x664] sm:$0xf] }
 0x3cb   : > { %3545 = vmatpush.bf16.msra.mxu3 %v14008_v63  ;;  %v9021_v63 = vor.u32 %v11204_v62, %v9020_v61  ;;  %v8900_v62 = vld [vmem:[%s17303_s7 + $0x620] sm:$0xf] }
 0x3cd   : > { %3588 = vmatpush.bf16.msrb.mxu2 %v11718_v2  ;;  %3850 = vmatpush.bf16.msrb.mxu0 %v9021_v63  ;;  %v8934_v2 = vld [vmem:[%s17303_s7 + $0x668] sm:$0xf0] }
 0x3ce   : > { %v8937_v18 = vor.u32 %v11185_v39, %v8934_v2  ;;  %v8985_v2 = vor.u32 %v11193_v4, %v8982_v48  ;;  %v9086_v48 = vld [vmem:[%s17303_s7 + $0x758] sm:$0xf0] }
 0x3cf   : > { %3546 = vmatpush.bf16.msra.mxu3 %v14023_v12  ;;  %v9025_v12 = vor.u32 %v11203_v0, %v9022_v32  ;;  %v11178_v0 = vld [vmem:[%s17303_s7 + $0x624] sm:$0xf0]  ;;  %v8902_v32 = vld [vmem:[%s17303_s7 + $0x628] sm:$0xf0] }
 0x3d0   : > { %v8901_v63 = vor.u32 %v11178_v0, %v8900_v62  ;;  %v11234_v62 = vld [vmem:[%s17303_s7 + $0x7e4] sm:$0xf0]  ;;  %v11233_v0 = vld [vmem:[%s17303_s7 + $0x7e4] sm:$0xf] }
 0x3d1   : > { %3589 = vmatpush.bf16.msrb.mxu2 %v11720_v23  ;;  %v9013_v23 = vor.u32 %v11202_v20, %v9012_v19  ;;  %v11175_v19 = vld [vmem:[%s17303_s7 + $0x614] sm:$0xf] }
 0x3d2   : > { %3547 = vmatmul.bf16.vlgmr.msra.gmra.mxu3 %v13250_v59 }
 0x3d3   : > { %3735 = vmatpush.bf16.msrb.mxu3 %v8945_v60  ;;  %3851 = vmatpush.bf16.msrb.mxu0 %v9013_v23  ;;  %v8990_v60 = vld [vmem:[%s17303_s7 + $0x6b8] sm:$0xf0]  ;;  %v8897_v23 = vor.u32 %v11175_v19, %v8894_v24  ;;  %v11231_v19 = vld [vmem:[%s17303_s7 + $0x7d4] sm:$0xf] }
 0x3d4   : > { %3590 = vmatmul.bf16.vlgmr.msrb.gmra.mxu2 %v14082_v52  ;;  %v8993_v61 = vor.u32 %v11195_v13, %v8990_v60  ;;  %v9094_v13 = vld [vmem:[%s17303_s7 + $0x768] sm:$0xf0]  ;;  %v9166_v24 = vld [vmem:[%s17303_s7 + $0x7d8] sm:$0xf0] }
 0x3d5   : > { %3863 = vmatpush.bf16.msra.mxu2 %v9025_v12  ;;  %v8980_v12 = vld [vmem:[%s17303_s7 + $0x6a0] sm:$0xf] }
 0x3d6   : > { %v8981_v39 = vor.u32 %v11194_v55, %v8980_v12  ;;  %v11216_v12 = vld [vmem:[%s17303_s7 + $0x754] sm:$0xf0]  ;;  %v11215_v55 = vld [vmem:[%s17303_s7 + $0x754] sm:$0xf] }
 0x3d7   : > { %3736 = vmatpush.bf16.msrb.mxu3 %v8937_v18  ;;  %v11176_v18 = vld [vmem:[%s17303_s7 + $0x614] sm:$0xf0] }
 0x3d9   : > { %3864 = vmatpush.bf16.msra.mxu2 %v9017_v28  ;;  %v11192_v28 = vld [vmem:[%s17303_s7 + $0x694] sm:$0xf0] }
 0x3df   : > { %v2758_v46 = vpop.f32.mrf.mxu1 }
 0x3e0   : > { %v2763_v36 = vadd.f32 %v2758_v46, %v13323_v5  ;;  %v11183_v46 = vld [vmem:[%s17303_s7 + $0x654] sm:$0xf] }
 0x3e1   : > { %v2886_v37 = vpop.f32.mrf.mxu0 }
 0x3e2   : > { %v2891_v38 = vadd.f32 %v2886_v37, %v2763_v36  ;;  %v8925_v37 = vor.u32 %v11184_v35, %v8924_v34  ;;  %v11191_v34 = vld [vmem:[%s17303_s7 + $0x694] sm:$0xf]  ;;  %v8973_v35 = vor.u32 %v11192_v28, %v8972_v27  ;;  %v9076_v27 = vld [vmem:[%s17303_s7 + $0x740] sm:$0xf]  ;;  %v11214_v28 = vld [vmem:[%s17303_s7 + $0x744] sm:$0xf0] }
 0x3e4   : > { %3724 = vmatpush.bf16.msra.mxu1 %v8925_v37  ;;  %v8884_v37 = vld [vmem:[%s17303_s7 + $0x600] sm:$0xf] }
 0x3e5   : > { %v2745_v21 = vpop.f32.mrf.mxu3 }
 0x3e6   : > { %v2762_v40 = vadd.f32 %v2745_v21, %v13279_v25 }
 0x3e7   : > { %v2760_v41 = vpop.f32.mrf.mxu1  ;;  %v2873_v42 = vpop.f32.mrf.mxu2 }
 0x3e8   : > { %v2890_v43 = vadd.f32 %v2873_v42, %v2762_v40  ;;  %v9004_v40 = vld [vmem:[%s17303_s7 + $0x6d0] sm:$0xf]  ;;  %v11200_v41 = vld [vmem:[%s17303_s7 + $0x6d4] sm:$0xf0]  ;;  %v11199_v42 = vld [vmem:[%s17303_s7 + $0x6d4] sm:$0xf] }
 0x3e9   : > { %v2888_v30 = vpop.f32.mrf.mxu0 }
 0x3ea   : > { %v9005_v30 = vor.u32 %v11200_v41, %v9004_v40  ;;  %v8886_v41 = vld [vmem:[%s17303_s7 + $0x608] sm:$0xf0] }
 0x3ec   : > { %3852 = vmatpush.bf16.msrb.mxu0 %v9005_v30 }
 0x3ed   : > { %v2747_v15 = vpop.f32.mrf.mxu3 }
 0x3ee   : > { %v9006_v15 = vld [vmem:[%s17303_s7 + $0x6d8] sm:$0xf0] }
 0x3ef   : > { %v2875_v16 = vpop.f32.mrf.mxu2  ;;  %v3013_v58 = vpop.f32.mrf.mxu1 }
 0x3f0   : > { %v3018_v44 = vadd.f32 %v3013_v58, %v2891_v38  ;;  %v8926_v38 = vld [vmem:[%s17303_s7 + $0x658] sm:$0xf0]  ;;  %v9009_v16 = vor.u32 %v11199_v42, %v9006_v15  ;;  %v8916_v58 = vld [vmem:[%s17303_s7 + $0x640] sm:$0xf]  ;;  %v9100_v42 = vld [vmem:[%s17303_s7 + $0x770] sm:$0xf] }
 0x3f1   : > { %v3140_v45 = vpop.f32.mrf.mxu0  ;;  %v8929_v21 = vor.u32 %v11183_v46, %v8926_v38  ;;  %v8974_v46 = vld [vmem:[%s17303_s7 + $0x698] sm:$0xf0]  ;;  %v11174_v38 = vld [vmem:[%s17303_s7 + $0x604] sm:$0xf0] }
 0x3f2   : > { %v3145_v59 = vadd.f32 %v3140_v45, %v3018_v44  ;;  %v11182_v44 = vld [vmem:[%s17303_s7 + $0x644] sm:$0xf0]  ;;  %v11181_v45 = vld [vmem:[%s17303_s7 + $0x644] sm:$0xf]  ;;  %3865 = vmatpush.bf16.msra.mxu2 %v9009_v16  ;;  %v8885_v40 = vor.u32 %v11174_v38, %v8884_v37  ;;  %v11219_v16 = vld [vmem:[%s17303_s7 + $0x774] sm:$0xf] }
 0x3f3   : > { %3737 = vmatpush.bf16.msrb.mxu3 %v8929_v21  ;;  %v11173_v21 = vld [vmem:[%s17303_s7 + $0x604] sm:$0xf]  ;;  %v9156_v37 = vld [vmem:[%s17303_s7 + $0x7c0] sm:$0xf]  ;;  %v11230_v38 = vld [vmem:[%s17303_s7 + $0x7c4] sm:$0xf0] }
 0x3f4   : > { %v8889_v30 = vor.u32 %v11173_v21, %v8886_v41  ;;  %v11229_v21 = vld [vmem:[%s17303_s7 + $0x7c4] sm:$0xf] }
 0x3f5   : > { %v3000_v47 = vpop.f32.mrf.mxu3 }
 0x3f6   : > { %v3017_v50 = vadd.f32 %v3000_v47, %v2890_v43  ;;  %v8918_v47 = vld [vmem:[%s17303_s7 + $0x648] sm:$0xf0] }
 0x3f7   : > { %v3015_v51 = vpop.f32.mrf.mxu1  ;;  %v3127_v14 = vpop.f32.mrf.mxu2 }
 0x3f8   : > { %v3144_v5 = vadd.f32 %v3127_v14, %v3017_v50  ;;  %v8921_v50 = vor.u32 %v11181_v45, %v8918_v47  ;;  %v8996_v51 = vld [vmem:[%s17303_s7 + $0x6c0] sm:$0xf]  ;;  %v11198_v14 = vld [vmem:[%s17303_s7 + $0x6c4] sm:$0xf0]  ;;  %v11189_v47 = vld [vmem:[%s17303_s7 + $0x684] sm:$0xf] }
 0x3f9   : > { %v3142_v53 = vpop.f32.mrf.mxu0 }
 0x3fa   : > { %v8997_v53 = vor.u32 %v11198_v14, %v8996_v51  ;;  %3738 = vmatpush.bf16.msrb.mxu3 %v8921_v50  ;;  %v8966_v50 = vld [vmem:[%s17303_s7 + $0x688] sm:$0xf0] }
 0x3fb   : > { %v8969_v14 = vor.u32 %v11189_v47, %v8966_v50  ;;  %v9148_v50 = vld [vmem:[%s17303_s7 + $0x7b0] sm:$0xf] }
 0x3fc   : > { %3853 = vmatpush.bf16.msrb.mxu0 %v8997_v53  ;;  %v11236_v53 = vld [vmem:[%s17303_s7 + $0x7f4] sm:$0xf0] }
 0x3fd   : > { %v3002_v54 = vpop.f32.mrf.mxu3 }
 0x3fe   : > { %v8998_v54 = vld [vmem:[%s17303_s7 + $0x6c8] sm:$0xf0] }
 0x3ff   : > { %v3129_v56 = vpop.f32.mrf.mxu2  ;;  %v3270_v57 = vpop.f32.mrf.mxu1 }
 0x400   : > { %v3275_v25 = vadd.f32 %v3270_v57, %v3145_v59  ;;  %v8917_v59 = vor.u32 %v11182_v44, %v8916_v58  ;;  %v8908_v57 = vld [vmem:[%s17303_s7 + $0x630] sm:$0xf]  ;;  %v9102_v58 = vld [vmem:[%s17303_s7 + $0x778] sm:$0xf0]  ;;  %v8964_v44 = vld [vmem:[%s17303_s7 + $0x680] sm:$0xf] }
 0x401   : > { %v3398_v8 = vpop.f32.mrf.mxu0  ;;  %v9105_v45 = vor.u32 %v11219_v16, %v9102_v58  ;;  %v9068_v16 = vld [vmem:[%s17303_s7 + $0x730] sm:$0xf]  ;;  %v11212_v58 = vld [vmem:[%s17303_s7 + $0x734] sm:$0xf0] }
 0x402   : > { %v14088_v7 = vadd.f32 %v3398_v8, %v3275_v25  ;;  %3725 = vmatpush.bf16.msra.mxu1 %v8917_v59  ;;  %v11180_v25 = vld [vmem:[%s17303_s7 + $0x634] sm:$0xf0]  ;;  %v11179_v8 = vld [vmem:[%s17303_s7 + $0x634] sm:$0xf]  ;;  %v11190_v59 = vld [vmem:[%s17303_s7 + $0x684] sm:$0xf0] }
 0x403   : > { %v8909_v3 = vor.u32 %v11180_v25, %v8908_v57  ;;  %v8913_v49 = vor.u32 %v11179_v8, %v8910_v6  ;;  %v8965_v51 = vor.u32 %v11190_v59, %v8964_v44  ;;  %v9182_v57 = vld [vmem:[%s17303_s7 + $0x7f8] sm:$0xf0]  ;;  %v9092_v25 = vld [vmem:[%s17303_s7 + $0x760] sm:$0xf]  ;;  %v11218_v8 = vld [vmem:[%s17303_s7 + $0x764] sm:$0xf0] }
 0x404   : > { %v11211_v44 = vld [vmem:[%s17303_s7 + $0x734] sm:$0xf]  ;;  %v9070_v59 = vld [vmem:[%s17303_s7 + $0x738] sm:$0xf0] }
 0x405   : > { %v3257_v9 = vpop.f32.mrf.mxu3  ;;  %3739 = vmatpush.bf16.msrb.mxu3 %v8913_v49  ;;  %v9073_v47 = vor.u32 %v11211_v44, %v9070_v59 }
 0x406   : > { %v3274_v17 = vadd.f32 %v3257_v9, %v3144_v5  ;;  %v11197_v5 = vld [vmem:[%s17303_s7 + $0x6c4] sm:$0xf]  ;;  %v8988_v9 = vld [vmem:[%s17303_s7 + $0x6b0] sm:$0xf]  ;;  %3726 = vmatpush.bf16.msra.mxu1 %v8909_v3 }
 0x407   : > { %v3385_v31 = vpop.f32.mrf.mxu2  ;;  %v3272_v29 = vpop.f32.mrf.mxu1  ;;  %v9001_v56 = vor.u32 %v11197_v5, %v8998_v54  ;;  %v9180_v5 = vld [vmem:[%s17303_s7 + $0x7f0] sm:$0xf]  ;;  %v11235_v54 = vld [vmem:[%s17303_s7 + $0x7f4] sm:$0xf] }
 0x408   : > { %v14114_v10 = vadd.f32 %v3385_v31, %v3274_v17  ;;  %v8989_v17 = vor.u32 %v11196_v11, %v8988_v9  ;;  %v11177_v31 = vld [vmem:[%s17303_s7 + $0x624] sm:$0xf]  ;;  %v9185_v49 = vor.u32 %v11235_v54, %v9182_v57  ;;  %v9093_v9 = vor.u32 %v11218_v8, %v9092_v25  ;;  %v9150_v54 = vld [vmem:[%s17303_s7 + $0x7b8] sm:$0xf0]  ;;  %v9060_v57 = vld [vmem:[%s17303_s7 + $0x720] sm:$0xf] }
 0x409   : > { %v3400_v1 = vpop.f32.mrf.mxu0  ;;  %3866 = vmatpush.bf16.msra.mxu2 %v9001_v56  ;;  %v8905_v29 = vor.u32 %v11177_v31, %v8902_v32  ;;  %v9181_v56 = vor.u32 %v11236_v53, %v9180_v5  ;;  %v11217_v11 = vld [vmem:[%s17303_s7 + $0x764] sm:$0xf]  ;;  %v9174_v31 = vld [vmem:[%s17303_s7 + $0x7e8] sm:$0xf0]  ;;  %v11210_v25 = vld [vmem:[%s17303_s7 + $0x724] sm:$0xf0] }
 0x40a   : > { %3854 = vmatpush.bf16.msrb.mxu0 %v8989_v17  ;;  %3727 = vmatpush.bf16.msra.mxu1 %v8901_v63  ;;  %v8892_v1 = vld [vmem:[%s17303_s7 + $0x610] sm:$0xf]  ;;  %v9172_v17 = vld [vmem:[%s17303_s7 + $0x7e0] sm:$0xf]  ;;  %v9177_v32 = vor.u32 %v11233_v0, %v9174_v31  ;;  %v11209_v8 = vld [vmem:[%s17303_s7 + $0x724] sm:$0xf] }
 0x40b   : > { %3740 = vmatpush.bf16.msrb.mxu3 %v8905_v29  ;;  %v8893_v20 = vor.u32 %v11176_v18, %v8892_v1  ;;  %v9173_v63 = vor.u32 %v11234_v62, %v9172_v17  ;;  %v9084_v29 = vld [vmem:[%s17303_s7 + $0x750] sm:$0xf]  ;;  %v11232_v18 = vld [vmem:[%s17303_s7 + $0x7d4] sm:$0xf0]  ;;  %v11226_v17 = vld [vmem:[%s17303_s7 + $0x7a4] sm:$0xf0] }
 0x40c   : > { %v9164_v1 = vld [vmem:[%s17303_s7 + $0x7d0] sm:$0xf]  ;;  %v9142_v0 = vld [vmem:[%s17303_s7 + $0x7a8] sm:$0xf0] }
 0x40d   : > { %v3259_v36 = vpop.f32.mrf.mxu3  ;;  %3867 = vmatpush.bf16.msra.mxu2 %v8993_v61  ;;  %v9097_v61 = vor.u32 %v11217_v11, %v9094_v13  ;;  %v9140_v13 = vld [vmem:[%s17303_s7 + $0x7a0] sm:$0xf] }
 0x40e   : > { %3855 = vmatpush.bf16.msrb.mxu0 %v8981_v39  ;;  %3728 = vmatpush.bf16.msra.mxu1 %v8893_v20  ;;  %v8977_v36 = vor.u32 %v11191_v34, %v8974_v46  ;;  %v9085_v39 = vor.u32 %v11216_v12, %v9084_v29  ;;  %v9165_v20 = vor.u32 %v11232_v18, %v9164_v1  ;;  %v11213_v34 = vld [vmem:[%s17303_s7 + $0x744] sm:$0xf]  ;;  %v9078_v46 = vld [vmem:[%s17303_s7 + $0x748] sm:$0xf0]  ;;  %v11207_v29 = vld [vmem:[%s17303_s7 + $0x714] sm:$0xf] }
 0x40f   : > { %v3387_v43 = vpop.f32.mrf.mxu2  ;;  %3741 = vmatpush.bf16.msrb.mxu3 %v8897_v23  ;;  %v14327_v60 = vpop.f32.mrf.mxu1  ;;  %v9169_v23 = vor.u32 %v11231_v19, %v9166_v24  ;;  %v9141_v62 = vor.u32 %v11226_v17, %v9140_v13  ;;  %v9132_v18 = vld [vmem:[%s17303_s7 + $0x790] sm:$0xf]  ;;  %v11224_v19 = vld [vmem:[%s17303_s7 + $0x794] sm:$0xf0] }
 0x410   : > { %v11220_v43 = vld [vmem:[%s17303_s7 + $0x774] sm:$0xf0]  ;;  %v9133_v24 = vor.u32 %v11224_v19, %v9132_v18  ;;  %v11251_v18 = vld [vmem:[%s17303_s7 + $0x874] sm:$0xf] }
 0x411   : > { %3868 = vmatpush.bf16.msra.mxu2 %v8985_v2  ;;  %v9101_v15 = vor.u32 %v11220_v43, %v9100_v42  ;;  %v14316_v6 = vpop.f32.mrf.mxu0  ;;  %v9089_v2 = vor.u32 %v11215_v55, %v9086_v48  ;;  %v9157_v42 = vor.u32 %v11230_v38, %v9156_v37  ;;  %v9158_v43 = vld [vmem:[%s17303_s7 + $0x7c8] sm:$0xf0]  ;;  %v9054_v48 = vld [vmem:[%s17303_s7 + $0x718] sm:$0xf0] }
 0x412   : > { %3856 = vmatpush.bf16.msrb.mxu0 %v8973_v35  ;;  %3729 = vmatpush.bf16.msra.mxu1 %v8885_v40  ;;  %v9077_v35 = vor.u32 %v11214_v28, %v9076_v27  ;;  %v9057_v1 = vor.u32 %v11207_v29, %v9054_v48  ;;  %v9134_v27 = vld [vmem:[%s17303_s7 + $0x798] sm:$0xf0]  ;;  %v9046_v37 = vld [vmem:[%s17303_s7 + $0x708] sm:$0xf0]  ;;  %v11252_v48 = vld [vmem:[%s17303_s7 + $0x874] sm:$0xf0] }
 0x413   : > { %3742 = vmatpush.bf16.msrb.mxu3 %v8889_v30 }
 0x415   : > { %3869 = vmatpush.bf16.msra.mxu2 %v8977_v36  ;;  %v9081_v36 = vor.u32 %v11213_v34, %v9078_v46  ;;  %v9044_v34 = vld [vmem:[%s17303_s7 + $0x700] sm:$0xf]  ;;  %v11205_v46 = vld [vmem:[%s17303_s7 + $0x704] sm:$0xf] }
 0x416   : > { %3977 = vmatpush.bf16.msrb.mxu1 %v9101_v15  ;;  %3857 = vmatpush.bf16.msrb.mxu0 %v8965_v51  ;;  %v9161_v15 = vor.u32 %v11229_v21, %v9158_v43  ;;  %v11228_v51 = vld [vmem:[%s17303_s7 + $0x7b4] sm:$0xf0]  ;;  %v9049_v38 = vor.u32 %v11205_v46, %v9046_v37  ;;  %v9124_v21 = vld [vmem:[%s17303_s7 + $0x780] sm:$0xf]  ;;  %v11221_v43 = vld [vmem:[%s17303_s7 + $0x784] sm:$0xf] }
 0x417   : > { %3990 = vmatpush.bf16.msra.mxu3 %v9105_v45  ;;  %v14392_v30 = vpop.f32.mrf.mxu1  ;;  %v9069_v45 = vor.u32 %v11212_v58, %v9068_v16  ;;  %v9149_v53 = vor.u32 %v11228_v51, %v9148_v50  ;;  %v9126_v58 = vld [vmem:[%s17303_s7 + $0x788] sm:$0xf0] }
 0x418   : > { %v9129_v44 = vor.u32 %v11221_v43, %v9126_v58  ;;  %v9254_v43 = vld [vmem:[%s17303_s7 + $0x868] sm:$0xf0] }
 0x419   : > { %3870 = vmatpush.bf16.msra.mxu2 %v8969_v14  ;;  %v14387_v41 = vpop.f32.mrf.mxu0  ;;  %v11227_v14 = vld [vmem:[%s17303_s7 + $0x7b4] sm:$0xf] }
 0x41a   : > { %4104 = vmatpush.bf16.msra.mxu0 %v9181_v56  ;;  %3978 = vmatpush.bf16.msrb.mxu1 %v9093_v9  ;;  %v9153_v56 = vor.u32 %v11227_v14, %v9150_v54  ;;  %v9062_v9 = vld [vmem:[%s17303_s7 + $0x728] sm:$0xf0] }
 0x41b   : > { %3991 = vmatpush.bf16.msra.mxu3 %v9097_v61  ;;  %v9065_v11 = vor.u32 %v11209_v8, %v9062_v9  ;;  %v11225_v61 = vld [vmem:[%s17303_s7 + $0x7a4] sm:$0xf] }
 0x41c   : > { %v9145_v31 = vor.u32 %v11225_v61, %v9142_v0 }
 0x41d   : > { %4117 = vmatpush.bf16.msrb.mxu2 %v9185_v49  ;;  %v9061_v49 = vor.u32 %v11210_v25, %v9060_v57 }
 0x41e   : > { %4105 = vmatpush.bf16.msra.mxu0 %v9173_v63  ;;  %3979 = vmatpush.bf16.msrb.mxu1 %v9085_v39  ;;  %v9052_v63 = vld [vmem:[%s17303_s7 + $0x710] sm:$0xf] }
 0x41f   : > { %3992 = vmatpush.bf16.msra.mxu3 %v9089_v2 }
 0x421   : > { %4118 = vmatpush.bf16.msrb.mxu2 %v9177_v32  ;;  %v11208_v32 = vld [vmem:[%s17303_s7 + $0x714] sm:$0xf0] }
 0x422   : > { %4106 = vmatpush.bf16.msra.mxu0 %v9165_v20  ;;  %3980 = vmatpush.bf16.msrb.mxu1 %v9077_v35  ;;  %v9053_v39 = vor.u32 %v11208_v32, %v9052_v63  ;;  %v11206_v35 = vld [vmem:[%s17303_s7 + $0x704] sm:$0xf0] }
 0x423   : > { %3993 = vmatpush.bf16.msra.mxu3 %v9081_v36  ;;  %v9045_v36 = vor.u32 %v11206_v35, %v9044_v34  ;;  %v9342_v34 = vld [vmem:[%s17303_s7 + $0x8f8] sm:$0xf0] }
 0x425   : > { %v14314_v3 = vpop.f32.mrf.mxu3  ;;  %4119 = vmatpush.bf16.msrb.mxu2 %v9169_v23  ;;  %v11223_v23 = vld [vmem:[%s17303_s7 + $0x794] sm:$0xf] }
 0x426   : > { %4107 = vmatpush.bf16.msra.mxu0 %v9157_v42  ;;  %3981 = vmatpush.bf16.msrb.mxu1 %v9069_v45  ;;  %v9137_v28 = vor.u32 %v11223_v23, %v9134_v27  ;;  %v11222_v42 = vld [vmem:[%s17303_s7 + $0x784] sm:$0xf0]  ;;  %v11268_v27 = vld [vmem:[%s17303_s7 + $0x8f4] sm:$0xf0] }
 0x427   : > { %v14347_v4 = vpop.f32.mrf.mxu2  ;;  %3994 = vmatpush.bf16.msra.mxu3 %v9073_v47  ;;  %v9125_v16 = vor.u32 %v11222_v42, %v9124_v21  ;;  %v11250_v21 = vld [vmem:[%s17303_s7 + $0x864] sm:$0xf0]  ;;  %v11249_v42 = vld [vmem:[%s17303_s7 + $0x864] sm:$0xf] }
 0x429   : > { %4120 = vmatpush.bf16.msrb.mxu2 %v9161_v15  ;;  %v3428_v15 = vadd.f32 %v14327_v60, %v14314_v3 }
 0x42a   : > { %4108 = vmatpush.bf16.msra.mxu0 %v9149_v53  ;;  %3982 = vmatpush.bf16.msrb.mxu1 %v9061_v49  ;;  %v14499_v49 = vld [vmem:[%s17301_s5] ss:$0 sm:$0xff] }
 0x42b   : > { %3995 = vmatpush.bf16.msra.mxu3 %v9065_v11  ;;  %v3442_v47 = vadd.f32 %v14347_v4, %v3428_v15 }
 0x42d   : > { %v14385_v40 = vpop.f32.mrf.mxu3  ;;  %4121 = vmatpush.bf16.msrb.mxu2 %v9153_v56  ;;  %v3456_v53 = vadd.f32 %v14316_v6, %v3442_v47  ;;  %v14505_v6 = vld [vmem:[%s17302_s6] ss:$0 sm:$0xff] }
 0x42e   : > { %4109 = vmatpush.bf16.msra.mxu0 %v9141_v62  ;;  %3983 = vmatpush.bf16.msrb.mxu1 %v9053_v39  ;;  %v3430_v29 = vadd.f32 %v14392_v30, %v14385_v40  ;;  %v9260_v39 = vld [vmem:[%s17303_s7 + $0x870] sm:$0xf]  ;;  %v9262_v40 = vld [vmem:[%s17303_s7 + $0x878] sm:$0xf0] }
 0x42f   : > { %v14415_v5 = vpop.f32.mrf.mxu2  ;;  %v3484_v2 = vpop.f32.mrf.mxu1  ;;  %3996 = vmatpush.bf16.msra.mxu3 %v9057_v1  ;;  %v9340_v30 = vld [vmem:[%s17303_s7 + $0x8f0] sm:$0xf]  ;;  %v9265_v37 = vor.u32 %v11251_v18, %v9262_v40 }
 0x430   : > { %v3444_v19 = vadd.f32 %v14415_v5, %v3430_v29  ;;  %v9252_v5 = vld [vmem:[%s17303_s7 + $0x860] sm:$0xf] }
 0x431   : > { %v3520_v55 = vpop.f32.mrf.mxu0  ;;  %4122 = vmatpush.bf16.msrb.mxu2 %v9145_v31 }
 0x432   : > { %4110 = vmatpush.bf16.msra.mxu0 %v9133_v24  ;;  %3984 = vmatpush.bf16.msrb.mxu1 %v9045_v36  ;;  %v9261_v36 = vor.u32 %v11252_v48, %v9260_v39  ;;  %v3458_v47 = vadd.f32 %v14387_v41, %v3444_v19  ;;  %v9244_v41 = vld [vmem:[%s17303_s7 + $0x850] sm:$0xf]  ;;  %v9316_v39 = vld [vmem:[%s17303_s7 + $0x8c0] sm:$0xf]  ;;  %v11262_v48 = vld [vmem:[%s17303_s7 + $0x8c4] sm:$0xf0] }
 0x433   : > { %3997 = vmatpush.bf16.msra.mxu3 %v9049_v38  ;;  %v11244_v19 = vld [vmem:[%s17303_s7 + $0x834] sm:$0xf0] }
 0x435   : > { %v3498_v12 = vpop.f32.mrf.mxu3  ;;  %4123 = vmatpush.bf16.msrb.mxu2 %v9137_v28  ;;  %v11267_v28 = vld [vmem:[%s17303_s7 + $0x8f4] sm:$0xf] }
 0x436   : > { %4111 = vmatpush.bf16.msra.mxu0 %v9125_v16  ;;  %v3499_v14 = vadd.f32 %v3498_v12, %v3484_v2  ;;  %v9341_v16 = vor.u32 %v11268_v27, %v9340_v30  ;;  %v9345_v58 = vor.u32 %v11267_v28, %v9342_v34  ;;  %v9228_v30 = vld [vmem:[%s17303_s7 + $0x830] sm:$0xf]  ;;  %v9317_v27 = vor.u32 %v11262_v48, %v9316_v39  ;;  %v11253_v39 = vld [vmem:[%s17303_s7 + $0x884] sm:$0xf]  ;;  %v9286_v48 = vld [vmem:[%s17303_s7 + $0x888] sm:$0xf0] }
 0x437   : > { %v3534_v20 = vpop.f32.mrf.mxu2  ;;  %v3486_v50 = vpop.f32.mrf.mxu1  ;;  %v9308_v34 = vld [vmem:[%s17303_s7 + $0x8b0] sm:$0xf] }
 0x438   : > { %v3503_v54 = vadd.f32 %v3499_v14, %v3456_v53  ;;  %v3535_v3 = vadd.f32 %v3534_v20, %v3520_v55  ;;  %v9253_v53 = vor.u32 %v11250_v21, %v9252_v5  ;;  %v9220_v21 = vld [vmem:[%s17303_s7 + $0x820] sm:$0xf] }
 0x439   : > { %v3522_v59 = vpop.f32.mrf.mxu0  ;;  %4124 = vmatpush.bf16.msrb.mxu2 %v9129_v44  ;;  %v9332_v44 = vld [vmem:[%s17303_s7 + $0x8e0] sm:$0xf] }
 0x43a   : > { %v3505_v9 = vmul.f32 %v14499_v49, %v3503_v54  ;;  %v9257_v54 = vor.u32 %v11249_v42, %v9254_v43  ;;  %v11242_v42 = vld [vmem:[%s17303_s7 + $0x824] sm:$0xf0] }
 0x43c   : > { %v3507_v17 = vadd.f32 %v14505_v6, %v3505_v9  ;;  %v9324_v9 = vld [vmem:[%s17303_s7 + $0x8d0] sm:$0xf] }
 0x43d   : > { %v3500_v45 = vpop.f32.mrf.mxu3 }
 0x43e   : > { %v3509_v0 = vmax.f32 %v3507_v17, 0.0  ;;  %v3501_v15 = vadd.f32 %v3500_v45, %v3486_v50  ;;  %v11265_v45 = vld [vmem:[%s17303_s7 + $0x8e4] sm:$0xf]  ;;  %v9334_v50 = vld [vmem:[%s17303_s7 + $0x8e8] sm:$0xf0] }
 0x43f   : > { %v3536_v51 = vpop.f32.mrf.mxu2  ;;  %v3562_v56 = vpop.f32.mrf.mxu1 }
 0x440   : > { %v3537_v32 = vadd.f32 %v3536_v51, %v3522_v59  ;;  %v11266_v59 = vld [vmem:[%s17303_s7 + $0x8e4] sm:$0xf0] }
 0x441   : > { %v3605_v25 = vpop.f32.mrf.mxu0 }
 0x447   : > { %v3564_v20 = vpop.f32.mrf.mxu1 }
 0x449   : > { %v3607_v23 = vpop.f32.mrf.mxu0 }
 0x455   : > { %v3548_v60 = vpop.f32.mrf.mxu3 }
 0x456   : > { %v3549_v57 = vadd.f32 %v3548_v60, %v3535_v3  ;;  %v11248_v3 = vld [vmem:[%s17303_s7 + $0x854] sm:$0xf0]  ;;  %v11247_v60 = vld [vmem:[%s17303_s7 + $0x854] sm:$0xf] }
 0x457   : > { %v3591_v8 = vpop.f32.mrf.mxu2 }
 0x458   : > { %v3563_v4 = vadd.f32 %v3562_v56, %v3549_v57  ;;  %v3606_v11 = vadd.f32 %v3605_v25, %v3591_v8  ;;  %v9246_v56 = vld [vmem:[%s17303_s7 + $0x858] sm:$0xf0]  ;;  %v3504_v57 = vadd.f32 %v3501_v15, %v3458_v47  ;;  %v9333_v25 = vor.u32 %v11266_v59, %v9332_v44  ;;  %v11241_v15 = vld [vmem:[%s17303_s7 + $0x824] sm:$0xf]  ;;  %v9300_v47 = vld [vmem:[%s17303_s7 + $0x8a0] sm:$0xf] }
 0x459   : > { %v9337_v8 = vor.u32 %v11265_v45, %v9334_v50  ;;  %v11257_v50 = vld [vmem:[%s17303_s7 + $0x8a4] sm:$0xf] }
 0x45a   : > { %v3610_v13 = vadd.f32 %v3606_v11, %v3563_v4  ;;  %v11264_v4 = vld [vmem:[%s17303_s7 + $0x8d4] sm:$0xf0]  ;;  %v11263_v11 = vld [vmem:[%s17303_s7 + $0x8d4] sm:$0xf]  ;;  %v3506_v29 = vmul.f32 %v14499_v49, %v3504_v57 }
 0x45c   : > { %v3612_v61 = vmul.f32 %v14499_v49, %v3610_v13  ;;  %v9326_v13 = vld [vmem:[%s17303_s7 + $0x8d8] sm:$0xf0] }
 0x45d   : > { %v3550_v63 = vpop.f32.mrf.mxu3 }
 0x45e   : > { %v3614_v62 = vadd.f32 %v14505_v6, %v3612_v61  ;;  %v3551_v55 = vadd.f32 %v3550_v63, %v3537_v32  ;;  %v9245_v61 = vor.u32 %v11248_v3, %v9244_v41  ;;  %v11245_v63 = vld [vmem:[%s17303_s7 + $0x844] sm:$0xf]  ;;  %v9238_v32 = vld [vmem:[%s17303_s7 + $0x848] sm:$0xf0]  ;;  %v9212_v3 = vld [vmem:[%s17303_s7 + $0x810] sm:$0xf] }
 0x45f   : > { %v3593_v1 = vpop.f32.mrf.mxu2  ;;  %v9241_v40 = vor.u32 %v11245_v63, %v9238_v32  ;;  %v9206_v63 = vld [vmem:[%s17303_s7 + $0x808] sm:$0xf0] }
 0x460   : > { %v3616_v31 = vmax.f32 %v3614_v62, 0.0  ;;  %v3565_v35 = vadd.f32 %v3564_v20, %v3551_v55  ;;  %v3608_v46 = vadd.f32 %v3607_v23, %v3593_v1  ;;  %v9249_v62 = vor.u32 %v11247_v60, %v9246_v56  ;;  %v11243_v20 = vld [vmem:[%s17303_s7 + $0x834] sm:$0xf]  ;;  %v9214_v56 = vld [vmem:[%s17303_s7 + $0x818] sm:$0xf0] }
 0x461   : > { %v9329_v55 = vor.u32 %v11263_v11, %v9326_v13  ;;  %v3508_v23 = vadd.f32 %v14505_v6, %v3506_v29  ;;  %v11239_v60 = vld [vmem:[%s17303_s7 + $0x814] sm:$0xf]  ;;  %v9294_v11 = vld [vmem:[%s17303_s7 + $0x898] sm:$0xf0] }
 0x462   : > { %v3618_v12 = vmax.f32 %v3509_v0, %v3616_v31  ;;  %v3611_v14 = vadd.f32 %v3608_v46, %v3565_v35  ;;  %v9236_v0 = vld [vmem:[%s17303_s7 + $0x840] sm:$0xf]  ;;  %v11246_v31 = vld [vmem:[%s17303_s7 + $0x844] sm:$0xf0]  ;;  %v11260_v35 = vld [vmem:[%s17303_s7 + $0x8b4] sm:$0xf0] }
 0x463   : > { %v9237_v18 = vor.u32 %v11246_v31, %v9236_v0  ;;  %v11259_v46 = vld [vmem:[%s17303_s7 + $0x8b4] sm:$0xf]  ;;  %v9309_v44 = vor.u32 %v11260_v35, %v9308_v34  ;;  %v11238_v0 = vld [vmem:[%s17303_s7 + $0x804] sm:$0xf0]  ;;  %v11237_v31 = vld [vmem:[%s17303_s7 + $0x804] sm:$0xf] }
 0x464   : > { %v3621_v2 = vrot.slane %v3618_v12, 1  ;;  %v3613_v17 = vmul.f32 %v14499_v49, %v3611_v14  ;;  %v9318_v49 = vld [vmem:[%s17303_s7 + $0x8c8] sm:$0xf0]  ;;  %v14744_v34 = vld [vmem:[%s17300_s4 + $0xb0] sm:$0xff] }
 0x465   : > { %v9302_v14 = vld [vmem:[%s17303_s7 + $0x8a8] sm:$0xf0]  ;;  %v14750_v35 = vld [vmem:[%s17300_s4 + $0x30] sm:$0xff] }
 0x466   : > { %v3623_v24 = vmax.f32 %v3618_v12, %v3621_v2  ;;  %v9325_v12 = vor.u32 %v11264_v4, %v9324_v9  ;;  %v11261_v2 = vld [vmem:[%s17303_s7 + $0x8c4] sm:$0xf]  ;;  %v3615_v1 = vadd.f32 %v14505_v6, %v3613_v17  ;;  %v9310_v6 = vld [vmem:[%s17303_s7 + $0x8b8] sm:$0xf0]  ;;  %v11256_v9 = vld [vmem:[%s17303_s7 + $0x894] sm:$0xf0] }
 0x467   : > { %v9321_v28 = vor.u32 %v11261_v2, %v9318_v49  ;;  %v9313_v59 = vor.u32 %v11259_v46, %v9310_v6  ;;  %v11255_v4 = vld [vmem:[%s17303_s7 + $0x894] sm:$0xf]  ;;  %v11731_v6 = vld [vmem:[%s17300_s4 + $0x88] sm:$0xff] }
 0x468   : > { %v14540_v38 = vpack.c.bf16 %v3623_v24, %v3623_v24  ;;  %v9230_v24 = vld [vmem:[%s17303_s7 + $0x838] sm:$0xf0]  ;;  %v9297_v29 = vor.u32 %v11255_v4, %v9294_v11  ;;  %v14756_v46 = vld [vmem:[%s17300_s4 + $0x50] sm:$0xff]  ;;  %v11269_v4 = vld [vmem:[#allocation2 + $0x84] sm:$0xf] }
 0x469   : > { %v9233_v5 = vor.u32 %v11243_v20, %v9230_v24  ;;  %v14723_v20 = vld [vmem:[%s17300_s4 + $0xb8] sm:$0xff]  ;;  %v9352_v11 = vld [vmem:[#allocation2 + $0x88] sm:$0xf0] }
 0x46a   : > { %3730 = vmatmul.bf16.vlgmr.msra.gmra.mxu1 %v14540_v38  ;;  %3743 = vmatmul.bf16.vlgmr.msrb.gmra.mxu3 %v14540_v38  ;;  %v3768_v51 = vrot.slane %v14540_v38, 1  ;;  %v3895_v43 = vrot.slane %v14540_v38, 2  ;;  %v4022_v45 = vrot.slane %v14540_v38, 3  ;;  %v11240_v38 = vld [vmem:[%s17303_s7 + $0x814] sm:$0xf0] }
 0x46b   : > { %4234 = vmatpush.bf16.msra.mxu1 %v9261_v36  ;;  %4247 = vmatpush.bf16.msrb.mxu3 %v9265_v37  ;;  %v3617_v36 = vmax.f32 %v3615_v1, 0.0  ;;  %v9229_v37 = vor.u32 %v11244_v19, %v9228_v30  ;;  %v9213_v17 = vor.u32 %v11240_v38, %v9212_v3  ;;  %v9209_v1 = vor.u32 %v11237_v31, %v9206_v63  ;;  %v11723_v19 = vld [vmem:[%s17300_s4 + $0x98] sm:$0xff]  ;;  %v11752_v3 = vld [vmem:[%s17300_s4] sm:$0xff]  ;;  %v11753_v38 = vld [vmem:[%s17300_s4 + $0xd0] sm:$0xff] }
 0x46c   : > { %3858 = vmatmul.bf16.vlgmr.msrb.gmra.mxu0 %v3768_v51  ;;  %3871 = vmatmul.bf16.vlgmr.msra.gmra.mxu2 %v3768_v51  ;;  %v11258_v51 = vld [vmem:[%s17303_s7 + $0x8a4] sm:$0xf0]  ;;  %v14729_v24 = vld [vmem:[%s17300_s4 + $0x38] sm:$0xff]  ;;  %v9361_v31 = vld [vmem:[#allocation2 + $0x90] sm:$0xf] }
 0x46d   : > { %4362 = vmatpush.bf16.msrb.mxu0 %v9341_v16  ;;  %4375 = vmatpush.bf16.msra.mxu2 %v9345_v58  ;;  %v9222_v16 = vld [vmem:[%s17303_s7 + $0x828] sm:$0xf0]  ;;  %v3510_v58 = vmax.f32 %v3508_v23, 0.0  ;;  %v9301_v57 = vor.u32 %v11258_v51, %v9300_v47  ;;  %v14735_v23 = vld [vmem:[%s17300_s4 + $0x58] sm:$0xff]  ;;  %v11743_v47 = vld [vmem:[%s17300_s4 + $0x70] sm:$0xff] }
 0x46e   : > { %v9225_v41 = vor.u32 %v11241_v15, %v9222_v16  ;;  %v14798_v15 = vld [vmem:[%s17300_s4 + $0x20] sm:$0xff]  ;;  %v11744_v51 = vld [vmem:[%s17300_s4 + $0xe8] sm:$0xff]  ;;  %v11272_v63 = vld [vmem:[#allocation2 + $0x94] sm:$0xf0] }
 0x46f   : > { %4235 = vmatpush.bf16.msra.mxu1 %v9253_v53  ;;  %4248 = vmatpush.bf16.msrb.mxu3 %v9257_v54  ;;  %v3619_v53 = vmax.f32 %v3510_v58, %v3617_v36  ;;  %v9221_v54 = vor.u32 %v11242_v42, %v9220_v21  ;;  %v14765_v36 = vld [vmem:[%s17300_s4 + $0xa8] sm:$0xff]  ;;  %v11735_v21 = vld [vmem:[%s17300_s4 + $0x80] sm:$0xff]  ;;  %v11740_v58 = vld [vmem:[%s17300_s4 + $0x78] sm:$0xff] }
 0x470   : > { %v14786_v42 = vld [vmem:[%s17300_s4 + $0xa0] sm:$0xff] }
 0x471   : > { %4363 = vmatpush.bf16.msrb.mxu0 %v9333_v25  ;;  %4376 = vmatpush.bf16.msra.mxu2 %v9337_v8  ;;  %v9305_v25 = vor.u32 %v11257_v50, %v9302_v14  ;;  %v9292_v8 = vld [vmem:[%s17303_s7 + $0x890] sm:$0xf]  ;;  %v4133_v13 = vrot.slane %v3619_v53, 1  ;;  %v14804_v16 = vld [vmem:[%s17300_s4 + $0x40] sm:$0xff]  ;;  %v11746_v50 = vld [vmem:[%s17300_s4 + $0x68] sm:$0xff] }
 0x472   : > { %v9293_v32 = vor.u32 %v11256_v9, %v9292_v8  ;;  %v11747_v14 = vld [vmem:[%s17300_s4 + $0xe0] sm:$0xff] }
 0x473   : > { %4236 = vmatpush.bf16.msra.mxu1 %v9245_v61  ;;  %4249 = vmatpush.bf16.msrb.mxu3 %v9249_v62  ;;  %v9217_v61 = vor.u32 %v11239_v60, %v9214_v56  ;;  %v9204_v62 = vld [vmem:[%s17303_s7 + $0x800] sm:$0xf]  ;;  %v4135_v2 = vmax.f32 %v3619_v53, %v4133_v13  ;;  %v11754_v60 = vld [vmem:[%s17300_s4 + $0x110] sm:$0xff]  ;;  %v11755_v56 = vld [vmem:[%s17300_s4 + $0xc8] sm:$0xff] }
 0x474   : > { %v9205_v49 = vor.u32 %v11238_v0, %v9204_v62  ;;  %v11749_v53 = vld [vmem:[%s17300_s4 + $0x60] sm:$0xff]  ;;  %v9363_v62 = vld [vmem:[#allocation2 + $0x98] sm:$0xf0] }
 0x475   : > { %4364 = vmatpush.bf16.msrb.mxu0 %v9325_v12  ;;  %4377 = vmatpush.bf16.msra.mxu2 %v9329_v55  ;;  %v9284_v12 = vld [vmem:[%s17303_s7 + $0x880] sm:$0xf]  ;;  %v11254_v55 = vld [vmem:[%s17303_s7 + $0x884] sm:$0xf0]  ;;  %v4136_v30 = vpack.c.bf16 %v4135_v2, %v4135_v2 }
 0x476   : > { %v11757_v9 = vld [vmem:[%s17300_s4 + $0xc0] sm:$0xff] }
 0x477   : > { %4237 = vmatpush.bf16.msra.mxu1 %v9237_v18  ;;  %4250 = vmatpush.bf16.msrb.mxu3 %v9241_v40  ;;  %v9285_v18 = vor.u32 %v11254_v55, %v9284_v12  ;;  %v9289_v40 = vor.u32 %v11253_v39, %v9286_v48  ;;  %v11758_v13 = vld [vmem:[%s17300_s4 + $0x100] sm:$0xff] }
 0x479   : > { %4365 = vmatpush.bf16.msrb.mxu0 %v9317_v27  ;;  %4378 = vmatpush.bf16.msra.mxu2 %v9321_v28  ;;  %v4280_v27 = vrot.slane %v4136_v30, 1  ;;  %v11727_v28 = vld [vmem:[%s17300_s4 + $0x90] sm:$0xff] }
 0x47a   : > { %3985 = vmatmul.bf16.vlgmr.msrb.gmra.mxu1 %v3895_v43  ;;  %3998 = vmatmul.bf16.vlgmr.msra.gmra.mxu3 %v3895_v43  ;;  %v14792_v43 = vld [vmem:[%s17300_s4 + $0xf8] sm:$0xff] }
 0x47b   : > { %4238 = vmatpush.bf16.msra.mxu1 %v9229_v37  ;;  %4251 = vmatpush.bf16.msrb.mxu3 %v9233_v5  ;;  %v14771_v37 = vld [vmem:[%s17300_s4 + $0x28] sm:$0xff] }
 0x47c   : > { %4112 = vmatmul.bf16.vlgmr.msra.gmra.mxu0 %v4022_v45  ;;  %4125 = vmatmul.bf16.vlgmr.msrb.gmra.mxu2 %v4022_v45  ;;  %v14777_v5 = vld [vmem:[%s17300_s4 + $0x48] sm:$0xff]  ;;  %v14835_v45 = vld [vmem:[%s17300_s4 + $0x10] sm:$0xff] }
 0x47d   : > { %4366 = vmatpush.bf16.msrb.mxu0 %v9309_v44  ;;  %4379 = vmatpush.bf16.msra.mxu2 %v9313_v59  ;;  %v14813_v44 = vld [vmem:[%s17300_s4 + $0xf0] sm:$0xff]  ;;  %v14819_v59 = vld [vmem:[%s17300_s4 + $0x18] sm:$0xff] }
 0x47f   : > { %4239 = vmatpush.bf16.msra.mxu1 %v9221_v54  ;;  %4252 = vmatpush.bf16.msrb.mxu3 %v9225_v41  ;;  %v11750_v54 = vld [vmem:[%s17300_s4 + $0xd8] sm:$0xff] }
 0x480   : > { %v11751_v41 = vld [vmem:[%s17300_s4 + $0x118] sm:$0xff] }
 0x481   : > { %4367 = vmatpush.bf16.msrb.mxu0 %v9301_v57  ;;  %4380 = vmatpush.bf16.msra.mxu2 %v9305_v25  ;;  %v9350_v57 = vld [vmem:[#allocation2 + $0x80] sm:$0xf]  ;;  %v11756_v25 = vld [vmem:[%s17300_s4 + $0x108] sm:$0xff] }
 0x483   : > { %4240 = vmatpush.bf16.msra.mxu1 %v9213_v17  ;;  %4253 = vmatpush.bf16.msrb.mxu3 %v9217_v61  ;;  %v14891_v17 = vor.u32 %v11269_v4, %v9352_v11  ;;  %v11271_v61 = vld [vmem:[#allocation2 + $0x94] sm:$0xf]  ;;  %v9426_v11 = vld [vmem:[%s17303_s7 + $0x950] sm:$0xf] }
 0x484   : > { %v14906_v0 = vor.u32 %v11271_v61, %v9363_v62 }
 0x485   : > { %4368 = vmatpush.bf16.msrb.mxu0 %v9293_v32  ;;  %4381 = vmatpush.bf16.msra.mxu2 %v9297_v29  ;;  %v14915_v32 = vor.u32 %v11272_v63, %v9361_v31  ;;  %v11283_v63 = vld [vmem:[%s17303_s7 + $0x954] sm:$0xf] }
 0x487   : > { %4241 = vmatpush.bf16.msra.mxu1 %v9205_v49  ;;  %4254 = vmatpush.bf16.msrb.mxu3 %v9209_v1 }
 0x489   : > { %4369 = vmatpush.bf16.msrb.mxu0 %v9285_v18  ;;  %4382 = vmatpush.bf16.msra.mxu2 %v9289_v40 }
 0x48a   : > { %4242 = vmatmul.bf16.vlgmr.msra.gmra.mxu1 %v4136_v30  ;;  %4255 = vmatmul.bf16.vlgmr.msrb.gmra.mxu3 %v4136_v30 }
 0x48b   : > { %4390 = vmatpush.bf16.msrb.mxu1 %v11723_v19  ;;  %4408 = vmatpush.bf16.msra.mxu3 %v14723_v20 }
 0x48c   : > { %4370 = vmatmul.bf16.vlgmr.msrb.gmra.mxu0 %v4280_v27  ;;  %4383 = vmatmul.bf16.vlgmr.msra.gmra.mxu2 %v4280_v27 }
 0x48d   : > { %4418 = vmatpush.bf16.msra.mxu0 %v14729_v24  ;;  %4436 = vmatpush.bf16.msrb.mxu2 %v14735_v23 }
 0x48f   : > { %4391 = vmatpush.bf16.msrb.mxu1 %v11727_v28  ;;  %4409 = vmatpush.bf16.msra.mxu3 %v14744_v34 }
 0x491   : > { %4419 = vmatpush.bf16.msra.mxu0 %v14750_v35  ;;  %4437 = vmatpush.bf16.msrb.mxu2 %v14756_v46 }
 0x493   : > { %4392 = vmatpush.bf16.msrb.mxu1 %v11731_v6  ;;  %4410 = vmatpush.bf16.msra.mxu3 %v14765_v36 }
 0x495   : > { %4420 = vmatpush.bf16.msra.mxu0 %v14771_v37  ;;  %4438 = vmatpush.bf16.msrb.mxu2 %v14777_v5 }
 0x497   : > { %4393 = vmatpush.bf16.msrb.mxu1 %v11735_v21  ;;  %4411 = vmatpush.bf16.msra.mxu3 %v14786_v42 }
 0x499   : > { %4421 = vmatpush.bf16.msra.mxu0 %v14798_v15  ;;  %4439 = vmatpush.bf16.msrb.mxu2 %v14804_v16 }
 0x49a   : > { %9346 = vmatmul.msk.bf16.vlgmr.msra.gmra.mxu3 %vm912_vm0, %v14073_v33 }
 0x49b   : > { %4461 = vmatpush.bf16.msrb.mxu3 %v14792_v43  ;;  %4394 = vmatpush.bf16.msrb.mxu1 %v11740_v58 }
 0x49c   : > { %9347 = vmatmul.msk.bf16.vlgmr.msrb.gmra.mxu2 %vm912_vm0, %v14056_v22  ;;  %v14847_v22 = vld [vmem:[%s17300_s4 + $0x8] sm:$0xff] }
 0x49d   : > { %4497 = vmatpush.bf16.msra.mxu2 %v11723_v19  ;;  %4422 = vmatpush.bf16.msra.mxu0 %v14819_v59 }
 0x49f   : > { %4462 = vmatpush.bf16.msrb.mxu3 %v14813_v44  ;;  %4395 = vmatpush.bf16.msrb.mxu1 %v11743_v47 }
 0x4a1   : > { %4498 = vmatpush.bf16.msra.mxu2 %v11727_v28  ;;  %4423 = vmatpush.bf16.msra.mxu0 %v14835_v45 }
 0x4a3   : > { %4463 = vmatpush.bf16.msrb.mxu3 %v11744_v51  ;;  %4396 = vmatpush.bf16.msrb.mxu1 %v11746_v50 }
 0x4a5   : > { %4499 = vmatpush.bf16.msra.mxu2 %v11731_v6  ;;  %4424 = vmatpush.bf16.msra.mxu0 %v14847_v22 }
 0x4a7   : > { %4464 = vmatpush.bf16.msrb.mxu3 %v11747_v14  ;;  %4397 = vmatpush.bf16.msrb.mxu1 %v11749_v53 }
 0x4a9   : > { %4500 = vmatpush.bf16.msra.mxu2 %v11735_v21  ;;  %4425 = vmatpush.bf16.msra.mxu0 %v11752_v3  ;;  %v11287_v21 = vld [vmem:[%s17303_s7 + $0x974] sm:$0xf] }
 0x4aa   : > { %4398 = vmatmul.bf16.vlgmr.msrb.gmra.mxu1 %v14082_v52 }
 0x4ab   : > { %4465 = vmatpush.bf16.msrb.mxu3 %v11750_v54  ;;  %4479 = vmatpush.bf16.msra.mxu1 %v11751_v41 }
 0x4ac   : > { %4426 = vmatmul.bf16.vlgmr.msra.gmra.mxu0 %v14049_v26  ;;  %v11270_v26 = vld [vmem:[#allocation2 + $0x84] sm:$0xf0] }
 0x4ad   : > { %4501 = vmatpush.bf16.msra.mxu2 %v11740_v58  ;;  %4515 = vmatpush.bf16.msrb.mxu0 %v14723_v20  ;;  %v14879_v8 = vor.u32 %v11270_v26, %v9350_v57  ;;  %v11304_v58 = vld [vmem:[%s17303_s7 + $0x9f4] sm:$0xf0]  ;;  %v11301_v26 = vld [vmem:[%s17303_s7 + $0x9e4] sm:$0xf] }
 0x4af   : > { %4466 = vmatpush.bf16.msrb.mxu3 %v11753_v38  ;;  %4480 = vmatpush.bf16.msra.mxu1 %v11754_v60 }
 0x4b1   : > { %4502 = vmatpush.bf16.msra.mxu2 %v11743_v47  ;;  %4516 = vmatpush.bf16.msrb.mxu0 %v14744_v34  ;;  %v11303_v47 = vld [vmem:[%s17303_s7 + $0x9f4] sm:$0xf] }
 0x4b3   : > { %4467 = vmatpush.bf16.msrb.mxu3 %v11755_v56  ;;  %4481 = vmatpush.bf16.msra.mxu1 %v11756_v25 }
 0x4b5   : > { %4503 = vmatpush.bf16.msra.mxu2 %v11746_v50  ;;  %4517 = vmatpush.bf16.msrb.mxu0 %v14765_v36  ;;  %v11288_v36 = vld [vmem:[%s17303_s7 + $0x974] sm:$0xf0] }
 0x4b7   : > { %4468 = vmatpush.bf16.msrb.mxu3 %v11757_v9  ;;  %4482 = vmatpush.bf16.msra.mxu1 %v11758_v13 }
 0x4b9   : > { %4504 = vmatpush.bf16.msra.mxu2 %v11749_v53  ;;  %4518 = vmatpush.bf16.msrb.mxu0 %v14786_v42  ;;  %v9444_v42 = vld [vmem:[%s17303_s7 + $0x978] sm:$0xf0] }
 0x4ba   : > { %4469 = vmatmul.bf16.vlgmr.msrb.gmra.mxu3 %v14879_v8  ;;  %9356 = vmatmul.msk.bf16.vlgmr.msra.gmra.mxu1 %vm912_vm0, %v14891_v17 }
 0x4bb   : > { %4543 = vmatpush.bf16.msra.mxu3 %v14735_v23  ;;  %4525 = vmatpush.bf16.msrb.mxu1 %v14729_v24 }
 0x4bc   : > { %4505 = vmatmul.bf16.vlgmr.msra.gmra.mxu2 %v14879_v8  ;;  %9357 = vmatmul.msk.bf16.vlgmr.msrb.gmra.mxu0 %vm912_vm0, %v14891_v17 }
 0x4bd   : > { %4568 = vmatpush.bf16.msra.mxu0 %v14792_v43  ;;  %4586 = vmatpush.bf16.msrb.mxu2 %v11751_v41  ;;  %v9436_v41 = vld [vmem:[%s17303_s7 + $0x968] sm:$0xf0] }
 0x4bf   : > { %4544 = vmatpush.bf16.msra.mxu3 %v14756_v46  ;;  %4526 = vmatpush.bf16.msrb.mxu1 %v14750_v35 }
 0x4c1   : > { %4569 = vmatpush.bf16.msra.mxu0 %v14813_v44  ;;  %4587 = vmatpush.bf16.msrb.mxu2 %v11754_v60  ;;  %v11302_v60 = vld [vmem:[%s17303_s7 + $0x9e4] sm:$0xf0] }
 0x4c3   : > { %4545 = vmatpush.bf16.msra.mxu3 %v14777_v5  ;;  %4527 = vmatpush.bf16.msrb.mxu1 %v14771_v37 }
 0x4c5   : > { %4570 = vmatpush.bf16.msra.mxu0 %v11744_v51  ;;  %4588 = vmatpush.bf16.msrb.mxu2 %v11756_v25  ;;  %v9524_v51 = vld [vmem:[%s17303_s7 + $0x9f8] sm:$0xf0]  ;;  %v9516_v25 = vld [vmem:[%s17303_s7 + $0x9e8] sm:$0xf0] }
 0x4c6   : > { %v9527_v50 = vor.u32 %v11303_v47, %v9524_v51  ;;  %v9519_v4 = vor.u32 %v11301_v26, %v9516_v25  ;;  %v9402_v47 = vld [vmem:[%s17303_s7 + $0x920] sm:$0xf]  ;;  %v11278_v51 = vld [vmem:[%s17303_s7 + $0x924] sm:$0xf0]  ;;  %v11276_v26 = vld [vmem:[%s17303_s7 + $0x914] sm:$0xf0] }
 0x4c7   : > { %4546 = vmatpush.bf16.msra.mxu3 %v14804_v16  ;;  %4528 = vmatpush.bf16.msrb.mxu1 %v14798_v15  ;;  %v9447_v15 = vor.u32 %v11287_v21, %v9444_v42  ;;  %v9522_v16 = vld [vmem:[%s17303_s7 + $0x9f0] sm:$0xf]  ;;  %v9412_v21 = vld [vmem:[%s17303_s7 + $0x938] sm:$0xf0] }
 0x4c9   : > { %4571 = vmatpush.bf16.msra.mxu0 %v11747_v14  ;;  %4589 = vmatpush.bf16.msrb.mxu2 %v11758_v13  ;;  %v9434_v14 = vld [vmem:[%s17303_s7 + $0x960] sm:$0xf]  ;;  %v11284_v13 = vld [vmem:[%s17303_s7 + $0x954] sm:$0xf0] }
 0x4ca   : > { %9358 = vmatmul.msk.bf16.vlgmr.msra.gmra.mxu3 %vm912_vm0, %v14073_v33  ;;  %v9427_v31 = vor.u32 %v11284_v13, %v9426_v11  ;;  %v9474_v13 = vld [vmem:[%s17303_s7 + $0x990] sm:$0xf] }
 0x4cb   : > { %4529 = vmatpush.bf16.msrb.mxu1 %v14819_v59  ;;  %v9523_v59 = vor.u32 %v11304_v58, %v9522_v16  ;;  %v11295_v58 = vld [vmem:[%s17303_s7 + $0x9b4] sm:$0xf] }
 0x4cc   : > { %9367 = vmatmul.msk.bf16.vlgmr.msrb.gmra.mxu2 %vm912_vm0, %v14906_v0 }
 0x4cd   : > { %4572 = vmatpush.bf16.msra.mxu0 %v11750_v54  ;;  %4836 = vmatpush.bf16.msra.mxu2 %v9523_v59  ;;  %v11285_v54 = vld [vmem:[%s17303_s7 + $0x964] sm:$0xf] }
 0x4cf   : > { %4530 = vmatpush.bf16.msrb.mxu1 %v14835_v45 }
 0x4d1   : > { %4573 = vmatpush.bf16.msra.mxu0 %v11753_v38  ;;  %v9514_v38 = vld [vmem:[%s17303_s7 + $0x9e0] sm:$0xf] }
 0x4d2   : > { %v9515_v57 = vor.u32 %v11302_v60, %v9514_v38  ;;  %v11293_v38 = vld [vmem:[%s17303_s7 + $0x9a4] sm:$0xf]  ;;  %v9484_v60 = vld [vmem:[%s17303_s7 + $0x9a8] sm:$0xf0] }
 0x4d3   : > { %4531 = vmatpush.bf16.msrb.mxu1 %v14847_v22  ;;  %v11286_v22 = vld [vmem:[%s17303_s7 + $0x964] sm:$0xf0] }
 0x4d4   : > { %v9435_v53 = vor.u32 %v11286_v22, %v9434_v14  ;;  %4837 = vmatpush.bf16.msra.mxu2 %v9515_v57  ;;  %v11277_v14 = vld [vmem:[%s17303_s7 + $0x924] sm:$0xf]  ;;  %v9404_v22 = vld [vmem:[%s17303_s7 + $0x928] sm:$0xf0]  ;;  %v9394_v57 = vld [vmem:[%s17303_s7 + $0x910] sm:$0xf] }
 0x4d5   : > { %4574 = vmatpush.bf16.msra.mxu0 %v11755_v56  ;;  %v9395_v25 = vor.u32 %v11276_v26, %v9394_v57  ;;  %v9666_v57 = vld [vmem:[%s17303_s7 + $0xad0] sm:$0xf]  ;;  %v11332_v26 = vld [vmem:[%s17303_s7 + $0xad4] sm:$0xf0] }
 0x4d7   : > { %4532 = vmatpush.bf16.msrb.mxu1 %v11752_v3  ;;  %v9439_v3 = vor.u32 %v11285_v54, %v9436_v41  ;;  %v9482_v54 = vld [vmem:[%s17303_s7 + $0x9a0] sm:$0xf]  ;;  %v11294_v41 = vld [vmem:[%s17303_s7 + $0x9a4] sm:$0xf0] }
 0x4d9   : > { %4575 = vmatpush.bf16.msra.mxu0 %v11757_v9 }
 0x4da   : > { %4533 = vmatmul.bf16.vlgmr.msrb.gmra.mxu1 %v14082_v52 }
 0x4db   : > { %4721 = vmatpush.bf16.msra.mxu1 %v9447_v15  ;;  %v11296_v15 = vld [vmem:[%s17303_s7 + $0x9b4] sm:$0xf0] }
 0x4dc   : > { %4576 = vmatmul.bf16.vlgmr.msra.gmra.mxu0 %v14915_v32 }
 0x4dd   : > { %4849 = vmatpush.bf16.msrb.mxu0 %v9527_v50  ;;  %v9403_v50 = vor.u32 %v11278_v51, %v9402_v47  ;;  %v11333_v47 = vld [vmem:[%s17303_s7 + $0xae4] sm:$0xf] }
 0x4df   : > { %4722 = vmatpush.bf16.msra.mxu1 %v9439_v3  ;;  %v9483_v3 = vor.u32 %v11294_v41, %v9482_v54  ;;  %v11316_v54 = vld [vmem:[%s17303_s7 + $0xa54] sm:$0xf0] }
 0x4e1   : > { %4850 = vmatpush.bf16.msrb.mxu0 %v9519_v4  ;;  %v9396_v4 = vld [vmem:[%s17303_s7 + $0x918] sm:$0xf0] }
 0x4e7   : > { %v3731_v33 = vpop.f32.mrf.mxu1 }
 0x4e8   : > { %v3748_v29 = vadd.f32 %v3731_v33, %v14114_v10  ;;  %v9428_v33 = vld [vmem:[%s17303_s7 + $0x958] sm:$0xf0] }
 0x4e9   : > { %v3859_v12 = vpop.f32.mrf.mxu0 }
 0x4ea   : > { %v3876_v55 = vadd.f32 %v3859_v12, %v3748_v29  ;;  %v9431_v12 = vor.u32 %v11283_v63, %v9428_v33  ;;  %v9476_v63 = vld [vmem:[%s17303_s7 + $0x998] sm:$0xf0] }
 0x4ec   : > { %4723 = vmatpush.bf16.msra.mxu1 %v9431_v12  ;;  %v9386_v12 = vld [vmem:[%s17303_s7 + $0x900] sm:$0xf] }
 0x4ed   : > { %v3744_v39 = vpop.f32.mrf.mxu3 }
 0x4ee   : > { %v3749_v48 = vadd.f32 %v3744_v39, %v14088_v7  ;;  %v9442_v7 = vld [vmem:[%s17303_s7 + $0x970] sm:$0xf]  ;;  %v11300_v39 = vld [vmem:[%s17303_s7 + $0x9d4] sm:$0xf0] }
 0x4ef   : > { %v3733_v2 = vpop.f32.mrf.mxu1  ;;  %v3872_v49 = vpop.f32.mrf.mxu2  ;;  %v9443_v5 = vor.u32 %v11288_v36, %v9442_v7  ;;  %v11280_v7 = vld [vmem:[%s17303_s7 + $0x934] sm:$0xf0] }
 0x4f0   : > { %v3877_v1 = vadd.f32 %v3872_v49, %v3749_v48  ;;  %v11299_v48 = vld [vmem:[%s17303_s7 + $0x9d4] sm:$0xf] }
 0x4f1   : > { %v3861_v18 = vpop.f32.mrf.mxu0  ;;  %4708 = vmatpush.bf16.msrb.mxu3 %v9443_v5  ;;  %v11279_v5 = vld [vmem:[%s17303_s7 + $0x934] sm:$0xf] }
 0x4f2   : > { %v9418_v18 = vld [vmem:[%s17303_s7 + $0x940] sm:$0xf]  ;;  %v9415_v42 = vor.u32 %v11279_v5, %v9412_v21  ;;  %v11318_v21 = vld [vmem:[%s17303_s7 + $0xa64] sm:$0xf0] }
 0x4f5   : > { %v3746_v40 = vpop.f32.mrf.mxu3  ;;  %4709 = vmatpush.bf16.msrb.mxu3 %v9435_v53  ;;  %v9407_v53 = vor.u32 %v11277_v14, %v9404_v22  ;;  %v9676_v14 = vld [vmem:[%s17303_s7 + $0xae8] sm:$0xf0] }
 0x4f6   : > { %v11282_v40 = vld [vmem:[%s17303_s7 + $0x944] sm:$0xf0]  ;;  %v9679_v22 = vor.u32 %v11333_v47, %v9676_v14  ;;  %v9644_v47 = vld [vmem:[%s17303_s7 + $0xaa8] sm:$0xf0] }
 0x4f7   : > { %v3874_v30 = vpop.f32.mrf.mxu2  ;;  %v3986_v19 = vpop.f32.mrf.mxu1 }
 0x4f8   : > { %v4003_v20 = vadd.f32 %v3986_v19, %v3876_v55  ;;  %v9506_v55 = vld [vmem:[%s17303_s7 + $0x9d0] sm:$0xf]  ;;  %v9419_v19 = vor.u32 %v11282_v40, %v9418_v18  ;;  %v11320_v18 = vld [vmem:[%s17303_s7 + $0xa74] sm:$0xf0]  ;;  %v9466_v40 = vld [vmem:[%s17303_s7 + $0x980] sm:$0xf] }
 0x4f9   : > { %v4113_v24 = vpop.f32.mrf.mxu0  ;;  %4710 = vmatpush.bf16.msrb.mxu3 %v9427_v31  ;;  %v9507_v49 = vor.u32 %v11300_v39, %v9506_v55  ;;  %v11291_v31 = vld [vmem:[%s17303_s7 + $0x994] sm:$0xf]  ;;  %v11274_v55 = vld [vmem:[%s17303_s7 + $0x904] sm:$0xf0] }
 0x4fa   : > { %v4130_v52 = vadd.f32 %v4113_v24, %v4003_v20  ;;  %v11281_v20 = vld [vmem:[%s17303_s7 + $0x944] sm:$0xf]  ;;  %v9420_v24 = vld [vmem:[%s17303_s7 + $0x948] sm:$0xf0]  ;;  %v9479_v33 = vor.u32 %v11291_v31, %v9476_v63  ;;  %v9387_v39 = vor.u32 %v11274_v55, %v9386_v12  ;;  %v9658_v12 = vld [vmem:[%s17303_s7 + $0xac0] sm:$0xf] }
 0x4fb   : > { %4838 = vmatpush.bf16.msra.mxu2 %v9507_v49  ;;  %v9602_v49 = vld [vmem:[%s17303_s7 + $0xa70] sm:$0xf]  ;;  %v11313_v31 = vld [vmem:[%s17303_s7 + $0xa44] sm:$0xf]  ;;  %v9580_v63 = vld [vmem:[%s17303_s7 + $0xa48] sm:$0xf0] }
 0x4fc   : > { %v11330_v55 = vld [vmem:[%s17303_s7 + $0xac4] sm:$0xf0] }
 0x4fd   : > { %v3999_v23 = vpop.f32.mrf.mxu3  ;;  %4711 = vmatpush.bf16.msrb.mxu3 %v9419_v19  ;;  %v9603_v19 = vor.u32 %v11320_v18, %v9602_v49  ;;  %v9660_v49 = vld [vmem:[%s17303_s7 + $0xac8] sm:$0xf0] }
 0x4fe   : > { %v4004_v27 = vadd.f32 %v3999_v23, %v3877_v1  ;;  %v9508_v1 = vld [vmem:[%s17303_s7 + $0x9d8] sm:$0xf0]  ;;  %v9498_v23 = vld [vmem:[%s17303_s7 + $0x9c0] sm:$0xf] }
 0x4ff   : > { %v3988_v28 = vpop.f32.mrf.mxu1  ;;  %v4126_v34 = vpop.f32.mrf.mxu2  ;;  %v9511_v30 = vor.u32 %v11299_v48, %v9508_v1  ;;  %v11273_v48 = vld [vmem:[%s17303_s7 + $0x904] sm:$0xf] }
 0x500   : > { %v4131_v10 = vadd.f32 %v4126_v34, %v4004_v27  ;;  %v11298_v27 = vld [vmem:[%s17303_s7 + $0x9c4] sm:$0xf0] }
 0x501   : > { %v4115_v35 = vpop.f32.mrf.mxu0  ;;  %4851 = vmatpush.bf16.msrb.mxu0 %v9511_v30  ;;  %v9499_v34 = vor.u32 %v11298_v27, %v9498_v23  ;;  %v11290_v30 = vld [vmem:[%s17303_s7 + $0x984] sm:$0xf0]  ;;  %v11289_v23 = vld [vmem:[%s17303_s7 + $0x984] sm:$0xf] }
 0x502   : > { %v9500_v35 = vld [vmem:[%s17303_s7 + $0x9c8] sm:$0xf0] }
 0x503   : > { %4839 = vmatpush.bf16.msra.mxu2 %v9499_v34  ;;  %v9682_v34 = vld [vmem:[%s17303_s7 + $0xaf0] sm:$0xf] }
 0x505   : > { %v4001_v46 = vpop.f32.mrf.mxu3 }
 0x507   : > { %v4128_v6 = vpop.f32.mrf.mxu2  ;;  %v4243_v37 = vpop.f32.mrf.mxu1 }
 0x508   : > { %v4260_v43 = vadd.f32 %v4243_v37, %v4130_v52  ;;  %v9423_v52 = vor.u32 %v11281_v20, %v9420_v24  ;;  %v9410_v6 = vld [vmem:[%s17303_s7 + $0x930] sm:$0xf]  ;;  %v9467_v20 = vor.u32 %v11290_v30, %v9466_v40  ;;  %v11319_v24 = vld [vmem:[%s17303_s7 + $0xa74] sm:$0xf]  ;;  %v11312_v30 = vld [vmem:[%s17303_s7 + $0xa34] sm:$0xf0] }
 0x509   : > { %v4371_v44 = vpop.f32.mrf.mxu0  ;;  %v9411_v37 = vor.u32 %v11280_v7, %v9410_v6  ;;  %v11335_v6 = vld [vmem:[%s17303_s7 + $0xaf4] sm:$0xf]  ;;  %v9684_v7 = vld [vmem:[%s17303_s7 + $0xaf8] sm:$0xf0]  ;;  %v9570_v40 = vld [vmem:[%s17303_s7 + $0xa30] sm:$0xf] }
 0x50a   : > { %v14945_v45 = vadd.f32 %v4371_v44, %v4260_v43  ;;  %4724 = vmatpush.bf16.msra.mxu1 %v9423_v52  ;;  %v9490_v43 = vld [vmem:[%s17303_s7 + $0x9b0] sm:$0xf]  ;;  %v9492_v44 = vld [vmem:[%s17303_s7 + $0x9b8] sm:$0xf0]  ;;  %v9687_v5 = vor.u32 %v11335_v6, %v9684_v7  ;;  %v9562_v7 = vld [vmem:[%s17303_s7 + $0xa20] sm:$0xf] }
 0x50b   : > { %4712 = vmatpush.bf16.msrb.mxu3 %v9411_v37  ;;  %v9491_v16 = vor.u32 %v11296_v15, %v9490_v43  ;;  %v9495_v59 = vor.u32 %v11295_v58, %v9492_v44  ;;  %v9604_v52 = vld [vmem:[%s17303_s7 + $0xa78] sm:$0xf0]  ;;  %v9596_v43 = vld [vmem:[%s17303_s7 + $0xa68] sm:$0xf0]  ;;  %v9674_v44 = vld [vmem:[%s17303_s7 + $0xae0] sm:$0xf] }
 0x50c   : > { %v9607_v27 = vor.u32 %v11319_v24, %v9604_v52  ;;  %v11311_v24 = vld [vmem:[%s17303_s7 + $0xa34] sm:$0xf]  ;;  %v9572_v52 = vld [vmem:[%s17303_s7 + $0xa38] sm:$0xf0] }
 0x50d   : > { %v4256_v56 = vpop.f32.mrf.mxu3  ;;  %4840 = vmatpush.bf16.msra.mxu2 %v9491_v16 }
 0x50e   : > { %v4261_v9 = vadd.f32 %v4256_v56, %v4131_v10  ;;  %v11297_v10 = vld [vmem:[%s17303_s7 + $0x9c4] sm:$0xf]  ;;  %4725 = vmatpush.bf16.msra.mxu1 %v9415_v42  ;;  %v9487_v56 = vor.u32 %v11293_v38, %v9484_v60  ;;  %v11315_v38 = vld [vmem:[%s17303_s7 + $0xa54] sm:$0xf]  ;;  %v9588_v60 = vld [vmem:[%s17303_s7 + $0xa58] sm:$0xf0] }
 0x50f   : > { %v4245_v61 = vpop.f32.mrf.mxu1  ;;  %v4384_v62 = vpop.f32.mrf.mxu2  ;;  %v9503_v46 = vor.u32 %v11297_v10, %v9500_v35  ;;  %4713 = vmatpush.bf16.msrb.mxu3 %v9403_v50  ;;  %v11336_v10 = vld [vmem:[%s17303_s7 + $0xaf4] sm:$0xf0]  ;;  %v11317_v42 = vld [vmem:[%s17303_s7 + $0xa64] sm:$0xf] }
 0x510   : > { %v14983_v29 = vadd.f32 %v4384_v62, %v4261_v9  ;;  %v11275_v9 = vld [vmem:[%s17303_s7 + $0x914] sm:$0xf]  ;;  %v11292_v61 = vld [vmem:[%s17303_s7 + $0x994] sm:$0xf0]  ;;  %v9599_v58 = vor.u32 %v11317_v42, %v9596_v43  ;;  %v9564_v42 = vld [vmem:[%s17303_s7 + $0xa28] sm:$0xf0] }
 0x511   : > { %v4373_v2 = vpop.f32.mrf.mxu0  ;;  %4852 = vmatpush.bf16.msrb.mxu0 %v9503_v46  ;;  %4841 = vmatpush.bf16.msra.mxu2 %v9483_v3  ;;  %v9399_v11 = vor.u32 %v11275_v9, %v9396_v4  ;;  %v9475_v62 = vor.u32 %v11292_v61, %v9474_v13  ;;  %v9683_v46 = vor.u32 %v11336_v10, %v9682_v34  ;;  %v11331_v9 = vld [vmem:[%s17303_s7 + $0xad4] sm:$0xf]  ;;  %v9668_v4 = vld [vmem:[%s17303_s7 + $0xad8] sm:$0xf0]  ;;  %v9578_v13 = vld [vmem:[%s17303_s7 + $0xa40] sm:$0xf] }
 0x512   : > { %4726 = vmatpush.bf16.msra.mxu1 %v9407_v53  ;;  %v9388_v2 = vld [vmem:[%s17303_s7 + $0x908] sm:$0xf0]  ;;  %v9586_v53 = vld [vmem:[%s17303_s7 + $0xa50] sm:$0xf]  ;;  %v11314_v61 = vld [vmem:[%s17303_s7 + $0xa44] sm:$0xf0] }
 0x513   : > { %4714 = vmatpush.bf16.msrb.mxu3 %v9395_v25  ;;  %v9391_v1 = vor.u32 %v11273_v48, %v9388_v2  ;;  %v9587_v3 = vor.u32 %v11316_v54, %v9586_v53  ;;  %v9667_v25 = vor.u32 %v11332_v26, %v9666_v57  ;;  %v9659_v48 = vor.u32 %v11330_v55, %v9658_v12  ;;  %v11329_v2 = vld [vmem:[%s17303_s7 + $0xac4] sm:$0xf]  ;;  %v11308_v53 = vld [vmem:[%s17303_s7 + $0xa14] sm:$0xf0]  ;;  %v9634_v26 = vld [vmem:[%s17303_s7 + $0xa90] sm:$0xf] }
 0x514   : > { %v9663_v18 = vor.u32 %v11329_v2, %v9660_v49  ;;  %v9548_v12 = vld [vmem:[%s17303_s7 + $0xa08] sm:$0xf0]  ;;  %v11322_v2 = vld [vmem:[%s17303_s7 + $0xa84] sm:$0xf0] }
 0x515   : > { %v4258_v28 = vpop.f32.mrf.mxu3  ;;  %4853 = vmatpush.bf16.msrb.mxu0 %v9495_v59  ;;  %4842 = vmatpush.bf16.msra.mxu2 %v9475_v62  ;;  %v11334_v59 = vld [vmem:[%s17303_s7 + $0xae4] sm:$0xf0]  ;;  %v9579_v62 = vor.u32 %v11314_v61, %v9578_v13  ;;  %v9636_v13 = vld [vmem:[%s17303_s7 + $0xa98] sm:$0xf0] }
 0x516   : > { %4727 = vmatpush.bf16.msra.mxu1 %v9399_v11  ;;  %v9468_v28 = vld [vmem:[%s17303_s7 + $0x988] sm:$0xf0]  ;;  %v9675_v50 = vor.u32 %v11334_v59, %v9674_v44  ;;  %v9671_v11 = vor.u32 %v11331_v9, %v9668_v4  ;;  %v11325_v59 = vld [vmem:[%s17303_s7 + $0xaa4] sm:$0xf] }
 0x517   : > { %v4386_v36 = vpop.f32.mrf.mxu2  ;;  %4715 = vmatpush.bf16.msrb.mxu3 %v9387_v39  ;;  %v9471_v35 = vor.u32 %v11289_v23, %v9468_v28  ;;  %v9575_v23 = vor.u32 %v11311_v24, %v9572_v52  ;;  %v11328_v28 = vld [vmem:[%s17303_s7 + $0xab4] sm:$0xf0]  ;;  %v9647_v14 = vor.u32 %v11325_v59, %v9644_v47 }
 0x518   : > { %v9594_v36 = vld [vmem:[%s17303_s7 + $0xa60] sm:$0xf] }
 0x519   : > { %4854 = vmatpush.bf16.msrb.mxu0 %v9487_v56  ;;  %4843 = vmatpush.bf16.msra.mxu2 %v9467_v20  ;;  %v9595_v16 = vor.u32 %v11318_v21, %v9594_v36  ;;  %v9591_v56 = vor.u32 %v11315_v38, %v9588_v60  ;;  %v9571_v20 = vor.u32 %v11312_v30, %v9570_v40  ;;  %v11310_v36 = vld [vmem:[%s17303_s7 + $0xa24] sm:$0xf0]  ;;  %v11309_v21 = vld [vmem:[%s17303_s7 + $0xa24] sm:$0xf]  ;;  %v11307_v60 = vld [vmem:[%s17303_s7 + $0xa14] sm:$0xf] }
 0x51a   : > { %4728 = vmatpush.bf16.msra.mxu1 %v9391_v1  ;;  %v9567_v43 = vor.u32 %v11309_v21, %v9564_v42  ;;  %v11321_v40 = vld [vmem:[%s17303_s7 + $0xa84] sm:$0xf]  ;;  %v9628_v30 = vld [vmem:[%s17303_s7 + $0xa88] sm:$0xf0]  ;;  %v15332_v21 = vld [vmem:[%s17301_s5] ss:$0 sm:$0xff] }
 0x51b   : > { %4963 = vmatpush.bf16.msra.mxu3 %v9603_v19 }
 0x51d   : > { %4855 = vmatpush.bf16.msrb.mxu0 %v9479_v33  ;;  %v15155_v15 = vpop.f32.mrf.mxu3  ;;  %5090 = vmatpush.bf16.msrb.mxu2 %v9683_v46  ;;  %v9583_v33 = vor.u32 %v11313_v31, %v9580_v63  ;;  %v9652_v46 = vld [vmem:[%s17303_s7 + $0xab8] sm:$0xf0]  ;;  %v11306_v31 = vld [vmem:[%s17303_s7 + $0xa04] sm:$0xf0] }
 0x51e   : > { %4976 = vmatpush.bf16.msrb.mxu1 %v9607_v27  ;;  %v9650_v27 = vld [vmem:[%s17303_s7 + $0xab0] sm:$0xf] }
 0x51f   : > { %v15144_v37 = vpop.f32.mrf.mxu2  ;;  %4964 = vmatpush.bf16.msra.mxu3 %v9595_v16  ;;  %v9651_v10 = vor.u32 %v11328_v28, %v9650_v27  ;;  %v9642_v16 = vld [vmem:[%s17303_s7 + $0xaa0] sm:$0xf] }
 0x521   : > { %4856 = vmatpush.bf16.msrb.mxu0 %v9471_v35  ;;  %5091 = vmatpush.bf16.msrb.mxu2 %v9675_v50  ;;  %v11327_v35 = vld [vmem:[%s17303_s7 + $0xab4] sm:$0xf] }
 0x522   : > { %4977 = vmatpush.bf16.msrb.mxu1 %v9599_v58  ;;  %v9655_v6 = vor.u32 %v11327_v35, %v9652_v46  ;;  %v11326_v58 = vld [vmem:[%s17303_s7 + $0xaa4] sm:$0xf0] }
 0x523   : > { %4965 = vmatpush.bf16.msra.mxu3 %v9587_v3  ;;  %v9643_v44 = vor.u32 %v11326_v58, %v9642_v16 }
 0x525   : > { %5103 = vmatpush.bf16.msra.mxu0 %v9687_v5  ;;  %5092 = vmatpush.bf16.msrb.mxu2 %v9667_v25  ;;  %v15223_v1 = vpop.f32.mrf.mxu3  ;;  %v9563_v5 = vor.u32 %v11310_v36, %v9562_v7  ;;  %v11324_v25 = vld [vmem:[%s17303_s7 + $0xa94] sm:$0xf0] }
 0x526   : > { %4978 = vmatpush.bf16.msrb.mxu1 %v9591_v56  ;;  %v9556_v56 = vld [vmem:[%s17303_s7 + $0xa18] sm:$0xf0]  ;;  %v9635_v4 = vor.u32 %v11324_v25, %v9634_v26  ;;  %v11351_v26 = vld [vmem:[%s17303_s7 + $0xb74] sm:$0xf] }
 0x527   : > { %v15166_v51 = vpop.f32.mrf.mxu1  ;;  %v15215_v39 = vpop.f32.mrf.mxu2  ;;  %4966 = vmatpush.bf16.msra.mxu3 %v9579_v62  ;;  %v9559_v57 = vor.u32 %v11307_v60, %v9556_v56  ;;  %v9546_v62 = vld [vmem:[%s17303_s7 + $0xa00] sm:$0xf]  ;;  %v9762_v60 = vld [vmem:[%s17303_s7 + $0xb70] sm:$0xf]  ;;  %v11352_v56 = vld [vmem:[%s17303_s7 + $0xb74] sm:$0xf0] }
 0x528   : > { %v9547_v63 = vor.u32 %v11306_v31, %v9546_v62  ;;  %v4414_v49 = vadd.f32 %v15155_v15, %v15166_v51  ;;  %v11368_v62 = vld [vmem:[%s17303_s7 + $0xbf4] sm:$0xf0]  ;;  %v11367_v31 = vld [vmem:[%s17303_s7 + $0xbf4] sm:$0xf] }
 0x529   : > { %v15177_v41 = vpop.f32.mrf.mxu0  ;;  %5104 = vmatpush.bf16.msra.mxu0 %v9679_v22  ;;  %5093 = vmatpush.bf16.msrb.mxu2 %v9659_v48  ;;  %v9554_v22 = vld [vmem:[%s17303_s7 + $0xa10] sm:$0xf]  ;;  %v9626_v48 = vld [vmem:[%s17303_s7 + $0xa80] sm:$0xf] }
 0x52a   : > { %4979 = vmatpush.bf16.msrb.mxu1 %v9583_v33  ;;  %v9555_v38 = vor.u32 %v11308_v53, %v9554_v22  ;;  %v11305_v33 = vld [vmem:[%s17303_s7 + $0xa04] sm:$0xf]  ;;  %v4428_v27 = vadd.f32 %v15177_v41, %v4414_v49 }
 0x52b   : > { %4967 = vmatpush.bf16.msra.mxu3 %v9571_v20  ;;  %v9551_v55 = vor.u32 %v11305_v33, %v9548_v12  ;;  %v9631_v20 = vor.u32 %v11321_v40, %v9628_v30  ;;  %v9763_v33 = vor.u32 %v11352_v56, %v9762_v60  ;;  %v11349_v49 = vld [vmem:[%s17303_s7 + $0xb64] sm:$0xf]  ;;  %v11362_v60 = vld [vmem:[%s17303_s7 + $0xbc4] sm:$0xf0] }
 0x52c   : > { %v4442_v28 = vadd.f32 %v15144_v37, %v4428_v27  ;;  %v15338_v37 = vld [vmem:[%s17302_s6] ss:$0 sm:$0xff]  ;;  %v11361_v56 = vld [vmem:[%s17303_s7 + $0xbc4] sm:$0xf] }
 0x52d   : > { %5105 = vmatpush.bf16.msra.mxu0 %v9671_v11  ;;  %5094 = vmatpush.bf16.msrb.mxu2 %v9651_v10  ;;  %v11323_v11 = vld [vmem:[%s17303_s7 + $0xa94] sm:$0xf] }
 0x52e   : > { %4980 = vmatpush.bf16.msrb.mxu1 %v9575_v23  ;;  %v9639_v61 = vor.u32 %v11323_v11, %v9636_v13 }
 0x52f   : > { %v15231_v19 = vpop.f32.mrf.mxu1  ;;  %4968 = vmatpush.bf16.msra.mxu3 %v9563_v5 }
 0x530   : > { %v4416_v53 = vadd.f32 %v15223_v1, %v15231_v19  ;;  %v9764_v1 = vld [vmem:[%s17303_s7 + $0xb78] sm:$0xf0] }
 0x531   : > { %v15245_v34 = vpop.f32.mrf.mxu0  ;;  %5106 = vmatpush.bf16.msra.mxu0 %v9663_v18  ;;  %5095 = vmatpush.bf16.msrb.mxu2 %v9643_v44  ;;  %v9627_v18 = vor.u32 %v11322_v2, %v9626_v48  ;;  %v9767_v12 = vor.u32 %v11351_v26, %v9764_v1  ;;  %v11350_v2 = vld [vmem:[%s17303_s7 + $0xb64] sm:$0xf0] }
 0x532   : > { %4981 = vmatpush.bf16.msrb.mxu1 %v9567_v43 }
 0x533   : > { %4969 = vmatpush.bf16.msra.mxu3 %v9555_v38 }
 0x535   : > { %5107 = vmatpush.bf16.msra.mxu0 %v9655_v6  ;;  %5096 = vmatpush.bf16.msrb.mxu2 %v9635_v4  ;;  %v4430_v4 = vadd.f32 %v15245_v34, %v4416_v53  ;;  %v9754_v34 = vld [vmem:[%s17303_s7 + $0xb60] sm:$0xf]  ;;  %v9740_v53 = vld [vmem:[%s17303_s7 + $0xb48] sm:$0xf0] }
 0x536   : > { %4982 = vmatpush.bf16.msrb.mxu1 %v9559_v57 }
 0x537   : > { %v4484_v54 = vpop.f32.mrf.mxu1  ;;  %4970 = vmatpush.bf16.msra.mxu3 %v9547_v63  ;;  %v9844_v63 = vld [vmem:[%s17303_s7 + $0xbf8] sm:$0xf0] }
 0x538   : > { %v9847_v30 = vor.u32 %v11367_v31, %v9844_v63  ;;  %v11359_v63 = vld [vmem:[%s17303_s7 + $0xbb4] sm:$0xf] }
 0x539   : > { %v4520_v9 = vpop.f32.mrf.mxu0  ;;  %5108 = vmatpush.bf16.msra.mxu0 %v9647_v14  ;;  %5097 = vmatpush.bf16.msrb.mxu2 %v9627_v18  ;;  %v9756_v18 = vld [vmem:[%s17303_s7 + $0xb68] sm:$0xf0] }
 0x53a   : > { %4983 = vmatpush.bf16.msrb.mxu1 %v9551_v55 }
 0x53d   : > { %v4470_v50 = vpop.f32.mrf.mxu3  ;;  %5109 = vmatpush.bf16.msra.mxu0 %v9639_v61 }
 0x53e   : > { %v4485_v51 = vadd.f32 %v4484_v54, %v4470_v50 }
 0x53f   : > { %v4506_v3 = vpop.f32.mrf.mxu2  ;;  %v4486_v52 = vpop.f32.mrf.mxu1 }
 0x540   : > { %v4489_v10 = vadd.f32 %v4485_v51, %v4442_v28  ;;  %v4521_v35 = vadd.f32 %v4520_v9, %v4506_v3  ;;  %v9842_v9 = vld [vmem:[%s17303_s7 + $0xbf0] sm:$0xf]  ;;  %v9836_v51 = vld [vmem:[%s17303_s7 + $0xbe8] sm:$0xf0]  ;;  %v9755_v28 = vor.u32 %v11350_v2, %v9754_v34  ;;  %v11342_v2 = vld [vmem:[%s17303_s7 + $0xb24] sm:$0xf0] }
 0x541   : > { %5110 = vmatpush.bf16.msra.mxu0 %v9631_v20  ;;  %v4522_v15 = vpop.f32.mrf.mxu0  ;;  %v9843_v40 = vor.u32 %v11368_v62, %v9842_v9  ;;  %v9834_v20 = vld [vmem:[%s17303_s7 + $0xbe0] sm:$0xf]  ;;  %v11344_v9 = vld [vmem:[%s17303_s7 + $0xb34] sm:$0xf0] }
 0x542   : > { %v4491_v42 = vmul.f32 %v15332_v21, %v4489_v10  ;;  %v9759_v10 = vor.u32 %v11349_v49, %v9756_v18  ;;  %v11360_v62 = vld [vmem:[%s17303_s7 + $0xbb4] sm:$0xf0] }
 0x544   : > { %v4493_v58 = vadd.f32 %v15338_v37, %v4491_v42  ;;  %v9826_v42 = vld [vmem:[%s17303_s7 + $0xbd0] sm:$0xf] }
 0x545   : > { %v4472_v24 = vpop.f32.mrf.mxu3 }
 0x546   : > { %v4495_v50 = vmax.f32 %v4493_v58, 0.0  ;;  %v4487_v55 = vadd.f32 %v4486_v52, %v4472_v24  ;;  %v11366_v24 = vld [vmem:[%s17303_s7 + $0xbe4] sm:$0xf0]  ;;  %v4444_v52 = vadd.f32 %v15215_v39, %v4430_v4  ;;  %v9746_v39 = vld [vmem:[%s17303_s7 + $0xb50] sm:$0xf] }
 0x547   : > { %v4508_v23 = vpop.f32.mrf.mxu2  ;;  %v9828_v58 = vld [vmem:[%s17303_s7 + $0xbd8] sm:$0xf0]  ;;  %v11343_v4 = vld [vmem:[%s17303_s7 + $0xb34] sm:$0xf] }
 0x548   : > { %v4523_v14 = vadd.f32 %v4522_v15, %v4508_v23  ;;  %v11365_v15 = vld [vmem:[%s17303_s7 + $0xbe4] sm:$0xf] }
 0x54d   : > { %v4548_v6 = vpop.f32.mrf.mxu3 }
 0x54f   : > { %v4591_v36 = vpop.f32.mrf.mxu2 }
 0x555   : > { %v4550_v19 = vpop.f32.mrf.mxu3 }
 0x557   : > { %v4534_v46 = vpop.f32.mrf.mxu1  ;;  %v4593_v25 = vpop.f32.mrf.mxu2 }
 0x558   : > { %v4535_v7 = vadd.f32 %v4534_v46, %v4521_v35  ;;  %v4490_v35 = vadd.f32 %v4487_v55, %v4444_v52  ;;  %v11348_v46 = vld [vmem:[%s17303_s7 + $0xb54] sm:$0xf0]  ;;  %v9722_v55 = vld [vmem:[%s17303_s7 + $0xb20] sm:$0xf] }
 0x559   : > { %v4577_v5 = vpop.f32.mrf.mxu0  ;;  %v9802_v52 = vld [vmem:[%s17303_s7 + $0xba0] sm:$0xf] }
 0x55a   : > { %v4549_v43 = vadd.f32 %v4548_v6, %v4535_v7  ;;  %v4592_v41 = vadd.f32 %v4591_v36, %v4577_v5  ;;  %v11347_v6 = vld [vmem:[%s17303_s7 + $0xb54] sm:$0xf]  ;;  %v9748_v7 = vld [vmem:[%s17303_s7 + $0xb58] sm:$0xf0]  ;;  %v9835_v36 = vor.u32 %v11366_v24, %v9834_v20  ;;  %v9839_v5 = vor.u32 %v11365_v15, %v9836_v51  ;;  %v11357_v51 = vld [vmem:[%s17303_s7 + $0xba4] sm:$0xf] }
 0x55c   : > { %v4596_v16 = vadd.f32 %v4592_v41, %v4549_v43  ;;  %v11364_v41 = vld [vmem:[%s17303_s7 + $0xbd4] sm:$0xf0] }
 0x55e   : > { %v4598_v44 = vmul.f32 %v15332_v21, %v4596_v16  ;;  %v11363_v16 = vld [vmem:[%s17303_s7 + $0xbd4] sm:$0xf] }
 0x55f   : > { %v4536_v47 = vpop.f32.mrf.mxu1 }
 0x560   : > { %v4600_v59 = vadd.f32 %v15338_v37, %v4598_v44  ;;  %v4537_v3 = vadd.f32 %v4536_v47, %v4523_v14  ;;  %v9747_v44 = vor.u32 %v11348_v46, %v9746_v39  ;;  %v9738_v47 = vld [vmem:[%s17303_s7 + $0xb40] sm:$0xf]  ;;  %v11346_v14 = vld [vmem:[%s17303_s7 + $0xb44] sm:$0xf0]  ;;  %v11339_v46 = vld [vmem:[%s17303_s7 + $0xb14] sm:$0xf] }
 0x561   : > { %v4579_v38 = vpop.f32.mrf.mxu0  ;;  %v9739_v26 = vor.u32 %v11346_v14, %v9738_v47  ;;  %v11338_v47 = vld [vmem:[%s17303_s7 + $0xb04] sm:$0xf0]  ;;  %v9708_v14 = vld [vmem:[%s17303_s7 + $0xb08] sm:$0xf0] }
 0x562   : > { %v4602_v22 = vmax.f32 %v4600_v59, 0.0  ;;  %v4551_v13 = vadd.f32 %v4550_v19, %v4537_v3  ;;  %v4594_v61 = vadd.f32 %v4593_v25, %v4579_v38  ;;  %v9751_v59 = vor.u32 %v11347_v6, %v9748_v7  ;;  %v9730_v19 = vld [vmem:[%s17303_s7 + $0xb30] sm:$0xf]  ;;  %v9716_v6 = vld [vmem:[%s17303_s7 + $0xb18] sm:$0xf0] }
 0x563   : > { %v9831_v3 = vor.u32 %v11363_v16, %v9828_v58  ;;  %v9796_v16 = vld [vmem:[%s17303_s7 + $0xb98] sm:$0xf0] }
 0x564   : > { %v4604_v54 = vmax.f32 %v4495_v50, %v4602_v22  ;;  %v4597_v23 = vadd.f32 %v4594_v61, %v4551_v13  ;;  %v4492_v50 = vmul.f32 %v15332_v21, %v4490_v35  ;;  %v11345_v22 = vld [vmem:[%s17303_s7 + $0xb44] sm:$0xf]  ;;  %v9714_v35 = vld [vmem:[%s17303_s7 + $0xb10] sm:$0xf] }
 0x565   : > { %v9743_v1 = vor.u32 %v11345_v22, %v9740_v53 }
 0x566   : > { %v4607_v57 = vrot.slane %v4604_v54, 1  ;;  %v4599_v43 = vmul.f32 %v15332_v21, %v4597_v23  ;;  %v9818_v21 = vld [vmem:[%s17303_s7 + $0xbc0] sm:$0xf]  ;;  %v4494_v25 = vadd.f32 %v15338_v37, %v4492_v50  ;;  %v11358_v23 = vld [vmem:[%s17303_s7 + $0xba4] sm:$0xf0] }
 0x567   : > { %v9819_v13 = vor.u32 %v11362_v60, %v9818_v21  ;;  %v9803_v7 = vor.u32 %v11358_v23, %v9802_v52  ;;  %v11337_v50 = vld [vmem:[%s17303_s7 + $0xb04] sm:$0xf]  ;;  %v11354_v21 = vld [vmem:[%s17303_s7 + $0xb84] sm:$0xf0]  ;;  %v9788_v60 = vld [vmem:[%s17303_s7 + $0xb88] sm:$0xf0] }
 0x568   : > { %v4609_v11 = vmax.f32 %v4604_v54, %v4607_v57  ;;  %v9827_v54 = vor.u32 %v11364_v41, %v9826_v42  ;;  %v4601_v38 = vadd.f32 %v15338_v37, %v4599_v43  ;;  %v9820_v57 = vld [vmem:[%s17303_s7 + $0xbc8] sm:$0xf0]  ;;  %v9810_v37 = vld [vmem:[%s17303_s7 + $0xbb0] sm:$0xf]  ;;  %v4496_v49 = vmax.f32 %v4494_v25, 0.0  ;;  %v11761_v25 = vld [vmem:[%s17300_s4 + $0x98] sm:$0xff] }
 0x569   : > { %v9823_v61 = vor.u32 %v11361_v56, %v9820_v57  ;;  %v9811_v20 = vor.u32 %v11360_v62, %v9810_v37  ;;  %v11356_v42 = vld [vmem:[%s17303_s7 + $0xb94] sm:$0xf0]  ;;  %v11355_v41 = vld [vmem:[%s17303_s7 + $0xb94] sm:$0xf]  ;;  %v9711_v57 = vor.u32 %v11337_v50, %v9708_v14  ;;  %v9863_v50 = vld [vmem:[#allocation2 + $0xb0] sm:$0xf] }
 0x56a   : > { %v15373_v48 = vpack.c.bf16 %v4609_v11, %v4609_v11  ;;  %v9732_v11 = vld [vmem:[%s17303_s7 + $0xb38] sm:$0xf0]  ;;  %v4603_v31 = vmax.f32 %v4601_v38, 0.0  ;;  %v9799_v53 = vor.u32 %v11355_v41, %v9796_v16  ;;  %v11353_v38 = vld [vmem:[%s17303_s7 + $0xb84] sm:$0xf]  ;;  %v15577_v37 = vld [vmem:[%s17300_s4 + $0xb0] sm:$0xff] }
 0x56b   : > { %v9735_v34 = vor.u32 %v11343_v4, %v9732_v11  ;;  %v15562_v4 = vld [vmem:[%s17300_s4 + $0x38] sm:$0xff]  ;;  %v15583_v62 = vld [vmem:[%s17300_s4 + $0x30] sm:$0xff]  ;;  %v11796_v16 = vld [vmem:[%s17300_s4 + $0xc0] sm:$0xff] }
 0x56c   : > { %4716 = vmatmul.bf16.vlgmr.msrb.gmra.mxu3 %v15373_v48  ;;  %4729 = vmatmul.bf16.vlgmr.msra.gmra.mxu1 %v15373_v48  ;;  %v4754_v27 = vrot.slane %v15373_v48, 1  ;;  %v4881_v18 = vrot.slane %v15373_v48, 2  ;;  %v5008_v15 = vrot.slane %v15373_v48, 3  ;;  %v11340_v48 = vld [vmem:[%s17303_s7 + $0xb14] sm:$0xf0]  ;;  %v11781_v52 = vld [vmem:[%s17300_s4 + $0x70] sm:$0xff] }
 0x56d   : > { %5220 = vmatpush.bf16.msrb.mxu3 %v9763_v33  ;;  %5233 = vmatpush.bf16.msra.mxu1 %v9767_v12  ;;  %v9812_v33 = vld [vmem:[%s17303_s7 + $0xbb8] sm:$0xf0]  ;;  %v9731_v12 = vor.u32 %v11344_v9, %v9730_v19  ;;  %v9715_v58 = vor.u32 %v11340_v48, %v9714_v35  ;;  %v15662_v23 = vld [vmem:[%s17300_s4 + $0x10] sm:$0xff]  ;;  %v11372_v14 = vld [vmem:[#allocation2 + $0xb4] sm:$0xf0] }
 0x56e   : > { %4844 = vmatmul.bf16.vlgmr.msra.gmra.mxu2 %v4754_v27  ;;  %4857 = vmatmul.bf16.vlgmr.msrb.gmra.mxu0 %v4754_v27  ;;  %v9815_v24 = vor.u32 %v11359_v63, %v9812_v33  ;;  %v4605_v27 = vmax.f32 %v4496_v49, %v4603_v31  ;;  %v15556_v9 = vld [vmem:[%s17300_s4 + $0xb8] sm:$0xff]  ;;  %v15589_v31 = vld [vmem:[%s17300_s4 + $0x50] sm:$0xff]  ;;  %v11769_v63 = vld [vmem:[%s17300_s4 + $0x88] sm:$0xff] }
 0x56f   : > { %5348 = vmatpush.bf16.msra.mxu2 %v9843_v40  ;;  %5361 = vmatpush.bf16.msrb.mxu0 %v9847_v30  ;;  %v11341_v40 = vld [vmem:[%s17303_s7 + $0xb24] sm:$0xf]  ;;  %v9724_v30 = vld [vmem:[%s17303_s7 + $0xb28] sm:$0xf0]  ;;  %v11790_v35 = vld [vmem:[%s17300_s4 + $0xd8] sm:$0xff] }
 0x570   : > { %v9727_v39 = vor.u32 %v11341_v40, %v9724_v30  ;;  %v5119_v43 = vrot.slane %v4605_v27, 1  ;;  %v15598_v33 = vld [vmem:[%s17300_s4 + $0xa8] sm:$0xff]  ;;  %v15625_v49 = vld [vmem:[%s17300_s4 + $0x20] sm:$0xff]  ;;  %v11778_v30 = vld [vmem:[%s17300_s4 + $0x78] sm:$0xff] }
 0x571   : > { %5221 = vmatpush.bf16.msrb.mxu3 %v9755_v28  ;;  %5234 = vmatpush.bf16.msra.mxu1 %v9759_v10  ;;  %v9804_v28 = vld [vmem:[%s17303_s7 + $0xba8] sm:$0xf0]  ;;  %v9723_v10 = vor.u32 %v11342_v2, %v9722_v55  ;;  %v11773_v55 = vld [vmem:[%s17300_s4 + $0x80] sm:$0xff]  ;;  %v11791_v48 = vld [vmem:[%s17300_s4 + $0x110] sm:$0xff] }
 0x572   : > { %v15619_v2 = vld [vmem:[%s17300_s4 + $0xa0] sm:$0xff] }
 0x573   : > { %5349 = vmatpush.bf16.msra.mxu2 %v9835_v36  ;;  %5362 = vmatpush.bf16.msrb.mxu0 %v9839_v5  ;;  %v9807_v36 = vor.u32 %v11357_v51, %v9804_v28  ;;  %v9794_v5 = vld [vmem:[%s17303_s7 + $0xb90] sm:$0xf]  ;;  %v15637_v40 = vld [vmem:[%s17300_s4 + $0x40] sm:$0xff] }
 0x574   : > { %v9795_v22 = vor.u32 %v11356_v42, %v9794_v5  ;;  %v11786_v51 = vld [vmem:[%s17300_s4 + $0xe0] sm:$0xff]  ;;  %v9854_v42 = vld [vmem:[#allocation2 + $0xa8] sm:$0xf0] }
 0x575   : > { %5222 = vmatpush.bf16.msrb.mxu3 %v9747_v44  ;;  %5235 = vmatpush.bf16.msra.mxu1 %v9751_v59  ;;  %v9719_v44 = vor.u32 %v11339_v46, %v9716_v6  ;;  %v9706_v59 = vld [vmem:[%s17303_s7 + $0xb00] sm:$0xf]  ;;  %v11792_v46 = vld [vmem:[%s17300_s4 + $0xd0] sm:$0xff]  ;;  %v11793_v6 = vld [vmem:[%s17300_s4 + $0x108] sm:$0xff] }
 0x576   : > { %v9707_v56 = vor.u32 %v11338_v47, %v9706_v59  ;;  %v11787_v28 = vld [vmem:[%s17300_s4 + $0x60] sm:$0xff]  ;;  %v9865_v59 = vld [vmem:[#allocation2 + $0xb8] sm:$0xf0] }
 0x577   : > { %5350 = vmatpush.bf16.msra.mxu2 %v9827_v54  ;;  %5363 = vmatpush.bf16.msrb.mxu0 %v9831_v3  ;;  %v9786_v54 = vld [vmem:[%s17303_s7 + $0xb80] sm:$0xf]  ;;  %v5121_v3 = vmax.f32 %v4605_v27, %v5119_v43  ;;  %v11783_v27 = vld [vmem:[%s17300_s4 + $0xe8] sm:$0xff]  ;;  %v11369_v5 = vld [vmem:[#allocation2 + $0xa4] sm:$0xf] }
 0x578   : > { %v11795_v43 = vld [vmem:[%s17300_s4 + $0x100] sm:$0xff] }
 0x579   : > { %5223 = vmatpush.bf16.msrb.mxu3 %v9739_v26  ;;  %5236 = vmatpush.bf16.msra.mxu1 %v9743_v1  ;;  %v9787_v26 = vor.u32 %v11354_v21, %v9786_v54  ;;  %v9791_v1 = vor.u32 %v11353_v38, %v9788_v60  ;;  %v5122_v19 = vpack.c.bf16 %v5121_v3, %v5121_v3 }
 0x57b   : > { %5351 = vmatpush.bf16.msra.mxu2 %v9819_v13  ;;  %5364 = vmatpush.bf16.msrb.mxu0 %v9823_v61  ;;  %v5266_v11 = vrot.slane %v5122_v19, 1  ;;  %v15568_v13 = vld [vmem:[%s17300_s4 + $0x58] sm:$0xff]  ;;  %v11765_v61 = vld [vmem:[%s17300_s4 + $0x90] sm:$0xff] }
 0x57c   : > { %4971 = vmatmul.bf16.vlgmr.msra.gmra.mxu3 %v4881_v18  ;;  %4984 = vmatmul.bf16.vlgmr.msrb.gmra.mxu1 %v4881_v18  ;;  %v15631_v18 = vld [vmem:[%s17300_s4 + $0xf8] sm:$0xff] }
 0x57d   : > { %5224 = vmatpush.bf16.msrb.mxu3 %v9731_v12  ;;  %5237 = vmatpush.bf16.msra.mxu1 %v9735_v34  ;;  %v15604_v12 = vld [vmem:[%s17300_s4 + $0x28] sm:$0xff] }
 0x57e   : > { %5098 = vmatmul.bf16.vlgmr.msrb.gmra.mxu2 %v5008_v15  ;;  %5111 = vmatmul.bf16.vlgmr.msra.gmra.mxu0 %v5008_v15  ;;  %v15610_v34 = vld [vmem:[%s17300_s4 + $0x48] sm:$0xff] }
 0x57f   : > { %5352 = vmatpush.bf16.msra.mxu2 %v9811_v20  ;;  %5365 = vmatpush.bf16.msrb.mxu0 %v9815_v24  ;;  %v15646_v20 = vld [vmem:[%s17300_s4 + $0x18] sm:$0xff]  ;;  %v11780_v24 = vld [vmem:[%s17300_s4 + $0xf0] sm:$0xff]  ;;  %v11784_v15 = vld [vmem:[%s17300_s4 + $0x68] sm:$0xff] }
 0x581   : > { %5225 = vmatpush.bf16.msrb.mxu3 %v9723_v10  ;;  %5238 = vmatpush.bf16.msra.mxu1 %v9727_v39  ;;  %v11788_v10 = vld [vmem:[%s17300_s4 + $0x118] sm:$0xff]  ;;  %v15689_v39 = vld [vmem:[%s17300_s4] sm:$0xff] }
 0x583   : > { %5353 = vmatpush.bf16.msra.mxu2 %v9803_v7  ;;  %5366 = vmatpush.bf16.msrb.mxu0 %v9807_v36  ;;  %v9852_v7 = vld [vmem:[#allocation2 + $0xa0] sm:$0xf]  ;;  %v11370_v36 = vld [vmem:[#allocation2 + $0xa4] sm:$0xf0] }
 0x584   : > { %v15715_v41 = vor.u32 %v11370_v36, %v9852_v7 }
 0x585   : > { %5226 = vmatpush.bf16.msrb.mxu3 %v9715_v58  ;;  %5239 = vmatpush.bf16.msra.mxu1 %v9719_v44  ;;  %v15722_v58 = vor.u32 %v11369_v5, %v9854_v42  ;;  %v11371_v44 = vld [vmem:[#allocation2 + $0xb4] sm:$0xf]  ;;  %v10016_v5 = vld [vmem:[%s17303_s7 + $0xce0] sm:$0xf]  ;;  %v11402_v42 = vld [vmem:[%s17303_s7 + $0xce4] sm:$0xf0] }
 0x586   : > { %v15739_v47 = vor.u32 %v11371_v44, %v9865_v59  ;;  %v10018_v44 = vld [vmem:[%s17303_s7 + $0xce8] sm:$0xf0] }
 0x587   : > { %5354 = vmatpush.bf16.msra.mxu2 %v9795_v22  ;;  %5367 = vmatpush.bf16.msrb.mxu0 %v9799_v53  ;;  %v15748_v22 = vor.u32 %v11372_v14, %v9863_v50  ;;  %v9928_v50 = vld [vmem:[%s17303_s7 + $0xc50] sm:$0xf]  ;;  %v11384_v14 = vld [vmem:[%s17303_s7 + $0xc54] sm:$0xf0] }
 0x589   : > { %5227 = vmatpush.bf16.msrb.mxu3 %v9707_v56  ;;  %5240 = vmatpush.bf16.msra.mxu1 %v9711_v57 }
 0x58b   : > { %5355 = vmatpush.bf16.msra.mxu2 %v9787_v26  ;;  %5368 = vmatpush.bf16.msrb.mxu0 %v9791_v1 }
 0x58c   : > { %5228 = vmatmul.bf16.vlgmr.msrb.gmra.mxu3 %v5122_v19  ;;  %5241 = vmatmul.bf16.vlgmr.msra.gmra.mxu1 %v5122_v19 }
 0x58d   : > { %5376 = vmatpush.bf16.msra.mxu3 %v11761_v25  ;;  %5394 = vmatpush.bf16.msrb.mxu1 %v15556_v9 }
 0x58e   : > { %5356 = vmatmul.bf16.vlgmr.msra.gmra.mxu2 %v5266_v11  ;;  %5369 = vmatmul.bf16.vlgmr.msrb.gmra.mxu0 %v5266_v11 }
 0x58f   : > { %5404 = vmatpush.bf16.msrb.mxu2 %v15562_v4  ;;  %5422 = vmatpush.bf16.msra.mxu0 %v15568_v13 }
 0x591   : > { %5377 = vmatpush.bf16.msra.mxu3 %v11765_v61  ;;  %5395 = vmatpush.bf16.msrb.mxu1 %v15577_v37 }
 0x593   : > { %5405 = vmatpush.bf16.msrb.mxu2 %v15583_v62  ;;  %5423 = vmatpush.bf16.msra.mxu0 %v15589_v31 }
 0x595   : > { %5378 = vmatpush.bf16.msra.mxu3 %v11769_v63  ;;  %5396 = vmatpush.bf16.msrb.mxu1 %v15598_v33 }
 0x597   : > { %5406 = vmatpush.bf16.msrb.mxu2 %v15604_v12  ;;  %5424 = vmatpush.bf16.msra.mxu0 %v15610_v34 }
 0x599   : > { %5379 = vmatpush.bf16.msra.mxu3 %v11773_v55  ;;  %5397 = vmatpush.bf16.msrb.mxu1 %v15619_v2 }
 0x59b   : > { %5407 = vmatpush.bf16.msrb.mxu2 %v15625_v49  ;;  %5425 = vmatpush.bf16.msra.mxu0 %v15637_v40 }
 0x59c   : > { %9848 = vmatmul.msk.bf16.vlgmr.msrb.gmra.mxu1 %vm912_vm0, %v14906_v0 }
 0x59d   : > { %5447 = vmatpush.bf16.msra.mxu1 %v15631_v18  ;;  %5380 = vmatpush.bf16.msra.mxu3 %v11778_v30 }
 0x59e   : > { %9849 = vmatmul.msk.bf16.vlgmr.msra.gmra.mxu0 %vm912_vm0, %v14891_v17  ;;  %v15674_v17 = vld [vmem:[%s17300_s4 + $0x8] sm:$0xff] }
 0x59f   : > { %5483 = vmatpush.bf16.msrb.mxu0 %v11761_v25  ;;  %5408 = vmatpush.bf16.msrb.mxu2 %v15646_v20 }
 0x5a1   : > { %5448 = vmatpush.bf16.msra.mxu1 %v11780_v24  ;;  %5381 = vmatpush.bf16.msra.mxu3 %v11781_v52 }
 0x5a3   : > { %5484 = vmatpush.bf16.msrb.mxu0 %v11765_v61  ;;  %5409 = vmatpush.bf16.msrb.mxu2 %v15662_v23 }
 0x5a5   : > { %5449 = vmatpush.bf16.msra.mxu1 %v11783_v27  ;;  %5382 = vmatpush.bf16.msra.mxu3 %v11784_v15 }
 0x5a7   : > { %5485 = vmatpush.bf16.msrb.mxu0 %v11769_v63  ;;  %5410 = vmatpush.bf16.msrb.mxu2 %v15674_v17 }
 0x5a9   : > { %5450 = vmatpush.bf16.msra.mxu1 %v11786_v51  ;;  %5383 = vmatpush.bf16.msra.mxu3 %v11787_v28 }
 0x5ab   : > { %5486 = vmatpush.bf16.msrb.mxu0 %v11773_v55  ;;  %5411 = vmatpush.bf16.msrb.mxu2 %v15689_v39  ;;  %v9944_v55 = vld [vmem:[%s17303_s7 + $0xc70] sm:$0xf] }
 0x5ac   : > { %5384 = vmatmul.bf16.vlgmr.msra.gmra.mxu3 %v14915_v32 }
 0x5ad   : > { %5465 = vmatpush.bf16.msrb.mxu3 %v11788_v10  ;;  %5451 = vmatpush.bf16.msra.mxu1 %v11790_v35 }
 0x5ae   : > { %5412 = vmatmul.bf16.vlgmr.msrb.gmra.mxu2 %v14879_v8  ;;  %v11794_v8 = vld [vmem:[%s17300_s4 + $0xc8] sm:$0xff] }
 0x5af   : > { %5501 = vmatpush.bf16.msra.mxu2 %v15556_v9  ;;  %5487 = vmatpush.bf16.msrb.mxu0 %v11778_v30  ;;  %v9946_v30 = vld [vmem:[%s17303_s7 + $0xc78] sm:$0xf0] }
 0x5b1   : > { %5466 = vmatpush.bf16.msrb.mxu3 %v11791_v48  ;;  %5452 = vmatpush.bf16.msra.mxu1 %v11792_v46 }
 0x5b3   : > { %5502 = vmatpush.bf16.msra.mxu2 %v15577_v37  ;;  %5488 = vmatpush.bf16.msrb.mxu0 %v11781_v52  ;;  %v10024_v52 = vld [vmem:[%s17303_s7 + $0xcf0] sm:$0xf] }
 0x5b5   : > { %5467 = vmatpush.bf16.msrb.mxu3 %v11793_v6  ;;  %5453 = vmatpush.bf16.msra.mxu1 %v11794_v8 }
 0x5b7   : > { %5503 = vmatpush.bf16.msra.mxu2 %v15598_v33  ;;  %5489 = vmatpush.bf16.msrb.mxu0 %v11784_v15 }
 0x5b9   : > { %5468 = vmatpush.bf16.msrb.mxu3 %v11795_v43  ;;  %5454 = vmatpush.bf16.msra.mxu1 %v11796_v16 }
 0x5bb   : > { %5504 = vmatpush.bf16.msra.mxu2 %v15619_v2  ;;  %5490 = vmatpush.bf16.msrb.mxu0 %v11787_v28  ;;  %v11388_v2 = vld [vmem:[%s17303_s7 + $0xc74] sm:$0xf0] }
 0x5bc   : > { %5455 = vmatmul.bf16.vlgmr.msra.gmra.mxu1 %v15715_v41  ;;  %9858 = vmatmul.msk.bf16.vlgmr.msrb.gmra.mxu3 %vm912_vm0, %v15722_v58 }
 0x5bd   : > { %5511 = vmatpush.bf16.msra.mxu3 %v15562_v4  ;;  %5529 = vmatpush.bf16.msrb.mxu1 %v15568_v13 }
 0x5be   : > { %5491 = vmatmul.bf16.vlgmr.msrb.gmra.mxu0 %v15715_v41  ;;  %9859 = vmatmul.msk.bf16.vlgmr.msra.gmra.mxu2 %vm912_vm0, %v15722_v58 }
 0x5bf   : > { %5554 = vmatpush.bf16.msrb.mxu2 %v15631_v18  ;;  %5572 = vmatpush.bf16.msra.mxu0 %v11788_v10 }
 0x5c1   : > { %5512 = vmatpush.bf16.msra.mxu3 %v15583_v62  ;;  %5530 = vmatpush.bf16.msrb.mxu1 %v15589_v31 }
 0x5c3   : > { %5555 = vmatpush.bf16.msrb.mxu2 %v11780_v24  ;;  %5573 = vmatpush.bf16.msra.mxu0 %v11791_v48  ;;  %v11386_v48 = vld [vmem:[%s17303_s7 + $0xc64] sm:$0xf0] }
 0x5c5   : > { %5513 = vmatpush.bf16.msra.mxu3 %v15604_v12  ;;  %5531 = vmatpush.bf16.msrb.mxu1 %v15610_v34 }
 0x5c7   : > { %5556 = vmatpush.bf16.msrb.mxu2 %v11783_v27  ;;  %5574 = vmatpush.bf16.msra.mxu0 %v11793_v6  ;;  %v11403_v27 = vld [vmem:[%s17303_s7 + $0xcf4] sm:$0xf] }
 0x5c9   : > { %5514 = vmatpush.bf16.msra.mxu3 %v15625_v49  ;;  %5532 = vmatpush.bf16.msrb.mxu1 %v15637_v40  ;;  %v11387_v49 = vld [vmem:[%s17303_s7 + $0xc74] sm:$0xf]  ;;  %v9945_v40 = vor.u32 %v11388_v2, %v9944_v55  ;;  %v9914_v2 = vld [vmem:[%s17303_s7 + $0xc38] sm:$0xf0] }
 0x5ca   : > { %v9949_v24 = vor.u32 %v11387_v49, %v9946_v30  ;;  %v11395_v30 = vld [vmem:[%s17303_s7 + $0xcb4] sm:$0xf] }
 0x5cb   : > { %5557 = vmatpush.bf16.msrb.mxu2 %v11786_v51  ;;  %5575 = vmatpush.bf16.msra.mxu0 %v11795_v43  ;;  %v10026_v51 = vld [vmem:[%s17303_s7 + $0xcf8] sm:$0xf0]  ;;  %v11401_v43 = vld [vmem:[%s17303_s7 + $0xce4] sm:$0xf] }
 0x5cc   : > { %9860 = vmatmul.msk.bf16.vlgmr.msrb.gmra.mxu1 %vm912_vm0, %v14906_v0  ;;  %v10021_v59 = vor.u32 %v11401_v43, %v10018_v44  ;;  %v9898_v43 = vld [vmem:[%s17303_s7 + $0xc18] sm:$0xf0]  ;;  %v9976_v44 = vld [vmem:[%s17303_s7 + $0xc90] sm:$0xf] }
 0x5cd   : > { %5515 = vmatpush.bf16.msra.mxu3 %v15646_v20  ;;  %5694 = vmatpush.bf16.msra.mxu1 %v9945_v40  ;;  %v11396_v40 = vld [vmem:[%s17303_s7 + $0xcb4] sm:$0xf0] }
 0x5ce   : > { %9869 = vmatmul.msk.bf16.vlgmr.msra.gmra.mxu0 %vm912_vm0, %v15739_v47 }
 0x5cf   : > { %5558 = vmatpush.bf16.msrb.mxu2 %v11790_v35  ;;  %v9936_v35 = vld [vmem:[%s17303_s7 + $0xc60] sm:$0xf] }
 0x5d0   : > { %v9937_v6 = vor.u32 %v11386_v48, %v9936_v35  ;;  %v11394_v35 = vld [vmem:[%s17303_s7 + $0xca4] sm:$0xf0]  ;;  %v11393_v48 = vld [vmem:[%s17303_s7 + $0xca4] sm:$0xf] }
 0x5d1   : > { %5516 = vmatpush.bf16.msra.mxu3 %v15662_v23  ;;  %v11404_v23 = vld [vmem:[%s17303_s7 + $0xcf4] sm:$0xf0] }
 0x5d2   : > { %5695 = vmatpush.bf16.msra.mxu1 %v9937_v6  ;;  %v9986_v6 = vld [vmem:[%s17303_s7 + $0xca8] sm:$0xf0] }
 0x5d3   : > { %5559 = vmatpush.bf16.msrb.mxu2 %v11792_v46  ;;  %v11385_v46 = vld [vmem:[%s17303_s7 + $0xc64] sm:$0xf] }
 0x5d5   : > { %5517 = vmatpush.bf16.msra.mxu3 %v15674_v17  ;;  %v10025_v17 = vor.u32 %v11404_v23, %v10024_v52  ;;  %v9904_v23 = vld [vmem:[%s17303_s7 + $0xc20] sm:$0xf] }
 0x5d7   : > { %5560 = vmatpush.bf16.msrb.mxu2 %v11794_v8  ;;  %5822 = vmatpush.bf16.msrb.mxu0 %v10025_v17  ;;  %v9938_v8 = vld [vmem:[%s17303_s7 + $0xc68] sm:$0xf0] }
 0x5d8   : > { %v9941_v36 = vor.u32 %v11385_v46, %v9938_v8  ;;  %v9989_v8 = vor.u32 %v11393_v48, %v9986_v6  ;;  %v10090_v6 = vld [vmem:[%s17303_s7 + $0xd58] sm:$0xf0] }
 0x5d9   : > { %5518 = vmatpush.bf16.msra.mxu3 %v15689_v39  ;;  %v10029_v39 = vor.u32 %v11403_v27, %v10026_v51  ;;  %v11378_v27 = vld [vmem:[%s17303_s7 + $0xc24] sm:$0xf0]  ;;  %v9906_v51 = vld [vmem:[%s17303_s7 + $0xc28] sm:$0xf0] }
 0x5da   : > { %v9905_v17 = vor.u32 %v11378_v27, %v9904_v23  ;;  %v11434_v23 = vld [vmem:[%s17303_s7 + $0xde4] sm:$0xf0]  ;;  %v11433_v27 = vld [vmem:[%s17303_s7 + $0xde4] sm:$0xf] }
 0x5db   : > { %5561 = vmatpush.bf16.msrb.mxu2 %v11796_v16  ;;  %v10017_v16 = vor.u32 %v11402_v42, %v10016_v5  ;;  %v11375_v5 = vld [vmem:[%s17303_s7 + $0xc14] sm:$0xf] }
 0x5dc   : > { %5519 = vmatmul.bf16.vlgmr.msra.gmra.mxu3 %v14915_v32 }
 0x5dd   : > { %5707 = vmatpush.bf16.msrb.mxu3 %v9949_v24  ;;  %5823 = vmatpush.bf16.msrb.mxu0 %v10017_v16  ;;  %v9994_v24 = vld [vmem:[%s17303_s7 + $0xcb8] sm:$0xf0]  ;;  %v9901_v16 = vor.u32 %v11375_v5, %v9898_v43  ;;  %v11431_v5 = vld [vmem:[%s17303_s7 + $0xdd4] sm:$0xf] }
 0x5de   : > { %5562 = vmatmul.bf16.vlgmr.msrb.gmra.mxu2 %v15748_v22  ;;  %v9997_v52 = vor.u32 %v11395_v30, %v9994_v24  ;;  %v10098_v30 = vld [vmem:[%s17303_s7 + $0xd68] sm:$0xf0]  ;;  %v10170_v43 = vld [vmem:[%s17303_s7 + $0xdd8] sm:$0xf0] }
 0x5df   : > { %5835 = vmatpush.bf16.msra.mxu2 %v10029_v39  ;;  %v9984_v39 = vld [vmem:[%s17303_s7 + $0xca0] sm:$0xf] }
 0x5e0   : > { %v9985_v46 = vor.u32 %v11394_v35, %v9984_v39  ;;  %v11416_v39 = vld [vmem:[%s17303_s7 + $0xd54] sm:$0xf0]  ;;  %v11415_v35 = vld [vmem:[%s17303_s7 + $0xd54] sm:$0xf] }
 0x5e1   : > { %5708 = vmatpush.bf16.msrb.mxu3 %v9941_v36  ;;  %v11376_v36 = vld [vmem:[%s17303_s7 + $0xc14] sm:$0xf0] }
 0x5e3   : > { %5836 = vmatpush.bf16.msra.mxu2 %v10021_v59  ;;  %v11392_v59 = vld [vmem:[%s17303_s7 + $0xc94] sm:$0xf0] }
 0x5e9   : > { %v4730_v0 = vpop.f32.mrf.mxu1 }
 0x5ea   : > { %v4735_v53 = vadd.f32 %v4730_v0, %v14983_v29  ;;  %v11383_v0 = vld [vmem:[%s17303_s7 + $0xc54] sm:$0xf] }
 0x5eb   : > { %v4858_v54 = vpop.f32.mrf.mxu0 }
 0x5ec   : > { %v4863_v3 = vadd.f32 %v4858_v54, %v4735_v53  ;;  %v9929_v54 = vor.u32 %v11384_v14, %v9928_v50  ;;  %v11391_v50 = vld [vmem:[%s17303_s7 + $0xc94] sm:$0xf]  ;;  %v9977_v14 = vor.u32 %v11392_v59, %v9976_v44  ;;  %v10080_v44 = vld [vmem:[%s17303_s7 + $0xd40] sm:$0xf]  ;;  %v11414_v59 = vld [vmem:[%s17303_s7 + $0xd44] sm:$0xf0] }
 0x5ee   : > { %5696 = vmatpush.bf16.msra.mxu1 %v9929_v54  ;;  %v9888_v54 = vld [vmem:[%s17303_s7 + $0xc00] sm:$0xf] }
 0x5ef   : > { %v4717_v21 = vpop.f32.mrf.mxu3 }
 0x5f0   : > { %v4734_v38 = vadd.f32 %v4717_v21, %v14945_v45 }
 0x5f1   : > { %v4732_v60 = vpop.f32.mrf.mxu1  ;;  %v4845_v56 = vpop.f32.mrf.mxu2 }
 0x5f2   : > { %v4862_v57 = vadd.f32 %v4845_v56, %v4734_v38  ;;  %v10008_v38 = vld [vmem:[%s17303_s7 + $0xcd0] sm:$0xf]  ;;  %v11400_v60 = vld [vmem:[%s17303_s7 + $0xcd4] sm:$0xf0]  ;;  %v11399_v56 = vld [vmem:[%s17303_s7 + $0xcd4] sm:$0xf] }
 0x5f3   : > { %v4860_v26 = vpop.f32.mrf.mxu0 }
 0x5f4   : > { %v10009_v26 = vor.u32 %v11400_v60, %v10008_v38  ;;  %v9890_v60 = vld [vmem:[%s17303_s7 + $0xc08] sm:$0xf0] }
 0x5f6   : > { %5824 = vmatpush.bf16.msrb.mxu0 %v10009_v26 }
 0x5f7   : > { %v4719_v1 = vpop.f32.mrf.mxu3 }
 0x5f8   : > { %v10010_v1 = vld [vmem:[%s17303_s7 + $0xcd8] sm:$0xf0] }
 0x5f9   : > { %v4847_v19 = vpop.f32.mrf.mxu2  ;;  %v4985_v25 = vpop.f32.mrf.mxu1 }
 0x5fa   : > { %v4990_v9 = vadd.f32 %v4985_v25, %v4863_v3  ;;  %v9930_v3 = vld [vmem:[%s17303_s7 + $0xc58] sm:$0xf0]  ;;  %v10013_v19 = vor.u32 %v11399_v56, %v10010_v1  ;;  %v9920_v25 = vld [vmem:[%s17303_s7 + $0xc40] sm:$0xf]  ;;  %v10104_v56 = vld [vmem:[%s17303_s7 + $0xd70] sm:$0xf] }
 0x5fb   : > { %v5112_v4 = vpop.f32.mrf.mxu0  ;;  %v9933_v21 = vor.u32 %v11383_v0, %v9930_v3  ;;  %v9978_v0 = vld [vmem:[%s17303_s7 + $0xc98] sm:$0xf0]  ;;  %v11374_v3 = vld [vmem:[%s17303_s7 + $0xc04] sm:$0xf0] }
 0x5fc   : > { %v5117_v32 = vadd.f32 %v5112_v4, %v4990_v9  ;;  %v11382_v9 = vld [vmem:[%s17303_s7 + $0xc44] sm:$0xf0]  ;;  %v11381_v4 = vld [vmem:[%s17303_s7 + $0xc44] sm:$0xf]  ;;  %5837 = vmatpush.bf16.msra.mxu2 %v10013_v19  ;;  %v9889_v38 = vor.u32 %v11374_v3, %v9888_v54  ;;  %v11419_v19 = vld [vmem:[%s17303_s7 + $0xd74] sm:$0xf] }
 0x5fd   : > { %5709 = vmatpush.bf16.msrb.mxu3 %v9933_v21  ;;  %v11373_v21 = vld [vmem:[%s17303_s7 + $0xc04] sm:$0xf]  ;;  %v10160_v54 = vld [vmem:[%s17303_s7 + $0xdc0] sm:$0xf]  ;;  %v11430_v3 = vld [vmem:[%s17303_s7 + $0xdc4] sm:$0xf0] }
 0x5fe   : > { %v9893_v26 = vor.u32 %v11373_v21, %v9890_v60  ;;  %v11429_v21 = vld [vmem:[%s17303_s7 + $0xdc4] sm:$0xf] }
 0x5ff   : > { %v4972_v11 = vpop.f32.mrf.mxu3 }
 0x600   : > { %v4989_v13 = vadd.f32 %v4972_v11, %v4862_v57  ;;  %v9922_v11 = vld [vmem:[%s17303_s7 + $0xc48] sm:$0xf0] }
 0x601   : > { %v4987_v61 = vpop.f32.mrf.mxu1  ;;  %v5099_v37 = vpop.f32.mrf.mxu2 }
 0x602   : > { %v5116_v29 = vadd.f32 %v5099_v37, %v4989_v13  ;;  %v9925_v13 = vor.u32 %v11381_v4, %v9922_v11  ;;  %v10000_v61 = vld [vmem:[%s17303_s7 + $0xcc0] sm:$0xf]  ;;  %v11398_v37 = vld [vmem:[%s17303_s7 + $0xcc4] sm:$0xf0]  ;;  %v11389_v11 = vld [vmem:[%s17303_s7 + $0xc84] sm:$0xf] }
 0x603   : > { %v5114_v62 = vpop.f32.mrf.mxu0 }
 0x604   : > { %v10001_v62 = vor.u32 %v11398_v37, %v10000_v61  ;;  %5710 = vmatpush.bf16.msrb.mxu3 %v9925_v13  ;;  %v9970_v13 = vld [vmem:[%s17303_s7 + $0xc88] sm:$0xf0] }
 0x605   : > { %v9973_v37 = vor.u32 %v11389_v11, %v9970_v13  ;;  %v10152_v13 = vld [vmem:[%s17303_s7 + $0xdb0] sm:$0xf] }
 0x606   : > { %5825 = vmatpush.bf16.msrb.mxu0 %v10001_v62  ;;  %v11436_v62 = vld [vmem:[%s17303_s7 + $0xdf4] sm:$0xf0] }
 0x607   : > { %v4974_v31 = vpop.f32.mrf.mxu3 }
 0x608   : > { %v10002_v31 = vld [vmem:[%s17303_s7 + $0xcc8] sm:$0xf0] }
 0x609   : > { %v5101_v63 = vpop.f32.mrf.mxu2  ;;  %v5242_v33 = vpop.f32.mrf.mxu1 }
 0x60a   : > { %v5247_v45 = vadd.f32 %v5242_v33, %v5117_v32  ;;  %v9921_v32 = vor.u32 %v11382_v9, %v9920_v25  ;;  %v9912_v33 = vld [vmem:[%s17303_s7 + $0xc30] sm:$0xf]  ;;  %v10106_v25 = vld [vmem:[%s17303_s7 + $0xd78] sm:$0xf0]  ;;  %v9968_v9 = vld [vmem:[%s17303_s7 + $0xc80] sm:$0xf] }
 0x60b   : > { %v5370_v12 = vpop.f32.mrf.mxu0  ;;  %v10109_v4 = vor.u32 %v11419_v19, %v10106_v25  ;;  %v10072_v19 = vld [vmem:[%s17303_s7 + $0xd30] sm:$0xf]  ;;  %v11412_v25 = vld [vmem:[%s17303_s7 + $0xd34] sm:$0xf0] }
 0x60c   : > { %v15754_v34 = vadd.f32 %v5370_v12, %v5247_v45  ;;  %5697 = vmatpush.bf16.msra.mxu1 %v9921_v32  ;;  %v11380_v45 = vld [vmem:[%s17303_s7 + $0xc34] sm:$0xf0]  ;;  %v11379_v12 = vld [vmem:[%s17303_s7 + $0xc34] sm:$0xf]  ;;  %v11390_v32 = vld [vmem:[%s17303_s7 + $0xc84] sm:$0xf0] }
 0x60d   : > { %v9913_v55 = vor.u32 %v11380_v45, %v9912_v33  ;;  %v9917_v49 = vor.u32 %v11379_v12, %v9914_v2  ;;  %v9969_v61 = vor.u32 %v11390_v32, %v9968_v9  ;;  %v10186_v33 = vld [vmem:[%s17303_s7 + $0xdf8] sm:$0xf0]  ;;  %v10096_v45 = vld [vmem:[%s17303_s7 + $0xd60] sm:$0xf]  ;;  %v11418_v12 = vld [vmem:[%s17303_s7 + $0xd64] sm:$0xf0] }
 0x60e   : > { %v11411_v9 = vld [vmem:[%s17303_s7 + $0xd34] sm:$0xf]  ;;  %v10074_v32 = vld [vmem:[%s17303_s7 + $0xd38] sm:$0xf0] }
 0x60f   : > { %v5229_v18 = vpop.f32.mrf.mxu3  ;;  %5711 = vmatpush.bf16.msrb.mxu3 %v9917_v49  ;;  %v10077_v11 = vor.u32 %v11411_v9, %v10074_v32 }
 0x610   : > { %v5246_v20 = vadd.f32 %v5229_v18, %v5116_v29  ;;  %v11397_v29 = vld [vmem:[%s17303_s7 + $0xcc4] sm:$0xf]  ;;  %v9992_v18 = vld [vmem:[%s17303_s7 + $0xcb0] sm:$0xf]  ;;  %5698 = vmatpush.bf16.msra.mxu1 %v9913_v55 }
 0x611   : > { %v5357_v15 = vpop.f32.mrf.mxu2  ;;  %v5244_v28 = vpop.f32.mrf.mxu1  ;;  %v10005_v63 = vor.u32 %v11397_v29, %v10002_v31  ;;  %v10184_v29 = vld [vmem:[%s17303_s7 + $0xdf0] sm:$0xf]  ;;  %v11435_v31 = vld [vmem:[%s17303_s7 + $0xdf4] sm:$0xf] }
 0x612   : > { %v15780_v10 = vadd.f32 %v5357_v15, %v5246_v20  ;;  %v9993_v20 = vor.u32 %v11396_v40, %v9992_v18  ;;  %v11377_v15 = vld [vmem:[%s17303_s7 + $0xc24] sm:$0xf]  ;;  %v10189_v49 = vor.u32 %v11435_v31, %v10186_v33  ;;  %v10097_v18 = vor.u32 %v11418_v12, %v10096_v45  ;;  %v10154_v31 = vld [vmem:[%s17303_s7 + $0xdb8] sm:$0xf0]  ;;  %v10064_v33 = vld [vmem:[%s17303_s7 + $0xd20] sm:$0xf] }
 0x613   : > { %v5372_v7 = vpop.f32.mrf.mxu0  ;;  %5838 = vmatpush.bf16.msra.mxu2 %v10005_v63  ;;  %v9909_v28 = vor.u32 %v11377_v15, %v9906_v51  ;;  %v10185_v63 = vor.u32 %v11436_v62, %v10184_v29  ;;  %v11417_v40 = vld [vmem:[%s17303_s7 + $0xd64] sm:$0xf]  ;;  %v10178_v15 = vld [vmem:[%s17303_s7 + $0xde8] sm:$0xf0]  ;;  %v11410_v45 = vld [vmem:[%s17303_s7 + $0xd24] sm:$0xf0] }
 0x614   : > { %5826 = vmatpush.bf16.msrb.mxu0 %v9993_v20  ;;  %5699 = vmatpush.bf16.msra.mxu1 %v9905_v17  ;;  %v9896_v7 = vld [vmem:[%s17303_s7 + $0xc10] sm:$0xf]  ;;  %v10176_v20 = vld [vmem:[%s17303_s7 + $0xde0] sm:$0xf]  ;;  %v10181_v51 = vor.u32 %v11433_v27, %v10178_v15  ;;  %v11409_v12 = vld [vmem:[%s17303_s7 + $0xd24] sm:$0xf] }
 0x615   : > { %5712 = vmatpush.bf16.msrb.mxu3 %v9909_v28  ;;  %v9897_v42 = vor.u32 %v11376_v36, %v9896_v7  ;;  %v10177_v17 = vor.u32 %v11434_v23, %v10176_v20  ;;  %v10088_v28 = vld [vmem:[%s17303_s7 + $0xd50] sm:$0xf]  ;;  %v11432_v36 = vld [vmem:[%s17303_s7 + $0xdd4] sm:$0xf0]  ;;  %v11426_v20 = vld [vmem:[%s17303_s7 + $0xda4] sm:$0xf0] }
 0x616   : > { %v10168_v7 = vld [vmem:[%s17303_s7 + $0xdd0] sm:$0xf]  ;;  %v10146_v27 = vld [vmem:[%s17303_s7 + $0xda8] sm:$0xf0] }
 0x617   : > { %v5231_v53 = vpop.f32.mrf.mxu3  ;;  %5839 = vmatpush.bf16.msra.mxu2 %v9997_v52  ;;  %v10101_v52 = vor.u32 %v11417_v40, %v10098_v30  ;;  %v10144_v30 = vld [vmem:[%s17303_s7 + $0xda0] sm:$0xf] }
 0x618   : > { %5827 = vmatpush.bf16.msrb.mxu0 %v9985_v46  ;;  %5700 = vmatpush.bf16.msra.mxu1 %v9897_v42  ;;  %v9981_v53 = vor.u32 %v11391_v50, %v9978_v0  ;;  %v10089_v46 = vor.u32 %v11416_v39, %v10088_v28  ;;  %v10169_v42 = vor.u32 %v11432_v36, %v10168_v7  ;;  %v11413_v50 = vld [vmem:[%s17303_s7 + $0xd44] sm:$0xf]  ;;  %v10082_v0 = vld [vmem:[%s17303_s7 + $0xd48] sm:$0xf0]  ;;  %v11407_v28 = vld [vmem:[%s17303_s7 + $0xd14] sm:$0xf] }
 0x619   : > { %v5359_v57 = vpop.f32.mrf.mxu2  ;;  %5713 = vmatpush.bf16.msrb.mxu3 %v9901_v16  ;;  %v15993_v24 = vpop.f32.mrf.mxu1  ;;  %v10173_v16 = vor.u32 %v11431_v5, %v10170_v43  ;;  %v10145_v23 = vor.u32 %v11426_v20, %v10144_v30  ;;  %v10136_v36 = vld [vmem:[%s17303_s7 + $0xd90] sm:$0xf]  ;;  %v11424_v5 = vld [vmem:[%s17303_s7 + $0xd94] sm:$0xf0] }
 0x61a   : > { %v11420_v57 = vld [vmem:[%s17303_s7 + $0xd74] sm:$0xf0]  ;;  %v10137_v43 = vor.u32 %v11424_v5, %v10136_v36  ;;  %v11451_v36 = vld [vmem:[%s17303_s7 + $0xe74] sm:$0xf] }
 0x61b   : > { %5840 = vmatpush.bf16.msra.mxu2 %v9989_v8  ;;  %v10105_v1 = vor.u32 %v11420_v57, %v10104_v56  ;;  %v15982_v2 = vpop.f32.mrf.mxu0  ;;  %v10093_v8 = vor.u32 %v11415_v35, %v10090_v6  ;;  %v10161_v56 = vor.u32 %v11430_v3, %v10160_v54  ;;  %v10162_v57 = vld [vmem:[%s17303_s7 + $0xdc8] sm:$0xf0]  ;;  %v10058_v6 = vld [vmem:[%s17303_s7 + $0xd18] sm:$0xf0] }
 0x61c   : > { %5828 = vmatpush.bf16.msrb.mxu0 %v9977_v14  ;;  %5701 = vmatpush.bf16.msra.mxu1 %v9889_v38  ;;  %v10081_v14 = vor.u32 %v11414_v59, %v10080_v44  ;;  %v10061_v7 = vor.u32 %v11407_v28, %v10058_v6  ;;  %v10138_v44 = vld [vmem:[%s17303_s7 + $0xd98] sm:$0xf0]  ;;  %v10050_v54 = vld [vmem:[%s17303_s7 + $0xd08] sm:$0xf0]  ;;  %v11452_v6 = vld [vmem:[%s17303_s7 + $0xe74] sm:$0xf0] }
 0x61d   : > { %5714 = vmatpush.bf16.msrb.mxu3 %v9893_v26 }
 0x61f   : > { %5841 = vmatpush.bf16.msra.mxu2 %v9981_v53  ;;  %v10085_v53 = vor.u32 %v11413_v50, %v10082_v0  ;;  %v10048_v50 = vld [vmem:[%s17303_s7 + $0xd00] sm:$0xf]  ;;  %v11405_v0 = vld [vmem:[%s17303_s7 + $0xd04] sm:$0xf] }
 0x620   : > { %5949 = vmatpush.bf16.msrb.mxu1 %v10105_v1  ;;  %5829 = vmatpush.bf16.msrb.mxu0 %v9969_v61  ;;  %v10165_v1 = vor.u32 %v11429_v21, %v10162_v57  ;;  %v11428_v61 = vld [vmem:[%s17303_s7 + $0xdb4] sm:$0xf0]  ;;  %v10053_v3 = vor.u32 %v11405_v0, %v10050_v54  ;;  %v10128_v21 = vld [vmem:[%s17303_s7 + $0xd80] sm:$0xf]  ;;  %v11421_v57 = vld [vmem:[%s17303_s7 + $0xd84] sm:$0xf] }
 0x621   : > { %5962 = vmatpush.bf16.msra.mxu3 %v10109_v4  ;;  %v16058_v26 = vpop.f32.mrf.mxu1  ;;  %v10073_v4 = vor.u32 %v11412_v25, %v10072_v19  ;;  %v10153_v62 = vor.u32 %v11428_v61, %v10152_v13  ;;  %v10130_v25 = vld [vmem:[%s17303_s7 + $0xd88] sm:$0xf0] }
 0x622   : > { %v10133_v9 = vor.u32 %v11421_v57, %v10130_v25  ;;  %v10258_v57 = vld [vmem:[%s17303_s7 + $0xe68] sm:$0xf0] }
 0x623   : > { %5842 = vmatpush.bf16.msra.mxu2 %v9973_v37  ;;  %v16053_v60 = vpop.f32.mrf.mxu0  ;;  %v11427_v37 = vld [vmem:[%s17303_s7 + $0xdb4] sm:$0xf] }
 0x624   : > { %6076 = vmatpush.bf16.msra.mxu0 %v10185_v63  ;;  %5950 = vmatpush.bf16.msrb.mxu1 %v10097_v18  ;;  %v10157_v63 = vor.u32 %v11427_v37, %v10154_v31  ;;  %v10066_v18 = vld [vmem:[%s17303_s7 + $0xd28] sm:$0xf0] }
 0x625   : > { %5963 = vmatpush.bf16.msra.mxu3 %v10101_v52  ;;  %v10069_v40 = vor.u32 %v11409_v12, %v10066_v18  ;;  %v11425_v52 = vld [vmem:[%s17303_s7 + $0xda4] sm:$0xf] }
 0x626   : > { %v10149_v15 = vor.u32 %v11425_v52, %v10146_v27 }
 0x627   : > { %6089 = vmatpush.bf16.msrb.mxu2 %v10189_v49  ;;  %v10065_v49 = vor.u32 %v11410_v45, %v10064_v33 }
 0x628   : > { %6077 = vmatpush.bf16.msra.mxu0 %v10177_v17  ;;  %5951 = vmatpush.bf16.msrb.mxu1 %v10089_v46  ;;  %v10056_v17 = vld [vmem:[%s17303_s7 + $0xd10] sm:$0xf] }
 0x629   : > { %5964 = vmatpush.bf16.msra.mxu3 %v10093_v8 }
 0x62b   : > { %6090 = vmatpush.bf16.msrb.mxu2 %v10181_v51  ;;  %v11408_v51 = vld [vmem:[%s17303_s7 + $0xd14] sm:$0xf0] }
 0x62c   : > { %6078 = vmatpush.bf16.msra.mxu0 %v10169_v42  ;;  %5952 = vmatpush.bf16.msrb.mxu1 %v10081_v14  ;;  %v10057_v46 = vor.u32 %v11408_v51, %v10056_v17  ;;  %v11406_v14 = vld [vmem:[%s17303_s7 + $0xd04] sm:$0xf0] }
 0x62d   : > { %5965 = vmatpush.bf16.msra.mxu3 %v10085_v53  ;;  %v10049_v53 = vor.u32 %v11406_v14, %v10048_v50  ;;  %v10346_v50 = vld [vmem:[%s17303_s7 + $0xef8] sm:$0xf0] }
 0x62f   : > { %v15980_v55 = vpop.f32.mrf.mxu3  ;;  %6091 = vmatpush.bf16.msrb.mxu2 %v10173_v16  ;;  %v11423_v16 = vld [vmem:[%s17303_s7 + $0xd94] sm:$0xf] }
 0x630   : > { %6079 = vmatpush.bf16.msra.mxu0 %v10161_v56  ;;  %5953 = vmatpush.bf16.msrb.mxu1 %v10073_v4  ;;  %v10141_v59 = vor.u32 %v11423_v16, %v10138_v44  ;;  %v11422_v56 = vld [vmem:[%s17303_s7 + $0xd84] sm:$0xf0]  ;;  %v11468_v44 = vld [vmem:[%s17303_s7 + $0xef4] sm:$0xf0] }
 0x631   : > { %v16013_v48 = vpop.f32.mrf.mxu2  ;;  %5966 = vmatpush.bf16.msra.mxu3 %v10077_v11  ;;  %v10129_v19 = vor.u32 %v11422_v56, %v10128_v21  ;;  %v11450_v21 = vld [vmem:[%s17303_s7 + $0xe64] sm:$0xf0]  ;;  %v11449_v56 = vld [vmem:[%s17303_s7 + $0xe64] sm:$0xf] }
 0x633   : > { %6092 = vmatpush.bf16.msrb.mxu2 %v10165_v1  ;;  %v5400_v1 = vadd.f32 %v15993_v24, %v15980_v55 }
 0x634   : > { %6080 = vmatpush.bf16.msra.mxu0 %v10153_v62  ;;  %5954 = vmatpush.bf16.msrb.mxu1 %v10065_v49  ;;  %v16165_v49 = vld [vmem:[%s17301_s5] ss:$0 sm:$0xff] }
 0x635   : > { %5967 = vmatpush.bf16.msra.mxu3 %v10069_v40  ;;  %v5414_v11 = vadd.f32 %v16013_v48, %v5400_v1 }
 0x637   : > { %v16051_v38 = vpop.f32.mrf.mxu3  ;;  %6093 = vmatpush.bf16.msrb.mxu2 %v10157_v63  ;;  %v5428_v62 = vadd.f32 %v15982_v2, %v5414_v11  ;;  %v16171_v2 = vld [vmem:[%s17302_s6] ss:$0 sm:$0xff] }
 0x638   : > { %6081 = vmatpush.bf16.msra.mxu0 %v10145_v23  ;;  %5955 = vmatpush.bf16.msrb.mxu1 %v10057_v46  ;;  %v5402_v28 = vadd.f32 %v16058_v26, %v16051_v38  ;;  %v10264_v46 = vld [vmem:[%s17303_s7 + $0xe70] sm:$0xf]  ;;  %v10266_v38 = vld [vmem:[%s17303_s7 + $0xe78] sm:$0xf0] }
 0x639   : > { %v16081_v29 = vpop.f32.mrf.mxu2  ;;  %v5456_v8 = vpop.f32.mrf.mxu1  ;;  %5968 = vmatpush.bf16.msra.mxu3 %v10061_v7  ;;  %v10344_v26 = vld [vmem:[%s17303_s7 + $0xef0] sm:$0xf]  ;;  %v10269_v54 = vor.u32 %v11451_v36, %v10266_v38 }
 0x63a   : > { %v5416_v5 = vadd.f32 %v16081_v29, %v5402_v28  ;;  %v10256_v29 = vld [vmem:[%s17303_s7 + $0xe60] sm:$0xf] }
 0x63b   : > { %v5492_v35 = vpop.f32.mrf.mxu0  ;;  %6094 = vmatpush.bf16.msrb.mxu2 %v10149_v15 }
 0x63c   : > { %6082 = vmatpush.bf16.msra.mxu0 %v10137_v43  ;;  %5956 = vmatpush.bf16.msrb.mxu1 %v10049_v53  ;;  %v10265_v53 = vor.u32 %v11452_v6, %v10264_v46  ;;  %v5430_v11 = vadd.f32 %v16053_v60, %v5416_v5  ;;  %v10248_v60 = vld [vmem:[%s17303_s7 + $0xe50] sm:$0xf]  ;;  %v10320_v46 = vld [vmem:[%s17303_s7 + $0xec0] sm:$0xf]  ;;  %v11462_v6 = vld [vmem:[%s17303_s7 + $0xec4] sm:$0xf0] }
 0x63d   : > { %5969 = vmatpush.bf16.msra.mxu3 %v10053_v3  ;;  %v11444_v5 = vld [vmem:[%s17303_s7 + $0xe34] sm:$0xf0] }
 0x63f   : > { %v5470_v39 = vpop.f32.mrf.mxu3  ;;  %6095 = vmatpush.bf16.msrb.mxu2 %v10141_v59  ;;  %v11467_v59 = vld [vmem:[%s17303_s7 + $0xef4] sm:$0xf] }
 0x640   : > { %6083 = vmatpush.bf16.msra.mxu0 %v10129_v19  ;;  %v5471_v37 = vadd.f32 %v5470_v39, %v5456_v8  ;;  %v10345_v19 = vor.u32 %v11468_v44, %v10344_v26  ;;  %v10349_v25 = vor.u32 %v11467_v59, %v10346_v50  ;;  %v10232_v26 = vld [vmem:[%s17303_s7 + $0xe30] sm:$0xf]  ;;  %v10321_v44 = vor.u32 %v11462_v6, %v10320_v46  ;;  %v11453_v46 = vld [vmem:[%s17303_s7 + $0xe84] sm:$0xf]  ;;  %v10290_v6 = vld [vmem:[%s17303_s7 + $0xe88] sm:$0xf0] }
 0x641   : > { %v5506_v42 = vpop.f32.mrf.mxu2  ;;  %v5458_v13 = vpop.f32.mrf.mxu1  ;;  %v10312_v50 = vld [vmem:[%s17303_s7 + $0xeb0] sm:$0xf] }
 0x642   : > { %v5475_v31 = vadd.f32 %v5471_v37, %v5428_v62  ;;  %v5507_v55 = vadd.f32 %v5506_v42, %v5492_v35  ;;  %v10257_v62 = vor.u32 %v11450_v21, %v10256_v29  ;;  %v10224_v21 = vld [vmem:[%s17303_s7 + $0xe20] sm:$0xf] }
 0x643   : > { %v5494_v32 = vpop.f32.mrf.mxu0  ;;  %6096 = vmatpush.bf16.msrb.mxu2 %v10133_v9  ;;  %v10336_v9 = vld [vmem:[%s17303_s7 + $0xee0] sm:$0xf] }
 0x644   : > { %v5477_v18 = vmul.f32 %v16165_v49, %v5475_v31  ;;  %v10261_v31 = vor.u32 %v11449_v56, %v10258_v57  ;;  %v11442_v56 = vld [vmem:[%s17303_s7 + $0xe24] sm:$0xf0] }
 0x646   : > { %v5479_v20 = vadd.f32 %v16171_v2, %v5477_v18  ;;  %v10328_v18 = vld [vmem:[%s17303_s7 + $0xed0] sm:$0xf] }
 0x647   : > { %v5472_v4 = vpop.f32.mrf.mxu3 }
 0x648   : > { %v5481_v27 = vmax.f32 %v5479_v20, 0.0  ;;  %v5473_v1 = vadd.f32 %v5472_v4, %v5458_v13  ;;  %v11465_v4 = vld [vmem:[%s17303_s7 + $0xee4] sm:$0xf]  ;;  %v10338_v13 = vld [vmem:[%s17303_s7 + $0xee8] sm:$0xf0] }
 0x649   : > { %v5508_v61 = vpop.f32.mrf.mxu2  ;;  %v5534_v63 = vpop.f32.mrf.mxu1 }
 0x64a   : > { %v5509_v51 = vadd.f32 %v5508_v61, %v5494_v32  ;;  %v11466_v32 = vld [vmem:[%s17303_s7 + $0xee4] sm:$0xf0] }
 0x64b   : > { %v5577_v45 = vpop.f32.mrf.mxu0 }
 0x651   : > { %v5536_v42 = vpop.f32.mrf.mxu1 }
 0x653   : > { %v5579_v16 = vpop.f32.mrf.mxu0 }
 0x65f   : > { %v5520_v24 = vpop.f32.mrf.mxu3 }
 0x660   : > { %v5521_v33 = vadd.f32 %v5520_v24, %v5507_v55  ;;  %v11448_v55 = vld [vmem:[%s17303_s7 + $0xe54] sm:$0xf0]  ;;  %v11447_v24 = vld [vmem:[%s17303_s7 + $0xe54] sm:$0xf] }
 0x661   : > { %v5563_v12 = vpop.f32.mrf.mxu2 }
 0x662   : > { %v5535_v48 = vadd.f32 %v5534_v63, %v5521_v33  ;;  %v5578_v40 = vadd.f32 %v5577_v45, %v5563_v12  ;;  %v10250_v63 = vld [vmem:[%s17303_s7 + $0xe58] sm:$0xf0]  ;;  %v5476_v33 = vadd.f32 %v5473_v1, %v5430_v11  ;;  %v10337_v45 = vor.u32 %v11466_v32, %v10336_v9  ;;  %v11441_v1 = vld [vmem:[%s17303_s7 + $0xe24] sm:$0xf]  ;;  %v10304_v11 = vld [vmem:[%s17303_s7 + $0xea0] sm:$0xf] }
 0x663   : > { %v10341_v12 = vor.u32 %v11465_v4, %v10338_v13  ;;  %v11457_v13 = vld [vmem:[%s17303_s7 + $0xea4] sm:$0xf] }
 0x664   : > { %v5582_v30 = vadd.f32 %v5578_v40, %v5535_v48  ;;  %v11464_v48 = vld [vmem:[%s17303_s7 + $0xed4] sm:$0xf0]  ;;  %v11463_v40 = vld [vmem:[%s17303_s7 + $0xed4] sm:$0xf]  ;;  %v5478_v28 = vmul.f32 %v16165_v49, %v5476_v33 }
 0x666   : > { %v5584_v52 = vmul.f32 %v16165_v49, %v5582_v30  ;;  %v10330_v30 = vld [vmem:[%s17303_s7 + $0xed8] sm:$0xf0] }
 0x667   : > { %v5522_v17 = vpop.f32.mrf.mxu3 }
 0x668   : > { %v5586_v23 = vadd.f32 %v16171_v2, %v5584_v52  ;;  %v5523_v35 = vadd.f32 %v5522_v17, %v5509_v51  ;;  %v10249_v52 = vor.u32 %v11448_v55, %v10248_v60  ;;  %v11445_v17 = vld [vmem:[%s17303_s7 + $0xe44] sm:$0xf]  ;;  %v10242_v51 = vld [vmem:[%s17303_s7 + $0xe48] sm:$0xf0]  ;;  %v10216_v55 = vld [vmem:[%s17303_s7 + $0xe10] sm:$0xf] }
 0x669   : > { %v5565_v7 = vpop.f32.mrf.mxu2  ;;  %v10245_v38 = vor.u32 %v11445_v17, %v10242_v51  ;;  %v10210_v17 = vld [vmem:[%s17303_s7 + $0xe08] sm:$0xf0] }
 0x66a   : > { %v5588_v15 = vmax.f32 %v5586_v23, 0.0  ;;  %v5537_v14 = vadd.f32 %v5536_v42, %v5523_v35  ;;  %v5580_v0 = vadd.f32 %v5579_v16, %v5565_v7  ;;  %v10253_v23 = vor.u32 %v11447_v24, %v10250_v63  ;;  %v11443_v42 = vld [vmem:[%s17303_s7 + $0xe34] sm:$0xf]  ;;  %v10218_v63 = vld [vmem:[%s17303_s7 + $0xe18] sm:$0xf0] }
 0x66b   : > { %v10333_v35 = vor.u32 %v11463_v40, %v10330_v30  ;;  %v5480_v16 = vadd.f32 %v16171_v2, %v5478_v28  ;;  %v11439_v24 = vld [vmem:[%s17303_s7 + $0xe14] sm:$0xf]  ;;  %v10298_v40 = vld [vmem:[%s17303_s7 + $0xe98] sm:$0xf0] }
 0x66c   : > { %v5590_v39 = vmax.f32 %v5481_v27, %v5588_v15  ;;  %v5583_v37 = vadd.f32 %v5580_v0, %v5537_v14  ;;  %v10240_v27 = vld [vmem:[%s17303_s7 + $0xe40] sm:$0xf]  ;;  %v11446_v15 = vld [vmem:[%s17303_s7 + $0xe44] sm:$0xf0]  ;;  %v11460_v14 = vld [vmem:[%s17303_s7 + $0xeb4] sm:$0xf0] }
 0x66d   : > { %v10241_v36 = vor.u32 %v11446_v15, %v10240_v27  ;;  %v11459_v0 = vld [vmem:[%s17303_s7 + $0xeb4] sm:$0xf]  ;;  %v10313_v9 = vor.u32 %v11460_v14, %v10312_v50  ;;  %v11438_v27 = vld [vmem:[%s17303_s7 + $0xe04] sm:$0xf0]  ;;  %v11437_v15 = vld [vmem:[%s17303_s7 + $0xe04] sm:$0xf] }
 0x66e   : > { %v5593_v8 = vrot.slane %v5590_v39, 1  ;;  %v5585_v20 = vmul.f32 %v16165_v49, %v5583_v37  ;;  %v10322_v49 = vld [vmem:[%s17303_s7 + $0xec8] sm:$0xf0]  ;;  %v16410_v50 = vld [vmem:[%s17300_s4 + $0xb0] sm:$0xff] }
 0x66f   : > { %v10306_v37 = vld [vmem:[%s17303_s7 + $0xea8] sm:$0xf0]  ;;  %v16416_v14 = vld [vmem:[%s17300_s4 + $0x30] sm:$0xff] }
 0x670   : > { %v5595_v43 = vmax.f32 %v5590_v39, %v5593_v8  ;;  %v10329_v39 = vor.u32 %v11464_v48, %v10328_v18  ;;  %v11461_v8 = vld [vmem:[%s17303_s7 + $0xec4] sm:$0xf]  ;;  %v5587_v7 = vadd.f32 %v16171_v2, %v5585_v20  ;;  %v10314_v2 = vld [vmem:[%s17303_s7 + $0xeb8] sm:$0xf0]  ;;  %v11456_v18 = vld [vmem:[%s17303_s7 + $0xe94] sm:$0xf0] }
 0x671   : > { %v10325_v59 = vor.u32 %v11461_v8, %v10322_v49  ;;  %v10317_v32 = vor.u32 %v11459_v0, %v10314_v2  ;;  %v11455_v48 = vld [vmem:[%s17303_s7 + $0xe94] sm:$0xf]  ;;  %v11807_v2 = vld [vmem:[%s17300_s4 + $0x88] sm:$0xff] }
 0x672   : > { %v16206_v3 = vpack.c.bf16 %v5595_v43, %v5595_v43  ;;  %v10234_v43 = vld [vmem:[%s17303_s7 + $0xe38] sm:$0xf0]  ;;  %v10301_v28 = vor.u32 %v11455_v48, %v10298_v40  ;;  %v16422_v0 = vld [vmem:[%s17300_s4 + $0x50] sm:$0xff]  ;;  %v11469_v48 = vld [vmem:[#allocation2 + $0xc4] sm:$0xf] }
 0x673   : > { %v10237_v29 = vor.u32 %v11443_v42, %v10234_v43  ;;  %v16389_v42 = vld [vmem:[%s17300_s4 + $0xb8] sm:$0xff]  ;;  %v10356_v40 = vld [vmem:[#allocation2 + $0xc8] sm:$0xf0] }
 0x674   : > { %5702 = vmatmul.bf16.vlgmr.msra.gmra.mxu1 %v16206_v3  ;;  %5715 = vmatmul.bf16.vlgmr.msrb.gmra.mxu3 %v16206_v3  ;;  %v5740_v61 = vrot.slane %v16206_v3, 1  ;;  %v5867_v57 = vrot.slane %v16206_v3, 2  ;;  %v5994_v4 = vrot.slane %v16206_v3, 3  ;;  %v11440_v3 = vld [vmem:[%s17303_s7 + $0xe14] sm:$0xf0] }
 0x675   : > { %6206 = vmatpush.bf16.msra.mxu1 %v10265_v53  ;;  %6219 = vmatpush.bf16.msrb.mxu3 %v10269_v54  ;;  %v5589_v53 = vmax.f32 %v5587_v7, 0.0  ;;  %v10233_v54 = vor.u32 %v11444_v5, %v10232_v26  ;;  %v10217_v20 = vor.u32 %v11440_v3, %v10216_v55  ;;  %v10213_v7 = vor.u32 %v11437_v15, %v10210_v17  ;;  %v11799_v5 = vld [vmem:[%s17300_s4 + $0x98] sm:$0xff]  ;;  %v11828_v55 = vld [vmem:[%s17300_s4] sm:$0xff]  ;;  %v11829_v3 = vld [vmem:[%s17300_s4 + $0xd0] sm:$0xff] }
 0x676   : > { %5830 = vmatmul.bf16.vlgmr.msrb.gmra.mxu0 %v5740_v61  ;;  %5843 = vmatmul.bf16.vlgmr.msra.gmra.mxu2 %v5740_v61  ;;  %v11458_v61 = vld [vmem:[%s17303_s7 + $0xea4] sm:$0xf0]  ;;  %v16395_v43 = vld [vmem:[%s17300_s4 + $0x38] sm:$0xff]  ;;  %v10365_v15 = vld [vmem:[#allocation2 + $0xd0] sm:$0xf] }
 0x677   : > { %6334 = vmatpush.bf16.msrb.mxu0 %v10345_v19  ;;  %6347 = vmatpush.bf16.msra.mxu2 %v10349_v25  ;;  %v10226_v19 = vld [vmem:[%s17303_s7 + $0xe28] sm:$0xf0]  ;;  %v5482_v25 = vmax.f32 %v5480_v16, 0.0  ;;  %v10305_v33 = vor.u32 %v11458_v61, %v10304_v11  ;;  %v16401_v16 = vld [vmem:[%s17300_s4 + $0x58] sm:$0xff]  ;;  %v11819_v11 = vld [vmem:[%s17300_s4 + $0x70] sm:$0xff] }
 0x678   : > { %v10229_v60 = vor.u32 %v11441_v1, %v10226_v19  ;;  %v16464_v1 = vld [vmem:[%s17300_s4 + $0x20] sm:$0xff]  ;;  %v11820_v61 = vld [vmem:[%s17300_s4 + $0xe8] sm:$0xff]  ;;  %v11472_v17 = vld [vmem:[#allocation2 + $0xd4] sm:$0xf0] }
 0x679   : > { %6207 = vmatpush.bf16.msra.mxu1 %v10257_v62  ;;  %6220 = vmatpush.bf16.msrb.mxu3 %v10261_v31  ;;  %v5591_v62 = vmax.f32 %v5482_v25, %v5589_v53  ;;  %v10225_v31 = vor.u32 %v11442_v56, %v10224_v21  ;;  %v16431_v53 = vld [vmem:[%s17300_s4 + $0xa8] sm:$0xff]  ;;  %v11811_v21 = vld [vmem:[%s17300_s4 + $0x80] sm:$0xff]  ;;  %v11816_v25 = vld [vmem:[%s17300_s4 + $0x78] sm:$0xff] }
 0x67a   : > { %v16452_v56 = vld [vmem:[%s17300_s4 + $0xa0] sm:$0xff] }
 0x67b   : > { %6335 = vmatpush.bf16.msrb.mxu0 %v10337_v45  ;;  %6348 = vmatpush.bf16.msra.mxu2 %v10341_v12  ;;  %v10309_v45 = vor.u32 %v11457_v13, %v10306_v37  ;;  %v10296_v12 = vld [vmem:[%s17303_s7 + $0xe90] sm:$0xf]  ;;  %v6105_v30 = vrot.slane %v5591_v62, 1  ;;  %v16470_v19 = vld [vmem:[%s17300_s4 + $0x40] sm:$0xff]  ;;  %v11822_v13 = vld [vmem:[%s17300_s4 + $0x68] sm:$0xff] }
 0x67c   : > { %v10297_v51 = vor.u32 %v11456_v18, %v10296_v12  ;;  %v11823_v37 = vld [vmem:[%s17300_s4 + $0xe0] sm:$0xff] }
 0x67d   : > { %6208 = vmatpush.bf16.msra.mxu1 %v10249_v52  ;;  %6221 = vmatpush.bf16.msrb.mxu3 %v10253_v23  ;;  %v10221_v52 = vor.u32 %v11439_v24, %v10218_v63  ;;  %v10208_v23 = vld [vmem:[%s17303_s7 + $0xe00] sm:$0xf]  ;;  %v6107_v8 = vmax.f32 %v5591_v62, %v6105_v30  ;;  %v11830_v24 = vld [vmem:[%s17300_s4 + $0x110] sm:$0xff]  ;;  %v11831_v63 = vld [vmem:[%s17300_s4 + $0xc8] sm:$0xff] }
 0x67e   : > { %v10209_v49 = vor.u32 %v11438_v27, %v10208_v23  ;;  %v11825_v62 = vld [vmem:[%s17300_s4 + $0x60] sm:$0xff]  ;;  %v10367_v23 = vld [vmem:[#allocation2 + $0xd8] sm:$0xf0] }
 0x67f   : > { %6336 = vmatpush.bf16.msrb.mxu0 %v10329_v39  ;;  %6349 = vmatpush.bf16.msra.mxu2 %v10333_v35  ;;  %v10288_v39 = vld [vmem:[%s17303_s7 + $0xe80] sm:$0xf]  ;;  %v11454_v35 = vld [vmem:[%s17303_s7 + $0xe84] sm:$0xf0]  ;;  %v6108_v26 = vpack.c.bf16 %v6107_v8, %v6107_v8 }
 0x680   : > { %v11833_v18 = vld [vmem:[%s17300_s4 + $0xc0] sm:$0xff] }
 0x681   : > { %6209 = vmatpush.bf16.msra.mxu1 %v10241_v36  ;;  %6222 = vmatpush.bf16.msrb.mxu3 %v10245_v38  ;;  %v10289_v36 = vor.u32 %v11454_v35, %v10288_v39  ;;  %v10293_v38 = vor.u32 %v11453_v46, %v10290_v6  ;;  %v11834_v30 = vld [vmem:[%s17300_s4 + $0x100] sm:$0xff] }
 0x683   : > { %6337 = vmatpush.bf16.msrb.mxu0 %v10321_v44  ;;  %6350 = vmatpush.bf16.msra.mxu2 %v10325_v59  ;;  %v6252_v44 = vrot.slane %v6108_v26, 1  ;;  %v11803_v59 = vld [vmem:[%s17300_s4 + $0x90] sm:$0xff] }
 0x684   : > { %5957 = vmatmul.bf16.vlgmr.msrb.gmra.mxu1 %v5867_v57  ;;  %5970 = vmatmul.bf16.vlgmr.msra.gmra.mxu3 %v5867_v57  ;;  %v16458_v57 = vld [vmem:[%s17300_s4 + $0xf8] sm:$0xff] }
 0x685   : > { %6210 = vmatpush.bf16.msra.mxu1 %v10233_v54  ;;  %6223 = vmatpush.bf16.msrb.mxu3 %v10237_v29  ;;  %v16437_v54 = vld [vmem:[%s17300_s4 + $0x28] sm:$0xff] }
 0x686   : > { %6084 = vmatmul.bf16.vlgmr.msra.gmra.mxu0 %v5994_v4  ;;  %6097 = vmatmul.bf16.vlgmr.msrb.gmra.mxu2 %v5994_v4  ;;  %v16443_v29 = vld [vmem:[%s17300_s4 + $0x48] sm:$0xff]  ;;  %v16501_v4 = vld [vmem:[%s17300_s4 + $0x10] sm:$0xff] }
 0x687   : > { %6338 = vmatpush.bf16.msrb.mxu0 %v10313_v9  ;;  %6351 = vmatpush.bf16.msra.mxu2 %v10317_v32  ;;  %v16479_v9 = vld [vmem:[%s17300_s4 + $0xf0] sm:$0xff]  ;;  %v16485_v32 = vld [vmem:[%s17300_s4 + $0x18] sm:$0xff] }
 0x689   : > { %6211 = vmatpush.bf16.msra.mxu1 %v10225_v31  ;;  %6224 = vmatpush.bf16.msrb.mxu3 %v10229_v60  ;;  %v11826_v31 = vld [vmem:[%s17300_s4 + $0xd8] sm:$0xff] }
 0x68a   : > { %v11827_v60 = vld [vmem:[%s17300_s4 + $0x118] sm:$0xff] }
 0x68b   : > { %6339 = vmatpush.bf16.msrb.mxu0 %v10305_v33  ;;  %6352 = vmatpush.bf16.msra.mxu2 %v10309_v45  ;;  %v10354_v33 = vld [vmem:[#allocation2 + $0xc0] sm:$0xf]  ;;  %v11832_v45 = vld [vmem:[%s17300_s4 + $0x108] sm:$0xff] }
 0x68d   : > { %6212 = vmatpush.bf16.msra.mxu1 %v10217_v20  ;;  %6225 = vmatpush.bf16.msrb.mxu3 %v10221_v52  ;;  %v10359_v20 = vor.u32 %v11469_v48, %v10356_v40  ;;  %v11471_v52 = vld [vmem:[#allocation2 + $0xd4] sm:$0xf] }
 0x68e   : > { %v10370_v27 = vor.u32 %v11471_v52, %v10367_v23  ;;  %v11483_v52 = vld [vmem:[%s17303_s7 + $0xf54] sm:$0xf] }
 0x68f   : > { %6340 = vmatpush.bf16.msrb.mxu0 %v10297_v51  ;;  %6353 = vmatpush.bf16.msra.mxu2 %v10301_v28  ;;  %v10366_v51 = vor.u32 %v11472_v17, %v10365_v15  ;;  %v10432_v15 = vld [vmem:[%s17303_s7 + $0xf58] sm:$0xf0]  ;;  %v10510_v17 = vld [vmem:[%s17303_s7 + $0xfd0] sm:$0xf] }
 0x691   : > { %6213 = vmatpush.bf16.msra.mxu1 %v10209_v49  ;;  %6226 = vmatpush.bf16.msrb.mxu3 %v10213_v7 }
 0x693   : > { %6341 = vmatpush.bf16.msrb.mxu0 %v10289_v36  ;;  %6354 = vmatpush.bf16.msra.mxu2 %v10293_v38 }
 0x694   : > { %6214 = vmatmul.bf16.vlgmr.msra.gmra.mxu1 %v6108_v26  ;;  %6227 = vmatmul.bf16.vlgmr.msrb.gmra.mxu3 %v6108_v26 }
 0x695   : > { %6362 = vmatpush.bf16.msrb.mxu1 %v11799_v5  ;;  %6380 = vmatpush.bf16.msra.mxu3 %v16389_v42 }
 0x696   : > { %6342 = vmatmul.bf16.vlgmr.msrb.gmra.mxu0 %v6252_v44  ;;  %6355 = vmatmul.bf16.vlgmr.msra.gmra.mxu2 %v6252_v44 }
 0x697   : > { %6390 = vmatpush.bf16.msra.mxu0 %v16395_v43  ;;  %6408 = vmatpush.bf16.msrb.mxu2 %v16401_v16 }
 0x699   : > { %6363 = vmatpush.bf16.msrb.mxu1 %v11803_v59  ;;  %6381 = vmatpush.bf16.msra.mxu3 %v16410_v50 }
 0x69b   : > { %6391 = vmatpush.bf16.msra.mxu0 %v16416_v14  ;;  %6409 = vmatpush.bf16.msrb.mxu2 %v16422_v0 }
 0x69d   : > { %6364 = vmatpush.bf16.msrb.mxu1 %v11807_v2  ;;  %6382 = vmatpush.bf16.msra.mxu3 %v16431_v53 }
 0x69f   : > { %6392 = vmatpush.bf16.msra.mxu0 %v16437_v54  ;;  %6410 = vmatpush.bf16.msrb.mxu2 %v16443_v29 }
 0x6a1   : > { %6365 = vmatpush.bf16.msrb.mxu1 %v11811_v21  ;;  %6383 = vmatpush.bf16.msra.mxu3 %v16452_v56 }
 0x6a3   : > { %6393 = vmatpush.bf16.msra.mxu0 %v16464_v1  ;;  %6411 = vmatpush.bf16.msrb.mxu2 %v16470_v19 }
 0x6a4   : > { %10350 = vmatmul.msk.bf16.vlgmr.msra.gmra.mxu3 %vm912_vm0, %v15739_v47 }
 0x6a5   : > { %6433 = vmatpush.bf16.msrb.mxu3 %v16458_v57  ;;  %6366 = vmatpush.bf16.msrb.mxu1 %v11816_v25 }
 0x6a6   : > { %10351 = vmatmul.msk.bf16.vlgmr.msrb.gmra.mxu2 %vm912_vm0, %v15722_v58  ;;  %v16513_v58 = vld [vmem:[%s17300_s4 + $0x8] sm:$0xff] }
 0x6a7   : > { %6469 = vmatpush.bf16.msra.mxu2 %v11799_v5  ;;  %6394 = vmatpush.bf16.msra.mxu0 %v16485_v32 }
 0x6a9   : > { %6434 = vmatpush.bf16.msrb.mxu3 %v16479_v9  ;;  %6367 = vmatpush.bf16.msrb.mxu1 %v11819_v11 }
 0x6ab   : > { %6470 = vmatpush.bf16.msra.mxu2 %v11803_v59  ;;  %6395 = vmatpush.bf16.msra.mxu0 %v16501_v4 }
 0x6ad   : > { %6435 = vmatpush.bf16.msrb.mxu3 %v11820_v61  ;;  %6368 = vmatpush.bf16.msrb.mxu1 %v11822_v13 }
 0x6af   : > { %6471 = vmatpush.bf16.msra.mxu2 %v11807_v2  ;;  %6396 = vmatpush.bf16.msra.mxu0 %v16513_v58 }
 0x6b1   : > { %6436 = vmatpush.bf16.msrb.mxu3 %v11823_v37  ;;  %6369 = vmatpush.bf16.msrb.mxu1 %v11825_v62 }
 0x6b3   : > { %6472 = vmatpush.bf16.msra.mxu2 %v11811_v21  ;;  %6397 = vmatpush.bf16.msra.mxu0 %v11828_v55 }
 0x6b4   : > { %6370 = vmatmul.bf16.vlgmr.msrb.gmra.mxu1 %v15748_v22 }
 0x6b5   : > { %6437 = vmatpush.bf16.msrb.mxu3 %v11826_v31  ;;  %6451 = vmatpush.bf16.msra.mxu1 %v11827_v60 }
 0x6b6   : > { %6398 = vmatmul.bf16.vlgmr.msra.gmra.mxu0 %v15715_v41  ;;  %v11470_v41 = vld [vmem:[#allocation2 + $0xc4] sm:$0xf0] }
 0x6b7   : > { %6473 = vmatpush.bf16.msra.mxu2 %v11816_v25  ;;  %6487 = vmatpush.bf16.msrb.mxu0 %v16389_v42  ;;  %v10355_v12 = vor.u32 %v11470_v41, %v10354_v33  ;;  %v10526_v25 = vld [vmem:[%s17303_s7 + $0xff0] sm:$0xf]  ;;  %v11501_v33 = vld [vmem:[%s17303_s7 + $0xfe4] sm:$0xf] }
 0x6b9   : > { %6438 = vmatpush.bf16.msrb.mxu3 %v11829_v3  ;;  %6452 = vmatpush.bf16.msra.mxu1 %v11830_v24 }
 0x6bb   : > { %6474 = vmatpush.bf16.msra.mxu2 %v11819_v11  ;;  %6488 = vmatpush.bf16.msrb.mxu0 %v16410_v50 }
 0x6bd   : > { %6439 = vmatpush.bf16.msrb.mxu3 %v11831_v63  ;;  %6453 = vmatpush.bf16.msra.mxu1 %v11832_v45 }
 0x6bf   : > { %6475 = vmatpush.bf16.msra.mxu2 %v11822_v13  ;;  %6489 = vmatpush.bf16.msrb.mxu0 %v16431_v53 }
 0x6c1   : > { %6440 = vmatpush.bf16.msrb.mxu3 %v11833_v18  ;;  %6454 = vmatpush.bf16.msra.mxu1 %v11834_v30 }
 0x6c3   : > { %6476 = vmatpush.bf16.msra.mxu2 %v11825_v62  ;;  %6490 = vmatpush.bf16.msrb.mxu0 %v16452_v56  ;;  %v11485_v62 = vld [vmem:[%s17303_s7 + $0xf64] sm:$0xf] }
 0x6c4   : > { %6441 = vmatmul.bf16.vlgmr.msrb.gmra.mxu3 %v10355_v12  ;;  %10360 = vmatmul.msk.bf16.vlgmr.msra.gmra.mxu1 %vm912_vm0, %v10359_v20 }
 0x6c5   : > { %6515 = vmatpush.bf16.msra.mxu3 %v16401_v16  ;;  %6497 = vmatpush.bf16.msrb.mxu1 %v16395_v43 }
 0x6c6   : > { %6477 = vmatmul.bf16.vlgmr.msra.gmra.mxu2 %v10355_v12  ;;  %10361 = vmatmul.msk.bf16.vlgmr.msrb.gmra.mxu0 %vm912_vm0, %v10359_v20  ;;  %v10520_v12 = vld [vmem:[%s17303_s7 + $0xfe8] sm:$0xf0]  ;;  %v11484_v20 = vld [vmem:[%s17303_s7 + $0xf54] sm:$0xf0] }
 0x6c7   : > { %6540 = vmatpush.bf16.msra.mxu0 %v16458_v57  ;;  %6558 = vmatpush.bf16.msrb.mxu2 %v11827_v60  ;;  %v10448_v57 = vld [vmem:[%s17303_s7 + $0xf78] sm:$0xf0]  ;;  %v10440_v60 = vld [vmem:[%s17303_s7 + $0xf68] sm:$0xf0]  ;;  %v10523_v40 = vor.u32 %v11501_v33, %v10520_v12  ;;  %v11492_v12 = vld [vmem:[%s17303_s7 + $0xf94] sm:$0xf0] }
 0x6c8   : > { %v10400_v33 = vld [vmem:[%s17303_s7 + $0xf18] sm:$0xf0] }
 0x6c9   : > { %6516 = vmatpush.bf16.msra.mxu3 %v16422_v0  ;;  %6498 = vmatpush.bf16.msrb.mxu1 %v16416_v14 }
 0x6cb   : > { %6541 = vmatpush.bf16.msra.mxu0 %v16479_v9  ;;  %6559 = vmatpush.bf16.msrb.mxu2 %v11830_v24  ;;  %v11504_v9 = vld [vmem:[%s17303_s7 + $0xff4] sm:$0xf0]  ;;  %v10518_v24 = vld [vmem:[%s17303_s7 + $0xfe0] sm:$0xf] }
 0x6cd   : > { %6517 = vmatpush.bf16.msra.mxu3 %v16443_v29  ;;  %6499 = vmatpush.bf16.msrb.mxu1 %v16437_v54  ;;  %v11488_v54 = vld [vmem:[%s17303_s7 + $0xf74] sm:$0xf0]  ;;  %v11487_v29 = vld [vmem:[%s17303_s7 + $0xf74] sm:$0xf] }
 0x6cf   : > { %6542 = vmatpush.bf16.msra.mxu0 %v11820_v61  ;;  %6560 = vmatpush.bf16.msrb.mxu2 %v11832_v45  ;;  %v10527_v61 = vor.u32 %v11504_v9, %v10526_v25  ;;  %v11478_v25 = vld [vmem:[%s17303_s7 + $0xf24] sm:$0xf0]  ;;  %v11477_v9 = vld [vmem:[%s17303_s7 + $0xf24] sm:$0xf] }
 0x6d1   : > { %6518 = vmatpush.bf16.msra.mxu3 %v16470_v19  ;;  %6500 = vmatpush.bf16.msrb.mxu1 %v16464_v1  ;;  %v10451_v19 = vor.u32 %v11487_v29, %v10448_v57  ;;  %v11496_v29 = vld [vmem:[%s17303_s7 + $0xfb4] sm:$0xf0]  ;;  %v10496_v57 = vld [vmem:[%s17303_s7 + $0xfb8] sm:$0xf0] }
 0x6d3   : > { %6543 = vmatpush.bf16.msra.mxu0 %v11823_v37  ;;  %6561 = vmatpush.bf16.msrb.mxu2 %v11834_v30  ;;  %v10438_v37 = vld [vmem:[%s17303_s7 + $0xf60] sm:$0xf]  ;;  %v10430_v30 = vld [vmem:[%s17303_s7 + $0xf50] sm:$0xf] }
 0x6d4   : > { %10362 = vmatmul.msk.bf16.vlgmr.msra.gmra.mxu3 %vm912_vm0, %v15739_v47 }
 0x6d5   : > { %6501 = vmatpush.bf16.msrb.mxu1 %v16485_v32  ;;  %v11503_v32 = vld [vmem:[%s17303_s7 + $0xff4] sm:$0xf] }
 0x6d6   : > { %10371 = vmatmul.msk.bf16.vlgmr.msrb.gmra.mxu2 %vm912_vm0, %v10370_v27  ;;  %v10431_v27 = vor.u32 %v11484_v20, %v10430_v30  ;;  %v10390_v20 = vld [vmem:[%s17303_s7 + $0xf00] sm:$0xf] }
 0x6d7   : > { %6544 = vmatpush.bf16.msra.mxu0 %v11826_v31  ;;  %6808 = vmatpush.bf16.msra.mxu2 %v10527_v61  ;;  %v10408_v61 = vld [vmem:[%s17303_s7 + $0xf28] sm:$0xf0] }
 0x6d9   : > { %6502 = vmatpush.bf16.msrb.mxu1 %v16501_v4  ;;  %v10528_v4 = vld [vmem:[%s17303_s7 + $0xff8] sm:$0xf0] }
 0x6da   : > { %v10531_v13 = vor.u32 %v11503_v32, %v10528_v4  ;;  %v10411_v4 = vor.u32 %v11477_v9, %v10408_v61  ;;  %v10590_v9 = vld [vmem:[%s17303_s7 + $0x1050] sm:$0xf]  ;;  %v11515_v61 = vld [vmem:[%s17303_s7 + $0x1054] sm:$0xf] }
 0x6db   : > { %6545 = vmatpush.bf16.msra.mxu0 %v11829_v3  ;;  %v10443_v3 = vor.u32 %v11485_v62, %v10440_v60 }
 0x6dd   : > { %6503 = vmatpush.bf16.msrb.mxu1 %v16513_v58  ;;  %v11486_v58 = vld [vmem:[%s17303_s7 + $0xf64] sm:$0xf0] }
 0x6de   : > { %v10439_v31 = vor.u32 %v11486_v58, %v10438_v37  ;;  %v11494_v37 = vld [vmem:[%s17303_s7 + $0xfa4] sm:$0xf0]  ;;  %v11493_v58 = vld [vmem:[%s17303_s7 + $0xfa4] sm:$0xf] }
 0x6df   : > { %6546 = vmatpush.bf16.msra.mxu0 %v11831_v63  ;;  %v11502_v63 = vld [vmem:[%s17303_s7 + $0xfe4] sm:$0xf0] }
 0x6e0   : > { %v10519_v45 = vor.u32 %v11502_v63, %v10518_v24  ;;  %v11475_v24 = vld [vmem:[%s17303_s7 + $0xf14] sm:$0xf] }
 0x6e1   : > { %6504 = vmatpush.bf16.msrb.mxu1 %v11828_v55 }
 0x6e2   : > { %6809 = vmatpush.bf16.msra.mxu2 %v10519_v45  ;;  %v10478_v45 = vld [vmem:[%s17303_s7 + $0xf90] sm:$0xf] }
 0x6e3   : > { %6547 = vmatpush.bf16.msra.mxu0 %v11833_v18 }
 0x6e4   : > { %6505 = vmatmul.bf16.vlgmr.msrb.gmra.mxu1 %v15748_v22 }
 0x6e5   : > { %6693 = vmatpush.bf16.msra.mxu1 %v10451_v19  ;;  %v10406_v19 = vld [vmem:[%s17303_s7 + $0xf20] sm:$0xf] }
 0x6e6   : > { %6548 = vmatmul.bf16.vlgmr.msra.gmra.mxu0 %v10366_v51  ;;  %v11500_v51 = vld [vmem:[%s17303_s7 + $0xfd4] sm:$0xf0]  ;;  %v10407_v32 = vor.u32 %v11478_v25, %v10406_v19 }
 0x6e7   : > { %6821 = vmatpush.bf16.msrb.mxu0 %v10531_v13  ;;  %v10486_v13 = vld [vmem:[%s17303_s7 + $0xfa0] sm:$0xf] }
 0x6e8   : > { %v10487_v62 = vor.u32 %v11494_v37, %v10486_v13  ;;  %v10592_v13 = vld [vmem:[%s17303_s7 + $0x1058] sm:$0xf0] }
 0x6e9   : > { %6694 = vmatpush.bf16.msra.mxu1 %v10443_v3  ;;  %v11476_v3 = vld [vmem:[%s17303_s7 + $0xf14] sm:$0xf0]  ;;  %v10595_v37 = vor.u32 %v11515_v61, %v10592_v13  ;;  %v10638_v13 = vld [vmem:[%s17303_s7 + $0x1090] sm:$0xf] }
 0x6eb   : > { %6822 = vmatpush.bf16.msrb.mxu0 %v10523_v40  ;;  %v10480_v40 = vld [vmem:[%s17303_s7 + $0xf98] sm:$0xf0] }
 0x6f1   : > { %v5703_v28 = vpop.f32.mrf.mxu1 }
 0x6f2   : > { %v5720_v47 = vadd.f32 %v5703_v28, %v15780_v10 }
 0x6f3   : > { %v5831_v39 = vpop.f32.mrf.mxu0 }
 0x6f4   : > { %v5848_v35 = vadd.f32 %v5831_v39, %v5720_v47  ;;  %v10435_v47 = vor.u32 %v11483_v52, %v10432_v15  ;;  %v10511_v39 = vor.u32 %v11500_v51, %v10510_v17  ;;  %v11474_v52 = vld [vmem:[%s17303_s7 + $0xf04] sm:$0xf0]  ;;  %v10392_v17 = vld [vmem:[%s17303_s7 + $0xf08] sm:$0xf0]  ;;  %v10606_v51 = vld [vmem:[%s17303_s7 + $0x1070] sm:$0xf] }
 0x6f5   : > { %v10391_v15 = vor.u32 %v11474_v52, %v10390_v20 }
 0x6f6   : > { %6695 = vmatpush.bf16.msra.mxu1 %v10435_v47  ;;  %6810 = vmatpush.bf16.msra.mxu2 %v10511_v39 }
 0x6f7   : > { %v5716_v46 = vpop.f32.mrf.mxu3 }
 0x6f8   : > { %v5721_v6 = vadd.f32 %v5716_v46, %v15754_v34  ;;  %v10446_v34 = vld [vmem:[%s17303_s7 + $0xf70] sm:$0xf]  ;;  %v10512_v46 = vld [vmem:[%s17303_s7 + $0xfd8] sm:$0xf0] }
 0x6f9   : > { %v5705_v8 = vpop.f32.mrf.mxu1  ;;  %v5844_v49 = vpop.f32.mrf.mxu2  ;;  %v10447_v56 = vor.u32 %v11488_v54, %v10446_v34  ;;  %v10494_v54 = vld [vmem:[%s17303_s7 + $0xfb0] sm:$0xf] }
 0x6fa   : > { %v5849_v7 = vadd.f32 %v5844_v49, %v5721_v6  ;;  %v10422_v8 = vld [vmem:[%s17303_s7 + $0xf40] sm:$0xf]  ;;  %v11482_v49 = vld [vmem:[%s17303_s7 + $0xf44] sm:$0xf0] }
 0x6fb   : > { %v5833_v36 = vpop.f32.mrf.mxu0  ;;  %6680 = vmatpush.bf16.msrb.mxu3 %v10447_v56  ;;  %v10495_v56 = vor.u32 %v11496_v29, %v10494_v54 }
 0x6fc   : > { %v10423_v36 = vor.u32 %v11482_v49, %v10422_v8  ;;  %v11490_v49 = vld [vmem:[%s17303_s7 + $0xf84] sm:$0xf0] }
 0x6ff   : > { %v5718_v38 = vpop.f32.mrf.mxu3  ;;  %6681 = vmatpush.bf16.msrb.mxu3 %v10439_v31  ;;  %v10488_v31 = vld [vmem:[%s17303_s7 + $0xfa8] sm:$0xf0] }
 0x700   : > { %v10424_v38 = vld [vmem:[%s17303_s7 + $0xf48] sm:$0xf0]  ;;  %v10491_v60 = vor.u32 %v11493_v58, %v10488_v31  ;;  %v10670_v58 = vld [vmem:[%s17303_s7 + $0x10d0] sm:$0xf]  ;;  %v11531_v31 = vld [vmem:[%s17303_s7 + $0x10d4] sm:$0xf] }
 0x701   : > { %v5846_v26 = vpop.f32.mrf.mxu2  ;;  %v5958_v5 = vpop.f32.mrf.mxu1 }
 0x702   : > { %v5975_v42 = vadd.f32 %v5958_v5, %v5848_v35  ;;  %v11499_v35 = vld [vmem:[%s17303_s7 + $0xfd4] sm:$0xf] }
 0x703   : > { %v6085_v43 = vpop.f32.mrf.mxu0  ;;  %6682 = vmatpush.bf16.msrb.mxu3 %v10431_v27  ;;  %v10515_v6 = vor.u32 %v11499_v35, %v10512_v46  ;;  %v11473_v27 = vld [vmem:[%s17303_s7 + $0xf04] sm:$0xf]  ;;  %v11519_v35 = vld [vmem:[%s17303_s7 + $0x1074] sm:$0xf]  ;;  %v10608_v46 = vld [vmem:[%s17303_s7 + $0x1078] sm:$0xf0] }
 0x704   : > { %v6102_v16 = vadd.f32 %v6085_v43, %v5975_v42  ;;  %v10502_v42 = vld [vmem:[%s17303_s7 + $0xfc0] sm:$0xf]  ;;  %v11498_v43 = vld [vmem:[%s17303_s7 + $0xfc4] sm:$0xf0]  ;;  %v10395_v47 = vor.u32 %v11473_v27, %v10392_v17  ;;  %v10611_v8 = vor.u32 %v11519_v35, %v10608_v46  ;;  %v10664_v27 = vld [vmem:[%s17303_s7 + $0x10c8] sm:$0xf0] }
 0x705   : > { %6823 = vmatpush.bf16.msrb.mxu0 %v10515_v6  ;;  %v10470_v6 = vld [vmem:[%s17303_s7 + $0xf80] sm:$0xf]  ;;  %v10576_v35 = vld [vmem:[%s17303_s7 + $0x1038] sm:$0xf0] }
 0x707   : > { %v5971_v22 = vpop.f32.mrf.mxu3  ;;  %6683 = vmatpush.bf16.msrb.mxu3 %v10423_v36  ;;  %v10472_v36 = vld [vmem:[%s17303_s7 + $0xf88] sm:$0xf0] }
 0x708   : > { %v5976_v44 = vadd.f32 %v5971_v22, %v5849_v7  ;;  %v11481_v7 = vld [vmem:[%s17303_s7 + $0xf44] sm:$0xf]  ;;  %v10503_v22 = vor.u32 %v11498_v43, %v10502_v42  ;;  %v11536_v42 = vld [vmem:[%s17303_s7 + $0x10f4] sm:$0xf0]  ;;  %v11535_v43 = vld [vmem:[%s17303_s7 + $0x10f4] sm:$0xf] }
 0x709   : > { %v5960_v59 = vpop.f32.mrf.mxu1  ;;  %v6098_v50 = vpop.f32.mrf.mxu2  ;;  %v10427_v5 = vor.u32 %v11481_v7, %v10424_v38  ;;  %v11489_v7 = vld [vmem:[%s17303_s7 + $0xf84] sm:$0xf]  ;;  %v10471_v38 = vor.u32 %v11490_v49, %v10470_v6  ;;  %v11528_v49 = vld [vmem:[%s17303_s7 + $0x10b4] sm:$0xf0] }
 0x70a   : > { %v6103_v10 = vadd.f32 %v6098_v50, %v5976_v44  ;;  %v10504_v44 = vld [vmem:[%s17303_s7 + $0xfc8] sm:$0xf0]  ;;  %6811 = vmatpush.bf16.msra.mxu2 %v10503_v22 }
 0x70b   : > { %v6087_v14 = vpop.f32.mrf.mxu0  ;;  %6696 = vmatpush.bf16.msra.mxu1 %v10427_v5  ;;  %v10686_v5 = vld [vmem:[%s17303_s7 + $0x10f0] sm:$0xf] }
 0x70c   : > { %v11480_v14 = vld [vmem:[%s17303_s7 + $0xf34] sm:$0xf0]  ;;  %v10687_v22 = vor.u32 %v11536_v42, %v10686_v5  ;;  %v10566_v5 = vld [vmem:[%s17303_s7 + $0x1020] sm:$0xf]  ;;  %v11510_v42 = vld [vmem:[%s17303_s7 + $0x1024] sm:$0xf0] }
 0x70e   : > { %6812 = vmatpush.bf16.msra.mxu2 %v10495_v56  ;;  %v11533_v56 = vld [vmem:[%s17303_s7 + $0x10e4] sm:$0xf] }
 0x70f   : > { %v5973_v0 = vpop.f32.mrf.mxu3 }
 0x710   : > { %v11479_v0 = vld [vmem:[%s17303_s7 + $0xf34] sm:$0xf] }
 0x711   : > { %v6100_v2 = vpop.f32.mrf.mxu2  ;;  %v6215_v53 = vpop.f32.mrf.mxu1 }
 0x712   : > { %v6232_v21 = vadd.f32 %v6215_v53, %v6102_v16  ;;  %v11497_v16 = vld [vmem:[%s17303_s7 + $0xfc4] sm:$0xf]  ;;  %v10416_v53 = vld [vmem:[%s17303_s7 + $0xf38] sm:$0xf0]  ;;  %6813 = vmatpush.bf16.msra.mxu2 %v10487_v62  ;;  %v11532_v62 = vld [vmem:[%s17303_s7 + $0x10d4] sm:$0xf0] }
 0x713   : > { %v6343_v1 = vpop.f32.mrf.mxu0  ;;  %v10507_v50 = vor.u32 %v11497_v16, %v10504_v44  ;;  %v10419_v34 = vor.u32 %v11479_v0, %v10416_v53  ;;  %v10688_v44 = vld [vmem:[%s17303_s7 + $0x10f8] sm:$0xf0]  ;;  %v10600_v53 = vld [vmem:[%s17303_s7 + $0x1068] sm:$0xf0] }
 0x714   : > { %v16594_v11 = vadd.f32 %v6343_v1, %v6232_v21  ;;  %v11495_v21 = vld [vmem:[%s17303_s7 + $0xfb4] sm:$0xf] }
 0x715   : > { %6824 = vmatpush.bf16.msrb.mxu0 %v10507_v50  ;;  %6697 = vmatpush.bf16.msra.mxu1 %v10419_v34  ;;  %v10499_v1 = vor.u32 %v11495_v21, %v10496_v57  ;;  %v11518_v50 = vld [vmem:[%s17303_s7 + $0x1064] sm:$0xf0]  ;;  %v10678_v34 = vld [vmem:[%s17303_s7 + $0x10e0] sm:$0xf]  ;;  %v10680_v57 = vld [vmem:[%s17303_s7 + $0x10e8] sm:$0xf0] }
 0x716   : > { %v11534_v21 = vld [vmem:[%s17303_s7 + $0x10e4] sm:$0xf0]  ;;  %v10683_v19 = vor.u32 %v11533_v56, %v10680_v57  ;;  %v10558_v57 = vld [vmem:[%s17303_s7 + $0x1010] sm:$0xf] }
 0x717   : > { %v6228_v55 = vpop.f32.mrf.mxu3 }
 0x718   : > { %v6233_v41 = vadd.f32 %v6228_v55, %v6103_v10  ;;  %v10414_v10 = vld [vmem:[%s17303_s7 + $0xf30] sm:$0xf] }
 0x719   : > { %v6217_v18 = vpop.f32.mrf.mxu1  ;;  %v6356_v48 = vpop.f32.mrf.mxu2  ;;  %v10415_v2 = vor.u32 %v11480_v14, %v10414_v10  ;;  %6825 = vmatpush.bf16.msrb.mxu0 %v10499_v1  ;;  %6698 = vmatpush.bf16.msra.mxu1 %v10411_v4  ;;  %v10398_v55 = vld [vmem:[%s17303_s7 + $0xf10] sm:$0xf]  ;;  %v10691_v14 = vor.u32 %v11535_v43, %v10688_v44  ;;  %v10679_v1 = vor.u32 %v11534_v21, %v10678_v34  ;;  %v11509_v43 = vld [vmem:[%s17303_s7 + $0x1024] sm:$0xf]  ;;  %v10568_v44 = vld [vmem:[%s17303_s7 + $0x1028] sm:$0xf0] }
 0x71a   : > { %v16632_v23 = vadd.f32 %v6356_v48, %v6233_v41  ;;  %v10399_v63 = vor.u32 %v11476_v3, %v10398_v55  ;;  %v10403_v41 = vor.u32 %v11475_v24, %v10400_v33  ;;  %v11491_v18 = vld [vmem:[%s17303_s7 + $0xf94] sm:$0xf]  ;;  %v10479_v48 = vor.u32 %v11492_v12, %v10478_v45  ;;  %v10672_v55 = vld [vmem:[%s17303_s7 + $0x10d8] sm:$0xf0]  ;;  %v10582_v24 = vld [vmem:[%s17303_s7 + $0x1040] sm:$0xf] }
 0x71b   : > { %v6345_v28 = vpop.f32.mrf.mxu0  ;;  %6684 = vmatpush.bf16.msrb.mxu3 %v10415_v2  ;;  %v10483_v30 = vor.u32 %v11491_v18, %v10480_v40  ;;  %v11517_v2 = vld [vmem:[%s17303_s7 + $0x1064] sm:$0xf]  ;;  %v10675_v3 = vor.u32 %v11531_v31, %v10672_v55  ;;  %v10584_v45 = vld [vmem:[%s17303_s7 + $0x1048] sm:$0xf0]  ;;  %v11530_v40 = vld [vmem:[%s17303_s7 + $0x10c4] sm:$0xf0] }
 0x71c   : > { %6814 = vmatpush.bf16.msra.mxu2 %v10479_v48  ;;  %v11520_v28 = vld [vmem:[%s17303_s7 + $0x1074] sm:$0xf0]  ;;  %v10603_v29 = vor.u32 %v11517_v2, %v10600_v53  ;;  %v11513_v33 = vld [vmem:[%s17303_s7 + $0x1044] sm:$0xf]  ;;  %v10662_v48 = vld [vmem:[%s17303_s7 + $0x10c0] sm:$0xf] }
 0x71d   : > { %6826 = vmatpush.bf16.msrb.mxu0 %v10491_v60  ;;  %6699 = vmatpush.bf16.msra.mxu1 %v10403_v41  ;;  %v10607_v39 = vor.u32 %v11520_v28, %v10606_v51  ;;  %v10671_v60 = vor.u32 %v11532_v62, %v10670_v58  ;;  %v10587_v18 = vor.u32 %v11513_v33, %v10584_v45  ;;  %v10574_v51 = vld [vmem:[%s17303_s7 + $0x1030] sm:$0xf]  ;;  %v11512_v28 = vld [vmem:[%s17303_s7 + $0x1034] sm:$0xf0]  ;;  %v10648_v34 = vld [vmem:[%s17303_s7 + $0x10a8] sm:$0xf0] }
 0x71e   : > { %v10663_v52 = vor.u32 %v11530_v40, %v10662_v48  ;;  %v11523_v58 = vld [vmem:[%s17303_s7 + $0x1094] sm:$0xf]  ;;  %v10640_v31 = vld [vmem:[%s17303_s7 + $0x1098] sm:$0xf0]  ;;  %v10550_v55 = vld [vmem:[%s17303_s7 + $0x1000] sm:$0xf] }
 0x71f   : > { %v6230_v26 = vpop.f32.mrf.mxu3  ;;  %6685 = vmatpush.bf16.msrb.mxu3 %v10407_v32  ;;  %v11516_v32 = vld [vmem:[%s17303_s7 + $0x1054] sm:$0xf0]  ;;  %v10552_v33 = vld [vmem:[%s17303_s7 + $0x1008] sm:$0xf0]  ;;  %v10630_v45 = vld [vmem:[%s17303_s7 + $0x1080] sm:$0xf] }
 0x720   : > { %v10475_v26 = vor.u32 %v11489_v7, %v10472_v36  ;;  %6815 = vmatpush.bf16.msra.mxu2 %v10471_v38  ;;  %v10591_v4 = vor.u32 %v11516_v32, %v10590_v9  ;;  %v11527_v7 = vld [vmem:[%s17303_s7 + $0x10b4] sm:$0xf]  ;;  %v10656_v38 = vld [vmem:[%s17303_s7 + $0x10b8] sm:$0xf0]  ;;  %v11522_v48 = vld [vmem:[%s17303_s7 + $0x1084] sm:$0xf0] }
 0x721   : > { %v6358_v59 = vpop.f32.mrf.mxu2  ;;  %6827 = vmatpush.bf16.msrb.mxu0 %v10483_v30  ;;  %6700 = vmatpush.bf16.msra.mxu1 %v10395_v47  ;;  %v11529_v30 = vld [vmem:[%s17303_s7 + $0x10c4] sm:$0xf]  ;;  %v11511_v47 = vld [vmem:[%s17303_s7 + $0x1034] sm:$0xf]  ;;  %v10560_v32 = vld [vmem:[%s17303_s7 + $0x1018] sm:$0xf0] }
 0x722   : > { %v10598_v59 = vld [vmem:[%s17303_s7 + $0x1060] sm:$0xf]  ;;  %v10667_v17 = vor.u32 %v11529_v30, %v10664_v27  ;;  %v10579_v6 = vor.u32 %v11511_v47, %v10576_v35  ;;  %v11521_v40 = vld [vmem:[%s17303_s7 + $0x1084] sm:$0xf]  ;;  %v10632_v30 = vld [vmem:[%s17303_s7 + $0x1088] sm:$0xf0] }
 0x723   : > { %6686 = vmatpush.bf16.msrb.mxu3 %v10399_v63  ;;  %v10599_v0 = vor.u32 %v11518_v50, %v10598_v59  ;;  %v11514_v63 = vld [vmem:[%s17303_s7 + $0x1044] sm:$0xf0]  ;;  %v10571_v59 = vor.u32 %v11509_v43, %v10568_v44  ;;  %v10646_v50 = vld [vmem:[%s17303_s7 + $0x10a0] sm:$0xf]  ;;  %v10635_v27 = vor.u32 %v11521_v40, %v10632_v30 }
 0x724   : > { %7062 = vmatpush.bf16.msrb.mxu2 %v10687_v22  ;;  %v10583_v41 = vor.u32 %v11514_v63, %v10582_v24  ;;  %v10567_v22 = vor.u32 %v11510_v42, %v10566_v5  ;;  %v11505_v24 = vld [vmem:[%s17303_s7 + $0x1004] sm:$0xf]  ;;  %v11566_v40 = vld [vmem:[%s17303_s7 + $0x11e4] sm:$0xf0] }
 0x725   : > { %6948 = vmatpush.bf16.msrb.mxu1 %v10611_v8  ;;  %6828 = vmatpush.bf16.msrb.mxu0 %v10475_v26  ;;  %v10654_v8 = vld [vmem:[%s17303_s7 + $0x10b0] sm:$0xf]  ;;  %v10659_v26 = vor.u32 %v11527_v7, %v10656_v38 }
 0x726   : > { %v10655_v36 = vor.u32 %v11528_v49, %v10654_v8 }
 0x727   : > { %6687 = vmatpush.bf16.msrb.mxu3 %v10391_v15  ;;  %v16801_v10 = vpop.f32.mrf.mxu3 }
 0x728   : > { %7063 = vmatpush.bf16.msrb.mxu2 %v10679_v1  ;;  %v11508_v1 = vld [vmem:[%s17303_s7 + $0x1014] sm:$0xf0] }
 0x729   : > { %v16790_v16 = vpop.f32.mrf.mxu2  ;;  %7075 = vmatpush.bf16.msra.mxu0 %v10691_v14  ;;  %6949 = vmatpush.bf16.msrb.mxu1 %v10603_v29  ;;  %v11526_v14 = vld [vmem:[%s17303_s7 + $0x10a4] sm:$0xf0]  ;;  %v10559_v9 = vor.u32 %v11508_v1, %v10558_v57  ;;  %v11552_v57 = vld [vmem:[%s17303_s7 + $0x1174] sm:$0xf0] }
 0x72a   : > { %v10647_v53 = vor.u32 %v11526_v14, %v10646_v50 }
 0x72b   : > { %6935 = vmatpush.bf16.msra.mxu3 %v10607_v39  ;;  %v10575_v39 = vor.u32 %v11512_v28, %v10574_v51 }
 0x72c   : > { %7064 = vmatpush.bf16.msrb.mxu2 %v10671_v60  ;;  %v10643_v60 = vor.u32 %v11523_v58, %v10640_v31  ;;  %v11568_v58 = vld [vmem:[%s17303_s7 + $0x11f4] sm:$0xf0]  ;;  %v10848_v31 = vld [vmem:[%s17303_s7 + $0x11f8] sm:$0xf0] }
 0x72d   : > { %7076 = vmatpush.bf16.msra.mxu0 %v10683_v19  ;;  %6950 = vmatpush.bf16.msrb.mxu1 %v10595_v37  ;;  %v11507_v19 = vld [vmem:[%s17303_s7 + $0x1014] sm:$0xf]  ;;  %v11524_v37 = vld [vmem:[%s17303_s7 + $0x1094] sm:$0xf0] }
 0x72e   : > { %v10639_v62 = vor.u32 %v11524_v37, %v10638_v13 }
 0x72f   : > { %6936 = vmatpush.bf16.msra.mxu3 %v10599_v0  ;;  %v16872_v20 = vpop.f32.mrf.mxu3  ;;  %v11525_v0 = vld [vmem:[%s17303_s7 + $0x10a4] sm:$0xf] }
 0x730   : > { %7065 = vmatpush.bf16.msrb.mxu2 %v10663_v52  ;;  %v10651_v56 = vor.u32 %v11525_v0, %v10648_v34  ;;  %v10631_v52 = vor.u32 %v11522_v48, %v10630_v45  ;;  %v10838_v48 = vld [vmem:[%s17303_s7 + $0x11e0] sm:$0xf] }
 0x731   : > { %v16812_v54 = vpop.f32.mrf.mxu1  ;;  %v16861_v12 = vpop.f32.mrf.mxu2  ;;  %7077 = vmatpush.bf16.msra.mxu0 %v10675_v3  ;;  %6951 = vmatpush.bf16.msrb.mxu1 %v10587_v18  ;;  %v11506_v3 = vld [vmem:[%s17303_s7 + $0x1004] sm:$0xf0] }
 0x732   : > { %v10551_v63 = vor.u32 %v11506_v3, %v10550_v55  ;;  %v6386_v18 = vadd.f32 %v16801_v10, %v16812_v54 }
 0x733   : > { %v16823_v25 = vpop.f32.mrf.mxu0  ;;  %6937 = vmatpush.bf16.msra.mxu3 %v10591_v4  ;;  %v10563_v4 = vor.u32 %v11507_v19, %v10560_v32  ;;  %v11551_v19 = vld [vmem:[%s17303_s7 + $0x1174] sm:$0xf]  ;;  %v10846_v32 = vld [vmem:[%s17303_s7 + $0x11f0] sm:$0xf] }
 0x734   : > { %7066 = vmatpush.bf16.msrb.mxu2 %v10655_v36  ;;  %v6400_v54 = vadd.f32 %v16823_v25, %v6386_v18  ;;  %v10847_v45 = vor.u32 %v11568_v58, %v10846_v32 }
 0x735   : > { %7078 = vmatpush.bf16.msra.mxu0 %v10667_v17  ;;  %6952 = vmatpush.bf16.msrb.mxu1 %v10579_v6 }
 0x737   : > { %6938 = vmatpush.bf16.msra.mxu3 %v10583_v41  ;;  %v10555_v41 = vor.u32 %v11505_v24, %v10552_v33  ;;  %v11549_v33 = vld [vmem:[%s17303_s7 + $0x1164] sm:$0xf] }
 0x738   : > { %7067 = vmatpush.bf16.msrb.mxu2 %v10647_v53 }
 0x739   : > { %v16877_v15 = vpop.f32.mrf.mxu1  ;;  %7079 = vmatpush.bf16.msra.mxu0 %v10659_v26  ;;  %6953 = vmatpush.bf16.msrb.mxu1 %v10571_v59  ;;  %v16984_v26 = vld [vmem:[%s17301_s5] ss:$0 sm:$0xff] }
 0x73a   : > { %v6388_v53 = vadd.f32 %v16872_v20, %v16877_v15  ;;  %v10768_v20 = vld [vmem:[%s17303_s7 + $0x1178] sm:$0xf0] }
 0x73b   : > { %v16891_v46 = vpop.f32.mrf.mxu0  ;;  %6939 = vmatpush.bf16.msra.mxu3 %v10575_v39  ;;  %v6414_v39 = vadd.f32 %v16790_v16, %v6400_v54  ;;  %v16990_v16 = vld [vmem:[%s17302_s6] ss:$0 sm:$0xff]  ;;  %v10771_v55 = vor.u32 %v11551_v19, %v10768_v20  ;;  %v11544_v19 = vld [vmem:[%s17303_s7 + $0x1134] sm:$0xf0]  ;;  %v11543_v20 = vld [vmem:[%s17303_s7 + $0x1134] sm:$0xf] }
 0x73c   : > { %7068 = vmatpush.bf16.msrb.mxu2 %v10639_v62  ;;  %v11567_v62 = vld [vmem:[%s17303_s7 + $0x11f4] sm:$0xf] }
 0x73d   : > { %7080 = vmatpush.bf16.msra.mxu0 %v10651_v56  ;;  %6954 = vmatpush.bf16.msrb.mxu1 %v10563_v4  ;;  %v10766_v56 = vld [vmem:[%s17303_s7 + $0x1170] sm:$0xf]  ;;  %v10851_v18 = vor.u32 %v11567_v62, %v10848_v31  ;;  %v10726_v31 = vld [vmem:[%s17303_s7 + $0x1120] sm:$0xf] }
 0x73f   : > { %6940 = vmatpush.bf16.msra.mxu3 %v10567_v22 }
 0x740   : > { %7069 = vmatpush.bf16.msrb.mxu2 %v10631_v52 }
 0x741   : > { %v6456_v29 = vpop.f32.mrf.mxu1  ;;  %7081 = vmatpush.bf16.msra.mxu0 %v10643_v60  ;;  %6955 = vmatpush.bf16.msrb.mxu1 %v10555_v41  ;;  %v10767_v60 = vor.u32 %v11552_v57, %v10766_v56  ;;  %v10760_v41 = vld [vmem:[%s17303_s7 + $0x1168] sm:$0xf0]  ;;  %v10734_v57 = vld [vmem:[%s17303_s7 + $0x1130] sm:$0xf] }
 0x742   : > { %v10763_v54 = vor.u32 %v11549_v33, %v10760_v41  ;;  %v10735_v58 = vor.u32 %v11544_v19, %v10734_v57  ;;  %v11576_v57 = vld [vmem:[%s17305_s9 + $0x38] sm:$0xff]  ;;  %v11575_v19 = vld [vmem:[%s17305_s9 + $0x30] sm:$0xff] }
 0x743   : > { %v6492_v61 = vpop.f32.mrf.mxu0  ;;  %6941 = vmatpush.bf16.msra.mxu3 %v10559_v9 }
 0x745   : > { %7082 = vmatpush.bf16.msra.mxu0 %v10635_v27 }
 0x747   : > { %v6442_v2 = vpop.f32.mrf.mxu3  ;;  %6942 = vmatpush.bf16.msra.mxu3 %v10551_v63  ;;  %v11550_v63 = vld [vmem:[%s17303_s7 + $0x1164] sm:$0xf0] }
 0x748   : > { %v6457_v47 = vadd.f32 %v6456_v29, %v6442_v2 }
 0x749   : > { %v6478_v21 = vpop.f32.mrf.mxu2  ;;  %v6458_v51 = vpop.f32.mrf.mxu1 }
 0x74a   : > { %v6461_v35 = vadd.f32 %v6457_v47, %v6414_v39  ;;  %v6493_v6 = vadd.f32 %v6492_v61, %v6478_v21  ;;  %v6402_v61 = vadd.f32 %v16891_v46, %v6388_v53  ;;  %v10758_v46 = vld [vmem:[%s17303_s7 + $0x1160] sm:$0xf]  ;;  %v11548_v47 = vld [vmem:[%s17303_s7 + $0x1154] sm:$0xf0]  ;;  %v11547_v39 = vld [vmem:[%s17303_s7 + $0x1154] sm:$0xf] }
 0x74b   : > { %v6494_v28 = vpop.f32.mrf.mxu0  ;;  %v11562_v53 = vld [vmem:[%s17303_s7 + $0x11c4] sm:$0xf0] }
 0x74c   : > { %v6463_v5 = vmul.f32 %v16984_v26, %v6461_v35  ;;  %v6416_v30 = vadd.f32 %v16861_v12, %v6402_v61  ;;  %v10750_v12 = vld [vmem:[%s17303_s7 + $0x1150] sm:$0xf]  ;;  %v10752_v35 = vld [vmem:[%s17303_s7 + $0x1158] sm:$0xf0]  ;;  %v11560_v61 = vld [vmem:[%s17303_s7 + $0x11b4] sm:$0xf0] }
 0x74e   : > { %v6465_v22 = vadd.f32 %v16990_v16, %v6463_v5  ;;  %v10832_v5 = vld [vmem:[%s17303_s7 + $0x11d8] sm:$0xf0] }
 0x74f   : > { %v6444_v17 = vpop.f32.mrf.mxu3 }
 0x750   : > { %v6467_v14 = vmax.f32 %v6465_v22, 0.0  ;;  %v6459_v3 = vadd.f32 %v6458_v51, %v6444_v17  ;;  %v11565_v17 = vld [vmem:[%s17303_s7 + $0x11e4] sm:$0xf]  ;;  %v10840_v51 = vld [vmem:[%s17303_s7 + $0x11e8] sm:$0xf0] }
 0x751   : > { %v6480_v10 = vpop.f32.mrf.mxu2 }
 0x752   : > { %v6495_v0 = vadd.f32 %v6494_v28, %v6480_v10  ;;  %v10759_v10 = vor.u32 %v11550_v63, %v10758_v46  ;;  %v6462_v28 = vadd.f32 %v6459_v3, %v6416_v30  ;;  %v11541_v3 = vld [vmem:[%s17303_s7 + $0x1124] sm:$0xf]  ;;  %v10728_v63 = vld [vmem:[%s17303_s7 + $0x1128] sm:$0xf0] }
 0x753   : > { %v11557_v30 = vld [vmem:[%s17303_s7 + $0x11a4] sm:$0xf] }
 0x754   : > { %v6464_v22 = vmul.f32 %v16984_v26, %v6462_v28 }
 0x757   : > { %v6520_v49 = vpop.f32.mrf.mxu3 }
 0x759   : > { %v6563_v36 = vpop.f32.mrf.mxu2 }
 0x75f   : > { %v6522_v15 = vpop.f32.mrf.mxu3 }
 0x761   : > { %v6506_v8 = vpop.f32.mrf.mxu1  ;;  %v6565_v9 = vpop.f32.mrf.mxu2 }
 0x762   : > { %v6507_v7 = vadd.f32 %v6506_v8, %v6493_v6  ;;  %v10839_v6 = vor.u32 %v11566_v40, %v10838_v48  ;;  %v10843_v8 = vor.u32 %v11565_v17, %v10840_v51  ;;  %v10731_v17 = vor.u32 %v11541_v3, %v10728_v63  ;;  %v10718_v51 = vld [vmem:[%s17303_s7 + $0x1110] sm:$0xf]  ;;  %v11569_v63 = vld [vmem:[%s17305_s9] sm:$0xff] }
 0x763   : > { %v6549_v38 = vpop.f32.mrf.mxu0 }
 0x764   : > { %v6521_v25 = vadd.f32 %v6520_v49, %v6507_v7  ;;  %v6564_v42 = vadd.f32 %v6563_v36, %v6549_v38  ;;  %v10830_v49 = vld [vmem:[%s17303_s7 + $0x11d0] sm:$0xf]  ;;  %v11564_v36 = vld [vmem:[%s17303_s7 + $0x11d4] sm:$0xf0]  ;;  %v11563_v38 = vld [vmem:[%s17303_s7 + $0x11d4] sm:$0xf] }
 0x766   : > { %v6568_v43 = vadd.f32 %v6564_v42, %v6521_v25  ;;  %v10751_v25 = vor.u32 %v11548_v47, %v10750_v12  ;;  %v10755_v42 = vor.u32 %v11547_v39, %v10752_v35  ;;  %v10798_v47 = vld [vmem:[%s17303_s7 + $0x1190] sm:$0xf]  ;;  %v11556_v39 = vld [vmem:[%s17303_s7 + $0x1194] sm:$0xf0] }
 0x768   : > { %v6570_v44 = vmul.f32 %v16984_v26, %v6568_v43  ;;  %v10742_v43 = vld [vmem:[%s17303_s7 + $0x1140] sm:$0xf] }
 0x769   : > { %v6508_v50 = vpop.f32.mrf.mxu1 }
 0x76a   : > { %v6572_v59 = vadd.f32 %v16990_v16, %v6570_v44  ;;  %v6509_v29 = vadd.f32 %v6508_v50, %v6495_v0  ;;  %v11546_v44 = vld [vmem:[%s17303_s7 + $0x1144] sm:$0xf0]  ;;  %v10744_v50 = vld [vmem:[%s17303_s7 + $0x1148] sm:$0xf0]  ;;  %v10835_v0 = vor.u32 %v11563_v38, %v10832_v5  ;;  %v11537_v5 = vld [vmem:[%s17303_s7 + $0x1104] sm:$0xf] }
 0x76b   : > { %v6551_v21 = vpop.f32.mrf.mxu0  ;;  %v11538_v38 = vld [vmem:[%s17303_s7 + $0x1104] sm:$0xf0] }
 0x76c   : > { %v6574_v2 = vmax.f32 %v6572_v59, 0.0  ;;  %v6523_v13 = vadd.f32 %v6522_v15, %v6509_v29  ;;  %v6566_v37 = vadd.f32 %v6565_v9, %v6551_v21  ;;  %v11545_v59 = vld [vmem:[%s17303_s7 + $0x1144] sm:$0xf]  ;;  %v10824_v29 = vld [vmem:[%s17303_s7 + $0x11c8] sm:$0xf0]  ;;  %v10743_v21 = vor.u32 %v11546_v44, %v10742_v43 }
 0x76d   : > { %v10747_v56 = vor.u32 %v11545_v59, %v10744_v50  ;;  %v10736_v15 = vld [vmem:[%s17303_s7 + $0x1138] sm:$0xf0]  ;;  %v11554_v59 = vld [vmem:[%s17303_s7 + $0x1184] sm:$0xf0]  ;;  %v11553_v50 = vld [vmem:[%s17303_s7 + $0x1184] sm:$0xf] }
 0x76e   : > { %v6576_v34 = vmax.f32 %v6467_v14, %v6574_v2  ;;  %v6569_v52 = vadd.f32 %v6566_v37, %v6523_v13  ;;  %v10831_v14 = vor.u32 %v11564_v36, %v10830_v49  ;;  %v11559_v13 = vld [vmem:[%s17303_s7 + $0x11b4] sm:$0xf]  ;;  %v10816_v37 = vld [vmem:[%s17303_s7 + $0x11b8] sm:$0xf0]  ;;  %v10739_v62 = vor.u32 %v11543_v20, %v10736_v15  ;;  %v10710_v36 = vld [vmem:[%s17303_s7 + $0x1100] sm:$0xf] }
 0x76f   : > { %v10819_v41 = vor.u32 %v11559_v13, %v10816_v37  ;;  %v11581_v20 = vld [vmem:[%s17305_s9 + $0x60] sm:$0xff]  ;;  %v11574_v15 = vld [vmem:[%s17305_s9 + $0x28] sm:$0xff] }
 0x770   : > { %v6579_v1 = vrot.slane %v6576_v34, 1  ;;  %v6571_v7 = vmul.f32 %v16984_v26, %v6569_v52  ;;  %v10822_v26 = vld [vmem:[%s17303_s7 + $0x11c0] sm:$0xf]  ;;  %v10808_v52 = vld [vmem:[%s17303_s7 + $0x11a8] sm:$0xf0] }
 0x771   : > { %v10823_v9 = vor.u32 %v11562_v53, %v10822_v26  ;;  %v10811_v28 = vor.u32 %v11557_v30, %v10808_v52  ;;  %v11578_v37 = vld [vmem:[%s17305_s9 + $0x48] sm:$0xff] }
 0x772   : > { %v6581_v4 = vmax.f32 %v6576_v34, %v6579_v1  ;;  %v6573_v2 = vadd.f32 %v16990_v16, %v6571_v7  ;;  %v11561_v34 = vld [vmem:[%s17303_s7 + $0x11c4] sm:$0xf]  ;;  %v6466_v1 = vadd.f32 %v16990_v16, %v6464_v22  ;;  %v10814_v16 = vld [vmem:[%s17303_s7 + $0x11b0] sm:$0xf]  ;;  %v10790_v22 = vld [vmem:[%s17303_s7 + $0x1180] sm:$0xf] }
 0x773   : > { %v10827_v32 = vor.u32 %v11561_v34, %v10824_v29  ;;  %v10815_v33 = vor.u32 %v11560_v61, %v10814_v16  ;;  %v11579_v16 = vld [vmem:[%s17305_s9 + $0x50] sm:$0xff] }
 0x774   : > { %v17025_v24 = vpack.c.bf16 %v6581_v4, %v6581_v4  ;;  %v6575_v4 = vmax.f32 %v6573_v2, 0.0  ;;  %v10791_v2 = vor.u32 %v11554_v59, %v10790_v22 }
 0x776   : > { %6688 = vmatmul.bf16.vlgmr.msrb.gmra.mxu3 %v17025_v24  ;;  %6701 = vmatmul.bf16.vlgmr.msra.gmra.mxu1 %v17025_v24  ;;  %v6726_v27 = vrot.slane %v17025_v24, 1  ;;  %v6853_v46 = vrot.slane %v17025_v24, 2  ;;  %v6980_v40 = vrot.slane %v17025_v24, 3  ;;  %v11540_v24 = vld [vmem:[%s17303_s7 + $0x1114] sm:$0xf0] }
 0x777   : > { %7192 = vmatpush.bf16.msrb.mxu3 %v10767_v60  ;;  %7205 = vmatpush.bf16.msra.mxu1 %v10771_v55  ;;  %v11542_v60 = vld [vmem:[%s17303_s7 + $0x1124] sm:$0xf0]  ;;  %v6468_v55 = vmax.f32 %v6466_v1, 0.0  ;;  %v10719_v49 = vor.u32 %v11540_v24, %v10718_v51 }
 0x778   : > { %6816 = vmatmul.bf16.vlgmr.msra.gmra.mxu2 %v6726_v27  ;;  %6829 = vmatmul.bf16.vlgmr.msrb.gmra.mxu0 %v6726_v27  ;;  %v10727_v27 = vor.u32 %v11542_v60, %v10726_v31  ;;  %v11582_v1 = vld [vmem:[%s17305_s9 + $0x68] sm:$0xff]  ;;  %v11577_v31 = vld [vmem:[%s17305_s9 + $0x40] sm:$0xff] }
 0x779   : > { %7320 = vmatpush.bf16.msra.mxu2 %v10847_v45  ;;  %7333 = vmatpush.bf16.msrb.mxu0 %v10851_v18  ;;  %v10806_v45 = vld [vmem:[%s17303_s7 + $0x11a0] sm:$0xf]  ;;  %v11558_v18 = vld [vmem:[%s17303_s7 + $0x11a4] sm:$0xf0]  ;;  %v6577_v48 = vmax.f32 %v6468_v55, %v6575_v4  ;;  %v11572_v4 = vld [vmem:[%s17305_s9 + $0x18] sm:$0xff] }
 0x77a   : > { %v10807_v12 = vor.u32 %v11558_v18, %v10806_v45 }
 0x77b   : > { %7193 = vmatpush.bf16.msrb.mxu3 %v10759_v10  ;;  %7206 = vmatpush.bf16.msra.mxu1 %v10763_v54  ;;  %v11539_v10 = vld [vmem:[%s17303_s7 + $0x1114] sm:$0xf]  ;;  %v10720_v54 = vld [vmem:[%s17303_s7 + $0x1118] sm:$0xf0]  ;;  %v7091_v35 = vrot.slane %v6577_v48, 1 }
 0x77c   : > { %v10723_v7 = vor.u32 %v11539_v10, %v10720_v54  ;;  %v7348_v54 = vld [vmem:[%s17304_s8] sm:$0x3] }
 0x77d   : > { %7321 = vmatpush.bf16.msra.mxu2 %v10839_v6  ;;  %7334 = vmatpush.bf16.msrb.mxu0 %v10843_v8  ;;  %v11555_v6 = vld [vmem:[%s17303_s7 + $0x1194] sm:$0xf]  ;;  %v10800_v8 = vld [vmem:[%s17303_s7 + $0x1198] sm:$0xf0]  ;;  %v7093_v44 = vmax.f32 %v6577_v48, %v7091_v35 }
 0x77e   : > { %v10803_v43 = vor.u32 %v11555_v6, %v10800_v8 }
 0x77f   : > { %7194 = vmatpush.bf16.msrb.mxu3 %v10751_v25  ;;  %7207 = vmatpush.bf16.msra.mxu1 %v10755_v42  ;;  %v10712_v25 = vld [vmem:[%s17303_s7 + $0x1108] sm:$0xf0]  ;;  %v10799_v42 = vor.u32 %v11556_v39, %v10798_v47  ;;  %v7094_v34 = vpack.c.bf16 %v7093_v44, %v7093_v44 }
 0x780   : > { %v10715_v26 = vor.u32 %v11537_v5, %v10712_v25  ;;  %v7350_v25 = vperm.slane %v7348_v54, 0 }
 0x781   : > { %7322 = vmatpush.bf16.msra.mxu2 %v10831_v14  ;;  %7335 = vmatpush.bf16.msrb.mxu0 %v10835_v0  ;;  %v10792_v14 = vld [vmem:[%s17303_s7 + $0x1188] sm:$0xf0]  ;;  %v10711_v0 = vor.u32 %v11538_v38, %v10710_v36  ;;  %v7238_v29 = vrot.slane %v7094_v34, 1 }
 0x782   : > { %v10795_v53 = vor.u32 %v11553_v50, %v10792_v14 }
 0x783   : > { %7195 = vmatpush.bf16.msrb.mxu3 %v10743_v21  ;;  %7208 = vmatpush.bf16.msra.mxu1 %v10747_v56  ;;  %v11584_v21 = vld [vmem:[%s17305_s9 + $0x78] sm:$0xff]  ;;  %v11583_v56 = vld [vmem:[%s17305_s9 + $0x70] sm:$0xff] }
 0x785   : > { %7323 = vmatpush.bf16.msra.mxu2 %v10823_v9  ;;  %7336 = vmatpush.bf16.msrb.mxu0 %v10827_v32  ;;  %v11580_v9 = vld [vmem:[%s17305_s9 + $0x58] sm:$0xff]  ;;  %v11573_v32 = vld [vmem:[%s17305_s9 + $0x20] sm:$0xff] }
 0x786   : > { %6943 = vmatmul.bf16.vlgmr.msra.gmra.mxu3 %v6853_v46  ;;  %6956 = vmatmul.bf16.vlgmr.msrb.gmra.mxu1 %v6853_v46  ;;  %v11570_v46 = vld [vmem:[%s17305_s9 + $0x8] sm:$0xff] }
 0x787   : > { %7196 = vmatpush.bf16.msrb.mxu3 %v10735_v58  ;;  %7209 = vmatpush.bf16.msra.mxu1 %v10739_v62  ;;  %v11571_v58 = vld [vmem:[%s17305_s9 + $0x10] sm:$0xff] }
 0x788   : > { %7070 = vmatmul.bf16.vlgmr.msrb.gmra.mxu2 %v6980_v40  ;;  %7083 = vmatmul.bf16.vlgmr.msra.gmra.mxu0 %v6980_v40 }
 0x789   : > { %7324 = vmatpush.bf16.msra.mxu2 %v10815_v33  ;;  %7337 = vmatpush.bf16.msrb.mxu0 %v10819_v41 }
 0x78b   : > { %7197 = vmatpush.bf16.msrb.mxu3 %v10727_v27  ;;  %7210 = vmatpush.bf16.msra.mxu1 %v10731_v17 }
 0x78d   : > { %7325 = vmatpush.bf16.msra.mxu2 %v10807_v12  ;;  %7338 = vmatpush.bf16.msrb.mxu0 %v10811_v28 }
 0x78f   : > { %7198 = vmatpush.bf16.msrb.mxu3 %v10719_v49  ;;  %7211 = vmatpush.bf16.msra.mxu1 %v10723_v7 }
 0x791   : > { %7326 = vmatpush.bf16.msra.mxu2 %v10799_v42  ;;  %7339 = vmatpush.bf16.msrb.mxu0 %v10803_v43 }
 0x793   : > { %7199 = vmatpush.bf16.msrb.mxu3 %v10711_v0  ;;  %7212 = vmatpush.bf16.msra.mxu1 %v10715_v26 }
 0x795   : > { %7327 = vmatpush.bf16.msra.mxu2 %v10791_v2  ;;  %7340 = vmatpush.bf16.msrb.mxu0 %v10795_v53 }
 0x796   : > { %7200 = vmatmul.bf16.vlgmr.msrb.gmra.mxu3 %v7094_v34  ;;  %7213 = vmatmul.bf16.vlgmr.msra.gmra.mxu1 %v7094_v34 }
 0x797   : > { %7502 = vmatpush.bf16.msrb.mxu1 %v11584_v21  ;;  %7489 = vmatpush.bf16.msra.mxu3 %v11576_v57 }
 0x798   : > { %7328 = vmatmul.bf16.vlgmr.msra.gmra.mxu2 %v7238_v29  ;;  %7341 = vmatmul.bf16.vlgmr.msrb.gmra.mxu0 %v7238_v29  ;;  %v7392_v29 = vld [vmem:[%s17306_s10] sm:$0x1] }
 0x79b   : > { %7503 = vmatpush.bf16.msrb.mxu1 %v11583_v56  ;;  %7490 = vmatpush.bf16.msra.mxu3 %v11575_v19 }
 0x79f   : > { %7504 = vmatpush.bf16.msrb.mxu1 %v11582_v1  ;;  %7491 = vmatpush.bf16.msra.mxu3 %v11574_v15 }
 0x7a3   : > { %7505 = vmatpush.bf16.msrb.mxu1 %v11581_v20  ;;  %7492 = vmatpush.bf16.msra.mxu3 %v11573_v32 }
 0x7a7   : > { %7506 = vmatpush.bf16.msrb.mxu1 %v11580_v9  ;;  %7493 = vmatpush.bf16.msra.mxu3 %v11572_v4 }
 0x7ab   : > { %7507 = vmatpush.bf16.msrb.mxu1 %v11579_v16  ;;  %7494 = vmatpush.bf16.msra.mxu3 %v11571_v58 }
 0x7af   : > { %7508 = vmatpush.bf16.msrb.mxu1 %v11578_v37  ;;  %7495 = vmatpush.bf16.msra.mxu3 %v11570_v46 }
 0x7b3   : > { %7509 = vmatpush.bf16.msrb.mxu1 %v11577_v31  ;;  %7496 = vmatpush.bf16.msra.mxu3 %v11569_v63 }
 0x7f3   : > { %v6702_v61 = vpop.f32.mrf.mxu1 }
 0x7f4   : > { %v6707_v48 = vadd.f32 %v6702_v61, %v16632_v23  ;;  %v7351_v23 = vperm.slane %v7348_v54, 1 }
 0x7f5   : > { %v6830_v13 = vpop.f32.mrf.mxu0 }
 0x7f6   : > { %v6835_v27 = vadd.f32 %v6830_v13, %v6707_v48 }
 0x7f9   : > { %v6689_v62 = vpop.f32.mrf.mxu3 }
 0x7fa   : > { %v6706_v51 = vadd.f32 %v6689_v62, %v16594_v11 }
 0x7fb   : > { %v6704_v60 = vpop.f32.mrf.mxu1  ;;  %v6817_v55 = vpop.f32.mrf.mxu2 }
 0x7fc   : > { %v6834_v12 = vadd.f32 %v6817_v55, %v6706_v51 }
 0x7fd   : > { %v6832_v3 = vpop.f32.mrf.mxu0 }
 0x801   : > { %v6691_v33 = vpop.f32.mrf.mxu3 }
 0x803   : > { %v6819_v41 = vpop.f32.mrf.mxu2  ;;  %v6957_v45 = vpop.f32.mrf.mxu1 }
 0x804   : > { %v6962_v24 = vadd.f32 %v6957_v45, %v6835_v27 }
 0x805   : > { %v7084_v18 = vpop.f32.mrf.mxu0 }
 0x806   : > { %v7089_v28 = vadd.f32 %v7084_v18, %v6962_v24 }
 0x809   : > { %v6944_v40 = vpop.f32.mrf.mxu3 }
 0x80a   : > { %v6961_v35 = vadd.f32 %v6944_v40, %v6834_v12 }
 0x80b   : > { %v6959_v30 = vpop.f32.mrf.mxu1  ;;  %v7071_v52 = vpop.f32.mrf.mxu2 }
 0x80c   : > { %v7088_v7 = vadd.f32 %v7071_v52, %v6961_v35 }
 0x80d   : > { %v7086_v17 = vpop.f32.mrf.mxu0 }
 0x811   : > { %v6946_v10 = vpop.f32.mrf.mxu3 }
 0x813   : > { %v7073_v47 = vpop.f32.mrf.mxu2  ;;  %v7214_v39 = vpop.f32.mrf.mxu1 }
 0x814   : > { %v7219_v6 = vadd.f32 %v7214_v39, %v7089_v28 }
 0x815   : > { %v7342_v8 = vpop.f32.mrf.mxu0 }
 0x816   : > { %v7347_v49 = vadd.f32 %v7342_v8, %v7219_v6 }
 0x818   : > { %v7355_v36 = vadd.f32 %v7351_v23, %v7347_v49 }
 0x819   : > { %v7201_v38 = vpop.f32.mrf.mxu3 }
 0x81a   : > { %v7357_v5 = vmax.f32 %v7355_v36, 0.0  ;;  %v7218_v11 = vadd.f32 %v7201_v38, %v7088_v7 }
 0x81b   : > { %v7216_v42 = vpop.f32.mrf.mxu1  ;;  %v7329_v43 = vpop.f32.mrf.mxu2 }
 0x81c   : > { %v7359_v22 = vpack.c.bf16 %v7357_v5, %v7357_v5  ;;  %v7346_v44 = vadd.f32 %v7329_v43, %v7218_v11 }
 0x81d   : > { %v7344_v59 = vpop.f32.mrf.mxu0 }
 0x81e   : > { %v7354_v50 = vadd.f32 %v7350_v25, %v7346_v44  ;;  %7510 = vmatmul.bf16.vlgmr.msrb.gmra.mxu1 %v7359_v22 }
 0x820   : > { %v7356_v14 = vmax.f32 %v7354_v50, 0.0 }
 0x821   : > { %v7203_v0 = vpop.f32.mrf.mxu3 }
 0x822   : > { %v7358_v26 = vpack.c.bf16 %v7356_v14, %v7356_v14 }
 0x823   : > { %v7331_v2 = vpop.f32.mrf.mxu2 }
 0x824   : > { %7497 = vmatmul.bf16.vlgmr.msra.gmra.mxu3 %v7358_v26 }
 0x89b   : > { %v7511_v53 = vpop.f32.mrf.mxu1 }
 0x8a3   : > { %v7513_v34 = vpop.f32.mrf.mxu1 }
 0x8a7   : > { %v7498_v21 = vpop.f32.mrf.mxu3 }
 0x8a8   : > { %v7499_v56 = vadd.f32 %v7498_v21, %v7392_v29 }
 0x8aa   : > { %v7512_v57 = vadd.f32 %v7511_v53, %v7499_v56 }
 0x8ac   : > { %7515 = vst [vmem:[%s17317_s12] sm:$0x1] %v7512_v57 }
 0x8ad   : > { %11864 = shalt.err (!%p11861_p7)
}
 0x8ae   : > { %11591 = dma.vmem_to_hbm [thread:$0]  (%p12009_p6), %s7528_s13, 16, %s7530_s30, %s7517_s0  }
 0x8af   : > { %v7500_v1 = vpop.f32.mrf.mxu3 }
 0x8b0 PF: > { %s7541_s22 = sand.u32 1, %s11891_s17   ;;  %p11594_p10 = pnand %p7605_p9, %p12013_p8 }
 0x8b1   : > { %s7542_s21 = scalar_lea.sflag [#allocation6], %s7541_s22 }
 0x8b2   : > { %p11595_p11 = pneg %p11594_p10 }
 0x8b4   : > { %11886 = dma.done.wait (%p11595_p11), %s7542_s21, 16  }
 0x8b5   : > { %11888 = vsyncadd (%p11595_p11), %s7542_s21, 4294967280  ;;  %p21_p12 = scmp.ge.s32.totalorder %s11994_s23, 4   ;;  %s17318_s17 = smov %s11895_s18 }
 0x8b6   : > { %s17319_s18 = smov %s11899_s19  ;;  %s17320_s19 = smov %s12007_s26 }
 0x8b7   : > { %s17321_s20 = smov %s11994_s23  ;;  %23 = sbr.rel (!%p21_p12) target bundleno = 6 (0x6), region = 227 }
 0x8bc   :  { %7547 = vsyncpa [#allocation6], 1 }
 0x8bd   :  { %7549 = vsyncpa [#allocation6 + $0x1], 1 }

</bundles_post_ra>
